<compile_context>
chip_gen: v5e
topology: v5e:2x2
jax: 0.10.0
libtpu: 0.0.40
codegen_flags: <defaults>
</compile_context>

<pallas_src>
import functools

import jax
import jax.numpy as jnp
from jax.experimental import pallas as pl
from jax.experimental.pallas import tpu as pltpu

NUM_CLASSES = 7           # from the surrounding training/eval code (num_classes = 7)
NPAD = 128                # lane-padded width of the merged-heads output
KSIZE = 3                 # 3x3 "same" conv in the backbone


# ---------------------------------------------------------------------------
# Fused kernel: in-kernel im2col conv + bias + ReLU + global-avg-pool + heads
# ---------------------------------------------------------------------------
def dmodel_fused_kernel(x_ref, wconv_ref, bconv_ref, whead_ref, bhead_ref,
                        out_ref):
    # x_ref     : (bb, H+2, W+2, Cin) compute-dtype zero-padded NHWC block
    # wconv_ref : (9*Cin, CPAD)       compute-dtype conv weight, rows (kh,kw,cin)
    # bconv_ref : (1, CPAD)           f32 conv bias (lane padded)
    # whead_ref : (CPAD, NPAD)        compute-dtype [w_log | w_g | 0-pad]
    # bhead_ref : (1, NPAD)           f32            [b_log | b_g | 0-pad]
    # out_ref   : (bb, NPAD)          f32            [log   | logit | 0-pad]
    bb, hp2, wp2, cin = x_ref.shape
    h, w = hp2 - 2, wp2 - 2
    hw = h * w
    cpad = wconv_ref.shape[1]

    wconv = wconv_ref[...]                                 # (9*Cin, CPAD)

    # 3x3 "same" conv as 9 accumulated MXU dots over shifted views of the
    # zero-padded input (in-kernel im2col; no 9x HBM expansion), fp32 acc.
    acc = None
    for kh in range(KSIZE):
        for kw in range(KSIZE):
            tap = kh * KSIZE + kw
            patch = x_ref[:, kh:kh + h, kw:kw + w, :].reshape(bb * hw, cin)
            part = jnp.dot(patch, wconv[tap * cin:(tap + 1) * cin, :],
                           preferred_element_type=jnp.float32)
            acc = part if acc is None else acc + part       # (bb*HW, CPAD) f32

    # Bias + ReLU kept in fp32 (no bf16 pack/unpack on the v5e VPU).
    acc = jnp.maximum(acc + bconv_ref[...], 0.0)

    # Global average pool: sublane reduce on the XLU (its slot is otherwise
    # idle here) instead of a pooling-matrix matmul / extra HBM traffic.
    v = jnp.sum(acc.reshape(bb, hw, cpad), axis=1) * (1.0 / hw)   # (bb, CPAD) f32

    # Both heads (mmodel classifier -> log, gmodel -> logit) in one matmul;
    # 128-lane-dense output -> one unmasked store.
    out_ref[...] = (jnp.dot(v.astype(whead_ref.dtype), whead_ref[...],
                            preferred_element_type=jnp.float32)
                    + bhead_ref[...])                              # (bb, NPAD)


# ---------------------------------------------------------------------------
# Batch-block sizing: fill a VMEM budget, keep megacore-friendly grids
# ---------------------------------------------------------------------------
def _pick_batch_block(batch, h, w, cpad, vmem_budget_bytes, compute_itemsize):
    # Per-image VMEM estimate: double-buffered padded-NHWC input tile (last
    # dim lane-pads to 128 in VMEM) + the fp32 conv accumulator + slack.
    sublane = 32 // compute_itemsize                   # 8 for f32, 16 for bf16
    in_tile = (h + 2) * pl.cdiv(w + 2, sublane) * sublane * 128 * compute_itemsize
    per_img = 2 * in_tile + h * w * cpad * 4 + (64 << 10)
    cap = max(1, int(vmem_budget_bytes) // per_img)
    # v7x megacore: keep >= 2 grid steps when the batch is big enough so the
    # "parallel" batch axis can shard across the two TensorCores.
    if batch >= 16:
        cap = min(cap, max(8, batch // 2))
    if cap >= batch:
        return batch
    bb = (cap // 8) * 8            # keep the (bb, 128) output block sublane-aligned
    while bb >= 8 and batch % bb:
        bb -= 8
    return bb if bb >= 8 else batch


# ---------------------------------------------------------------------------
# Wrapper: DModel.forward(img, test=False) -> (logit, log)
# ---------------------------------------------------------------------------
@functools.partial(jax.jit, static_argnames=("compute_dtype", "vmem_budget_bytes"))
def dmodel_forward(img_nchw, params, compute_dtype=jnp.bfloat16,
                   vmem_budget_bytes=24 << 20):
    """img_nchw: (B, Cin, H, W) float32 (NCHW, as in the PyTorch module).

    compute_dtype: dtype of the matmul operands. bf16 (default) is the native
    MXU fast path on v5e/v6e/v7x; fp32 accumulation is kept either way.
    Use jnp.float32 to track the PyTorch fp32 numerics more closely (note the
    TPU MXU still emulates fp32 matmuls with multi-pass bf16).
    """
    w_conv, b_conv, w_log, b_log, w_g, b_g = params
    batch, cin, h, w = img_nchw.shape
    cmid = w_conv.shape[0]                       # PyTorch Conv2d OIHW
    hw = h * w
    kc = KSIZE * KSIZE * cin
    cpad = pl.cdiv(cmid, 128) * 128              # lane-pad hidden dim
    nh = 2 * NUM_CLASSES                         # log ++ logit

    itemsize = jnp.dtype(compute_dtype).itemsize
    bb = _pick_batch_block(batch, h, w, cpad, vmem_budget_bytes, itemsize)
    nb = batch // bb

    # --- wrapper glue (1x input traffic, fused under this jit) --------------
    # NCHW -> NHWC and zero-pad H/W by 1 for the 3x3 "same" conv; the 9x
    # im2col expansion happens inside the kernel.
    x = jnp.transpose(img_nchw, (0, 2, 3, 1))
    x_pad = jnp.pad(x, ((0, 0), (1, 1), (1, 1), (0, 0))).astype(compute_dtype)

    # Conv weight: PyTorch OIHW (Cmid,Cin,3,3) -> im2col rows (kh,kw,cin) x Cmid.
    w_conv_2d = jnp.transpose(w_conv, (2, 3, 1, 0)).reshape(kc, cmid)
    w_conv_p = jnp.pad(w_conv_2d, ((0, 0), (0, cpad - cmid))).astype(compute_dtype)
    b_conv_p = jnp.pad(b_conv.reshape(1, cmid).astype(jnp.float32),
                       ((0, 0), (0, cpad - cmid)))

    # Merged heads: cols [0:7] = mmodel classifier (log), [7:14] = gmodel head
    # (logit), rest zero-padded to 128 lanes.  PyTorch Linear weights are (out,in).
    w_heads = jnp.concatenate([w_log.T, w_g.T], axis=1)             # (Cmid, 14)
    w_heads_p = jnp.pad(w_heads, ((0, cpad - cmid), (0, NPAD - nh))
                        ).astype(compute_dtype)
    b_heads = jnp.concatenate([b_log.reshape(1, -1), b_g.reshape(1, -1)],
                              axis=1).astype(jnp.float32)
    b_heads_p = jnp.pad(b_heads, ((0, 0), (0, NPAD - nh)))

    # --- cost estimate for the XLA scheduler --------------------------------
    flops = (2 * batch * hw * kc * cpad          # conv (9 accumulated dots)
             + batch * hw * cpad                 # global average pool reduce
             + 2 * batch * cpad * NPAD)          # merged heads matmul
    bytes_accessed = (x_pad.size * itemsize
                      + (w_conv_p.size + w_heads_p.size) * itemsize
                      + (b_conv_p.size + b_heads_p.size) * 4
                      + batch * NPAD * 4)
    cost = pl.CostEstimate(flops=flops, transcendentals=0,
                           bytes_accessed=bytes_accessed)

    # --- single fused pallas_call -------------------------------------------
    out = pl.pallas_call(
        dmodel_fused_kernel,
        out_shape=jax.ShapeDtypeStruct((batch, NPAD), jnp.float32),
        grid_spec=pltpu.PrefetchScalarGridSpec(
            num_scalar_prefetch=0,
            grid=(nb,),
            in_specs=[
                pl.BlockSpec((bb, h + 2, w + 2, cin),
                             lambda i: (i, 0, 0, 0)),          # padded NHWC tile
                pl.BlockSpec((kc, cpad), lambda i: (0, 0)),    # conv weight
                pl.BlockSpec((1, cpad), lambda i: (0, 0)),     # conv bias
                pl.BlockSpec((cpad, NPAD), lambda i: (0, 0)),  # merged head W
                pl.BlockSpec((1, NPAD), lambda i: (0, 0)),     # merged head b
            ],
            out_specs=pl.BlockSpec((bb, NPAD), lambda i: (i, 0)),
        ),
        compiler_params=pltpu.CompilerParams(
            dimension_semantics=("parallel",),
            # Above the scoped-VMEM defaults (16 MiB v5e / 32 MiB v6e,v7x),
            # below v7x's 64 MiB physical VMEM.
            vmem_limit_bytes=48 << 20,
        ),
        cost_estimate=cost,
    )(x_pad, w_conv_p, b_conv_p, w_heads_p, b_heads_p)

    log = out[:, :NUM_CLASSES]
    logit = out[:, NUM_CLASSES:nh]
    # DModel.forward(img, test=False) returns (logit, log).
    return logit, log


# ---------------------------------------------------------------------------
# Pure-JAX fp32 reference (mirrors DModel.forward(img, test=False))
# ---------------------------------------------------------------------------
def dmodel_reference(img_nchw, params):
    w_conv, b_conv, w_log, b_log, w_g, b_g = params
    b, cin, h, w = img_nchw.shape
    x = jnp.transpose(img_nchw, (0, 2, 3, 1)).astype(jnp.float32)
    xp = jnp.pad(x, ((0, 0), (1, 1), (1, 1), (0, 0)))
    wk = jnp.transpose(w_conv, (2, 3, 1, 0)).astype(jnp.float32)   # (3,3,Cin,Cmid)
    out = jnp.zeros((b, h, w, w_conv.shape[0]), jnp.float32)
    for kh in range(KSIZE):
        for kw in range(KSIZE):
            out = out + jnp.einsum('bhwc,co->bhwo',
                                   xp[:, kh:kh + h, kw:kw + w, :], wk[kh, kw])
    out = jnp.maximum(out + b_conv.reshape(1, 1, 1, -1), 0.0)
    v = jnp.mean(out, axis=(1, 2))
    log = v @ w_log.T + b_log
    logit = v @ w_g.T + b_g
    return logit, log


def init_params(key, cin=4, cmid=32):
    """Parameters in native PyTorch layouts (Conv2d OIHW, Linear (out,in))."""
    k = jax.random.split(key, 6)
    w_conv = jax.random.normal(k[0], (cmid, cin, KSIZE, KSIZE), jnp.float32) * 0.1
    b_conv = jax.random.normal(k[1], (cmid,), jnp.float32) * 0.01
    w_log = jax.random.normal(k[2], (NUM_CLASSES, cmid), jnp.float32) * 0.1
    b_log = jax.random.normal(k[3], (NUM_CLASSES,), jnp.float32) * 0.01
    w_g = jax.random.normal(k[4], (NUM_CLASSES, cmid), jnp.float32) * 0.1
    b_g = jax.random.normal(k[5], (NUM_CLASSES,), jnp.float32) * 0.01
    return (w_conv, b_conv, w_log, b_log, w_g, b_g)


if __name__ == "__main__":
    key = jax.random.PRNGKey(0)
    k_img, k_par = jax.random.split(key)

    B, Cin, H, W = 2, 4, 16, 16
    img = jax.random.normal(k_img, (B, Cin, H, W), jnp.float32)  # NCHW like PyTorch
    params = init_params(k_par, cin=Cin, cmid=32)

    logit, log = dmodel_forward(img, params)
    jax.block_until_ready((logit, log))

    assert logit.shape == (B, NUM_CLASSES) and log.shape == (B, NUM_CLASSES)
    assert bool(jnp.all(jnp.isfinite(logit))) and bool(jnp.all(jnp.isfinite(log)))

    # Loose-tolerance check vs. the fp32 reference (kernel matmuls run in bf16).
    logit_ref, log_ref = dmodel_reference(img, params)
    err = max(float(jnp.max(jnp.abs(logit - logit_ref))),
              float(jnp.max(jnp.abs(log - log_ref))))
    assert err < 5e-2, f"kernel/reference mismatch: max|diff|={err}"

    print("KERNEL_OK")
</pallas_src>

<mosaic_0001>
module attributes {stable_mosaic.version = 11 : i64} {
  func.func @dmodel_fused_kernel(%arg0: i32, %arg1: memref<2x18x18x4xbf16, #tpu.memory_space<vmem>>, %arg2: memref<36x128xbf16, #tpu.memory_space<vmem>>, %arg3: memref<1x128xf32, #tpu.memory_space<vmem>>, %arg4: memref<128x128xbf16, #tpu.memory_space<vmem>>, %arg5: memref<1x128xf32, #tpu.memory_space<vmem>>, %arg6: memref<2x128xf32, #tpu.memory_space<vmem>>) attributes {dimension_semantics = [#tpu.dimension_semantics<parallel>], iteration_bounds = array<i64: 1>, scalar_prefetch = 0 : i64, scratch_operands = 0 : i64, tpu.core_type = #tpu.core_type<tc>, window_params = [{transform_indices = @transform_0, window_bounds = array<i64: 2, 18, 18, 4>}, {pipeline_mode = #tpu.pipeline_mode<synchronous>, transform_indices = @transform_1, window_bounds = array<i64: 36, 128>}, {pipeline_mode = #tpu.pipeline_mode<synchronous>, transform_indices = @transform_2, window_bounds = array<i64: 1, 128>}, {pipeline_mode = #tpu.pipeline_mode<synchronous>, transform_indices = @transform_3, window_bounds = array<i64: 128, 128>}, {pipeline_mode = #tpu.pipeline_mode<synchronous>, transform_indices = @transform_4, window_bounds = array<i64: 1, 128>}, {transform_indices = @transform_5, window_bounds = array<i64: 2, 128>}]} {
    %c0 = arith.constant 0 : index
    %c0_0 = arith.constant 0 : index
    %0 = vector.load %arg2[%c0, %c0_0] : memref<36x128xbf16, #tpu.memory_space<vmem>>, vector<36x128xbf16>
    %c0_1 = arith.constant 0 : index
    %c0_2 = arith.constant 0 : index
    %c0_3 = arith.constant 0 : index
    %c0_4 = arith.constant 0 : index
    %1 = vector.load %arg1[%c0_1, %c0_2, %c0_3, %c0_4] : memref<2x18x18x4xbf16, #tpu.memory_space<vmem>>, vector<2x16x16x4xbf16>
    %2 = vector.shape_cast %1 : vector<2x16x16x4xbf16> to vector<512x4xbf16>
    %3 = vector.extract_strided_slice %0 {offsets = [0, 0], sizes = [4, 128], strides = [1, 1]} : vector<36x128xbf16> to vector<4x128xbf16>
    %cst = arith.constant dense<0.000000e+00> : vector<512x128xf32>
    %4 = tpu.matmul %2, %3, %cst {dimension_numbers = #tpu.dot_dimension_numbers<[1], [0], [0], [1], [0, 0, 1, 1], [], []>} : vector<512x4xbf16>, vector<4x128xbf16>, vector<512x128xf32> -> vector<512x128xf32>
    %c0_5 = arith.constant 0 : index
    %c0_6 = arith.constant 0 : index
    %c1 = arith.constant 1 : index
    %c0_7 = arith.constant 0 : index
    %5 = vector.load %arg1[%c0_5, %c0_6, %c1, %c0_7] : memref<2x18x18x4xbf16, #tpu.memory_space<vmem>>, vector<2x16x16x4xbf16>
    %6 = vector.shape_cast %5 : vector<2x16x16x4xbf16> to vector<512x4xbf16>
    %7 = vector.extract_strided_slice %0 {offsets = [4, 0], sizes = [4, 128], strides = [1, 1]} : vector<36x128xbf16> to vector<4x128xbf16>
    %cst_8 = arith.constant dense<0.000000e+00> : vector<512x128xf32>
    %8 = tpu.matmul %6, %7, %cst_8 {dimension_numbers = #tpu.dot_dimension_numbers<[1], [0], [0], [1], [0, 0, 1, 1], [], []>} : vector<512x4xbf16>, vector<4x128xbf16>, vector<512x128xf32> -> vector<512x128xf32>
    %9 = arith.addf %4, %8 : vector<512x128xf32>
    %c0_9 = arith.constant 0 : index
    %c0_10 = arith.constant 0 : index
    %c2 = arith.constant 2 : index
    %c0_11 = arith.constant 0 : index
    %10 = vector.load %arg1[%c0_9, %c0_10, %c2, %c0_11] : memref<2x18x18x4xbf16, #tpu.memory_space<vmem>>, vector<2x16x16x4xbf16>
    %11 = vector.shape_cast %10 : vector<2x16x16x4xbf16> to vector<512x4xbf16>
    %12 = vector.extract_strided_slice %0 {offsets = [8, 0], sizes = [4, 128], strides = [1, 1]} : vector<36x128xbf16> to vector<4x128xbf16>
    %cst_12 = arith.constant dense<0.000000e+00> : vector<512x128xf32>
    %13 = tpu.matmul %11, %12, %cst_12 {dimension_numbers = #tpu.dot_dimension_numbers<[1], [0], [0], [1], [0, 0, 1, 1], [], []>} : vector<512x4xbf16>, vector<4x128xbf16>, vector<512x128xf32> -> vector<512x128xf32>
    %14 = arith.addf %9, %13 : vector<512x128xf32>
    %c0_13 = arith.constant 0 : index
    %c1_14 = arith.constant 1 : index
    %c0_15 = arith.constant 0 : index
    %c0_16 = arith.constant 0 : index
    %15 = vector.load %arg1[%c0_13, %c1_14, %c0_15, %c0_16] : memref<2x18x18x4xbf16, #tpu.memory_space<vmem>>, vector<2x16x16x4xbf16>
    %16 = vector.shape_cast %15 : vector<2x16x16x4xbf16> to vector<512x4xbf16>
    %17 = vector.extract_strided_slice %0 {offsets = [12, 0], sizes = [4, 128], strides = [1, 1]} : vector<36x128xbf16> to vector<4x128xbf16>
    %cst_17 = arith.constant dense<0.000000e+00> : vector<512x128xf32>
    %18 = tpu.matmul %16, %17, %cst_17 {dimension_numbers = #tpu.dot_dimension_numbers<[1], [0], [0], [1], [0, 0, 1, 1], [], []>} : vector<512x4xbf16>, vector<4x128xbf16>, vector<512x128xf32> -> vector<512x128xf32>
    %19 = arith.addf %14, %18 : vector<512x128xf32>
    %c0_18 = arith.constant 0 : index
    %c1_19 = arith.constant 1 : index
    %c1_20 = arith.constant 1 : index
    %c0_21 = arith.constant 0 : index
    %20 = vector.load %arg1[%c0_18, %c1_19, %c1_20, %c0_21] : memref<2x18x18x4xbf16, #tpu.memory_space<vmem>>, vector<2x16x16x4xbf16>
    %21 = vector.shape_cast %20 : vector<2x16x16x4xbf16> to vector<512x4xbf16>
    %22 = vector.extract_strided_slice %0 {offsets = [16, 0], sizes = [4, 128], strides = [1, 1]} : vector<36x128xbf16> to vector<4x128xbf16>
    %cst_22 = arith.constant dense<0.000000e+00> : vector<512x128xf32>
    %23 = tpu.matmul %21, %22, %cst_22 {dimension_numbers = #tpu.dot_dimension_numbers<[1], [0], [0], [1], [0, 0, 1, 1], [], []>} : vector<512x4xbf16>, vector<4x128xbf16>, vector<512x128xf32> -> vector<512x128xf32>
    %24 = arith.addf %19, %23 : vector<512x128xf32>
    %c0_23 = arith.constant 0 : index
    %c1_24 = arith.constant 1 : index
    %c2_25 = arith.constant 2 : index
    %c0_26 = arith.constant 0 : index
    %25 = vector.load %arg1[%c0_23, %c1_24, %c2_25, %c0_26] : memref<2x18x18x4xbf16, #tpu.memory_space<vmem>>, vector<2x16x16x4xbf16>
    %26 = vector.shape_cast %25 : vector<2x16x16x4xbf16> to vector<512x4xbf16>
    %27 = vector.extract_strided_slice %0 {offsets = [20, 0], sizes = [4, 128], strides = [1, 1]} : vector<36x128xbf16> to vector<4x128xbf16>
    %cst_27 = arith.constant dense<0.000000e+00> : vector<512x128xf32>
    %28 = tpu.matmul %26, %27, %cst_27 {dimension_numbers = #tpu.dot_dimension_numbers<[1], [0], [0], [1], [0, 0, 1, 1], [], []>} : vector<512x4xbf16>, vector<4x128xbf16>, vector<512x128xf32> -> vector<512x128xf32>
    %29 = arith.addf %24, %28 : vector<512x128xf32>
    %c0_28 = arith.constant 0 : index
    %c2_29 = arith.constant 2 : index
    %c0_30 = arith.constant 0 : index
    %c0_31 = arith.constant 0 : index
    %30 = vector.load %arg1[%c0_28, %c2_29, %c0_30, %c0_31] : memref<2x18x18x4xbf16, #tpu.memory_space<vmem>>, vector<2x16x16x4xbf16>
    %31 = vector.shape_cast %30 : vector<2x16x16x4xbf16> to vector<512x4xbf16>
    %32 = vector.extract_strided_slice %0 {offsets = [24, 0], sizes = [4, 128], strides = [1, 1]} : vector<36x128xbf16> to vector<4x128xbf16>
    %cst_32 = arith.constant dense<0.000000e+00> : vector<512x128xf32>
    %33 = tpu.matmul %31, %32, %cst_32 {dimension_numbers = #tpu.dot_dimension_numbers<[1], [0], [0], [1], [0, 0, 1, 1], [], []>} : vector<512x4xbf16>, vector<4x128xbf16>, vector<512x128xf32> -> vector<512x128xf32>
    %34 = arith.addf %29, %33 : vector<512x128xf32>
    %c0_33 = arith.constant 0 : index
    %c2_34 = arith.constant 2 : index
    %c1_35 = arith.constant 1 : index
    %c0_36 = arith.constant 0 : index
    %35 = vector.load %arg1[%c0_33, %c2_34, %c1_35, %c0_36] : memref<2x18x18x4xbf16, #tpu.memory_space<vmem>>, vector<2x16x16x4xbf16>
    %36 = vector.shape_cast %35 : vector<2x16x16x4xbf16> to vector<512x4xbf16>
    %37 = vector.extract_strided_slice %0 {offsets = [28, 0], sizes = [4, 128], strides = [1, 1]} : vector<36x128xbf16> to vector<4x128xbf16>
    %cst_37 = arith.constant dense<0.000000e+00> : vector<512x128xf32>
    %38 = tpu.matmul %36, %37, %cst_37 {dimension_numbers = #tpu.dot_dimension_numbers<[1], [0], [0], [1], [0, 0, 1, 1], [], []>} : vector<512x4xbf16>, vector<4x128xbf16>, vector<512x128xf32> -> vector<512x128xf32>
    %39 = arith.addf %34, %38 : vector<512x128xf32>
    %c0_38 = arith.constant 0 : index
    %c2_39 = arith.constant 2 : index
    %c2_40 = arith.constant 2 : index
    %c0_41 = arith.constant 0 : index
    %40 = vector.load %arg1[%c0_38, %c2_39, %c2_40, %c0_41] : memref<2x18x18x4xbf16, #tpu.memory_space<vmem>>, vector<2x16x16x4xbf16>
    %41 = vector.shape_cast %40 : vector<2x16x16x4xbf16> to vector<512x4xbf16>
    %42 = vector.extract_strided_slice %0 {offsets = [32, 0], sizes = [4, 128], strides = [1, 1]} : vector<36x128xbf16> to vector<4x128xbf16>
    %cst_42 = arith.constant dense<0.000000e+00> : vector<512x128xf32>
    %43 = tpu.matmul %41, %42, %cst_42 {dimension_numbers = #tpu.dot_dimension_numbers<[1], [0], [0], [1], [0, 0, 1, 1], [], []>} : vector<512x4xbf16>, vector<4x128xbf16>, vector<512x128xf32> -> vector<512x128xf32>
    %44 = arith.addf %39, %43 : vector<512x128xf32>
    %c0_43 = arith.constant 0 : index
    %c0_44 = arith.constant 0 : index
    %45 = vector.load %arg3[%c0_43, %c0_44] : memref<1x128xf32, #tpu.memory_space<vmem>>, vector<1x128xf32>
    %46 = vector.broadcast %45 : vector<1x128xf32> to vector<512x128xf32>
    %47 = arith.addf %44, %46 : vector<512x128xf32>
    %cst_45 = arith.constant 0.000000e+00 : f32
    %48 = vector.broadcast %cst_45 : f32 to vector<512x128xf32>
    %49 = arith.maximumf %47, %48 : vector<512x128xf32>
    %50 = vector.shape_cast %49 : vector<512x128xf32> to vector<2x256x128xf32>
    %cst_46 = arith.constant dense<0.000000e+00> : vector<2x128xf32>
    %51 = vector.multi_reduction <add>, %50, %cst_46 [1] : vector<2x256x128xf32> to vector<2x128xf32>
    %cst_47 = arith.constant 3.906250e-03 : f32
    %52 = vector.broadcast %cst_47 : f32 to vector<2x128xf32>
    %53 = arith.mulf %51, %52 : vector<2x128xf32>
    %54 = arith.truncf %53 : vector<2x128xf32> to vector<2x128xbf16>
    %c0_48 = arith.constant 0 : index
    %c0_49 = arith.constant 0 : index
    %55 = vector.load %arg4[%c0_48, %c0_49] : memref<128x128xbf16, #tpu.memory_space<vmem>>, vector<128x128xbf16>
    %cst_50 = arith.constant dense<0.000000e+00> : vector<2x128xf32>
    %56 = tpu.matmul %54, %55, %cst_50 {dimension_numbers = #tpu.dot_dimension_numbers<[1], [0], [0], [1], [0, 0, 1, 1], [], []>} : vector<2x128xbf16>, vector<128x128xbf16>, vector<2x128xf32> -> vector<2x128xf32>
    %c0_51 = arith.constant 0 : index
    %c0_52 = arith.constant 0 : index
    %57 = vector.load %arg5[%c0_51, %c0_52] : memref<1x128xf32, #tpu.memory_space<vmem>>, vector<1x128xf32>
    %58 = vector.broadcast %57 : vector<1x128xf32> to vector<2x128xf32>
    %59 = arith.addf %56, %58 : vector<2x128xf32>
    %c0_53 = arith.constant 0 : index
    %c0_54 = arith.constant 0 : index
    %60 = vector.load %arg6[%c0_53, %c0_54] : memref<2x128xf32, #tpu.memory_space<vmem>>, vector<2x128xf32>
    tpu.vector_store %arg6[%c0_53, %c0_54], %59 {strides = array<i32>} : memref<2x128xf32, #tpu.memory_space<vmem>>, vector<2x128xf32>,
    return
  }
  func.func @transform_0(%arg0: i32) -> (i32, i32, i32, i32) {
    %c0_i32 = arith.constant 0 : i32
    %c0_i32_0 = arith.constant 0 : i32
    %c0_i32_1 = arith.constant 0 : i32
    %c0_i32_2 = arith.constant 0 : i32
    return %arg0, %c0_i32, %c0_i32_0, %c0_i32_1 : i32, i32, i32, i32
  }
  func.func @transform_1(%arg0: i32) -> (i32, i32) {
    %c0_i32 = arith.constant 0 : i32
    %c0_i32_0 = arith.constant 0 : i32
    %c0_i32_1 = arith.constant 0 : i32
    return %c0_i32, %c0_i32_0 : i32, i32
  }
  func.func @transform_2(%arg0: i32) -> (i32, i32) {
    %c0_i32 = arith.constant 0 : i32
    %c0_i32_0 = arith.constant 0 : i32
    %c0_i32_1 = arith.constant 0 : i32
    return %c0_i32, %c0_i32_0 : i32, i32
  }
  func.func @transform_3(%arg0: i32) -> (i32, i32) {
    %c0_i32 = arith.constant 0 : i32
    %c0_i32_0 = arith.constant 0 : i32
    %c0_i32_1 = arith.constant 0 : i32
    return %c0_i32, %c0_i32_0 : i32, i32
  }
  func.func @transform_4(%arg0: i32) -> (i32, i32) {
    %c0_i32 = arith.constant 0 : i32
    %c0_i32_0 = arith.constant 0 : i32
    %c0_i32_1 = arith.constant 0 : i32
    return %c0_i32, %c0_i32_0 : i32, i32
  }
  func.func @transform_5(%arg0: i32) -> (i32, i32) {
    %c0_i32 = arith.constant 0 : i32
    %c0_i32_0 = arith.constant 0 : i32
    return %arg0, %c0_i32 : i32, i32
  }
}

</mosaic_0001>

<bundles_post_ra>
// kernel: dmodel_forward.1
= control target key start
LH: loop header
LB: loop body
LE: loop exit
PB: predicated region body
PF: predicated region fallthrough
CT: control target
= control target key end

     0   :  { %vm1090_vm0 = vcmask 1041408   ;;  %vm122_vm1 = vsmask.f32 3328  ;;  %vm123_vm2 = vsmask.f32 7440  ;;  %vm993_vm4 = vcmask 31744   ;;  %s13614_s1 = inlined_call_operand.vmem [shape: bf16[36,128], index: 1, kind: input, shape index: {}]   ;;  %s13615_s0 = inlined_call_operand.vmem [shape: bf16[2,18,18,4], index: 0, kind: input, shape index: {}]   ;;  %s13616_s2 = inlined_call_operand.vmem [shape: f32[1,128], index: 2, kind: input, shape index: {}]   ;;  %s13617_s3 = inlined_call_operand.vmem [shape: bf16[128,128], index: 3, kind: input, shape index: {}]   ;;  %s13618_s4 = inlined_call_operand.vmem [shape: f32[1,128], index: 4, kind: input, shape index: {}]   ;;  %s13619_s5 = inlined_call_operand.vmem [shape: f32[2,128], index: 5, kind: output, shape index: {}]  }
   0x1   :  { %v9466_v0 = vld [vmem:[%s13614_s1] sm:$0xf]  ;;  %v44_v1 = vld [vmem:[%s13615_s0 + $0x6c] sm:$0xf]  ;;  %v45_v2 = vld [vmem:[%s13615_s0 + $0x70] sm:$0xf] }
   0x2   :  { %v990_v3 = vunpack.c.l.b16 %v9466_v0  ;;  %v99_v4 = vld [vmem:[%s13615_s0 + $0x74] sm:$0x1]  ;;  %v342_v5 = vshrl.u32 %v44_v1, 16  ;;  %v345_v6 = vshll.u32 %v44_v1, 16  ;;  %v351_v7 = vshll.u32 %v45_v2, 16  ;;  %vm9489_vm3 = vmor %vm122_vm1, %vm123_vm2 }
   0x3   :  { %v355_v8 = vshrl.u32 %v45_v2, 16  ;;  %v361_v9 = vshll.u32 %v99_v4, 16  ;;  %v54_v10 = vld [vmem:[%s13615_s0 + $0xa8] sm:$0xf]  ;;  %v55_v15 = vld [vmem:[%s13615_s0 + $0xac] sm:$0xf] }
   0x4   :  { %v991_v11 = vpack.c.b16 %v990_v3, %v990_v3  ;;  %v344_v12 = vrot.slane %v342_v5, 4  ;;  %v347_v13 = vrot.slane %v345_v6, 5  ;;  %v353_v14 = vrot.slane %v351_v7, 5  ;;  %v104_v18 = vld [vmem:[%s13615_s0 + $0xb0] sm:$0x1] }
   0x5   :  { %v357_v16 = vrot.slane %v355_v8, 4  ;;  %v363_v17 = vrot.slane %v361_v9, 5  ;;  %v462_v19 = vshrl.u32 %v54_v10, 16  ;;  %v465_v20 = vshll.u32 %v54_v10, 16  ;;  %v72_v30 = vld [vmem:[%s13615_s0 + $0x12c] sm:$0xf] }
   0x6   :  { %v992_v21 = vrot.slane %v991_v11, 2  ;;  %v348_v22 = vor.u32 %v347_v13, %v344_v12  ;;  %v471_v23 = vshll.u32 %v55_v15, 16  ;;  %v475_v24 = vshrl.u32 %v55_v15, 16  ;;  %v73_v35 = vld [vmem:[%s13615_s0 + $0x130] sm:$0xf] }
   0x7   :  { %v358_v26 = vor.u32 %v357_v16, %v353_v14  ;;  %v464_v27 = vrot.slane %v462_v19, 4  ;;  %v467_v28 = vrot.slane %v465_v20, 5  ;;  %v481_v29 = vshll.u32 %v104_v18, 16  ;;  %v113_v41 = vld [vmem:[%s13615_s0 + $0x134] sm:$0x1] }
   0x8   :  { %v1092_v31 = vsel %vm1090_vm0, %v992_v21, 0  ;;  %v349_v32 = vrot.slane %v348_v22, 4  ;;  %v473_v33 = vrot.slane %v471_v23, 5  ;;  %v477_v34 = vrot.slane %v475_v24, 4  ;;  %v22_v52 = vld [vmem:[%s13614_s1 + $0x4] sm:$0xf] }
   0x9   :  { %9304 = vmatpush.bf16.msra.mxu1 %v1092_v31  ;;  %9305 = vmatpush.bf16.msra.mxu2 %v1092_v31  ;;  %v359_v36 = vrot.slane %v358_v26, 4  ;;  %v468_v37 = vor.u32 %v467_v28, %v464_v27  ;;  %v483_v38 = vrot.slane %v481_v29, 5  ;;  %v678_v42 = vshrl.u32 %v72_v30, 16  ;;  %v26_v57 = vld [vmem:[%s13615_s0] sm:$0xf] }
   0xa   :  { %9306 = vmatpush.bf16.msra.mxu3 %v1092_v31  ;;  %1101 = vmatpush.bf16.msra.mxu0 %v1092_v31  ;;  %v354_v39 = vsel %vm9489_vm3, %v349_v32, %v353_v14  ;;  %v478_v40 = vor.u32 %v477_v34, %v473_v33  ;;  %v681_v43 = vshll.u32 %v72_v30, 16  ;;  %v687_v47 = vshll.u32 %v73_v35, 16  ;;  %v27_v62 = vld [vmem:[%s13615_s0 + $0x4] sm:$0xf]  ;;  %v90_v3 = vld [vmem:[%s13615_s0 + $0x8] sm:$0x1] }
   0xb   :  { %v364_v44 = vsel %vm9489_vm3, %v359_v36, %v363_v17  ;;  %v911_v45 = vunpack.c.l.b16 %v354_v39  ;;  %v469_v46 = vrot.slane %v468_v37, 4  ;;  %v680_v50 = vrot.slane %v678_v42, 4  ;;  %v23_v16 = vld [vmem:[%s13614_s1 + $0x8] sm:$0xf]  ;;  %v46_v20 = vld [vmem:[%s13615_s0 + $0x78] sm:$0xf] }
   0xc   :  { %v912_v48 = vunpack.c.l.b16 %v364_v44  ;;  %v479_v49 = vrot.slane %v478_v40, 4  ;;  %v683_v51 = vrot.slane %v681_v43, 5  ;;  %v689_v54 = vrot.slane %v687_v47, 5  ;;  %v47_v24 = vld [vmem:[%s13615_s0 + $0x7c] sm:$0xf] }
   0xd   :  { %v474_v53 = vsel %vm9489_vm3, %v469_v46, %v473_v33  ;;  %v691_v55 = vshrl.u32 %v73_v35, 16  ;;  %v697_v56 = vshll.u32 %v113_v41, 16  ;;  %v2207_v5 = vsel %vm1090_vm0, %v22_v52, 0  ;;  %v100_v35 = vld [vmem:[%s13615_s0 + $0x80] sm:$0x1] }
   0xe   :  { %v966_v58 = vpack.c.b16 %v912_v48, %v911_v45  ;;  %v484_v59 = vsel %vm9489_vm3, %v479_v49, %v483_v38  ;;  %v921_v60 = vunpack.c.l.b16 %v474_v53  ;;  %v684_v61 = vor.u32 %v683_v51, %v680_v50  ;;  %2216 = vmatpush.bf16.msrb.mxu2 %v2207_v5  ;;  %v56_v42 = vld [vmem:[%s13615_s0 + $0xb4] sm:$0xf]  ;;  %v57_v46 = vld [vmem:[%s13615_s0 + $0xb8] sm:$0xf]  ;;  %v105_v53 = vld [vmem:[%s13615_s0 + $0xbc] sm:$0x1] }
   0xf   :  { %v922_v63 = vunpack.c.l.b16 %v484_v59  ;;  %v693_v1 = vrot.slane %v691_v55, 4  ;;  %v699_v2 = vrot.slane %v697_v56, 5  ;;  %v2668_v6 = vunpack.c.l.b16 %v22_v52  ;;  %v74_v59 = vld [vmem:[%s13615_s0 + $0x138] sm:$0xf]  ;;  %v75_v5 = vld [vmem:[%s13615_s0 + $0x13c] sm:$0xf] }
  0x10   :  { %8025 = vmatmul.msk.bf16.vlgmr.msra.gmra.mxu1 %vm993_vm4, %v966_v58  ;;  %v685_v4 = vrot.slane %v684_v61, 4  ;;  %v126_v7 = vshrl.u32 %v26_v57, 16  ;;  %v129_v10 = vshll.u32 %v26_v57, 16  ;;  %v135_v11 = vshll.u32 %v27_v62, 16 }
  0x11   :  { %v971_v8 = vpack.c.b16 %v922_v63, %v921_v60  ;;  %v694_v9 = vor.u32 %v693_v1, %v689_v54  ;;  %v139_v14 = vshrl.u32 %v27_v62, 16  ;;  %v145_v15 = vshll.u32 %v90_v3, 16 }
  0x12   :  { %v690_v12 = vsel %vm9489_vm3, %v685_v4, %v689_v54  ;;  %v128_v13 = vrot.slane %v126_v7, 4  ;;  %v131_v18 = vrot.slane %v129_v10, 5  ;;  %v137_v19 = vrot.slane %v135_v11, 5 }
  0x13   :  { %8030 = vmatmul.msk.bf16.vlgmr.msra.gmra.mxu2 %vm993_vm4, %v971_v8  ;;  %v695_v17 = vrot.slane %v694_v9, 4  ;;  %v939_v21 = vunpack.c.l.b16 %v690_v12  ;;  %v141_v22 = vrot.slane %v139_v14, 4  ;;  %v2669_v23 = vpack.c.b16 %v2668_v6, %v2668_v6  ;;  %v114_v8 = vld [vmem:[%s13615_s0 + $0x140] sm:$0x1] }
  0x14   :  { %v132_v27 = vor.u32 %v131_v18, %v128_v13  ;;  %v147_v28 = vrot.slane %v145_v15, 5  ;;  %v4060_v29 = vsel %vm1090_vm0, %v23_v16, 0  ;;  %v366_v33 = vshrl.u32 %v46_v20, 16 }
  0x15   :  { %v700_v26 = vsel %vm9489_vm3, %v695_v17, %v699_v2  ;;  %v142_v31 = vor.u32 %v141_v22, %v137_v19  ;;  %v2670_v32 = vrot.slane %v2669_v23, 2  ;;  %4069 = vmatpush.bf16.msrb.mxu0 %v4060_v29  ;;  %v369_v36 = vshll.u32 %v46_v20, 16 }
  0x16   :  { %v940_v30 = vunpack.c.l.b16 %v700_v26  ;;  %v133_v34 = vrot.slane %v132_v27, 4  ;;  %v375_v37 = vshll.u32 %v47_v24, 16  ;;  %v368_v41 = vrot.slane %v366_v33, 4  ;;  %v28_v27 = vld [vmem:[%s13615_s0 + $0xc] sm:$0xf] }
  0x17   :  { %v143_v39 = vrot.slane %v142_v31, 4  ;;  %v2768_v40 = vsel %vm1090_vm0, %v2670_v32, 0  ;;  %v371_v44 = vrot.slane %v369_v36, 5  ;;  %v379_v49 = vshrl.u32 %v47_v24, 16  ;;  %v29_v31 = vld [vmem:[%s13615_s0 + $0x10] sm:$0xf] }
  0x18   :  { %v980_v38 = vpack.c.b16 %v940_v30, %v939_v21  ;;  %v138_v43 = vsel %vm9489_vm3, %v133_v34, %v137_v19  ;;  %2777 = vmatpush.bf16.msrb.mxu3 %v2768_v40  ;;  %v377_v45 = vrot.slane %v375_v37, 5  ;;  %v385_v50 = vshll.u32 %v100_v35, 16  ;;  %v91_v32 = vld [vmem:[%s13615_s0 + $0x14] sm:$0x1] }
  0x19   :  { %v148_v47 = vsel %vm9489_vm3, %v143_v39, %v147_v28  ;;  %v893_v48 = vunpack.c.l.b16 %v138_v43  ;;  %v372_v52 = vor.u32 %v371_v44, %v368_v41  ;;  %v486_v54 = vshrl.u32 %v56_v42, 16 }
  0x1a   :  { %8039 = vmatmul.msk.bf16.vlgmr.msra.gmra.mxu3 %vm993_vm4, %v980_v38  ;;  %v894_v51 = vunpack.c.l.b16 %v148_v47  ;;  %v381_v55 = vrot.slane %v379_v49, 4  ;;  %v387_v56 = vrot.slane %v385_v50, 5  ;;  %v489_v57 = vshll.u32 %v56_v42, 16  ;;  %v49_v50 = vld [vmem:[%s13615_s0 + $0x88] sm:$0xf] }
  0x1b   :  { %v495_v58 = vshll.u32 %v57_v46, 16  ;;  %v373_v61 = vrot.slane %v372_v52, 4  ;;  %v488_v62 = vrot.slane %v486_v54, 4  ;;  %v499_v63 = vshrl.u32 %v57_v46, 16 }
  0x1c   :  { %v957_v60 = vpack.c.b16 %v894_v51, %v893_v48  ;;  %v382_v1 = vor.u32 %v381_v55, %v377_v45  ;;  %v491_v2 = vrot.slane %v489_v57, 5  ;;  %v505_v4 = vshll.u32 %v105_v53, 16  ;;  %v101_v55 = vld [vmem:[%s13615_s0 + $0x8c] sm:$0x1] }
  0x1d   :  { %v497_v3 = vrot.slane %v495_v58, 5  ;;  %v378_v6 = vsel %vm9489_vm3, %v373_v61, %v377_v45  ;;  %v501_v7 = vrot.slane %v499_v63, 4  ;;  %v702_v9 = vshrl.u32 %v74_v59, 16  ;;  %v48_v45 = vld [vmem:[%s13615_s0 + $0x84] sm:$0xf] }
  0x1e   :  { %8016 = vmatmul.msk.bf16.vlgmr.msra.gmra.mxu0 %vm993_vm4, %v957_v60  ;;  %v383_v10 = vrot.slane %v382_v1, 4  ;;  %v913_v11 = vunpack.c.l.b16 %v378_v6  ;;  %v492_v12 = vor.u32 %v491_v2, %v488_v62  ;;  %v507_v13 = vrot.slane %v505_v4, 5 }
  0x1f   :  { %v502_v14 = vor.u32 %v501_v7, %v497_v3  ;;  %v704_v15 = vrot.slane %v702_v9, 4  ;;  %v705_v16 = vshll.u32 %v74_v59, 16  ;;  %v711_v17 = vshll.u32 %v75_v5, 16 }
  0x20   :  { %v388_v18 = vsel %vm9489_vm3, %v383_v10, %v387_v56  ;;  %v493_v19 = vrot.slane %v492_v12, 4  ;;  %v715_v20 = vshrl.u32 %v75_v5, 16  ;;  %v721_v21 = vshll.u32 %v114_v8, 16  ;;  %v58_v5 = vld [vmem:[%s13615_s0 + $0xd8] sm:$0xf] }
  0x21   :  { %v914_v22 = vunpack.c.l.b16 %v388_v18  ;;  %v503_v23 = vrot.slane %v502_v14, 4  ;;  %v707_v24 = vrot.slane %v705_v16, 5  ;;  %v713_v26 = vrot.slane %v711_v17, 5  ;;  %v59_v10 = vld [vmem:[%s13615_s0 + $0xdc] sm:$0xf] }
  0x22   :  { %v498_v28 = vsel %vm9489_vm3, %v493_v19, %v497_v3  ;;  %v717_v29 = vrot.slane %v715_v20, 4  ;;  %v723_v30 = vrot.slane %v721_v21, 5  ;;  %v150_v39 = vshrl.u32 %v28_v27, 16  ;;  %v106_v14 = vld [vmem:[%s13615_s0 + $0xe0] sm:$0x1] }
  0x23   :  { %v967_v33 = vpack.c.b16 %v914_v22, %v913_v11  ;;  %v508_v34 = vsel %vm9489_vm3, %v503_v23, %v507_v13  ;;  %v923_v35 = vunpack.c.l.b16 %v498_v28  ;;  %v708_v36 = vor.u32 %v707_v24, %v704_v15  ;;  %v76_v28 = vld [vmem:[%s13615_s0 + $0x144] sm:$0xf] }
  0x24   :  { %v924_v37 = vunpack.c.l.b16 %v508_v34  ;;  %v718_v38 = vor.u32 %v717_v29, %v713_v26  ;;  %v153_v40 = vshll.u32 %v28_v27, 16  ;;  %v159_v42 = vshll.u32 %v29_v31, 16 }
  0x25   :  { %8026 = vmatmul.msk.bf16.gmra.mxu1 %vm993_vm4, %v967_v33  ;;  %v709_v41 = vrot.slane %v708_v36, 4  ;;  %v163_v43 = vshrl.u32 %v29_v31, 16  ;;  %v169_v44 = vshll.u32 %v91_v32, 16  ;;  %v152_v48 = vrot.slane %v150_v39, 4  ;;  %v77_v33 = vld [vmem:[%s13615_s0 + $0x148] sm:$0xf] }
  0x26   :  { %v972_v46 = vpack.c.b16 %v924_v37, %v923_v35  ;;  %v719_v47 = vrot.slane %v718_v38, 4  ;;  %v155_v49 = vrot.slane %v153_v40, 5  ;;  %v161_v52 = vrot.slane %v159_v42, 5  ;;  %v115_v37 = vld [vmem:[%s13615_s0 + $0x14c] sm:$0x1] }
  0x27   :  { %v714_v51 = vsel %vm9489_vm3, %v709_v41, %v713_v26  ;;  %v165_v53 = vrot.slane %v163_v43, 4  ;;  %v171_v54 = vrot.slane %v169_v44, 5  ;;  %v390_v59 = vshrl.u32 %v48_v45, 16 }
  0x28   :  { %8031 = vmatmul.msk.bf16.gmra.mxu2 %vm993_vm4, %v972_v46  ;;  %v724_v56 = vsel %vm9489_vm3, %v719_v47, %v723_v30  ;;  %v941_v57 = vunpack.c.l.b16 %v714_v51  ;;  %v156_v58 = vor.u32 %v155_v49, %v152_v48  ;;  %v393_v62 = vshll.u32 %v48_v45, 16 }
  0x29   :  { %v942_v60 = vunpack.c.l.b16 %v724_v56  ;;  %v166_v61 = vor.u32 %v165_v53, %v161_v52  ;;  %v399_v63 = vshll.u32 %v49_v50, 16  ;;  %v392_v2 = vrot.slane %v390_v59, 4  ;;  %v92_v59 = vld [vmem:[%s13615_s0 + $0x20] sm:$0x1] }
  0x2a   :  { %v157_v1 = vrot.slane %v156_v58, 4  ;;  %v403_v3 = vshrl.u32 %v49_v50, 16  ;;  %v409_v4 = vshll.u32 %v101_v55, 16  ;;  %v395_v8 = vrot.slane %v393_v62, 5  ;;  %v30_v50 = vld [vmem:[%s13615_s0 + $0x18] sm:$0xf] }
  0x2b   :  { %v981_v6 = vpack.c.b16 %v942_v60, %v941_v57  ;;  %v167_v7 = vrot.slane %v166_v61, 4  ;;  %v401_v9 = vrot.slane %v399_v63, 5  ;;  %v510_v18 = vshrl.u32 %v58_v5, 16  ;;  %v31_v55 = vld [vmem:[%s13615_s0 + $0x1c] sm:$0xf] }
  0x2c   :  { %v162_v11 = vsel %vm9489_vm3, %v157_v1, %v161_v52  ;;  %v405_v12 = vrot.slane %v403_v3, 4  ;;  %v411_v13 = vrot.slane %v409_v4, 5  ;;  %v396_v17 = vor.u32 %v395_v8, %v392_v2 }
  0x2d   :  { %8040 = vmatmul.msk.bf16.gmra.mxu3 %vm993_vm4, %v981_v6  ;;  %v172_v15 = vsel %vm9489_vm3, %v167_v7, %v171_v54  ;;  %v895_v16 = vunpack.c.l.b16 %v162_v11  ;;  %v513_v21 = vshll.u32 %v58_v5, 16  ;;  %v519_v22 = vshll.u32 %v59_v10, 16  ;;  %v50_v5 = vld [vmem:[%s13615_s0 + $0x90] sm:$0xf] }
  0x2e   :  { %v896_v19 = vunpack.c.l.b16 %v172_v15  ;;  %v406_v20 = vor.u32 %v405_v12, %v401_v9  ;;  %v397_v23 = vrot.slane %v396_v17, 4  ;;  %v512_v24 = vrot.slane %v510_v18, 4  ;;  %v102_v18 = vld [vmem:[%s13615_s0 + $0x98] sm:$0x1] }
  0x2f   :  { %v523_v26 = vshrl.u32 %v59_v10, 16  ;;  %v529_v27 = vshll.u32 %v106_v14, 16  ;;  %v515_v31 = vrot.slane %v513_v21, 5  ;;  %v521_v32 = vrot.slane %v519_v22, 5  ;;  %v51_v14 = vld [vmem:[%s13615_s0 + $0x94] sm:$0xf] }
  0x30   :  { %v958_v29 = vpack.c.b16 %v896_v19, %v895_v16  ;;  %v407_v30 = vrot.slane %v406_v20, 4  ;;  %v402_v34 = vsel %vm9489_vm3, %v397_v23, %v401_v9  ;;  %v726_v41 = vshrl.u32 %v76_v28, 16 }
  0x31   :  { %v525_v35 = vrot.slane %v523_v26, 4  ;;  %v531_v36 = vrot.slane %v529_v27, 5  ;;  %v915_v39 = vunpack.c.l.b16 %v402_v34  ;;  %v516_v40 = vor.u32 %v515_v31, %v512_v24 }
  0x32   :  { %8017 = vmatmul.msk.bf16.gmra.mxu0 %vm993_vm4, %v958_v29  ;;  %v412_v38 = vsel %vm9489_vm3, %v407_v30, %v411_v13  ;;  %v729_v44 = vshll.u32 %v76_v28, 16  ;;  %v735_v45 = vshll.u32 %v77_v33, 16  ;;  %v728_v47 = vrot.slane %v726_v41, 4 }
  0x33   :  { %v916_v42 = vunpack.c.l.b16 %v412_v38  ;;  %v526_v43 = vor.u32 %v525_v35, %v521_v32  ;;  %v517_v46 = vrot.slane %v516_v40, 4  ;;  %v739_v48 = vshrl.u32 %v77_v33, 16  ;;  %v60_v33 = vld [vmem:[%s13615_s0 + $0xe4] sm:$0xf] }
  0x34   :  { %v745_v49 = vshll.u32 %v115_v37, 16  ;;  %v731_v53 = vrot.slane %v729_v44, 5  ;;  %v737_v54 = vrot.slane %v735_v45, 5  ;;  %v174_v63 = vshrl.u32 %v30_v50, 16  ;;  %v61_v37 = vld [vmem:[%s13615_s0 + $0xe8] sm:$0xf] }
  0x35   :  { %v968_v51 = vpack.c.b16 %v916_v42, %v915_v39  ;;  %v527_v52 = vrot.slane %v526_v43, 4  ;;  %v522_v56 = vsel %vm9489_vm3, %v517_v46, %v521_v32  ;;  %v741_v57 = vrot.slane %v739_v48, 4  ;;  %v107_v42 = vld [vmem:[%s13615_s0 + $0xec] sm:$0x1] }
  0x36   :  { %v747_v58 = vrot.slane %v745_v49, 5  ;;  %v925_v61 = vunpack.c.l.b16 %v522_v56  ;;  %v732_v62 = vor.u32 %v731_v53, %v728_v47  ;;  %v177_v3 = vshll.u32 %v30_v50, 16 }
  0x37   :  { %8027 = vmatmul.msk.bf16.gmra.mxu1 %vm993_vm4, %v968_v51  ;;  %v532_v60 = vsel %vm9489_vm3, %v527_v52, %v531_v36  ;;  %v742_v2 = vor.u32 %v741_v57, %v737_v54  ;;  %v183_v4 = vshll.u32 %v31_v55, 16  ;;  %v176_v7 = vrot.slane %v174_v63, 4 }
  0x38   :  { %v926_v1 = vunpack.c.l.b16 %v532_v60  ;;  %v733_v6 = vrot.slane %v732_v62, 4  ;;  %v187_v8 = vshrl.u32 %v31_v55, 16  ;;  %v193_v9 = vshll.u32 %v92_v59, 16  ;;  %v78_v55 = vld [vmem:[%s13615_s0 + $0x150] sm:$0xf] }
  0x39   :  { %v743_v11 = vrot.slane %v742_v2, 4  ;;  %v179_v12 = vrot.slane %v177_v3, 5  ;;  %v185_v13 = vrot.slane %v183_v4, 5  ;;  %v414_v19 = vshrl.u32 %v50_v5, 16  ;;  %v79_v60 = vld [vmem:[%s13615_s0 + $0x154] sm:$0xf] }
  0x3a   :  { %v973_v10 = vpack.c.b16 %v926_v1, %v925_v61  ;;  %v738_v15 = vsel %vm9489_vm3, %v733_v6, %v737_v54  ;;  %v189_v16 = vrot.slane %v187_v8, 4  ;;  %v195_v17 = vrot.slane %v193_v9, 5  ;;  %v116_v1 = vld [vmem:[%s13615_s0 + $0x158] sm:$0x1] }
  0x3b   :  { %v748_v20 = vsel %vm9489_vm3, %v743_v11, %v747_v58  ;;  %v943_v21 = vunpack.c.l.b16 %v738_v15  ;;  %v180_v22 = vor.u32 %v179_v12, %v176_v7  ;;  %v417_v23 = vshll.u32 %v50_v5, 16 }
  0x3c   :  { %8032 = vmatmul.msk.bf16.gmra.mxu2 %vm993_vm4, %v973_v10  ;;  %v944_v24 = vunpack.c.l.b16 %v748_v20  ;;  %v190_v26 = vor.u32 %v189_v16, %v185_v13  ;;  %v416_v27 = vrot.slane %v414_v19, 4  ;;  %v423_v28 = vshll.u32 %v51_v14, 16  ;;  %v33_v19 = vld [vmem:[%s13615_s0 + $0x28] sm:$0xf] }
  0x3d   :  { %v181_v29 = vrot.slane %v180_v22, 4  ;;  %v419_v30 = vrot.slane %v417_v23, 5  ;;  %v427_v31 = vshrl.u32 %v51_v14, 16  ;;  %v433_v32 = vshll.u32 %v102_v18, 16  ;;  %v32_v14 = vld [vmem:[%s13615_s0 + $0x24] sm:$0xf] }
  0x3e   :  { %v982_v34 = vpack.c.b16 %v944_v24, %v943_v21  ;;  %v191_v35 = vrot.slane %v190_v26, 4  ;;  %v425_v36 = vrot.slane %v423_v28, 5  ;;  %v534_v45 = vshrl.u32 %v60_v33, 16  ;;  %v93_v23 = vld [vmem:[%s13615_s0 + $0x2c] sm:$0x1] }
  0x3f   :  { %v186_v38 = vsel %vm9489_vm3, %v181_v29, %v185_v13  ;;  %v420_v39 = vor.u32 %v419_v30, %v416_v27  ;;  %v429_v40 = vrot.slane %v427_v31, 4  ;;  %v435_v41 = vrot.slane %v433_v32, 5 }
  0x40   :  { %8041 = vmatmul.msk.bf16.gmra.mxu3 %vm993_vm4, %v982_v34  ;;  %v196_v43 = vsel %vm9489_vm3, %v191_v35, %v195_v17  ;;  %v897_v44 = vunpack.c.l.b16 %v186_v38  ;;  %v537_v46 = vshll.u32 %v60_v33, 16  ;;  %v543_v50 = vshll.u32 %v61_v37, 16 }
  0x41   :  { %v898_v47 = vunpack.c.l.b16 %v196_v43  ;;  %v421_v48 = vrot.slane %v420_v39, 4  ;;  %v430_v49 = vor.u32 %v429_v40, %v425_v36  ;;  %v536_v51 = vrot.slane %v534_v45, 4 }
  0x42   :  { %v539_v52 = vrot.slane %v537_v46, 5  ;;  %v547_v53 = vshrl.u32 %v61_v37, 16  ;;  %v553_v54 = vshll.u32 %v107_v42, 16  ;;  %v545_v59 = vrot.slane %v543_v50, 5  ;;  %v52_v37 = vld [vmem:[%s13615_s0 + $0x9c] sm:$0xf] }
  0x43   :  { %v959_v56 = vpack.c.b16 %v898_v47, %v897_v44  ;;  %v426_v57 = vsel %vm9489_vm3, %v421_v48, %v425_v36  ;;  %v431_v58 = vrot.slane %v430_v49, 4  ;;  %v750_v4 = vshrl.u32 %v78_v55, 16  ;;  %v53_v42 = vld [vmem:[%s13615_s0 + $0xa0] sm:$0xf]  ;;  %v103_v46 = vld [vmem:[%s13615_s0 + $0xa4] sm:$0x1] }
  0x44   :  { %v917_v61 = vunpack.c.l.b16 %v426_v57  ;;  %v540_v62 = vor.u32 %v539_v52, %v536_v51  ;;  %v549_v63 = vrot.slane %v547_v53, 4  ;;  %v555_v3 = vrot.slane %v553_v54, 5 }
  0x45   :  { %8018 = vmatmul.msk.bf16.gmra.mxu0 %vm993_vm4, %v959_v56  ;;  %v436_v2 = vsel %vm9489_vm3, %v431_v58, %v435_v41  ;;  %v753_v5 = vshll.u32 %v78_v55, 16  ;;  %v759_v9 = vshll.u32 %v79_v60, 16  ;;  %v752_v10 = vrot.slane %v750_v4, 4 }
  0x46   :  { %v918_v6 = vunpack.c.l.b16 %v436_v2  ;;  %v541_v7 = vrot.slane %v540_v62, 4  ;;  %v550_v8 = vor.u32 %v549_v63, %v545_v59  ;;  %v763_v12 = vshrl.u32 %v79_v60, 16 }
  0x47   :  { %v755_v11 = vrot.slane %v753_v5, 5  ;;  %v769_v13 = vshll.u32 %v116_v1, 16  ;;  %v761_v18 = vrot.slane %v759_v9, 5  ;;  %v198_v27 = vshrl.u32 %v32_v14, 16  ;;  %v63_v1 = vld [vmem:[%s13615_s0 + $0xf4] sm:$0xf] }
  0x48   :  { %v969_v15 = vpack.c.b16 %v918_v6, %v917_v61  ;;  %v546_v16 = vsel %vm9489_vm3, %v541_v7, %v545_v59  ;;  %v551_v17 = vrot.slane %v550_v8, 4  ;;  %v765_v22 = vrot.slane %v763_v12, 4  ;;  %v62_v59 = vld [vmem:[%s13615_s0 + $0xf0] sm:$0xf]  ;;  %v108_v5 = vld [vmem:[%s13615_s0 + $0xf8] sm:$0x1] }
  0x49   :  { %v927_v20 = vunpack.c.l.b16 %v546_v16  ;;  %v756_v21 = vor.u32 %v755_v11, %v752_v10  ;;  %v771_v26 = vrot.slane %v769_v13, 5  ;;  %v201_v28 = vshll.u32 %v32_v14, 16 }
  0x4a   :  { %8028 = vmatmul.msk.bf16.gmra.mxu1 %vm993_vm4, %v969_v15  ;;  %v556_v24 = vsel %vm9489_vm3, %v551_v17, %v555_v3  ;;  %v766_v31 = vor.u32 %v765_v22, %v761_v18  ;;  %v207_v32 = vshll.u32 %v33_v19, 16  ;;  %v200_v33 = vrot.slane %v198_v27, 4 }
  0x4b   :  { %v928_v29 = vunpack.c.l.b16 %v556_v24  ;;  %v757_v30 = vrot.slane %v756_v21, 4  ;;  %v203_v34 = vrot.slane %v201_v28, 5  ;;  %v211_v35 = vshrl.u32 %v33_v19, 16  ;;  %v117_v28 = vld [vmem:[%s13615_s0 + $0x164] sm:$0x1] }
  0x4c   :  { %v217_v36 = vshll.u32 %v93_v23, 16  ;;  %v767_v40 = vrot.slane %v766_v31, 4  ;;  %v209_v41 = vrot.slane %v207_v32, 5  ;;  %v438_v49 = vshrl.u32 %v52_v37, 16  ;;  %v81_v23 = vld [vmem:[%s13615_s0 + $0x160] sm:$0xf] }
  0x4d   :  { %v974_v38 = vpack.c.b16 %v928_v29, %v927_v20  ;;  %v762_v39 = vsel %vm9489_vm3, %v757_v30, %v761_v18  ;;  %v204_v44 = vor.u32 %v203_v34, %v200_v33  ;;  %v213_v45 = vrot.slane %v211_v35, 4  ;;  %v80_v18 = vld [vmem:[%s13615_s0 + $0x15c] sm:$0xf] }
  0x4e   :  { %v945_v43 = vunpack.c.l.b16 %v762_v39  ;;  %v772_v47 = vsel %vm9489_vm3, %v767_v40, %v771_v26  ;;  %v219_v48 = vrot.slane %v217_v36, 5  ;;  %v441_v50 = vshll.u32 %v52_v37, 16 }
  0x4f   :  { %8033 = vmatmul.msk.bf16.gmra.mxu2 %vm993_vm4, %v974_v38  ;;  %v946_v51 = vunpack.c.l.b16 %v772_v47  ;;  %v205_v52 = vrot.slane %v204_v44, 4  ;;  %v214_v53 = vor.u32 %v213_v45, %v209_v41  ;;  %v447_v54 = vshll.u32 %v53_v42, 16 }
  0x50   :  { %v440_v55 = vrot.slane %v438_v49, 4  ;;  %v443_v56 = vrot.slane %v441_v50, 5  ;;  %v451_v57 = vshrl.u32 %v53_v42, 16  ;;  %v457_v58 = vshll.u32 %v103_v46, 16  ;;  %v35_v46 = vld [vmem:[%s13615_s0 + $0x34] sm:$0xf] }
  0x51   :  { %v983_v60 = vpack.c.b16 %v946_v51, %v945_v43  ;;  %v210_v61 = vsel %vm9489_vm3, %v205_v52, %v209_v41  ;;  %v215_v62 = vrot.slane %v214_v53, 4  ;;  %v449_v63 = vrot.slane %v447_v54, 5  ;;  %v34_v41 = vld [vmem:[%s13615_s0 + $0x30] sm:$0xf]  ;;  %v94_v50 = vld [vmem:[%s13615_s0 + $0x38] sm:$0x1] }
  0x52   :  { %v899_v2 = vunpack.c.l.b16 %v210_v61  ;;  %v444_v3 = vor.u32 %v443_v56, %v440_v55  ;;  %v453_v4 = vrot.slane %v451_v57, 4  ;;  %v459_v7 = vrot.slane %v457_v58, 5 }
  0x53   :  { %8042 = vmatmul.msk.bf16.gmra.mxu3 %vm993_vm4, %v983_v60  ;;  %v220_v6 = vsel %vm9489_vm3, %v215_v62, %v219_v48  ;;  %v558_v8 = vshrl.u32 %v62_v59, 16  ;;  %v561_v9 = vshll.u32 %v62_v59, 16  ;;  %v567_v13 = vshll.u32 %v63_v1, 16 }
  0x54   :  { %v900_v10 = vunpack.c.l.b16 %v220_v6  ;;  %v445_v11 = vrot.slane %v444_v3, 4  ;;  %v454_v12 = vor.u32 %v453_v4, %v449_v63  ;;  %v571_v16 = vshrl.u32 %v63_v1, 16 }
  0x55   :  { %v560_v14 = vrot.slane %v558_v8, 4  ;;  %v563_v15 = vrot.slane %v561_v9, 5  ;;  %v577_v17 = vshll.u32 %v108_v5, 16  ;;  %v569_v22 = vrot.slane %v567_v13, 5  ;;  %v65_v8 = vld [vmem:[%s13615_s0 + $0x100] sm:$0xf] }
  0x56   :  { %v960_v19 = vpack.c.b16 %v900_v10, %v899_v2  ;;  %v450_v20 = vsel %vm9489_vm3, %v445_v11, %v449_v63  ;;  %v455_v21 = vrot.slane %v454_v12, 4  ;;  %v573_v27 = vrot.slane %v571_v16, 4  ;;  %v64_v63 = vld [vmem:[%s13615_s0 + $0xfc] sm:$0xf]  ;;  %v109_v9 = vld [vmem:[%s13615_s0 + $0x104] sm:$0x1] }
  0x57   :  { %v919_v24 = vunpack.c.l.b16 %v450_v20  ;;  %v564_v26 = vor.u32 %v563_v15, %v560_v14  ;;  %v579_v30 = vrot.slane %v577_v17, 5  ;;  %v774_v31 = vshrl.u32 %v80_v18, 16 }
  0x58   :  { %8019 = vmatmul.msk.bf16.gmra.mxu0 %vm993_vm4, %v960_v19  ;;  %v460_v29 = vsel %vm9489_vm3, %v455_v21, %v459_v7  ;;  %v777_v32 = vshll.u32 %v80_v18, 16  ;;  %v574_v35 = vor.u32 %v573_v27, %v569_v22  ;;  %v783_v36 = vshll.u32 %v81_v23, 16  ;;  %v83_v27 = vld [vmem:[%s13615_s0 + $0x16c] sm:$0xf] }
  0x59   :  { %v920_v33 = vunpack.c.l.b16 %v460_v29  ;;  %v565_v34 = vrot.slane %v564_v26, 4  ;;  %v776_v37 = vrot.slane %v774_v31, 4  ;;  %v787_v39 = vshrl.u32 %v81_v23, 16  ;;  %v118_v31 = vld [vmem:[%s13615_s0 + $0x170] sm:$0x1] }
  0x5a   :  { %v779_v38 = vrot.slane %v777_v32, 5  ;;  %v793_v40 = vshll.u32 %v117_v28, 16  ;;  %v575_v44 = vrot.slane %v574_v35, 4  ;;  %v785_v45 = vrot.slane %v783_v36, 5 }
  0x5b   :  { %v970_v42 = vpack.c.b16 %v920_v33, %v919_v24  ;;  %v570_v43 = vsel %vm9489_vm3, %v565_v34, %v569_v22  ;;  %v789_v49 = vrot.slane %v787_v39, 4  ;;  %v222_v53 = vshrl.u32 %v34_v41, 16  ;;  %v82_v22 = vld [vmem:[%s13615_s0 + $0x168] sm:$0xf] }
  0x5c   :  { %v929_v47 = vunpack.c.l.b16 %v570_v43  ;;  %v780_v48 = vor.u32 %v779_v38, %v776_v37  ;;  %v580_v51 = vsel %vm9489_vm3, %v575_v44, %v579_v30  ;;  %v795_v52 = vrot.slane %v793_v40, 5  ;;  %v36_v40 = vld [vmem:[%s13615_s0 + $0x3c] sm:$0xf] }
  0x5d   :  { %8029 = vmatmul.msk.bf16.gmra.mxu1 %vm993_vm4, %v970_v42  ;;  %v225_v54 = vshll.u32 %v34_v41, 16  ;;  %v930_v55 = vunpack.c.l.b16 %v580_v51  ;;  %v790_v57 = vor.u32 %v789_v49, %v785_v45  ;;  %v231_v58 = vshll.u32 %v35_v46, 16 }
  0x5e   :  { %v781_v56 = vrot.slane %v780_v48, 4  ;;  %v224_v59 = vrot.slane %v222_v53, 4  ;;  %v235_v61 = vshrl.u32 %v35_v46, 16  ;;  %v241_v62 = vshll.u32 %v94_v50, 16  ;;  %v9793_v50 = vld [vmem:[%s13615_s0 + $0x40] sm:$0xf] }
  0x5f   :  { %v227_v60 = vrot.slane %v225_v54, 5  ;;  %v975_v1 = vpack.c.b16 %v930_v55, %v929_v47  ;;  %v791_v3 = vrot.slane %v790_v57, 4  ;;  %v233_v4 = vrot.slane %v231_v58, 5  ;;  %v9800_v54 = vld [vmem:[%s13615_s0 + $0x44] sm:$0x1] }
  0x60   :  { %v786_v2 = vsel %vm9489_vm3, %v781_v56, %v785_v45  ;;  %v237_v7 = vrot.slane %v235_v61, 4  ;;  %v243_v11 = vrot.slane %v241_v62, 5  ;;  %v1520_v12 = vsel %vm1090_vm0, %v9466_v0, 0  ;;  %v9200_v45 = vld [vmem:[%s13615_s0] sm:$0xff] }
  0x61   :  { %v947_v5 = vunpack.c.l.b16 %v786_v2  ;;  %v228_v6 = vor.u32 %v227_v60, %v224_v59  ;;  %8034 = vmatmul.msk.bf16.gmra.mxu2 %vm993_vm4, %v975_v1  ;;  %v796_v10 = vsel %vm9489_vm3, %v791_v3, %v795_v52  ;;  %v582_v13 = vshrl.u32 %v64_v63, 16  ;;  %1529 = vmatpush.bf16.msrb.mxu1 %v1520_v12 }
  0x62   :  { %v948_v14 = vunpack.c.l.b16 %v796_v10  ;;  %v238_v16 = vor.u32 %v237_v7, %v233_v4  ;;  %v585_v17 = vshll.u32 %v64_v63, 16  ;;  %v591_v19 = vshll.u32 %v65_v8, 16 }
  0x63   :  { %v229_v15 = vrot.slane %v228_v6, 4  ;;  %v584_v18 = vrot.slane %v582_v13, 4  ;;  %v595_v20 = vshrl.u32 %v65_v8, 16  ;;  %v601_v21 = vshll.u32 %v109_v9, 16  ;;  %v67_v9 = vld [vmem:[%s13615_s0 + $0x10c] sm:$0xf] }
  0x64   :  { %v984_v23 = vpack.c.b16 %v948_v14, %v947_v5  ;;  %v239_v26 = vrot.slane %v238_v16, 4  ;;  %v587_v0 = vrot.slane %v585_v17, 5  ;;  %v593_v29 = vrot.slane %v591_v19, 5  ;;  %v110_v13 = vld [vmem:[%s13615_s0 + $0x110] sm:$0x1] }
  0x65   :  { %v234_v24 = vsel %vm9489_vm3, %v229_v15, %v233_v4  ;;  %v597_v30 = vrot.slane %v595_v20, 4  ;;  %v603_v34 = vrot.slane %v601_v21, 5  ;;  %v798_v35 = vshrl.u32 %v82_v22, 16  ;;  %v66_v4 = vld [vmem:[%s13615_s0 + $0x108] sm:$0xf] }
  0x66   :  { %v901_v28 = vunpack.c.l.b16 %v234_v24  ;;  %8043 = vmatmul.msk.bf16.gmra.mxu3 %vm993_vm4, %v984_v23  ;;  %v244_v32 = vsel %vm9489_vm3, %v239_v26, %v243_v11  ;;  %v588_v33 = vor.u32 %v587_v0, %v584_v18  ;;  %v801_v38 = vshll.u32 %v82_v22, 16  ;;  %v84_v0 = vld [vmem:[%s13615_s0 + $0x174] sm:$0xf] }
  0x67   :  { %v902_v36 = vunpack.c.l.b16 %v244_v32  ;;  %v598_v37 = vor.u32 %v597_v30, %v593_v29  ;;  %v807_v39 = vshll.u32 %v83_v27, 16  ;;  %v800_v42 = vrot.slane %v798_v35, 4  ;;  %v119_v35 = vld [vmem:[%s13615_s0 + $0x17c] sm:$0x1] }
  0x68   :  { %v589_v41 = vrot.slane %v588_v33, 4  ;;  %v811_v43 = vshrl.u32 %v83_v27, 16  ;;  %v817_v44 = vshll.u32 %v118_v31, 16  ;;  %v803_v48 = vrot.slane %v801_v38, 5  ;;  %v85_v31 = vld [vmem:[%s13615_s0 + $0x178] sm:$0xf] }
  0x69   :  { %v961_v46 = vpack.c.b16 %v902_v36, %v901_v28  ;;  %v599_v47 = vrot.slane %v598_v37, 4  ;;  %v809_v49 = vrot.slane %v807_v39, 5  ;;  %v246_v58 = vshrl.u32 %v36_v40, 16 }
  0x6a   :  { %v594_v51 = vsel %vm9489_vm3, %v589_v41, %v593_v29  ;;  %v813_v52 = vrot.slane %v811_v43, 4  ;;  %v819_v53 = vrot.slane %v817_v44, 5  ;;  %v804_v57 = vor.u32 %v803_v48, %v800_v42  ;;  %v38_v48 = vld [vmem:[%s13615_s0 + $0x48] sm:$0xf] }
  0x6b   :  { %8020 = vmatmul.msk.bf16.gmra.mxu0 %vm993_vm4, %v961_v46  ;;  %v604_v55 = vsel %vm9489_vm3, %v599_v47, %v603_v34  ;;  %v931_v56 = vunpack.c.l.b16 %v594_v51  ;;  %v249_v61 = vshll.u32 %v36_v40, 16  ;;  %v255_v62 = vshll.u32 %v9793_v50, 16 }
  0x6c   :  { %v932_v59 = vunpack.c.l.b16 %v604_v55  ;;  %v814_v60 = vor.u32 %v813_v52, %v809_v49  ;;  %v805_v63 = vrot.slane %v804_v57, 4  ;;  %v248_v1 = vrot.slane %v246_v58, 4  ;;  %v9201_v55 = vld [vmem:[%s13615_s0 + $0xc] sm:$0xff] }
  0x6d   :  { %8176 = vmatmul.msk.bf16.vlgmr.msrb.gmra.mxu1 %vm993_vm4, %v9200_v45  ;;  %v259_v2 = vshrl.u32 %v9793_v50, 16  ;;  %v265_v3 = vshll.u32 %v9800_v54, 16  ;;  %v251_v7 = vrot.slane %v249_v61, 5  ;;  %v257_v8 = vrot.slane %v255_v62, 5 }
  0x6e   :  { %v976_v5 = vpack.c.b16 %v932_v59, %v931_v56  ;;  %v815_v6 = vrot.slane %v814_v60, 4  ;;  %v810_v10 = vsel %vm9489_vm3, %v805_v63, %v809_v49  ;;  %v606_v17 = vshrl.u32 %v66_v4, 16  ;;  %v9846_v56 = vld [vmem:[%s13615_s0 + $0x4c] sm:$0xf]  ;;  %v9853_v60 = vld [vmem:[%s13615_s0 + $0x50] sm:$0x1] }
  0x6f   :  { %v261_v11 = vrot.slane %v259_v2, 4  ;;  %v267_v12 = vrot.slane %v265_v3, 5  ;;  %v949_v15 = vunpack.c.l.b16 %v810_v10  ;;  %v252_v16 = vor.u32 %v251_v7, %v248_v1  ;;  %v68_v10 = vld [vmem:[%s13615_s0 + $0x114] sm:$0xf] }
  0x70   :  { %v820_v14 = vsel %vm9489_vm3, %v815_v6, %v819_v53  ;;  %v609_v20 = vshll.u32 %v66_v4, 16  ;;  %v615_v21 = vshll.u32 %v67_v9, 16  ;;  %v608_v23 = vrot.slane %v606_v17, 4 }
  0x71   :  { %8035 = vmatmul.msk.bf16.gmra.mxu2 %vm993_vm4, %v976_v5  ;;  %v950_v18 = vunpack.c.l.b16 %v820_v14  ;;  %v262_v19 = vor.u32 %v261_v11, %v257_v8  ;;  %v253_v22 = vrot.slane %v252_v16, 4  ;;  %v619_v24 = vshrl.u32 %v67_v9, 16 }
  0x72   :  { %v625_v26 = vshll.u32 %v110_v13, 16  ;;  %v611_v29 = vrot.slane %v609_v20, 5  ;;  %v617_v30 = vrot.slane %v615_v21, 5  ;;  %v822_v39 = vshrl.u32 %v84_v0, 16 }
  0x73   :  { %v985_v27 = vpack.c.b16 %v950_v18, %v949_v15  ;;  %v263_v28 = vrot.slane %v262_v19, 4  ;;  %v258_v32 = vsel %vm9489_vm3, %v253_v22, %v257_v8  ;;  %v621_v33 = vrot.slane %v619_v24, 4  ;;  %v69_v15 = vld [vmem:[%s13615_s0 + $0x118] sm:$0xf]  ;;  %v111_v19 = vld [vmem:[%s13615_s0 + $0x11c] sm:$0x1] }
  0x74   :  { %v627_v34 = vrot.slane %v625_v26, 5  ;;  %v903_v37 = vunpack.c.l.b16 %v258_v32  ;;  %v612_v38 = vor.u32 %v611_v29, %v608_v23  ;;  %v825_v42 = vshll.u32 %v84_v0, 16  ;;  %v86_v32 = vld [vmem:[%s13615_s0 + $0x180] sm:$0xf] }
  0x75   :  { %v268_v36 = vsel %vm9489_vm3, %v263_v28, %v267_v12  ;;  %v622_v41 = vor.u32 %v621_v33, %v617_v30  ;;  %v831_v43 = vshll.u32 %v85_v31, 16  ;;  %v824_v45 = vrot.slane %v822_v39, 4 }
  0x76   :  { %8044 = vmatmul.msk.bf16.gmra.mxu3 %vm993_vm4, %v985_v27  ;;  %v904_v40 = vunpack.c.l.b16 %v268_v36  ;;  %v613_v44 = vrot.slane %v612_v38, 4  ;;  %v835_v46 = vshrl.u32 %v85_v31, 16  ;;  %v841_v47 = vshll.u32 %v119_v35, 16 }
  0x77   :  { %v623_v51 = vrot.slane %v622_v41, 4  ;;  %v827_v52 = vrot.slane %v825_v42, 5  ;;  %v833_v53 = vrot.slane %v831_v43, 5  ;;  %v270_v1 = vshrl.u32 %v38_v48, 16  ;;  %v120_v41 = vld [vmem:[%s13615_s0 + $0x188] sm:$0x1] }
  0x78   :  { %v962_v49 = vpack.c.b16 %v904_v40, %v903_v37  ;;  %v618_v57 = vsel %vm9489_vm3, %v613_v44, %v617_v30  ;;  %v837_v58 = vrot.slane %v835_v46, 4  ;;  %v843_v59 = vrot.slane %v841_v47, 5  ;;  %v87_v37 = vld [vmem:[%s13615_s0 + $0x184] sm:$0xf] }
  0x79   :  { %v628_v61 = vsel %vm9489_vm3, %v623_v51, %v627_v34  ;;  %v933_v62 = vunpack.c.l.b16 %v618_v57  ;;  %v828_v63 = vor.u32 %v827_v52, %v824_v45  ;;  %v273_v4 = vshll.u32 %v38_v48, 16  ;;  %v40_v57 = vld [vmem:[%s13615_s0 + $0x54] sm:$0xf] }
  0x7a   :  { %v934_v2 = vunpack.c.l.b16 %v628_v61  ;;  %v838_v3 = vor.u32 %v837_v58, %v833_v53  ;;  %v279_v5 = vshll.u32 %v9846_v56, 16  ;;  %v272_v7 = vrot.slane %v270_v1, 4 }
  0x7b   :  { %8021 = vmatmul.msk.bf16.gmra.mxu0 %vm993_vm4, %v962_v49  ;;  %v829_v6 = vrot.slane %v828_v63, 4  ;;  %v283_v8 = vshrl.u32 %v9846_v56, 16  ;;  %v289_v9 = vshll.u32 %v9853_v60, 16  ;;  %v275_v13 = vrot.slane %v273_v4, 5  ;;  %v9896_v63 = vld [vmem:[%s13615_s0 + $0x58] sm:$0xf] }
  0x7c   :  { %v977_v11 = vpack.c.b16 %v934_v2, %v933_v62  ;;  %v839_v12 = vrot.slane %v838_v3, 4  ;;  %v281_v14 = vrot.slane %v279_v5, 5  ;;  %v630_v23 = vshrl.u32 %v68_v10, 16  ;;  %v9202_v4 = vld [vmem:[%s13615_s0 + $0x18] sm:$0xff] }
  0x7d   :  { %8177 = vmatmul.msk.bf16.gmra.mxu1 %vm993_vm4, %v9201_v55  ;;  %v834_v16 = vsel %vm9489_vm3, %v829_v6, %v833_v53  ;;  %v285_v17 = vrot.slane %v283_v8, 4  ;;  %v291_v18 = vrot.slane %v289_v9, 5  ;;  %v276_v22 = vor.u32 %v275_v13, %v272_v7  ;;  %v9906_v5 = vld [vmem:[%s13615_s0 + $0x5c] sm:$0x1] }
  0x7e   :  { %v844_v20 = vsel %vm9489_vm3, %v839_v12, %v843_v59  ;;  %v951_v21 = vunpack.c.l.b16 %v834_v16  ;;  %v633_v0 = vshll.u32 %v68_v10, 16  ;;  %v639_v27 = vshll.u32 %v69_v15, 16 }
  0x7f   :  { %v952_v24 = vunpack.c.l.b16 %v844_v20  ;;  %v286_v26 = vor.u32 %v285_v17, %v281_v14  ;;  %v277_v28 = vrot.slane %v276_v22, 4  ;;  %v632_v29 = vrot.slane %v630_v23, 4  ;;  %v71_v23 = vld [vmem:[%s13615_s0 + $0x124] sm:$0xf] }
  0x80   :  { %v643_v30 = vshrl.u32 %v69_v15, 16  ;;  %v649_v31 = vshll.u32 %v111_v19, 16  ;;  %v635_v35 = vrot.slane %v633_v0, 5  ;;  %v641_v36 = vrot.slane %v639_v27, 5  ;;  %v70_v19 = vld [vmem:[%s13615_s0 + $0x120] sm:$0xf] }
  0x81   :  { %8036 = vmatmul.msk.bf16.gmra.mxu2 %vm993_vm4, %v977_v11  ;;  %v986_v33 = vpack.c.b16 %v952_v24, %v951_v21  ;;  %v287_v34 = vrot.slane %v286_v26, 4  ;;  %v282_v38 = vsel %vm9489_vm3, %v277_v28, %v281_v14  ;;  %v846_v45 = vshrl.u32 %v86_v32, 16  ;;  %v112_v28 = vld [vmem:[%s13615_s0 + $0x128] sm:$0x1] }
  0x82   :  { %v645_v39 = vrot.slane %v643_v30, 4  ;;  %v651_v40 = vrot.slane %v649_v31, 5  ;;  %v905_v43 = vunpack.c.l.b16 %v282_v38  ;;  %v636_v44 = vor.u32 %v635_v35, %v632_v29 }
  0x83   :  { %v292_v42 = vsel %vm9489_vm3, %v287_v34, %v291_v18  ;;  %v849_v48 = vshll.u32 %v86_v32, 16  ;;  %v855_v49 = vshll.u32 %v87_v37, 16  ;;  %v848_v52 = vrot.slane %v846_v45, 4  ;;  %v89_v45 = vld [vmem:[%s13615_s0 + $0x190] sm:$0xf] }
  0x84   :  { %v906_v46 = vunpack.c.l.b16 %v292_v42  ;;  %v646_v47 = vor.u32 %v645_v39, %v641_v36  ;;  %v637_v51 = vrot.slane %v636_v44, 4  ;;  %v859_v53 = vshrl.u32 %v87_v37, 16 }
  0x85   :  { %v865_v55 = vshll.u32 %v120_v41, 16  ;;  %v851_v61 = vrot.slane %v849_v48, 5  ;;  %v857_v62 = vrot.slane %v855_v49, 5  ;;  %v294_v9 = vshrl.u32 %v40_v57, 16  ;;  %v88_v41 = vld [vmem:[%s13615_s0 + $0x18c] sm:$0xf] }
  0x86   :  { %8045 = vmatmul.msk.bf16.gmra.mxu3 %vm993_vm4, %v986_v33  ;;  %v963_v58 = vpack.c.b16 %v906_v46, %v905_v43  ;;  %v647_v59 = vrot.slane %v646_v47, 4  ;;  %v642_v1 = vsel %vm9489_vm3, %v637_v51, %v641_v36  ;;  %v861_v2 = vrot.slane %v859_v53, 4  ;;  %v121_v51 = vld [vmem:[%s13615_s0 + $0x194] sm:$0x1] }
  0x87   :  { %v867_v3 = vrot.slane %v865_v55, 5  ;;  %v935_v7 = vunpack.c.l.b16 %v642_v1  ;;  %v852_v8 = vor.u32 %v851_v61, %v848_v52  ;;  %v297_v12 = vshll.u32 %v40_v57, 16 }
  0x88   :  { %v652_v6 = vsel %vm9489_vm3, %v647_v59, %v651_v40  ;;  %v862_v11 = vor.u32 %v861_v2, %v857_v62  ;;  %v303_v13 = vshll.u32 %v9896_v63, 16  ;;  %v296_v15 = vrot.slane %v294_v9, 4  ;;  %v9309_v9 = vld [vmem:[%s13614_s1 + $0x8] sm:$0xf] }
  0x89   :  { %v936_v10 = vunpack.c.l.b16 %v652_v6  ;;  %v853_v14 = vrot.slane %v852_v8, 4  ;;  %v307_v16 = vshrl.u32 %v9896_v63, 16  ;;  %v313_v17 = vshll.u32 %v9906_v5, 16 }
  0x8a   :  { %v863_v20 = vrot.slane %v862_v11, 4  ;;  %v299_v21 = vrot.slane %v297_v12, 5  ;;  %v305_v22 = vrot.slane %v303_v13, 5  ;;  %v654_v32 = vshrl.u32 %v70_v19, 16 }
  0x8b   :  { %8022 = vmatmul.msk.bf16.gmra.mxu0 %vm993_vm4, %v963_v58  ;;  %v978_v24 = vpack.c.b16 %v936_v10, %v935_v7  ;;  %v858_v26 = vsel %vm9489_vm3, %v853_v14, %v857_v62  ;;  %v309_v0 = vrot.slane %v307_v16, 4  ;;  %v315_v27 = vrot.slane %v313_v17, 5  ;;  %v42_v7 = vld [vmem:[%s13615_s0 + $0x60] sm:$0xf]  ;;  %v9958_v14 = vld [vmem:[%s13615_s0 + $0x64] sm:$0xf] }
  0x8c   :  { %v868_v29 = vsel %vm9489_vm3, %v863_v20, %v867_v3  ;;  %v953_v30 = vunpack.c.l.b16 %v858_v26  ;;  %v300_v31 = vor.u32 %v299_v21, %v296_v15  ;;  %v657_v35 = vshll.u32 %v70_v19, 16  ;;  %v9965_v20 = vld [vmem:[%s13615_s0 + $0x68] sm:$0x1] }
  0x8d   :  { %v9914_v18 = vpop.f32.mrf.mxu1  ;;  %8178 = vmatmul.msk.bf16.gmra.mxu1 %vm993_vm4, %v9202_v4  ;;  %v954_v33 = vunpack.c.l.b16 %v868_v29  ;;  %v310_v34 = vor.u32 %v309_v0, %v305_v22  ;;  %v663_v36 = vshll.u32 %v71_v23, 16  ;;  %v656_v38 = vrot.slane %v654_v32, 4  ;;  %v9203_v26 = vld [vmem:[%s13615_s0 + $0x24] sm:$0xff] }
  0x8e   :  { %v301_v37 = vrot.slane %v300_v31, 4  ;;  %v667_v39 = vshrl.u32 %v71_v23, 16  ;;  %v673_v40 = vshll.u32 %v112_v28, 16  ;;  %v659_v43 = vrot.slane %v657_v35, 5 }
  0x8f   :  { %v311_v42 = vrot.slane %v310_v34, 4  ;;  %v665_v44 = vrot.slane %v663_v36, 5  ;;  %v987_v46 = vpack.c.b16 %v954_v33, %v953_v30  ;;  %v870_v57 = vshrl.u32 %v88_v41, 16 }
  0x90   :  { %v306_v47 = vsel %vm9489_vm3, %v301_v37, %v305_v22  ;;  %v669_v48 = vrot.slane %v667_v39, 4  ;;  %v675_v49 = vrot.slane %v673_v40, 5  ;;  %v660_v55 = vor.u32 %v659_v43, %v656_v38  ;;  %v9310_v39 = vld [vmem:[%s13615_s0 + $0x8] sm:$0x1] }
  0x91   :  { %8037 = vmatmul.msk.bf16.gmra.mxu2 %vm993_vm4, %v978_v24  ;;  %v316_v52 = vsel %vm9489_vm3, %v311_v42, %v315_v27  ;;  %v907_v53 = vunpack.c.l.b16 %v306_v47  ;;  %v873_v61 = vshll.u32 %v88_v41, 16  ;;  %v879_v62 = vshll.u32 %v89_v45, 16  ;;  %v1691_v47 = vld [vmem:[%s13615_s0] sm:$0xe] }
  0x92   :  { %v908_v58 = vunpack.c.l.b16 %v316_v52  ;;  %v670_v59 = vor.u32 %v669_v48, %v665_v44  ;;  %v661_v2 = vrot.slane %v660_v55, 4  ;;  %v872_v3 = vrot.slane %v870_v57, 4  ;;  %v8496_v48 = vld [vmem:[%s13615_s0 + $0xc] sm:$0xf] }
  0x93   :  { %v883_v4 = vshrl.u32 %v89_v45, 16  ;;  %v889_v6 = vshll.u32 %v121_v51, 16  ;;  %v4744_v10 = vunpack.c.l.b16 %v9309_v9  ;;  %v875_v12 = vrot.slane %v873_v61, 5  ;;  %v24_v57 = vld [vmem:[%s13614_s1 + $0xc] sm:$0xf] }
  0x94   :  { %v671_v11 = vrot.slane %v670_v59, 4  ;;  %v881_v13 = vrot.slane %v879_v62, 5  ;;  %v964_v15 = vpack.c.b16 %v908_v58, %v907_v53  ;;  %v666_v16 = vsel %vm9489_vm3, %v661_v2, %v665_v44  ;;  %v8497_v58 = vld [vmem:[%s13615_s0 + $0x10] sm:$0xf]  ;;  %v9311_v62 = vld [vmem:[%s13615_s0 + $0x4] sm:$0xf] }
  0x95   :  { %v9949_v8 = vpop.f32.mrf.mxu1  ;;  %v885_v17 = vrot.slane %v883_v4, 4  ;;  %v891_v19 = vrot.slane %v889_v6, 5  ;;  %v937_v23 = vunpack.c.l.b16 %v666_v16  ;;  %v876_v24 = vor.u32 %v875_v12, %v872_v3 }
  0x96   :  { %v9944_v1 = vpop.f32.mrf.mxu2  ;;  %8046 = vmatmul.msk.bf16.gmra.mxu3 %vm993_vm4, %v987_v46  ;;  %v676_v22 = vsel %vm9489_vm3, %v671_v11, %v675_v49  ;;  %v318_v0 = vshrl.u32 %v42_v7, 16  ;;  %v321_v29 = vshll.u32 %v42_v7, 16  ;;  %v327_v30 = vshll.u32 %v9958_v14, 16 }
  0x97   :  { %v938_v27 = vunpack.c.l.b16 %v676_v22  ;;  %v886_v28 = vor.u32 %v885_v17, %v881_v13  ;;  %v877_v32 = vrot.slane %v876_v24, 4  ;;  %v331_v34 = vshrl.u32 %v9958_v14, 16 }
  0x98   :  { %v320_v33 = vrot.slane %v318_v0, 4  ;;  %v337_v35 = vshll.u32 %v9965_v20, 16  ;;  %v323_v37 = vrot.slane %v321_v29, 5  ;;  %v329_v38 = vrot.slane %v327_v30, 5  ;;  %v25_v30 = vld [vmem:[%s13614_s1 + $0x10] sm:$0x3] }
  0x99   :  { %v887_v36 = vrot.slane %v886_v28, 4  ;;  %v1795_v40 = vrot.slane %v9310_v39, 5  ;;  %v882_v41 = vsel %vm9489_vm3, %v877_v32, %v881_v13  ;;  %v333_v42 = vrot.slane %v331_v34, 4  ;;  %v8498_v32 = vld [vmem:[%s13615_s0 + $0x14] sm:$0x1] }
  0x9a   :  { %v4745_v43 = vpack.c.b16 %v4744_v10, %v4744_v10  ;;  %v979_v44 = vpack.c.b16 %v938_v27, %v937_v23  ;;  %v324_v46 = vor.u32 %v323_v37, %v320_v33  ;;  %v955_v49 = vunpack.c.l.b16 %v882_v41 }
  0x9b   :  { %v9967_v21 = vpop.f32.mrf.mxu0  ;;  %8023 = vmatmul.msk.bf16.gmra.mxu0 %vm993_vm4, %v964_v15  ;;  %v892_v45 = vsel %vm9489_vm3, %v887_v36, %v891_v19  ;;  %v334_v52 = vor.u32 %v333_v42, %v329_v38  ;;  %v339_v53 = vrot.slane %v337_v35, 5  ;;  %vm1787_vm5 = vcmask 1042432  }
  0x9c   :  { %v956_v51 = vunpack.c.l.b16 %v892_v45  ;;  %v325_v59 = vrot.slane %v324_v46, 4  ;;  %v1792_v2 = vrot.slane %v9311_v62, 5  ;;  %v5401_v3 = vsel %vm1090_vm0, %v24_v57, 0 }
  0x9d   :  { %v9975_v31 = vpop.f32.mrf.mxu3  ;;  %8179 = vmatmul.msk.bf16.gmra.mxu1 %vm993_vm4, %v9203_v26  ;;  %v335_v4 = vrot.slane %v334_v52, 4  ;;  %vm1788_vm6 = vcmask 1046532   ;;  %5410 = vmatpush.bf16.msra.mxu2 %v5401_v3  ;;  %v3100_v6 = vshrl.u32 %v8496_v48, 16  ;;  %v3103_v7 = vshll.u32 %v8496_v48, 16  ;;  %v9312_v3 = vld [vmem:[%s13615_s0 + $0x10] sm:$0xf] }
  0x9e   :  { %13622 = vst [vmem:[#allocation2_spill] sm:$0xff] %v9975_v31  ;;  %v9994_v55 = vpop.f32.mrf.mxu2  ;;  %v330_v9 = vsel %vm9489_vm3, %v325_v59, %v329_v38  ;;  %v8208_v10 = vrot.slane %v1691_v47, 9  ;;  %v6597_v11 = vunpack.c.l.b16 %v24_v57  ;;  %v3109_v12 = vshll.u32 %v8497_v58, 16  ;;  %vm10019_vm7 = vmor %vm1787_vm5, %vm1788_vm6 }
  0x9f   :  { %v988_v13 = vpack.c.b16 %v956_v51, %v955_v49  ;;  %v340_v15 = vsel %vm9489_vm3, %v335_v4, %v339_v53  ;;  %v909_v16 = vunpack.c.l.b16 %v330_v9  ;;  %v1794_v19 = vrot.slane %v1792_v2, 4 }
  0xa0   :  { %v4746_v22 = vrot.slane %v4745_v43, 2  ;;  %v910_v23 = vunpack.c.l.b16 %v340_v15  ;;  %v3102_v0 = vrot.slane %v3100_v6, 4  ;;  %v3105_v27 = vrot.slane %v3103_v7, 5  ;;  %v1692_v7 = vld [vmem:[%s13615_s0 + $0xc] sm:$0xe] }
  0xa1   :  { %8038 = vmatmul.msk.bf16.gmra.mxu2 %vm993_vm4, %v979_v44  ;;  %v3111_v28 = vrot.slane %v3109_v12, 5  ;;  %v3113_v29 = vshrl.u32 %v8497_v58, 16  ;;  %v6598_v33 = vpack.c.b16 %v6597_v11, %v6597_v11  ;;  %v1793_v35 = vsel %vm10019_vm7, %v8208_v10, %v1792_v2  ;;  %v9204_v44 = vld [vmem:[%s13615_s0 + $0x30] sm:$0xff]  ;;  %v8499_v58 = vld [vmem:[%s13615_s0 + $0x18] sm:$0xf] }
  0xa2   :  { %v10002_v61 = vpop.f32.mrf.mxu1  ;;  %v965_v34 = vpack.c.b16 %v910_v23, %v909_v16  ;;  %v1796_v36 = vsel %vm10019_vm7, %v1794_v19, %v1795_v40  ;;  %v3106_v38 = vor.u32 %v3105_v27, %v3102_v0  ;;  %v4844_v41 = vsel %vm1090_vm0, %v4746_v22, 0  ;;  %v8500_v2 = vld [vmem:[%s13615_s0 + $0x1c] sm:$0xf]  ;;  %v9232_v16 = vld [vmem:[%s13615_s0 + $0xc] sm:$0xff]  ;;  %v9313_v0 = vld [vmem:[%s13615_s0 + $0x14] sm:$0x1] }
  0xa3   :  { %v10013_v17 = vpop.f32.mrf.mxu0  ;;  %v3115_v37 = vrot.slane %v3113_v29, 4  ;;  %v6599_v39 = vrot.slane %v6598_v33, 2  ;;  %v7477_v43 = vsel %vm1090_vm0, %v25_v30, 0  ;;  %v3119_v46 = vshll.u32 %v8498_v32, 16  ;;  %4853 = vmatpush.bf16.msra.mxu1 %v4844_v41 }
  0xa4   :  { %7486 = vmatpush.bf16.msra.mxu0 %v7477_v43  ;;  %v2014_v40 = vunpack.c.l.b16 %v1793_v35  ;;  %v2015_v48 = vunpack.c.l.b16 %v1796_v36  ;;  %v3107_v51 = vrot.slane %v3106_v38, 4  ;;  %v1799_v4 = vrot.slane %v9312_v3, 5  ;;  %v8501_v35 = vld [vmem:[%s13615_s0 + $0x20] sm:$0x1] }
  0xa5   :  { %v10015_v24 = vpop.f32.mrf.mxu3  ;;  %v3116_v45 = vor.u32 %v3115_v37, %v3111_v28  ;;  %v6697_v49 = vsel %vm1090_vm0, %v6599_v39, 0  ;;  %v3121_v57 = vrot.slane %v3119_v46, 5  ;;  %v3124_v9 = vshrl.u32 %v8499_v58, 16  ;;  %v9205_v43 = vld [vmem:[%s13615_s0 + $0x3c] sm:$0xff] }
  0xa6   :  { %13623 = vst [vmem:[#allocation3_spill] sm:$0xff] %v10015_v24  ;;  %8047 = vmatmul.msk.bf16.gmra.mxu3 %vm993_vm4, %v988_v13  ;;  %v2078_v59 = vpack.c.b16 %v2015_v48, %v2014_v40  ;;  %v3112_v6 = vsel %vm9489_vm3, %v3107_v51, %v3111_v28  ;;  %v3127_v11 = vshll.u32 %v8499_v58, 16  ;;  %v3133_v12 = vshll.u32 %v8500_v2, 16 }
  0xa7   :  { %6706 = vmatpush.bf16.msra.mxu3 %v6697_v49  ;;  %v3117_v53 = vrot.slane %v3116_v45, 4  ;;  %v3137_v13 = vshrl.u32 %v8500_v2, 16  ;;  %v8209_v22 = vrot.slane %v1692_v7, 9  ;;  %v1801_v23 = vrot.slane %v1799_v4, 4  ;;  %v8502_v49 = vld [vmem:[%s13615_s0 + $0x24] sm:$0xf] }
  0xa8   :  { %v1802_v27 = vrot.slane %v9313_v0, 5  ;;  %v3867_v28 = vunpack.c.l.b16 %v3112_v6  ;;  %v3126_v30 = vrot.slane %v3124_v9, 4  ;;  %v3129_v32 = vrot.slane %v3127_v11, 5  ;;  %v8503_v2 = vld [vmem:[%s13615_s0 + $0x28] sm:$0xf] }
  0xa9   :  { %v3122_v10 = vsel %vm9489_vm3, %v3117_v53, %v3121_v57  ;;  %v3135_v33 = vrot.slane %v3133_v12, 5  ;;  %v1800_v37 = vsel %vm10019_vm7, %v8209_v22, %v1799_v4  ;;  %v3143_v46 = vshll.u32 %v8501_v35, 16  ;;  %v9314_v6 = vld [vmem:[%s13615_s0 + $0x1c] sm:$0xf] }
  0xaa   :  { %v10035_v42 = vpop.f32.mrf.mxu1  ;;  %v3868_v29 = vunpack.c.l.b16 %v3122_v10  ;;  %v1803_v38 = vsel %vm10019_vm7, %v1801_v23, %v1802_v27  ;;  %v2016_v40 = vunpack.c.l.b16 %v1800_v37  ;;  %v3148_v4 = vshrl.u32 %v8502_v49, 16  ;;  %v1693_v10 = vld [vmem:[%s13615_s0 + $0x18] sm:$0xe] }
  0xab   :  { %v10041_v47 = vpop.f32.mrf.mxu2  ;;  %8024 = vmatmul.msk.bf16.gmra.mxu0 %vm993_vm4, %v965_v34  ;;  %v3139_v34 = vrot.slane %v3137_v13, 4  ;;  %v2017_v48 = vunpack.c.l.b16 %v1803_v38  ;;  %v3145_v58 = vrot.slane %v3143_v46, 5  ;;  %v1806_v7 = vrot.slane %v9314_v6, 5  ;;  %v9233_v27 = vld [vmem:[%s13615_s0 + $0x18] sm:$0xff] }
  0xac   :  { %v3931_v39 = vpack.c.b16 %v3868_v29, %v3867_v28  ;;  %v3151_v9 = vshll.u32 %v8502_v49, 16  ;;  %v3157_v11 = vshll.u32 %v8503_v2, 16  ;;  %v3161_v12 = vshrl.u32 %v8503_v2, 16 }
  0xad   :  { %8180 = vmatmul.msk.bf16.gmra.mxu1 %vm993_vm4, %v9204_v44  ;;  %v3130_v44 = vor.u32 %v3129_v32, %v3126_v30  ;;  %v3140_v45 = vor.u32 %v3139_v34, %v3135_v33  ;;  %v2079_v3 = vpack.c.b16 %v2017_v48, %v2016_v40  ;;  %v3150_v0 = vrot.slane %v3148_v4, 4  ;;  %v9315_v30 = vld [vmem:[%s13615_s0 + $0x20] sm:$0x1] }
  0xae   :  { %v8210_v28 = vrot.slane %v1693_v10, 9  ;;  %v1808_v29 = vrot.slane %v1806_v7, 4  ;;  %v1809_v32 = vrot.slane %v9315_v30, 5  ;;  %v3159_v37 = vrot.slane %v3157_v11, 5  ;;  %v8505_v11 = vld [vmem:[%s13615_s0 + $0x30] sm:$0xf] }
  0xaf   :  { %v10045_v52 = vpop.f32.mrf.mxu0  ;;  %v3131_v53 = vrot.slane %v3130_v44, 4  ;;  %v3141_v57 = vrot.slane %v3140_v45, 4  ;;  %v3163_v38 = vrot.slane %v3161_v12, 4  ;;  %v8506_v12 = vld [vmem:[%s13615_s0 + $0x34] sm:$0xf]  ;;  %vm7946_vm8 = vcmask 1041409  }
  0xb0   :  { %v10051_v62 = vpop.f32.mrf.mxu3  ;;  %v1807_v45 = vsel %vm10019_vm7, %v8210_v28, %v1806_v7  ;;  %v1810_v46 = vsel %vm10019_vm7, %v1808_v29, %v1809_v32  ;;  %v1694_v29 = vld [vmem:[%s13615_s0 + $0x24] sm:$0xe]  ;;  %v3172_v32 = vshrl.u32 %v8505_v11, 16 }
  0xb1   :  { %13626 = vst [vmem:[#allocation4_spill] sm:$0xff] %v10051_v62  ;;  %8240 = vmatmul.msk.bf16.vlgmr.msrb.gmra.mxu2 %vm993_vm4, %v2078_v59  ;;  %v3146_v22 = vsel %vm9489_vm3, %v3141_v57, %v3145_v58  ;;  %v3164_v49 = vor.u32 %v3163_v38, %v3159_v37  ;;  %v9206_v57 = vld [vmem:[%s13615_s0 + $0x48] sm:$0xff]  ;;  %v2018_v58 = vunpack.c.l.b16 %v1807_v45  ;;  %v2019_v2 = vunpack.c.l.b16 %v1810_v46 }
  0xb2   :  { %v3870_v35 = vunpack.c.l.b16 %v3146_v22  ;;  %v8211_v45 = vrot.slane %v1694_v29, 9 }
  0xb3   :  { %v10072_v19 = vpop.f32.mrf.mxu2  ;;  %v3165_v7 = vrot.slane %v3164_v49, 4  ;;  %v2080_v10 = vpack.c.b16 %v2019_v2, %v2018_v58 }
  0xb4   :  { %v10067_v15 = vpop.f32.mrf.mxu1 }
  0xb6   :  { %8464 = vmatmul.msk.bf16.vlgmr.msrb.gmra.mxu3 %vm993_vm4, %v9232_v16  ;;  %v3136_v16 = vsel %vm9489_vm3, %v3131_v53, %v3135_v33  ;;  %v3153_v33 = vrot.slane %v3151_v9, 5 }
  0xb7   :  { %v10081_v36 = vpop.f32.mrf.mxu0  ;;  %v3869_v34 = vunpack.c.l.b16 %v3136_v16  ;;  %v9316_v16 = vld [vmem:[%s13615_s0 + $0x28] sm:$0xf] }
  0xb8   :  { %v10087_v41 = vpop.f32.mrf.mxu3  ;;  %v3154_v48 = vor.u32 %v3153_v33, %v3150_v0  ;;  %v1813_v22 = vrot.slane %v9316_v16, 5  ;;  %v3175_v33 = vshll.u32 %v8505_v11, 16 }
  0xb9   :  { %13627 = vst [vmem:[#allocation5_spill] sm:$0xff] %v10087_v41  ;;  %v3932_v40 = vpack.c.b16 %v3870_v35, %v3869_v34  ;;  %v3181_v34 = vshll.u32 %v8506_v12, 16  ;;  %v3185_v35 = vshrl.u32 %v8506_v12, 16  ;;  %v9207_v12 = vld [vmem:[%s13615_s0 + $0x54] sm:$0xff] }
  0xba   :  { %v3155_v6 = vrot.slane %v3154_v48, 4  ;;  %v1815_v46 = vrot.slane %v1813_v22, 4 }
  0xbb   :  { %8592 = vmatmul.msk.bf16.vlgmr.msrb.gmra.mxu0 %vm993_vm4, %v3931_v39  ;;  %v8504_v39 = vld [vmem:[%s13615_s0 + $0x2c] sm:$0x1]  ;;  %v3183_v58 = vrot.slane %v3181_v34, 5  ;;  %v3187_v2 = vrot.slane %v3185_v35, 4  ;;  %v8509_v35 = vld [vmem:[%s13615_s0 + $0x40] sm:$0xf] }
  0xbc   :  { %v10096_v51 = vpop.f32.mrf.mxu1  ;;  %v3167_v53 = vshll.u32 %v8504_v39, 16  ;;  %v3160_v0 = vsel %vm9489_vm3, %v3155_v6, %v3159_v37  ;;  %v9317_v37 = vld [vmem:[%s13615_s0 + $0x2c] sm:$0x1]  ;;  %v9234_v39 = vld [vmem:[%s13615_s0 + $0x24] sm:$0xff] }
  0xbd   :  { %8181 = vmatmul.msk.bf16.gmra.mxu1 %vm993_vm4, %v9205_v43  ;;  %v1816_v38 = vrot.slane %v9317_v37, 5 }
  0xbe   :  { %v3169_v9 = vrot.slane %v3167_v53, 5  ;;  %v3174_v53 = vrot.slane %v3172_v32, 4 }
  0xbf   :  { %v10099_v59 = vpop.f32.mrf.mxu2 }
  0xc1   :  { %8241 = vmatmul.msk.bf16.gmra.mxu2 %vm993_vm4, %v2079_v3 }
  0xc2   :  { %v10110_v13 = vpop.f32.mrf.mxu0 }
  0xc3   :  { %v10117_v23 = vpop.f32.mrf.mxu3 }
  0xc4   :  { %13628 = vst [vmem:[#allocation6_spill] sm:$0xff] %v10117_v23 }
  0xc6   :  { %8465 = vmatmul.msk.bf16.gmra.mxu3 %vm993_vm4, %v9233_v27  ;;  %v3170_v27 = vsel %vm9489_vm3, %v3165_v7, %v3169_v9  ;;  %v8507_v7 = vld [vmem:[%s13615_s0 + $0x38] sm:$0x1]  ;;  %v1814_v9 = vsel %vm10019_vm7, %v8211_v45, %v1813_v22  ;;  %v8508_v22 = vld [vmem:[%s13615_s0 + $0x3c] sm:$0xf] }
  0xc7   :  { %v10128_v43 = vpop.f32.mrf.mxu1  ;;  %v10131_v44 = vpop.f32.mrf.mxu2  ;;  %v3872_v48 = vunpack.c.l.b16 %v3170_v27  ;;  %v3191_v27 = vshll.u32 %v8507_v7, 16  ;;  %v2020_v32 = vunpack.c.l.b16 %v1814_v9  ;;  %v3209_v7 = vshrl.u32 %v8509_v35, 16 }
  0xc8   :  { %13629 = vst [vmem:[#allocation7_spill] sm:$0xff] %v10131_v44  ;;  %v8525_v44 = vld [vmem:[%s13615_s0 + $0x80] sm:$0x1] }
  0xca   :  { %v10140_v3 = vpop.f32.mrf.mxu0 }
  0xcb   :  { %8593 = vmatmul.msk.bf16.gmra.mxu0 %vm993_vm4, %v3932_v40  ;;  %v10143_v4 = vpop.f32.mrf.mxu3  ;;  %v3871_v40 = vunpack.c.l.b16 %v3160_v0  ;;  %v3188_v0 = vor.u32 %v3187_v2, %v3183_v58  ;;  %v3205_v2 = vshll.u32 %v8509_v35, 16 }
  0xcc   :  { %13630 = vst [vmem:[#allocation8_spill] sm:$0xff] %v10143_v4 }
  0xcd   :  { %8182 = vmatmul.msk.bf16.gmra.mxu1 %vm993_vm4, %v9206_v57  ;;  %v3177_v57 = vrot.slane %v3175_v33, 5  ;;  %v3933_v11 = vpack.c.b16 %v3872_v48, %v3871_v40  ;;  %v3199_v40 = vshll.u32 %v8508_v22, 16 }
  0xcf   :  { %v10159_v28 = vpop.f32.mrf.mxu1  ;;  %v3178_v16 = vor.u32 %v3177_v57, %v3174_v53  ;;  %v9318_v53 = vld [vmem:[%s13615_s0 + $0x34] sm:$0xf] }
  0xd0   :  { %v1820_v57 = vrot.slane %v9318_v53, 5  ;;  %v3211_v53 = vrot.slane %v3209_v7, 4 }
  0xd1   :  { %8242 = vmatmul.msk.bf16.gmra.mxu2 %vm993_vm4, %v2080_v10  ;;  %v1817_v10 = vsel %vm10019_vm7, %v1815_v46, %v1816_v38  ;;  %v3179_v37 = vrot.slane %v3178_v16, 4  ;;  %v3189_v38 = vrot.slane %v3188_v0, 4  ;;  %v3196_v46 = vshrl.u32 %v8508_v22, 16  ;;  %v9319_v16 = vld [vmem:[%s13615_s0 + $0x38] sm:$0x1]  ;;  %v9235_v22 = vld [vmem:[%s13615_s0 + $0x30] sm:$0xff] }
  0xd2   :  { %v10164_v30 = vpop.f32.mrf.mxu2  ;;  %v2021_v33 = vunpack.c.l.b16 %v1817_v10  ;;  %v1695_v10 = vld [vmem:[%s13615_s0 + $0x30] sm:$0xe]  ;;  %v1823_v0 = vrot.slane %v9319_v16, 5  ;;  %v8510_v16 = vld [vmem:[%s13615_s0 + $0x44] sm:$0x1] }
  0xd3   :  { %13631 = vst [vmem:[#allocation9_spill] sm:$0xff] %v10164_v30  ;;  %v8212_v35 = vrot.slane %v1695_v10, 9 }
  0xd4   :  { %v2081_v45 = vpack.c.b16 %v2021_v33, %v2020_v32  ;;  %v3198_v32 = vrot.slane %v3196_v46, 4  ;;  %v3201_v33 = vrot.slane %v3199_v40, 5 }
  0xd5   :  { %v10173_v49 = vpop.f32.mrf.mxu0  ;;  %v1821_v46 = vsel %vm10019_vm7, %v8212_v35, %v1820_v57 }
  0xd6   :  { %v10175_v6 = vpop.f32.mrf.mxu3  ;;  %8466 = vmatmul.msk.bf16.gmra.mxu3 %vm993_vm4, %v9234_v39  ;;  %v3193_v39 = vrot.slane %v3191_v27, 5 }
  0xd7   :  { %13632 = vst [vmem:[#allocation10_spill] sm:$0xff] %v10175_v6 }
  0xda   :  { %v10188_v29 = vpop.f32.mrf.mxu1  ;;  %v10190_v34 = vpop.f32.mrf.mxu2 }
  0xdb   :  { %13633 = vst [vmem:[#allocation11_spill] sm:$0xff] %v10190_v34  ;;  %8594 = vmatmul.msk.bf16.gmra.mxu0 %vm993_vm4, %v3933_v11  ;;  %v3184_v11 = vsel %vm9489_vm3, %v3179_v37, %v3183_v58  ;;  %v1822_v58 = vrot.slane %v1820_v57, 4  ;;  %v3207_v37 = vrot.slane %v3205_v2, 5  ;;  %v3215_v2 = vshll.u32 %v8510_v16, 16 }
  0xdd   :  { %8183 = vmatmul.msk.bf16.gmra.mxu1 %vm993_vm4, %v9207_v12  ;;  %v10200_v48 = vpop.f32.mrf.mxu0  ;;  %v3194_v12 = vsel %vm9489_vm3, %v3189_v38, %v3193_v39  ;;  %v3873_v38 = vunpack.c.l.b16 %v3184_v11  ;;  %v1824_v40 = vsel %vm10019_vm7, %v1822_v58, %v1823_v0  ;;  %v3212_v10 = vor.u32 %v3211_v53, %v3207_v37  ;;  %v8511_v58 = vld [vmem:[%s13615_s0 + $0x48] sm:$0xf]  ;;  %v8512_v53 = vld [vmem:[%s13615_s0 + $0x4c] sm:$0xf] }
  0xde   :  { %v10205_v9 = vpop.f32.mrf.mxu3  ;;  %v3874_v39 = vunpack.c.l.b16 %v3194_v12  ;;  %v9208_v12 = vld [vmem:[%s13615_s0 + $0x60] sm:$0xff]  ;;  %v3217_v35 = vrot.slane %v3215_v2, 5  ;;  %v3229_v2 = vshll.u32 %v8512_v53, 16 }
  0xdf   :  { %13634 = vst [vmem:[#allocation12_spill] sm:$0xff] %v10205_v9  ;;  %v3213_v57 = vrot.slane %v3212_v10, 4  ;;  %v3223_v10 = vshll.u32 %v8511_v58, 16 }
  0xe0   :  { %v3934_v7 = vpack.c.b16 %v3874_v39, %v3873_v38  ;;  %v3231_v23 = vrot.slane %v3229_v2, 5 }
  0xe1   :  { %8243 = vmatmul.msk.bf16.gmra.mxu2 %vm993_vm4, %v2081_v45  ;;  %v3202_v45 = vor.u32 %v3201_v33, %v3198_v32  ;;  %v2022_v33 = vunpack.c.l.b16 %v1821_v46  ;;  %v3218_v16 = vsel %vm9489_vm3, %v3213_v57, %v3217_v35  ;;  %v1696_v46 = vld [vmem:[%s13615_s0 + $0x3c] sm:$0xe] }
  0xe2   :  { %v10218_v27 = vpop.f32.mrf.mxu1  ;;  %v3876_v57 = vunpack.c.l.b16 %v3218_v16  ;;  %v8213_v35 = vrot.slane %v1696_v46, 9 }
  0xe3   :  { %v3203_v4 = vrot.slane %v3202_v45, 4  ;;  %v1827_v45 = vrot.slane %v9793_v50, 5  ;;  %v9236_v50 = vld [vmem:[%s13615_s0 + $0x3c] sm:$0xff] }
  0xe4   :  { %v10226_v9 = vpop.f32.mrf.mxu2 }
  0xe5   :  { %13635 = vst [vmem:[#allocation13_spill] sm:$0xff] %v10226_v9  ;;  %v3208_v39 = vsel %vm9489_vm3, %v3203_v4, %v3207_v37 }
  0xe6   :  { %8467 = vmatmul.msk.bf16.gmra.mxu3 %vm993_vm4, %v9235_v22  ;;  %v2023_v22 = vunpack.c.l.b16 %v1824_v40  ;;  %v3220_v40 = vshrl.u32 %v8511_v58, 16  ;;  %v3875_v37 = vunpack.c.l.b16 %v3208_v39  ;;  %v1829_v58 = vrot.slane %v1827_v45, 4 }
  0xe8   :  { %v10233_v11 = vpop.f32.mrf.mxu0  ;;  %v2082_v38 = vpack.c.b16 %v2023_v22, %v2022_v33  ;;  %v1830_v33 = vrot.slane %v9800_v54, 5  ;;  %v8513_v54 = vld [vmem:[%s13615_s0 + $0x50] sm:$0x1]  ;;  %v3935_v16 = vpack.c.b16 %v3876_v57, %v3875_v37  ;;  %v8514_v57 = vld [vmem:[%s13615_s0 + $0x54] sm:$0xf] }
  0xe9   :  { %v10238_v6 = vpop.f32.mrf.mxu3 }
  0xea   :  { %13636 = vst [vmem:[#allocation14_spill] sm:$0xff] %v10238_v6  ;;  %v10240_v32 = vpop.f32.mrf.mxu1  ;;  %v3222_v6 = vrot.slane %v3220_v40, 4  ;;  %v1831_v39 = vsel %vm10019_vm7, %v1829_v58, %v1830_v33  ;;  %v1834_v58 = vrot.slane %v9846_v56, 5 }
  0xeb   :  { %8595 = vmatmul.msk.bf16.gmra.mxu0 %vm993_vm4, %v3934_v7  ;;  %v3233_v7 = vshrl.u32 %v8512_v53, 16  ;;  %v3225_v53 = vrot.slane %v3223_v10, 5  ;;  %v3239_v10 = vshll.u32 %v8513_v54, 16  ;;  %v2025_v31 = vunpack.c.l.b16 %v1831_v39 }
  0xec   :  { %v10243_v0 = vpop.f32.mrf.mxu2  ;;  %v3244_v39 = vshrl.u32 %v8514_v57, 16 }
  0xed   :  { %13637 = vst [vmem:[#allocation15_spill] sm:$0xff] %v10243_v0  ;;  %8184 = vmatmul.msk.bf16.gmra.mxu1 %vm993_vm4, %v9208_v12  ;;  %v3235_v41 = vrot.slane %v3233_v7, 4  ;;  %v3226_v46 = vor.u32 %v3225_v53, %v3222_v6  ;;  %v9209_v7 = vld [vmem:[%s13615_s0 + $0x6c] sm:$0xff]  ;;  %v3241_v37 = vrot.slane %v3239_v10, 5 }
  0xef   :  { %v3236_v40 = vor.u32 %v3235_v41, %v3231_v23 }
  0xf0   :  { %v10260_v12 = vpop.f32.mrf.mxu0 }
  0xf1   :  { %v10263_v22 = vpop.f32.mrf.mxu3  ;;  %8244 = vmatmul.msk.bf16.gmra.mxu2 %vm993_vm4, %v2082_v38  ;;  %v1828_v38 = vsel %vm10019_vm7, %v8213_v35, %v1827_v45  ;;  %v3227_v45 = vrot.slane %v3226_v46, 4  ;;  %v3237_v33 = vrot.slane %v3236_v40, 4  ;;  %v8515_v35 = vld [vmem:[%s13615_s0 + $0x58] sm:$0xf] }
  0xf2   :  { %13638 = vst [vmem:[#allocation16_spill] sm:$0xff] %v10263_v22  ;;  %v10266_v4 = vpop.f32.mrf.mxu1  ;;  %v3253_v46 = vshll.u32 %v8515_v35, 16  ;;  %v3257_v40 = vshrl.u32 %v8515_v35, 16 }
  0xf3   :  { %v3232_v53 = vsel %vm9489_vm3, %v3227_v45, %v3231_v23  ;;  %v3242_v54 = vsel %vm9489_vm3, %v3237_v33, %v3241_v37  ;;  %v1837_v23 = vrot.slane %v9853_v60, 5  ;;  %v1836_v45 = vrot.slane %v1834_v58, 4 }
  0xf4   :  { %v10271_v62 = vpop.f32.mrf.mxu2  ;;  %v3877_v33 = vunpack.c.l.b16 %v3232_v53  ;;  %v3878_v37 = vunpack.c.l.b16 %v3242_v54 }
  0xf5   :  { %13639 = vst [vmem:[#allocation17_spill] sm:$0xff] %v10271_v62 }
  0xf6   :  { %8468 = vmatmul.msk.bf16.gmra.mxu3 %vm993_vm4, %v9236_v50  ;;  %v2024_v50 = vunpack.c.l.b16 %v1828_v38  ;;  %v3936_v53 = vpack.c.b16 %v3878_v37, %v3877_v33 }
  0xf8   :  { %v10281_v2 = vpop.f32.mrf.mxu0  ;;  %v2083_v41 = vpack.c.b16 %v2025_v31, %v2024_v50  ;;  %v1697_v31 = vld [vmem:[%s13615_s0 + $0x48] sm:$0xe] }
  0xf9   :  { %v10286_v22 = vpop.f32.mrf.mxu3  ;;  %v8214_v50 = vrot.slane %v1697_v31, 9  ;;  %v1838_v31 = vsel %vm10019_vm7, %v1836_v45, %v1837_v23  ;;  %v8518_v23 = vld [vmem:[%s13615_s0 + $0x64] sm:$0xf] }
  0xfa   :  { %13640 = vst [vmem:[#allocation18_spill] sm:$0xff] %v10286_v22  ;;  %v10288_v24 = vpop.f32.mrf.mxu1  ;;  %v2027_v0 = vunpack.c.l.b16 %v1838_v31  ;;  %v3281_v31 = vshrl.u32 %v8518_v23, 16 }
  0xfb   :  { %8596 = vmatmul.msk.bf16.gmra.mxu0 %vm993_vm4, %v3935_v16  ;;  %v3247_v16 = vshll.u32 %v8514_v57, 16  ;;  %v3246_v57 = vrot.slane %v3244_v39, 4  ;;  %v1835_v60 = vsel %vm10019_vm7, %v8214_v50, %v1834_v58  ;;  %v9210_v39 = vld [vmem:[%s13615_s0 + $0x78] sm:$0xff]  ;;  %v8517_v58 = vld [vmem:[%s13615_s0 + $0x60] sm:$0xf] }
  0xfc   :  { %v10291_v6 = vpop.f32.mrf.mxu2 }
  0xfd   :  { %13641 = vst [vmem:[#allocation19_spill] sm:$0xff] %v10291_v6  ;;  %8185 = vmatmul.msk.bf16.gmra.mxu1 %vm993_vm4, %v9209_v7  ;;  %v9237_v7 = vld [vmem:[%s13615_s0 + $0x48] sm:$0xff]  ;;  %v3249_v35 = vrot.slane %v3247_v16, 5  ;;  %v3255_v6 = vrot.slane %v3253_v46, 5 }
  0xff   :  { %v3250_v16 = vor.u32 %v3249_v35, %v3246_v57  ;;  %v3268_v57 = vshrl.u32 %v8517_v58, 16  ;;  %v3271_v35 = vshll.u32 %v8517_v58, 16  ;;  %v9238_v58 = vld [vmem:[%s13615_s0 + $0x54] sm:$0xff] }
 0x100   :  { %v10308_v38 = vpop.f32.mrf.mxu0 }
 0x101   :  { %v10310_v10 = vpop.f32.mrf.mxu3  ;;  %8245 = vmatmul.msk.bf16.gmra.mxu2 %vm993_vm4, %v2083_v41  ;;  %v8516_v41 = vld [vmem:[%s13615_s0 + $0x5c] sm:$0x1] }
 0x102   :  { %13642 = vst [vmem:[#allocation20_spill] sm:$0xff] %v10310_v10  ;;  %v10313_v56 = vpop.f32.mrf.mxu1  ;;  %v3259_v10 = vrot.slane %v3257_v40, 4  ;;  %v3263_v40 = vshll.u32 %v8516_v41, 16  ;;  %v3277_v41 = vshll.u32 %v8518_v23, 16 }
 0x104   :  { %v10319_v22 = vpop.f32.mrf.mxu2  ;;  %v3260_v46 = vor.u32 %v3259_v10, %v3255_v6  ;;  %v3251_v10 = vrot.slane %v3250_v16, 4  ;;  %v3265_v33 = vrot.slane %v3263_v40, 5  ;;  %v3273_v40 = vrot.slane %v3271_v35, 5 }
 0x105   :  { %13643 = vst [vmem:[#allocation21_spill] sm:$0xff] %v10319_v22 }
 0x106   :  { %8469 = vmatmul.msk.bf16.gmra.mxu3 %vm993_vm4, %v9237_v7  ;;  %v2026_v7 = vunpack.c.l.b16 %v1835_v60  ;;  %v3261_v45 = vrot.slane %v3260_v46, 4  ;;  %v1841_v60 = vrot.slane %v9896_v63, 5  ;;  %v3270_v46 = vrot.slane %v3268_v57, 4 }
 0x108   :  { %v10329_v54 = vpop.f32.mrf.mxu0  ;;  %v2084_v37 = vpack.c.b16 %v2027_v0, %v2026_v7  ;;  %v1844_v0 = vrot.slane %v9906_v5, 5  ;;  %v3279_v7 = vrot.slane %v3277_v41, 5  ;;  %v3274_v57 = vor.u32 %v3273_v40, %v3270_v46 }
 0x109   :  { %v10334_v22 = vpop.f32.mrf.mxu3 }
 0x10a   :  { %13644 = vst [vmem:[#allocation22_spill] sm:$0xff] %v10334_v22  ;;  %v10336_v62 = vpop.f32.mrf.mxu1  ;;  %v1698_v22 = vld [vmem:[%s13615_s0 + $0x54] sm:$0xe] }
 0x10b   :  { %8597 = vmatmul.msk.bf16.gmra.mxu0 %vm993_vm4, %v3936_v53  ;;  %v3256_v53 = vsel %vm9489_vm3, %v3251_v10, %v3255_v6  ;;  %v8215_v6 = vrot.slane %v1698_v22, 9  ;;  %v1843_v10 = vrot.slane %v1841_v60, 4 }
 0x10c   :  { %v10345_v50 = vpop.f32.mrf.mxu2 }
 0x10d   :  { %13645 = vst [vmem:[#allocation23_spill] sm:$0xff] %v10345_v50  ;;  %8186 = vmatmul.msk.bf16.gmra.mxu1 %vm993_vm4, %v9210_v39  ;;  %v3266_v39 = vsel %vm9489_vm3, %v3261_v45, %v3265_v33  ;;  %v3283_v45 = vrot.slane %v3281_v31, 4  ;;  %v3879_v33 = vunpack.c.l.b16 %v3256_v53  ;;  %v1842_v35 = vsel %vm10019_vm7, %v8215_v6, %v1841_v60 }
 0x10e   :  { %v3880_v5 = vunpack.c.l.b16 %v3266_v39  ;;  %v9211_v39 = vld [vmem:[%s13615_s0 + $0x84] sm:$0xff]  ;;  %v2028_v40 = vunpack.c.l.b16 %v1842_v35  ;;  %v3275_v60 = vrot.slane %v3274_v57, 4  ;;  %v1848_v57 = vrot.slane %v9958_v14, 5  ;;  %v1699_v35 = vld [vmem:[%s13615_s0 + $0x60] sm:$0xe] }
 0x10f   :  { %v3284_v22 = vor.u32 %v3283_v45, %v3279_v7  ;;  %v8520_v45 = vld [vmem:[%s13615_s0 + $0x6c] sm:$0xf]  ;;  %v9239_v14 = vld [vmem:[%s13615_s0 + $0x60] sm:$0xff] }
 0x110   :  { %v10352_v9 = vpop.f32.mrf.mxu0  ;;  %v3937_v31 = vpack.c.b16 %v3880_v5, %v3879_v33  ;;  %v8521_v33 = vld [vmem:[%s13615_s0 + $0x70] sm:$0xf] }
 0x111   :  { %v10359_v16 = vpop.f32.mrf.mxu3  ;;  %8246 = vmatmul.msk.bf16.gmra.mxu2 %vm993_vm4, %v2084_v37  ;;  %v8519_v37 = vld [vmem:[%s13615_s0 + $0x68] sm:$0x1]  ;;  %v3285_v6 = vrot.slane %v3284_v22, 4  ;;  %v3295_v22 = vshll.u32 %v8520_v45, 16 }
 0x112   :  { %13646 = vst [vmem:[#allocation24_spill] sm:$0xff] %v10359_v16  ;;  %v1543_v63 = vpop.f32.mrf.mxu1  ;;  %v3287_v41 = vshll.u32 %v8519_v37, 16 }
 0x113   :  { %v10366_v23 = vadd.f32 %v1543_v63, %v10140_v3  ;;  %v1845_v3 = vsel %vm10019_vm7, %v1843_v10, %v1844_v0 }
 0x114   :  { %v10371_v16 = vpop.f32.mrf.mxu2  ;;  %v3289_v0 = vrot.slane %v3287_v41, 5  ;;  %v3301_v41 = vshll.u32 %v8521_v33, 16 }
 0x115   :  { %13647 = vst [vmem:[#allocation25_spill] sm:$0xff] %v10371_v16 }
 0x116   :  { %8470 = vmatmul.msk.bf16.gmra.mxu3 %vm993_vm4, %v9238_v58  ;;  %v2029_v58 = vunpack.c.l.b16 %v1845_v3  ;;  %v3290_v37 = vsel %vm9489_vm3, %v3285_v6, %v3289_v0  ;;  %v3292_v3 = vshrl.u32 %v8520_v45, 16  ;;  %v8216_v0 = vrot.slane %v1699_v35, 9 }
 0x117   :  { %v1850_v45 = vrot.slane %v1848_v57, 4 }
 0x118   :  { %v10378_v53 = vpop.f32.mrf.mxu0  ;;  %v2085_v5 = vpack.c.b16 %v2029_v58, %v2028_v40 }
 0x119   :  { %v10383_v63 = vpop.f32.mrf.mxu3 }
 0x11a   :  { %13648 = vst [vmem:[#allocation26_spill] sm:$0xff] %v10383_v63  ;;  %v1546_v46 = vpop.f32.mrf.mxu1  ;;  %v3297_v63 = vrot.slane %v3295_v22, 5 }
 0x11b   :  { %v10386_v16 = vadd.f32 %v1546_v46, %v10173_v49  ;;  %8598 = vmatmul.msk.bf16.gmra.mxu0 %vm993_vm4, %v3937_v31  ;;  %v3280_v49 = vsel %vm9489_vm3, %v3275_v60, %v3279_v7  ;;  %v3305_v31 = vshrl.u32 %v8521_v33, 16  ;;  %v1851_v46 = vrot.slane %v9965_v20, 5 }
 0x11c   :  { %v10389_v10 = vpop.f32.mrf.mxu2  ;;  %v3881_v7 = vunpack.c.l.b16 %v3280_v49  ;;  %v3882_v60 = vunpack.c.l.b16 %v3290_v37  ;;  %v3294_v33 = vrot.slane %v3292_v3, 4  ;;  %v1849_v49 = vsel %vm10019_vm7, %v8216_v0, %v1848_v57 }
 0x11d   :  { %13649 = vst [vmem:[#allocation27_spill] sm:$0xff] %v10389_v10  ;;  %8187 = vmatmul.msk.bf16.gmra.mxu1 %vm993_vm4, %v9211_v39  ;;  %v3303_v10 = vrot.slane %v3301_v41, 5  ;;  %v3307_v20 = vrot.slane %v3305_v31, 4  ;;  %v9212_v31 = vld [vmem:[%s13615_s0 + $0x90] sm:$0xff] }
 0x11e   :  { %v3938_v37 = vpack.c.b16 %v3882_v60, %v3881_v7  ;;  %v3298_v35 = vor.u32 %v3297_v63, %v3294_v33  ;;  %v8524_v33 = vld [vmem:[%s13615_s0 + $0x7c] sm:$0xf] }
 0x11f   :  { %v3308_v3 = vor.u32 %v3307_v20, %v3303_v10 }
 0x120   :  { %v10406_v39 = vpop.f32.mrf.mxu0 }
 0x121   :  { %v10409_v40 = vpop.f32.mrf.mxu3  ;;  %8247 = vmatmul.msk.bf16.gmra.mxu2 %vm993_vm4, %v2085_v5  ;;  %v8522_v5 = vld [vmem:[%s13615_s0 + $0x74] sm:$0x1]  ;;  %v3309_v63 = vrot.slane %v3308_v3, 4  ;;  %v3329_v3 = vshrl.u32 %v8524_v33, 16 }
 0x122   :  { %13650 = vst [vmem:[#allocation28_spill] sm:$0xff] %v10409_v40  ;;  %v1548_v58 = vpop.f32.mrf.mxu1  ;;  %v3311_v22 = vshll.u32 %v8522_v5, 16 }
 0x123   :  { %v10416_v6 = vadd.f32 %v1548_v58, %v10200_v48  ;;  %v1852_v48 = vsel %vm10019_vm7, %v1850_v45, %v1851_v46  ;;  %v3299_v46 = vrot.slane %v3298_v35, 4  ;;  %v8523_v45 = vld [vmem:[%s13615_s0 + $0x78] sm:$0xf]  ;;  %v3325_v35 = vshll.u32 %v8524_v33, 16 }
 0x124   :  { %v10418_v50 = vpop.f32.mrf.mxu2  ;;  %v3313_v7 = vrot.slane %v3311_v22, 5  ;;  %v1532_v33 = vadd.f32 %v10240_v32, %v9967_v21  ;;  %v3331_v30 = vrot.slane %v3329_v3, 4 }
 0x125   :  { %13651 = vst [vmem:[#allocation29_spill] sm:$0xff] %v10418_v50  ;;  %v2031_v50 = vunpack.c.l.b16 %v1852_v48  ;;  %v3304_v20 = vsel %vm9489_vm3, %v3299_v46, %v3303_v10  ;;  %v3316_v48 = vshrl.u32 %v8523_v45, 16  ;;  %v9321_v10 = vld [vmem:[%s13615_s0 + $0x74] sm:$0x1]  ;;  %v9240_v46 = vld [vmem:[%s13615_s0 + $0x6c] sm:$0xff]  ;;  %v3327_v34 = vrot.slane %v3325_v35, 5 }
 0x126   :  { %8471 = vmatmul.msk.bf16.gmra.mxu3 %vm993_vm4, %v9239_v14  ;;  %v2030_v14 = vunpack.c.l.b16 %v1849_v49  ;;  %v3314_v5 = vsel %vm9489_vm3, %v3309_v63, %v3313_v7 }
 0x128   :  { %v10428_v41 = vpop.f32.mrf.mxu0  ;;  %v2086_v0 = vpack.c.b16 %v2031_v50, %v2030_v14  ;;  %v1700_v50 = vld [vmem:[%s13615_s0 + $0x6c] sm:$0xe]  ;;  %v1858_v14 = vrot.slane %v9321_v10, 5 }
 0x129   :  { %v10433_v58 = vpop.f32.mrf.mxu3  ;;  %v8217_v7 = vrot.slane %v1700_v50, 9 }
 0x12a   :  { %13652 = vst [vmem:[#allocation30_spill] sm:$0xff] %v10433_v58  ;;  %v1551_v40 = vpop.f32.mrf.mxu1  ;;  %v3318_v58 = vrot.slane %v3316_v48, 4  ;;  %v3332_v48 = vor.u32 %v3331_v30, %v3327_v34 }
 0x12b   :  { %v10436_v57 = vadd.f32 %v1551_v40, %v10233_v11  ;;  %8599 = vmatmul.msk.bf16.gmra.mxu0 %vm993_vm4, %v3938_v37  ;;  %v9320_v11 = vld [vmem:[%s13615_s0 + $0x70] sm:$0xf]  ;;  %v3319_v37 = vshll.u32 %v8523_v45, 16 }
 0x12c   :  { %v10439_v60 = vpop.f32.mrf.mxu2  ;;  %v1855_v40 = vrot.slane %v9320_v11, 5  ;;  %v3883_v11 = vunpack.c.l.b16 %v3304_v20 }
 0x12d   :  { %13653 = vst [vmem:[#allocation31_spill] sm:$0xff] %v10439_v60  ;;  %8188 = vmatmul.msk.bf16.gmra.mxu1 %vm993_vm4, %v9212_v31  ;;  %v3321_v60 = vrot.slane %v3319_v37, 5  ;;  %v3335_v37 = vshll.u32 %v8525_v44, 16  ;;  %v8526_v44 = vld [vmem:[%s13615_s0 + $0x84] sm:$0xf] }
 0x12e   :  { %v1857_v45 = vrot.slane %v1855_v40, 4 }
 0x12f   :  { %v3322_v50 = vor.u32 %v3321_v60, %v3318_v58  ;;  %v3333_v58 = vrot.slane %v3332_v48, 4  ;;  %v3337_v30 = vrot.slane %v3335_v37, 5  ;;  %v9323_v48 = vld [vmem:[%s13615_s0 + $0x80] sm:$0x1] }
 0x130   :  { %v10458_v49 = vpop.f32.mrf.mxu0  ;;  %v1859_v21 = vsel %vm10019_vm7, %v1857_v45, %v1858_v14  ;;  %v1865_v37 = vrot.slane %v9323_v48, 5 }
 0x131   :  { %v10460_v22 = vpop.f32.mrf.mxu3  ;;  %8248 = vmatmul.msk.bf16.gmra.mxu2 %vm993_vm4, %v2086_v0  ;;  %v3884_v0 = vunpack.c.l.b16 %v3314_v5  ;;  %v9213_v5 = vld [vmem:[%s13615_s0 + $0x9c] sm:$0xff] }
 0x132   :  { %13654 = vst [vmem:[#allocation32_spill] sm:$0xff] %v10460_v22  ;;  %v1553_v31 = vpop.f32.mrf.mxu1 }
 0x133   :  { %v10470_v63 = vadd.f32 %v1553_v31, %v10260_v12  ;;  %v1856_v12 = vsel %vm10019_vm7, %v8217_v7, %v1855_v40  ;;  %v3939_v32 = vpack.c.b16 %v3884_v0, %v3883_v11  ;;  %v2033_v31 = vunpack.c.l.b16 %v1859_v21  ;;  %v1701_v0 = vld [vmem:[%s13615_s0 + $0x78] sm:$0xe] }
 0x134   :  { %v2218_v22 = vpop.f32.mrf.mxu2  ;;  %v1534_v40 = vadd.f32 %v10266_v4, %v10013_v17  ;;  %v3323_v7 = vrot.slane %v3322_v50, 4  ;;  %v8527_v17 = vld [vmem:[%s13615_s0 + $0x88] sm:$0xf]  ;;  %v9322_v4 = vld [vmem:[%s13615_s0 + $0x7c] sm:$0xf] }
 0x135   :  { %v2378_v10 = vadd.f32 %v2218_v22, %v1532_v33  ;;  %v2032_v22 = vunpack.c.l.b16 %v1856_v12  ;;  %v1862_v11 = vrot.slane %v9322_v4, 5  ;;  %v3343_v12 = vshll.u32 %v8526_v44, 16 }
 0x136   :  { %8472 = vmatmul.msk.bf16.gmra.mxu3 %vm993_vm4, %v9240_v46  ;;  %v3353_v50 = vshrl.u32 %v8527_v17, 16 }
 0x138   :  { %v4071_v20 = vpop.f32.mrf.mxu0 }
 0x139   :  { %v2779_v35 = vpop.f32.mrf.mxu3 }
 0x13a   :  { %v1556_v3 = vpop.f32.mrf.mxu1  ;;  %v2939_v46 = vadd.f32 %v2779_v35, %v2378_v10  ;;  %v3340_v10 = vshrl.u32 %v8526_v44, 16  ;;  %v1537_v35 = vadd.f32 %v10288_v24, %v10045_v52  ;;  %v3345_v44 = vrot.slane %v3343_v12, 5 }
 0x13b   :  { %v10486_v33 = vadd.f32 %v1556_v3, %v10281_v2  ;;  %8600 = vmatmul.msk.bf16.gmra.mxu0 %vm993_vm4, %v3939_v32  ;;  %v2087_v2 = vpack.c.b16 %v2033_v31, %v2032_v22  ;;  %v3328_v32 = vsel %vm9489_vm3, %v3323_v7, %v3327_v34  ;;  %v9241_v34 = vld [vmem:[%s13615_s0 + $0x78] sm:$0xff]  ;;  %v3355_v52 = vrot.slane %v3353_v50, 4 }
 0x13c   :  { %v2220_v14 = vpop.f32.mrf.mxu2  ;;  %v10495_v60 = vadd.f32 %v4071_v20, %v2939_v46  ;;  %v3338_v20 = vsel %vm9489_vm3, %v3333_v58, %v3337_v30  ;;  %v3885_v7 = vunpack.c.l.b16 %v3328_v32  ;;  %v3342_v30 = vrot.slane %v3340_v10, 4 }
 0x13d   :  { %8189 = vmatmul.msk.bf16.gmra.mxu1 %vm993_vm4, %v9213_v5  ;;  %v2379_v45 = vadd.f32 %v2220_v14, %v1534_v40  ;;  %v3349_v5 = vshll.u32 %v8527_v17, 16  ;;  %v8218_v40 = vrot.slane %v1701_v0, 9  ;;  %v1864_v14 = vrot.slane %v1862_v11, 4 }
 0x13e   :  { %v3886_v58 = vunpack.c.l.b16 %v3338_v20  ;;  %v3346_v12 = vor.u32 %v3345_v44, %v3342_v30 }
 0x13f   :  { %v3351_v24 = vrot.slane %v3349_v5, 5  ;;  %v1866_v0 = vsel %vm10019_vm7, %v1864_v14, %v1865_v37 }
 0x140   :  { %v4073_v21 = vpop.f32.mrf.mxu0  ;;  %v3940_v10 = vpack.c.b16 %v3886_v58, %v3885_v7  ;;  %v3347_v37 = vrot.slane %v3346_v12, 4  ;;  %v8529_v7 = vld [vmem:[%s13615_s0 + $0x90] sm:$0xf] }
 0x141   :  { %v2781_v3 = vpop.f32.mrf.mxu3  ;;  %8249 = vmatmul.msk.bf16.gmra.mxu2 %vm993_vm4, %v2087_v2  ;;  %v3356_v20 = vor.u32 %v3355_v52, %v3351_v24  ;;  %v1702_v52 = vld [vmem:[%s13615_s0 + $0x84] sm:$0xe] }
 0x142   :  { %v1558_v22 = vpop.f32.mrf.mxu1  ;;  %v2940_v31 = vadd.f32 %v2781_v3, %v2379_v45  ;;  %v8528_v45 = vld [vmem:[%s13615_s0 + $0x8c] sm:$0x1]  ;;  %v2035_v3 = vunpack.c.l.b16 %v1866_v0  ;;  %v3367_v0 = vshll.u32 %v8529_v7, 16 }
 0x143   :  { %v10520_v46 = vadd.f32 %v1558_v22, %v10308_v38  ;;  %v1863_v38 = vsel %vm10019_vm7, %v8218_v40, %v1862_v11  ;;  %v3359_v5 = vshll.u32 %v8528_v45, 16  ;;  %v1539_v11 = vadd.f32 %v10313_v56, %v10081_v36  ;;  %v8530_v36 = vld [vmem:[%s13615_s0 + $0x94] sm:$0xf]  ;;  %v9324_v56 = vld [vmem:[%s13615_s0 + $0x88] sm:$0xf] }
 0x144   :  { %v2223_v17 = vpop.f32.mrf.mxu2  ;;  %v10522_v4 = vadd.f32 %v4073_v21, %v2940_v31  ;;  %v9214_v21 = vld [vmem:[%s13615_s0 + $0xa8] sm:$0xff]  ;;  %v3357_v40 = vrot.slane %v3356_v20, 4  ;;  %v1869_v44 = vrot.slane %v9324_v56, 5  ;;  %v3377_v12 = vshrl.u32 %v8530_v36, 16 }
 0x145   :  { %v2380_v2 = vadd.f32 %v2223_v17, %v1537_v35  ;;  %v2034_v35 = vunpack.c.l.b16 %v1863_v38  ;;  %v3361_v14 = vrot.slane %v3359_v5, 5  ;;  %v3352_v17 = vsel %vm9489_vm3, %v3347_v37, %v3351_v24 }
 0x146   :  { %8473 = vmatmul.msk.bf16.gmra.mxu3 %vm993_vm4, %v9241_v34 }
 0x147   :  { %v3362_v38 = vsel %vm9489_vm3, %v3357_v40, %v3361_v14  ;;  %v3369_v14 = vrot.slane %v3367_v0, 5 }
 0x148   :  { %v4076_v32 = vpop.f32.mrf.mxu0  ;;  %v3888_v37 = vunpack.c.l.b16 %v3362_v38 }
 0x149   :  { %v2784_v50 = vpop.f32.mrf.mxu3 }
 0x14a   :  { %v1561_v48 = vpop.f32.mrf.mxu1  ;;  %v2941_v22 = vadd.f32 %v2784_v50, %v2380_v2  ;;  %v3364_v2 = vshrl.u32 %v8529_v7, 16  ;;  %v9242_v50 = vld [vmem:[%s13615_s0 + $0x84] sm:$0xff] }
 0x14b   :  { %v10536_v31 = vadd.f32 %v1561_v48, %v10329_v54  ;;  %8601 = vmatmul.msk.bf16.gmra.mxu0 %vm993_vm4, %v3940_v10  ;;  %v2088_v54 = vpack.c.b16 %v2035_v3, %v2034_v35  ;;  %v3373_v10 = vshll.u32 %v8530_v36, 16  ;;  %v8219_v35 = vrot.slane %v1702_v52, 9  ;;  %v9215_v52 = vld [vmem:[%s13615_s0 + $0xb4] sm:$0xff] }
 0x14c   :  { %v2225_v34 = vpop.f32.mrf.mxu2  ;;  %v10545_v58 = vadd.f32 %v4076_v32, %v2941_v22  ;;  %v9325_v32 = vld [vmem:[%s13615_s0 + $0x8c] sm:$0x1]  ;;  %v1871_v3 = vrot.slane %v1869_v44, 4  ;;  %v1542_v22 = vadd.f32 %v10336_v62, %v10110_v13 }
 0x14d   :  { %8190 = vmatmul.msk.bf16.gmra.mxu1 %vm993_vm4, %v9214_v21  ;;  %v2381_v30 = vadd.f32 %v2225_v34, %v1539_v11  ;;  %v1872_v21 = vrot.slane %v9325_v32, 5  ;;  %v3887_v11 = vunpack.c.l.b16 %v3352_v17  ;;  %v3366_v34 = vrot.slane %v3364_v2, 4 }
 0x14e   :  { %v3375_v7 = vrot.slane %v3373_v10, 5  ;;  %v1870_v56 = vsel %vm10019_vm7, %v8219_v35, %v1869_v44  ;;  %v8532_v35 = vld [vmem:[%s13615_s0 + $0x9c] sm:$0xf] }
 0x14f   :  { %v1873_v62 = vsel %vm10019_vm7, %v1871_v3, %v1872_v21  ;;  %v3941_v13 = vpack.c.b16 %v3888_v37, %v3887_v11  ;;  %v3370_v2 = vor.u32 %v3369_v14, %v3366_v34  ;;  %v9326_v37 = vld [vmem:[%s13615_s0 + $0x94] sm:$0xf]  ;;  %v3388_v14 = vshrl.u32 %v8532_v35, 16 }
 0x150   :  { %v4078_v45 = vpop.f32.mrf.mxu0  ;;  %v2037_v32 = vunpack.c.l.b16 %v1873_v62  ;;  %v1876_v34 = vrot.slane %v9326_v37, 5 }
 0x151   :  { %v2786_v20 = vpop.f32.mrf.mxu3  ;;  %8250 = vmatmul.msk.bf16.gmra.mxu2 %vm993_vm4, %v2088_v54  ;;  %v3379_v54 = vrot.slane %v3377_v12, 4  ;;  %v2036_v12 = vunpack.c.l.b16 %v1870_v56  ;;  %v3371_v21 = vrot.slane %v3370_v2, 4 }
 0x152   :  { %v1563_v24 = vpop.f32.mrf.mxu1  ;;  %v2942_v5 = vadd.f32 %v2786_v20, %v2381_v30 }
 0x153   :  { %v10568_v48 = vadd.f32 %v1563_v24, %v10352_v9  ;;  %v8531_v9 = vld [vmem:[%s13615_s0 + $0x98] sm:$0x1]  ;;  %v2089_v11 = vpack.c.b16 %v2037_v32, %v2036_v12 }
 0x154   :  { %v2228_v40 = vpop.f32.mrf.mxu2  ;;  %v10572_v30 = vadd.f32 %v4078_v45, %v2942_v5  ;;  %v3380_v45 = vor.u32 %v3379_v54, %v3375_v7  ;;  %v3383_v38 = vshll.u32 %v8531_v9, 16  ;;  %v3391_v54 = vshll.u32 %v8532_v35, 16 }
 0x155   :  { %v2382_v36 = vadd.f32 %v2228_v40, %v1542_v22  ;;  %v1703_v40 = vld [vmem:[%s13615_s0 + $0x90] sm:$0xe] }
 0x156   :  { %8474 = vmatmul.msk.bf16.gmra.mxu3 %vm993_vm4, %v9242_v50  ;;  %v3381_v5 = vrot.slane %v3380_v45, 4  ;;  %v3385_v50 = vrot.slane %v3383_v38, 5  ;;  %v9243_v38 = vld [vmem:[%s13615_s0 + $0x90] sm:$0xff] }
 0x158   :  { %v4081_v17 = vpop.f32.mrf.mxu0  ;;  %v3386_v9 = vsel %vm9489_vm3, %v3381_v5, %v3385_v50 }
 0x159   :  { %v2789_v0 = vpop.f32.mrf.mxu3  ;;  %v3890_v32 = vunpack.c.l.b16 %v3386_v9 }
 0x15a   :  { %v1566_v10 = vpop.f32.mrf.mxu1  ;;  %v2943_v20 = vadd.f32 %v2789_v0, %v2382_v36  ;;  %v8220_v0 = vrot.slane %v1703_v40, 9 }
 0x15b   :  { %v10586_v24 = vadd.f32 %v1566_v10, %v10378_v53  ;;  %8602 = vmatmul.msk.bf16.gmra.mxu0 %vm993_vm4, %v3941_v13  ;;  %v8533_v53 = vld [vmem:[%s13615_s0 + $0xa0] sm:$0xf]  ;;  %v9327_v13 = vld [vmem:[%s13615_s0 + $0x98] sm:$0x1]  ;;  %v1878_v10 = vrot.slane %v1876_v34, 4 }
 0x15c   :  { %v2230_v44 = vpop.f32.mrf.mxu2  ;;  %v10593_v3 = vadd.f32 %v4081_v17, %v2943_v20  ;;  %v3397_v56 = vshll.u32 %v8533_v53, 16  ;;  %v3401_v62 = vshrl.u32 %v8533_v53, 16  ;;  %v1879_v17 = vrot.slane %v9327_v13, 5 }
 0x15d   :  { %8191 = vmatmul.msk.bf16.gmra.mxu1 %vm993_vm4, %v9215_v52  ;;  %v2383_v22 = vadd.f32 %v2230_v44, %v10366_v23  ;;  %v3376_v23 = vsel %vm9489_vm3, %v3371_v21, %v3375_v7  ;;  %v3390_v20 = vrot.slane %v3388_v14, 4  ;;  %v3393_v44 = vrot.slane %v3391_v54, 5  ;;  %v9216_v54 = vld [vmem:[%s13615_s0 + $0xd8] sm:$0xff] }
 0x15e   :  { %v3889_v12 = vunpack.c.l.b16 %v3376_v23  ;;  %v3399_v5 = vrot.slane %v3397_v56, 5  ;;  %v3403_v50 = vrot.slane %v3401_v62, 4  ;;  %v1880_v53 = vsel %vm10019_vm7, %v1878_v10, %v1879_v17 }
 0x15f   :  { %v3394_v40 = vor.u32 %v3393_v44, %v3390_v20  ;;  %v2039_v62 = vunpack.c.l.b16 %v1880_v53 }
 0x160   :  { %v4083_v36 = vpop.f32.mrf.mxu0  ;;  %v3942_v37 = vpack.c.b16 %v3890_v32, %v3889_v12  ;;  %v9328_v32 = vld [vmem:[%s13615_s0 + $0xa0] sm:$0xf] }
 0x161   :  { %v2791_v52 = vpop.f32.mrf.mxu3  ;;  %8251 = vmatmul.msk.bf16.gmra.mxu2 %vm993_vm4, %v2089_v11  ;;  %v8534_v11 = vld [vmem:[%s13615_s0 + $0xa4] sm:$0x1]  ;;  %v1883_v20 = vrot.slane %v9328_v32, 5 }
 0x162   :  { %v1568_v2 = vpop.f32.mrf.mxu1  ;;  %v2944_v45 = vadd.f32 %v2791_v52, %v2383_v22 }
 0x163   :  { %v10617_v7 = vadd.f32 %v1568_v2, %v10406_v39  ;;  %v1877_v39 = vsel %vm10019_vm7, %v8220_v0, %v1876_v34  ;;  %v3395_v34 = vrot.slane %v3394_v40, 4 }
 0x164   :  { %v2233_v21 = vpop.f32.mrf.mxu2  ;;  %v10619_v35 = vadd.f32 %v4083_v36, %v2944_v45  ;;  %v3407_v36 = vshll.u32 %v8534_v11, 16  ;;  %v2038_v56 = vunpack.c.l.b16 %v1877_v39 }
 0x165   :  { %v2384_v22 = vadd.f32 %v2233_v21, %v10386_v16  ;;  %v3404_v16 = vor.u32 %v3403_v50, %v3399_v5  ;;  %v3400_v44 = vsel %vm9489_vm3, %v3395_v34, %v3399_v5  ;;  %v1704_v21 = vld [vmem:[%s13615_s0 + $0x9c] sm:$0xe] }
 0x166   :  { %8475 = vmatmul.msk.bf16.gmra.mxu3 %vm993_vm4, %v9243_v38  ;;  %v3409_v45 = vrot.slane %v3407_v36, 5  ;;  %v8535_v38 = vld [vmem:[%s13615_s0 + $0xa8] sm:$0xf]  ;;  %v2090_v12 = vpack.c.b16 %v2039_v62, %v2038_v56  ;;  %v3891_v56 = vunpack.c.l.b16 %v3400_v44 }
 0x167   :  { %v3405_v2 = vrot.slane %v3404_v16, 4  ;;  %v3412_v50 = vshrl.u32 %v8535_v38, 16  ;;  %v3415_v11 = vshll.u32 %v8535_v38, 16  ;;  %v9244_v16 = vld [vmem:[%s13615_s0 + $0x9c] sm:$0xff] }
 0x168   :  { %v4086_v14 = vpop.f32.mrf.mxu0 }
 0x169   :  { %v2794_v23 = vpop.f32.mrf.mxu3 }
 0x16a   :  { %v1571_v9 = vpop.f32.mrf.mxu1  ;;  %v2945_v13 = vadd.f32 %v2794_v23, %v2384_v22  ;;  %v8221_v23 = vrot.slane %v1704_v21, 9  ;;  %v9217_v21 = vld [vmem:[%s13615_s0 + $0xe4] sm:$0xff] }
 0x16b   :  { %v10634_v52 = vadd.f32 %v1571_v9, %v10428_v41  ;;  %8603 = vmatmul.msk.bf16.gmra.mxu0 %vm993_vm4, %v3942_v37  ;;  %v8536_v41 = vld [vmem:[%s13615_s0 + $0xac] sm:$0xf]  ;;  %v9329_v37 = vld [vmem:[%s13615_s0 + $0xa4] sm:$0x1]  ;;  %v1885_v9 = vrot.slane %v1883_v20, 4 }
 0x16c   :  { %v2235_v17 = vpop.f32.mrf.mxu2  ;;  %v10641_v0 = vadd.f32 %v4086_v14, %v2945_v13  ;;  %v3421_v39 = vshll.u32 %v8536_v41, 16  ;;  %v3425_v53 = vshrl.u32 %v8536_v41, 16  ;;  %v1886_v40 = vrot.slane %v9329_v37, 5 }
 0x16d   :  { %8192 = vmatmul.msk.bf16.gmra.mxu1 %vm993_vm4, %v9216_v54  ;;  %v2385_v10 = vadd.f32 %v2235_v17, %v10416_v6  ;;  %v3410_v6 = vsel %vm9489_vm3, %v3405_v2, %v3409_v45  ;;  %v3414_v13 = vrot.slane %v3412_v50, 4  ;;  %v3417_v17 = vrot.slane %v3415_v11, 5 }
 0x16e   :  { %v3892_v62 = vunpack.c.l.b16 %v3410_v6  ;;  %v3423_v2 = vrot.slane %v3421_v39, 5  ;;  %v3427_v45 = vrot.slane %v3425_v53, 4  ;;  %v1887_v41 = vsel %vm10019_vm7, %v1885_v9, %v1886_v40 }
 0x16f   :  { %v3418_v50 = vor.u32 %v3417_v17, %v3414_v13  ;;  %v2041_v53 = vunpack.c.l.b16 %v1887_v41 }
 0x170   :  { %v4088_v22 = vpop.f32.mrf.mxu0  ;;  %v3943_v32 = vpack.c.b16 %v3892_v62, %v3891_v56  ;;  %v8539_v56 = vld [vmem:[%s13615_s0 + $0xb8] sm:$0xf]  ;;  %v9330_v62 = vld [vmem:[%s13615_s0 + $0xac] sm:$0xf] }
 0x171   :  { %v2796_v14 = vpop.f32.mrf.mxu3  ;;  %8252 = vmatmul.msk.bf16.gmra.mxu2 %vm993_vm4, %v2090_v12  ;;  %v8537_v12 = vld [vmem:[%s13615_s0 + $0xb0] sm:$0x1]  ;;  %v3419_v40 = vrot.slane %v3418_v50, 4  ;;  %v1890_v13 = vrot.slane %v9330_v62, 5  ;;  %v3449_v41 = vshrl.u32 %v8539_v56, 16 }
 0x172   :  { %v1573_v5 = vpop.f32.mrf.mxu1  ;;  %v2946_v54 = vadd.f32 %v2796_v14, %v2385_v10 }
 0x173   :  { %v10665_v36 = vadd.f32 %v1573_v5, %v10458_v49  ;;  %v1884_v49 = vsel %vm10019_vm7, %v8221_v23, %v1883_v20 }
 0x174   :  { %v2238_v34 = vpop.f32.mrf.mxu2  ;;  %v10667_v38 = vadd.f32 %v4088_v22, %v2946_v54  ;;  %v3431_v22 = vshll.u32 %v8537_v12, 16  ;;  %v2040_v39 = vunpack.c.l.b16 %v1884_v49  ;;  %v8538_v54 = vld [vmem:[%s13615_s0 + $0xb4] sm:$0xf]  ;;  %v3445_v49 = vshll.u32 %v8539_v56, 16 }
 0x175   :  { %v2386_v10 = vadd.f32 %v2238_v34, %v10436_v57  ;;  %v3428_v57 = vor.u32 %v3427_v45, %v3423_v2  ;;  %v1705_v34 = vld [vmem:[%s13615_s0 + $0xa8] sm:$0xe]  ;;  %v3436_v17 = vshrl.u32 %v8538_v54, 16  ;;  %v3439_v45 = vshll.u32 %v8538_v54, 16 }
 0x176   :  { %8476 = vmatmul.msk.bf16.gmra.mxu3 %vm993_vm4, %v9244_v16  ;;  %v3433_v5 = vrot.slane %v3431_v22, 5  ;;  %v2091_v9 = vpack.c.b16 %v2041_v53, %v2040_v39  ;;  %v8222_v22 = vrot.slane %v1705_v34, 9 }
 0x177   :  { %v3429_v14 = vrot.slane %v3428_v57, 4 }
 0x178   :  { %v4091_v44 = vpop.f32.mrf.mxu0  ;;  %v1891_v56 = vsel %vm10019_vm7, %v8222_v22, %v1890_v13  ;;  %v8541_v22 = vld [vmem:[%s13615_s0 + $0xc0] sm:$0xf] }
 0x179   :  { %v2799_v6 = vpop.f32.mrf.mxu3  ;;  %v3434_v12 = vsel %vm9489_vm3, %v3429_v14, %v3433_v5  ;;  %v3447_v14 = vrot.slane %v3445_v49, 5  ;;  %v3451_v5 = vrot.slane %v3449_v41, 4  ;;  %v2042_v41 = vunpack.c.l.b16 %v1891_v56 }
 0x17a   :  { %v10681_v11 = vpop.f32.mrf.mxu1  ;;  %v2947_v37 = vadd.f32 %v2799_v6, %v2386_v10  ;;  %v1892_v6 = vrot.slane %v1890_v13, 4  ;;  %v3894_v53 = vunpack.c.l.b16 %v3434_v12 }
 0x17b   :  { %8604 = vmatmul.msk.bf16.gmra.mxu0 %vm993_vm4, %v3943_v32 }
 0x17c   :  { %v2240_v20 = vpop.f32.mrf.mxu2  ;;  %v10688_v16 = vadd.f32 %v4091_v44, %v2947_v37  ;;  %v3438_v37 = vrot.slane %v3436_v17, 4 }
 0x17d   :  { %8193 = vmatmul.msk.bf16.gmra.mxu1 %vm993_vm4, %v9217_v21  ;;  %v2387_v23 = vadd.f32 %v2240_v20, %v10470_v63  ;;  %v3424_v63 = vsel %vm9489_vm3, %v3419_v40, %v3423_v2  ;;  %v9331_v21 = vld [vmem:[%s13615_s0 + $0xb0] sm:$0x1]  ;;  %v9245_v2 = vld [vmem:[%s13615_s0 + $0xa8] sm:$0xff]  ;;  %v3441_v20 = vrot.slane %v3439_v45, 5 }
 0x17e   :  { %v1893_v50 = vrot.slane %v9331_v21, 5  ;;  %v3893_v39 = vunpack.c.l.b16 %v3424_v63 }
 0x17f   :  { %v3442_v17 = vor.u32 %v3441_v20, %v3438_v37  ;;  %v8542_v37 = vld [vmem:[%s13615_s0 + $0xc4] sm:$0xf]  ;;  %v9332_v20 = vld [vmem:[%s13615_s0 + $0xb8] sm:$0xf] }
 0x180   :  { %v4093_v10 = vpop.f32.mrf.mxu0  ;;  %v1894_v62 = vsel %vm10019_vm7, %v1892_v6, %v1893_v50  ;;  %v3944_v34 = vpack.c.b16 %v3894_v53, %v3893_v39 }
 0x181   :  { %v2801_v32 = vpop.f32.mrf.mxu3  ;;  %8253 = vmatmul.msk.bf16.gmra.mxu2 %vm993_vm4, %v2091_v9  ;;  %v3443_v13 = vrot.slane %v3442_v17, 4  ;;  %v3473_v17 = vshrl.u32 %v8542_v37, 16 }
 0x182   :  { %v10705_v44 = vpop.f32.mrf.mxu1  ;;  %v2948_v57 = vadd.f32 %v2801_v32, %v2387_v23  ;;  %v8540_v23 = vld [vmem:[%s13615_s0 + $0xbc] sm:$0x1]  ;;  %v2043_v32 = vunpack.c.l.b16 %v1894_v62  ;;  %v3463_v62 = vshll.u32 %v8541_v22, 16 }
 0x183   :  { %v3455_v63 = vshll.u32 %v8540_v23, 16  ;;  %v3460_v23 = vshrl.u32 %v8541_v22, 16 }
 0x184   :  { %v2243_v40 = vpop.f32.mrf.mxu2  ;;  %v10713_v54 = vadd.f32 %v4093_v10, %v2948_v57  ;;  %v9218_v10 = vld [vmem:[%s13615_s0 + $0xf0] sm:$0xff]  ;;  %v2092_v53 = vpack.c.b16 %v2043_v32, %v2042_v41 }
 0x185   :  { %v2388_v9 = vadd.f32 %v2243_v40, %v10486_v33  ;;  %v3452_v33 = vor.u32 %v3451_v5, %v3447_v14  ;;  %v1897_v40 = vrot.slane %v9332_v20, 5  ;;  %v3448_v5 = vsel %vm9489_vm3, %v3443_v13, %v3447_v14  ;;  %v9333_v14 = vld [vmem:[%s13615_s0 + $0xbc] sm:$0x1] }
 0x186   :  { %8477 = vmatmul.msk.bf16.gmra.mxu3 %vm993_vm4, %v9245_v2  ;;  %v3457_v2 = vrot.slane %v3455_v63, 5 }
 0x187   :  { %v3453_v50 = vrot.slane %v3452_v33, 4  ;;  %v1900_v33 = vrot.slane %v9333_v14, 5  ;;  %v1899_v32 = vrot.slane %v1897_v40, 4 }
 0x188   :  { %v4096_v45 = vpop.f32.mrf.mxu0 }
 0x189   :  { %v2804_v12 = vpop.f32.mrf.mxu3 }
 0x18a   :  { %v10727_v49 = vpop.f32.mrf.mxu1  ;;  %v2949_v21 = vadd.f32 %v2804_v12, %v2388_v9  ;;  %v1706_v9 = vld [vmem:[%s13615_s0 + $0xb4] sm:$0xe] }
 0x18b   :  { %8605 = vmatmul.msk.bf16.gmra.mxu0 %vm993_vm4, %v3944_v34  ;;  %v3469_v34 = vshll.u32 %v8542_v37, 16  ;;  %v9246_v12 = vld [vmem:[%s13615_s0 + $0xb4] sm:$0xff]  ;;  %v8223_v41 = vrot.slane %v1706_v9, 9 }
 0x18c   :  { %v2245_v57 = vpop.f32.mrf.mxu2  ;;  %v10734_v6 = vadd.f32 %v4096_v45, %v2949_v21  ;;  %v3895_v21 = vunpack.c.l.b16 %v3448_v5  ;;  %v1901_v5 = vsel %vm10019_vm7, %v1899_v32, %v1900_v33 }
 0x18d   :  { %8194 = vmatmul.msk.bf16.gmra.mxu1 %vm993_vm4, %v9218_v10  ;;  %v2389_v39 = vadd.f32 %v2245_v57, %v10520_v46  ;;  %v3458_v46 = vsel %vm9489_vm3, %v3453_v50, %v3457_v2  ;;  %v3462_v57 = vrot.slane %v3460_v23, 4  ;;  %v3465_v2 = vrot.slane %v3463_v62, 5 }
 0x18e   :  { %v3896_v13 = vunpack.c.l.b16 %v3458_v46  ;;  %v3471_v22 = vrot.slane %v3469_v34, 5  ;;  %v1898_v9 = vsel %vm10019_vm7, %v8223_v41, %v1897_v40 }
 0x18f   :  { %v3466_v62 = vor.u32 %v3465_v2, %v3462_v57  ;;  %v2044_v14 = vunpack.c.l.b16 %v1898_v9  ;;  %v8545_v2 = vld [vmem:[%s13615_s0 + $0xe8] sm:$0xf] }
 0x190   :  { %v4098_v56 = vpop.f32.mrf.mxu0  ;;  %v3945_v23 = vpack.c.b16 %v3896_v13, %v3895_v21  ;;  %v8544_v21 = vld [vmem:[%s13615_s0 + $0xe4] sm:$0xf] }
 0x191   :  { %v2806_v45 = vpop.f32.mrf.mxu3  ;;  %8254 = vmatmul.msk.bf16.gmra.mxu2 %vm993_vm4, %v2092_v53  ;;  %v3475_v53 = vrot.slane %v3473_v17, 4  ;;  %v3467_v33 = vrot.slane %v3466_v62, 4  ;;  %v3484_v9 = vshrl.u32 %v8544_v21, 16  ;;  %v3497_v62 = vshrl.u32 %v8545_v2, 16 }
 0x192   :  { %v10751_v10 = vpop.f32.mrf.mxu1  ;;  %v2950_v63 = vadd.f32 %v2806_v45, %v2389_v39  ;;  %v8543_v39 = vld [vmem:[%s13615_s0 + $0xc8] sm:$0x1] }
 0x193   :  { %v3479_v34 = vshll.u32 %v8543_v39, 16  ;;  %v1707_v39 = vld [vmem:[%s13615_s0 + $0xd8] sm:$0xe] }
 0x194   :  { %v2248_v50 = vpop.f32.mrf.mxu2  ;;  %v10759_v37 = vadd.f32 %v4098_v56, %v2950_v63  ;;  %v9219_v56 = vld [vmem:[%s13615_s0 + $0xfc] sm:$0xff]  ;;  %v2045_v63 = vunpack.c.l.b16 %v1901_v5  ;;  %v3487_v5 = vshll.u32 %v8544_v21, 16 }
 0x195   :  { %v2390_v20 = vadd.f32 %v2248_v50, %v10536_v31  ;;  %v3476_v31 = vor.u32 %v3475_v53, %v3471_v22  ;;  %v3481_v32 = vrot.slane %v3479_v34, 5  ;;  %v9334_v53 = vld [vmem:[%s13615_s0 + $0xdc] sm:$0xf] }
 0x196   :  { %13655 = vst [vmem:[#allocation33_spill] sm:$0xff] %v10759_v37  ;;  %8478 = vmatmul.msk.bf16.gmra.mxu3 %vm993_vm4, %v9246_v12  ;;  %v2093_v50 = vpack.c.b16 %v2045_v63, %v2044_v14  ;;  %v3489_v21 = vrot.slane %v3487_v5, 5 }
 0x197   :  { %v3477_v41 = vrot.slane %v3476_v31, 4 }
 0x198   :  { %v4101_v46 = vpop.f32.mrf.mxu0 }
 0x199   :  { %v2809_v17 = vpop.f32.mrf.mxu3 }
 0x19a   :  { %v10773_v45 = vpop.f32.mrf.mxu1  ;;  %v2951_v12 = vadd.f32 %v2809_v17, %v2390_v20  ;;  %v1904_v20 = vrot.slane %v9334_v53, 5  ;;  %v9335_v17 = vld [vmem:[%s13615_s0 + $0xe0] sm:$0x1]  ;;  %v3499_v53 = vrot.slane %v3497_v62, 4 }
 0x19b   :  { %8606 = vmatmul.msk.bf16.gmra.mxu0 %vm993_vm4, %v3945_v23  ;;  %v1907_v14 = vrot.slane %v9335_v17, 5 }
 0x19c   :  { %v2250_v40 = vpop.f32.mrf.mxu2  ;;  %v10780_v13 = vadd.f32 %v4101_v46, %v2951_v12  ;;  %v3482_v46 = vsel %vm9489_vm3, %v3477_v41, %v3481_v32  ;;  %v8224_v12 = vrot.slane %v1707_v39, 9  ;;  %v3486_v32 = vrot.slane %v3484_v9, 4 }
 0x19d   :  { %8195 = vmatmul.msk.bf16.gmra.mxu1 %vm993_vm4, %v9219_v56  ;;  %v2391_v57 = vadd.f32 %v2250_v40, %v10568_v48  ;;  %v3472_v48 = vsel %vm9489_vm3, %v3467_v33, %v3471_v22  ;;  %v3493_v56 = vshll.u32 %v8545_v2, 16  ;;  %v9247_v22 = vld [vmem:[%s13615_s0 + $0xc0] sm:$0xff]  ;;  %v1906_v40 = vrot.slane %v1904_v20, 4 }
 0x19e   :  { %13656 = vst [vmem:[#allocation34_spill] sm:$0xff] %v10780_v13  ;;  %v3897_v33 = vunpack.c.l.b16 %v3472_v48  ;;  %v3898_v41 = vunpack.c.l.b16 %v3482_v46  ;;  %v1905_v39 = vsel %vm10019_vm7, %v8224_v12, %v1904_v20  ;;  %v3490_v48 = vor.u32 %v3489_v21, %v3486_v32 }
 0x19f   :  { %v1908_v9 = vsel %vm10019_vm7, %v1906_v40, %v1907_v14  ;;  %v2046_v17 = vunpack.c.l.b16 %v1905_v39  ;;  %v1708_v39 = vld [vmem:[%s13615_s0 + $0xe4] sm:$0xe] }
 0x1a0   :  { %v4103_v23 = vpop.f32.mrf.mxu0  ;;  %v3946_v5 = vpack.c.b16 %v3898_v41, %v3897_v33  ;;  %v3491_v20 = vrot.slane %v3490_v48, 4  ;;  %v8547_v33 = vld [vmem:[%s13615_s0 + $0xf0] sm:$0xf] }
 0x1a1   :  { %v2811_v31 = vpop.f32.mrf.mxu3  ;;  %8255 = vmatmul.msk.bf16.gmra.mxu2 %vm993_vm4, %v2093_v50  ;;  %v3495_v50 = vrot.slane %v3493_v56, 5  ;;  %v3511_v48 = vshll.u32 %v8547_v33, 16 }
 0x1a2   :  { %v10797_v34 = vpop.f32.mrf.mxu1  ;;  %v2952_v63 = vadd.f32 %v2811_v31, %v2391_v57  ;;  %v8546_v57 = vld [vmem:[%s13615_s0 + $0xec] sm:$0x1] }
 0x1a3   :  { %v3503_v56 = vshll.u32 %v8546_v57, 16  ;;  %v3496_v57 = vsel %vm9489_vm3, %v3491_v20, %v3495_v50 }
 0x1a4   :  { %v2253_v2 = vpop.f32.mrf.mxu2  ;;  %v10805_v13 = vadd.f32 %v4103_v23, %v2952_v63  ;;  %v9220_v23 = vld [vmem:[%s13615_s0 + $0x108] sm:$0xff]  ;;  %v2047_v63 = vunpack.c.l.b16 %v1908_v9  ;;  %v3508_v9 = vshrl.u32 %v8547_v33, 16 }
 0x1a5   :  { %v2392_v37 = vadd.f32 %v2253_v2, %v10586_v24  ;;  %v3500_v24 = vor.u32 %v3499_v53, %v3495_v50  ;;  %v3505_v40 = vrot.slane %v3503_v56, 5  ;;  %v9336_v2 = vld [vmem:[%s13615_s0 + $0xe8] sm:$0xf]  ;;  %v9337_v50 = vld [vmem:[%s13615_s0 + $0xec] sm:$0x1] }
 0x1a6   :  { %13657 = vst [vmem:[#allocation35_spill] sm:$0xff] %v10805_v13  ;;  %8479 = vmatmul.msk.bf16.gmra.mxu3 %vm993_vm4, %v9247_v22  ;;  %v2094_v21 = vpack.c.b16 %v2047_v63, %v2046_v17  ;;  %v1911_v53 = vrot.slane %v9336_v2, 5  ;;  %v9248_v63 = vld [vmem:[%s13615_s0 + $0xe4] sm:$0xff] }
 0x1a7   :  { %v3501_v14 = vrot.slane %v3500_v24, 4 }
 0x1a8   :  { %v4106_v46 = vpop.f32.mrf.mxu0  ;;  %v1913_v20 = vrot.slane %v1911_v53, 4 }
 0x1a9   :  { %v2814_v62 = vpop.f32.mrf.mxu3 }
 0x1aa   :  { %v10819_v31 = vpop.f32.mrf.mxu1  ;;  %v2953_v22 = vadd.f32 %v2814_v62, %v2392_v37  ;;  %v8548_v37 = vld [vmem:[%s13615_s0 + $0xf4] sm:$0xf]  ;;  %v1914_v62 = vrot.slane %v9337_v50, 5 }
 0x1ab   :  { %8607 = vmatmul.msk.bf16.gmra.mxu0 %vm993_vm4, %v3946_v5 }
 0x1ac   :  { %v2255_v12 = vpop.f32.mrf.mxu2  ;;  %v10826_v41 = vadd.f32 %v4106_v46, %v2953_v22  ;;  %v3517_v46 = vshll.u32 %v8548_v37, 16  ;;  %v8225_v22 = vrot.slane %v1708_v39, 9 }
 0x1ad   :  { %8196 = vmatmul.msk.bf16.gmra.mxu1 %vm993_vm4, %v9220_v23  ;;  %v2393_v32 = vadd.f32 %v2255_v12, %v10617_v7  ;;  %v3506_v7 = vsel %vm9489_vm3, %v3501_v14, %v3505_v40  ;;  %v3521_v23 = vshrl.u32 %v8548_v37, 16  ;;  %v3899_v12 = vunpack.c.l.b16 %v3496_v57 }
 0x1ae   :  { %13658 = vst [vmem:[#allocation36_spill] sm:$0xff] %v10826_v41  ;;  %v3900_v14 = vunpack.c.l.b16 %v3506_v7  ;;  %v3510_v40 = vrot.slane %v3508_v9, 4  ;;  %v3513_v37 = vrot.slane %v3511_v48, 5  ;;  %v1912_v39 = vsel %vm10019_vm7, %v8225_v22, %v1911_v53 }
 0x1af   :  { %v3523_v2 = vrot.slane %v3521_v23, 4  ;;  %v1915_v57 = vsel %vm10019_vm7, %v1913_v20, %v1914_v62  ;;  %v2048_v50 = vunpack.c.l.b16 %v1912_v39 }
 0x1b0   :  { %v4108_v5 = vpop.f32.mrf.mxu0  ;;  %v3947_v9 = vpack.c.b16 %v3900_v14, %v3899_v12  ;;  %v3514_v48 = vor.u32 %v3513_v37, %v3510_v40  ;;  %v8550_v12 = vld [vmem:[%s13615_s0 + $0xfc] sm:$0xf]  ;;  %v9338_v37 = vld [vmem:[%s13615_s0 + $0xf4] sm:$0xf] }
 0x1b1   :  { %v2816_v24 = vpop.f32.mrf.mxu3  ;;  %8256 = vmatmul.msk.bf16.gmra.mxu2 %vm993_vm4, %v2094_v21  ;;  %v3519_v21 = vrot.slane %v3517_v46, 5  ;;  %v3532_v39 = vshrl.u32 %v8550_v12, 16 }
 0x1b2   :  { %v10843_v56 = vpop.f32.mrf.mxu1  ;;  %v2954_v17 = vadd.f32 %v2816_v24, %v2393_v32  ;;  %v8549_v32 = vld [vmem:[%s13615_s0 + $0xf8] sm:$0x1]  ;;  %v3515_v62 = vrot.slane %v3514_v48, 4 }
 0x1b3   :  { %v3527_v46 = vshll.u32 %v8549_v32, 16  ;;  %v1709_v32 = vld [vmem:[%s13615_s0 + $0xf0] sm:$0xe] }
 0x1b4   :  { %v2258_v33 = vpop.f32.mrf.mxu2  ;;  %v10851_v41 = vadd.f32 %v4108_v5, %v2954_v17  ;;  %v9221_v5 = vld [vmem:[%s13615_s0 + $0x114] sm:$0xff]  ;;  %v2049_v17 = vunpack.c.l.b16 %v1915_v57  ;;  %v3535_v57 = vshll.u32 %v8550_v12, 16  ;;  %v3534_v12 = vrot.slane %v3532_v39, 4 }
 0x1b5   :  { %v2394_v13 = vadd.f32 %v2258_v33, %v10634_v52  ;;  %v3524_v52 = vor.u32 %v3523_v2, %v3519_v21  ;;  %v3529_v20 = vrot.slane %v3527_v46, 5  ;;  %v1918_v2 = vrot.slane %v9338_v37, 5 }
 0x1b6   :  { %13659 = vst [vmem:[#allocation37_spill] sm:$0xff] %v10851_v41  ;;  %8480 = vmatmul.msk.bf16.gmra.mxu3 %vm993_vm4, %v9248_v63  ;;  %v2095_v33 = vpack.c.b16 %v2049_v17, %v2048_v50  ;;  %v1577_v17 = vadd.f32 %v10681_v11, %v9914_v18  ;;  %v8552_v18 = vld [vmem:[%s13615_s0 + $0x104] sm:$0x1] }
 0x1b7   :  { %v3525_v22 = vrot.slane %v3524_v52, 4  ;;  %v9339_v52 = vld [vmem:[%s13615_s0 + $0xf8] sm:$0x1] }
 0x1b8   :  { %v4111_v7 = vpop.f32.mrf.mxu0  ;;  %v1921_v46 = vrot.slane %v9339_v52, 5 }
 0x1b9   :  { %v2819_v23 = vpop.f32.mrf.mxu3 }
 0x1ba   :  { %v10865_v24 = vpop.f32.mrf.mxu1  ;;  %v2955_v63 = vadd.f32 %v2819_v23, %v2394_v13  ;;  %v8551_v13 = vld [vmem:[%s13615_s0 + $0x100] sm:$0xf] }
 0x1bb   :  { %8608 = vmatmul.msk.bf16.gmra.mxu0 %vm993_vm4, %v3947_v9  ;;  %v3545_v48 = vshrl.u32 %v8551_v13, 16 }
 0x1bc   :  { %v2260_v53 = vpop.f32.mrf.mxu2  ;;  %v10872_v14 = vadd.f32 %v4111_v7, %v2955_v63  ;;  %v3530_v7 = vsel %vm9489_vm3, %v3525_v22, %v3529_v20 }
 0x1bd   :  { %8197 = vmatmul.msk.bf16.gmra.mxu1 %vm993_vm4, %v9221_v5  ;;  %v2395_v40 = vadd.f32 %v2260_v53, %v10665_v36  ;;  %v3520_v36 = vsel %vm9489_vm3, %v3515_v62, %v3519_v21  ;;  %v3541_v5 = vshll.u32 %v8551_v13, 16  ;;  %v9249_v21 = vld [vmem:[%s13615_s0 + $0xf0] sm:$0xff]  ;;  %v8226_v53 = vrot.slane %v1709_v32, 9 }
 0x1be   :  { %13660 = vst [vmem:[#allocation38_spill] sm:$0xff] %v10872_v14  ;;  %v1920_v62 = vrot.slane %v1918_v2, 4  ;;  %v3901_v22 = vunpack.c.l.b16 %v3520_v36  ;;  %v3902_v20 = vunpack.c.l.b16 %v3530_v7  ;;  %v3537_v13 = vrot.slane %v3535_v57, 5 }
 0x1bf   :  { %v3543_v52 = vrot.slane %v3541_v5, 5  ;;  %v3547_v14 = vrot.slane %v3545_v48, 4  ;;  %v1919_v11 = vsel %vm10019_vm7, %v8226_v53, %v1918_v2  ;;  %v3551_v7 = vshll.u32 %v8552_v18, 16 }
 0x1c0   :  { %v4113_v9 = vpop.f32.mrf.mxu0  ;;  %v3948_v32 = vpack.c.b16 %v3902_v20, %v3901_v22  ;;  %v3538_v39 = vor.u32 %v3537_v13, %v3534_v12  ;;  %v1579_v2 = vadd.f32 %v10705_v44, %v9949_v8  ;;  %v8554_v8 = vld [vmem:[%s13615_s0 + $0x10c] sm:$0xf]  ;;  %v9340_v44 = vld [vmem:[%s13615_s0 + $0x100] sm:$0xf] }
 0x1c1   :  { %v2821_v23 = vpop.f32.mrf.mxu3  ;;  %8257 = vmatmul.msk.bf16.gmra.mxu2 %vm993_vm4, %v2095_v33  ;;  %v3548_v36 = vor.u32 %v3547_v14, %v3543_v52  ;;  %v8553_v14 = vld [vmem:[%s13615_s0 + $0x108] sm:$0xf] }
 0x1c2   :  { %v10892_v50 = vpop.f32.mrf.mxu1  ;;  %v2956_v63 = vadd.f32 %v2821_v23, %v2395_v40  ;;  %v1922_v40 = vsel %vm10019_vm7, %v1920_v62, %v1921_v46  ;;  %v2050_v23 = vunpack.c.l.b16 %v1919_v11  ;;  %v3539_v46 = vrot.slane %v3538_v39, 4 }
 0x1c3   :  { %v3549_v53 = vrot.slane %v3548_v36, 4  ;;  %v3553_v62 = vrot.slane %v3551_v7, 5  ;;  %v3556_v18 = vshrl.u32 %v8553_v14, 16  ;;  %v3565_v39 = vshll.u32 %v8554_v8, 16 }
 0x1c4   :  { %v2263_v37 = vpop.f32.mrf.mxu2  ;;  %v10899_v33 = vadd.f32 %v4113_v9, %v2956_v63  ;;  %v9222_v9 = vld [vmem:[%s13615_s0 + $0x120] sm:$0xff]  ;;  %v3544_v13 = vsel %vm9489_vm3, %v3539_v46, %v3543_v52 }
 0x1c5   :  { %v2396_v41 = vadd.f32 %v2263_v37, %v1577_v17  ;;  %v2051_v17 = vunpack.c.l.b16 %v1922_v40  ;;  %v1710_v37 = vld [vmem:[%s13615_s0 + $0xfc] sm:$0xe]  ;;  %v3554_v40 = vsel %vm9489_vm3, %v3549_v53, %v3553_v62  ;;  %v9341_v52 = vld [vmem:[%s13615_s0 + $0x104] sm:$0x1]  ;;  %v3903_v46 = vunpack.c.l.b16 %v3544_v13 }
 0x1c6   :  { %8481 = vmatmul.msk.bf16.gmra.mxu3 %vm993_vm4, %v9249_v21  ;;  %v1928_v7 = vrot.slane %v9341_v52, 5  ;;  %v3558_v53 = vrot.slane %v3556_v18, 4  ;;  %v9223_v18 = vld [vmem:[%s13615_s0 + $0x12c] sm:$0xff] }
 0x1c7   :  { %v2096_v12 = vpack.c.b16 %v2051_v17, %v2050_v23  ;;  %v9250_v23 = vld [vmem:[%s13615_s0 + $0xfc] sm:$0xff]  ;;  %v8227_v17 = vrot.slane %v1710_v37, 9 }
 0x1c8   :  { %v4116_v57 = vpop.f32.mrf.mxu0 }
 0x1c9   :  { %v2824_v5 = vpop.f32.mrf.mxu3 }
 0x1ca   :  { %v10912_v48 = vpop.f32.mrf.mxu1  ;;  %v2957_v63 = vadd.f32 %v2824_v5, %v2396_v41  ;;  %v1925_v41 = vrot.slane %v9340_v44, 5 }
 0x1cb   :  { %8609 = vmatmul.msk.bf16.gmra.mxu0 %vm993_vm4, %v3948_v32  ;;  %v3559_v32 = vshll.u32 %v8553_v14, 16 }
 0x1cc   :  { %v2265_v21 = vpop.f32.mrf.mxu2  ;;  %v10921_v22 = vadd.f32 %v4116_v57, %v2957_v63  ;;  %v3569_v57 = vshrl.u32 %v8554_v8, 16  ;;  %v1927_v63 = vrot.slane %v1925_v41, 4  ;;  %v1926_v37 = vsel %vm10019_vm7, %v8227_v17, %v1925_v41 }
 0x1cd   :  { %8198 = vmatmul.msk.bf16.gmra.mxu1 %vm993_vm4, %v9222_v9  ;;  %v2397_v20 = vadd.f32 %v2265_v21, %v1579_v2  ;;  %v1582_v2 = vadd.f32 %v10727_v49, %v10002_v61  ;;  %v3904_v21 = vunpack.c.l.b16 %v3554_v40  ;;  %v3561_v14 = vrot.slane %v3559_v32, 5 }
 0x1ce   :  { %v3571_v8 = vrot.slane %v3569_v57, 4  ;;  %v1929_v61 = vsel %vm10019_vm7, %v1927_v63, %v1928_v7  ;;  %v1584_v41 = vadd.f32 %v10751_v10, %v10035_v42  ;;  %v8557_v42 = vld [vmem:[%s13615_s0 + $0x118] sm:$0xf]  ;;  %v9342_v10 = vld [vmem:[%s13615_s0 + $0x10c] sm:$0xf] }
 0x1cf   :  { %v3949_v49 = vpack.c.b16 %v3904_v21, %v3903_v46  ;;  %v8556_v46 = vld [vmem:[%s13615_s0 + $0x114] sm:$0xf] }
 0x1d0   :  { %v4118_v11 = vpop.f32.mrf.mxu0 }
 0x1d1   :  { %v2826_v9 = vpop.f32.mrf.mxu3  ;;  %8258 = vmatmul.msk.bf16.gmra.mxu2 %vm993_vm4, %v2096_v12  ;;  %v3567_v12 = vrot.slane %v3565_v39, 5 }
 0x1d2   :  { %v10937_v36 = vpop.f32.mrf.mxu1  ;;  %v2958_v5 = vadd.f32 %v2826_v9, %v2397_v20  ;;  %v8555_v20 = vld [vmem:[%s13615_s0 + $0x110] sm:$0x1]  ;;  %v2052_v9 = vunpack.c.l.b16 %v1926_v37 }
 0x1d3   :  { %v3572_v40 = vor.u32 %v3571_v8, %v3567_v12  ;;  %v3575_v32 = vshll.u32 %v8555_v20, 16  ;;  %v1711_v8 = vld [vmem:[%s13615_s0 + $0x108] sm:$0xe]  ;;  %v3583_v20 = vshll.u32 %v8556_v46, 16 }
 0x1d4   :  { %v2268_v62 = vpop.f32.mrf.mxu2  ;;  %v10947_v44 = vadd.f32 %v4118_v11, %v2958_v5  ;;  %v3562_v11 = vor.u32 %v3561_v14, %v3558_v53  ;;  %v2053_v5 = vunpack.c.l.b16 %v1929_v61  ;;  %v1932_v14 = vrot.slane %v9342_v10, 5 }
 0x1d5   :  { %v2398_v52 = vadd.f32 %v2268_v62, %v1582_v2  ;;  %v3573_v63 = vrot.slane %v3572_v40, 4  ;;  %v3577_v2 = vrot.slane %v3575_v32, 5 }
 0x1d6   :  { %8482 = vmatmul.msk.bf16.gmra.mxu3 %vm993_vm4, %v9250_v23  ;;  %v3563_v17 = vrot.slane %v3562_v11, 4  ;;  %v2097_v62 = vpack.c.b16 %v2053_v5, %v2052_v9  ;;  %v9343_v11 = vld [vmem:[%s13615_s0 + $0x110] sm:$0x1]  ;;  %v1587_v9 = vadd.f32 %v10773_v45, %v10067_v15  ;;  %v8558_v15 = vld [vmem:[%s13615_s0 + $0x11c] sm:$0x1] }
 0x1d7   :  { %v1935_v40 = vrot.slane %v9343_v11, 5 }
 0x1d8   :  { %v4121_v13 = vpop.f32.mrf.mxu0  ;;  %v3568_v61 = vsel %vm9489_vm3, %v3563_v17, %v3567_v12  ;;  %v9251_v12 = vld [vmem:[%s13615_s0 + $0x108] sm:$0xff] }
 0x1d9   :  { %v2829_v39 = vpop.f32.mrf.mxu3 }
 0x1da   :  { %v10960_v57 = vpop.f32.mrf.mxu1  ;;  %v2959_v23 = vadd.f32 %v2829_v39, %v2398_v52  ;;  %v3580_v52 = vshrl.u32 %v8556_v46, 16 }
 0x1db   :  { %8610 = vmatmul.msk.bf16.gmra.mxu0 %vm993_vm4, %v3949_v49  ;;  %v3578_v49 = vsel %vm9489_vm3, %v3573_v63, %v3577_v2  ;;  %v3585_v2 = vrot.slane %v3583_v20, 5 }
 0x1dc   :  { %v2270_v7 = vpop.f32.mrf.mxu2  ;;  %v10969_v21 = vadd.f32 %v4121_v13, %v2959_v23  ;;  %v3589_v13 = vshll.u32 %v8557_v42, 16  ;;  %v8228_v23 = vrot.slane %v1711_v8, 9  ;;  %v3906_v17 = vunpack.c.l.b16 %v3578_v49 }
 0x1dd   :  { %8199 = vmatmul.msk.bf16.gmra.mxu1 %vm993_vm4, %v9223_v18  ;;  %v2399_v53 = vadd.f32 %v2270_v7, %v1584_v41  ;;  %v3593_v18 = vshrl.u32 %v8557_v42, 16  ;;  %v1934_v41 = vrot.slane %v1932_v14, 4  ;;  %v3905_v7 = vunpack.c.l.b16 %v3568_v61 }
 0x1de   :  { %v3582_v63 = vrot.slane %v3580_v52, 4  ;;  %v3591_v42 = vrot.slane %v3589_v13, 5  ;;  %v1933_v45 = vsel %vm10019_vm7, %v8228_v23, %v1932_v14  ;;  %v3599_v49 = vshll.u32 %v8558_v15, 16 }
 0x1df   :  { %v3595_v10 = vrot.slane %v3593_v18, 4  ;;  %v3950_v8 = vpack.c.b16 %v3906_v17, %v3905_v7  ;;  %v1589_v14 = vadd.f32 %v10797_v34, %v10096_v51  ;;  %v8559_v7 = vld [vmem:[%s13615_s0 + $0x120] sm:$0xf]  ;;  %v8560_v51 = vld [vmem:[%s13615_s0 + $0x124] sm:$0xf] }
 0x1e0   :  { %v4123_v37 = vpop.f32.mrf.mxu0  ;;  %v3586_v52 = vor.u32 %v3585_v2, %v3582_v63  ;;  %v9344_v34 = vld [vmem:[%s13615_s0 + $0x118] sm:$0xf]  ;;  %v3604_v15 = vshrl.u32 %v8559_v7, 16 }
 0x1e1   :  { %v2831_v32 = vpop.f32.mrf.mxu3  ;;  %8259 = vmatmul.msk.bf16.gmra.mxu2 %vm993_vm4, %v2097_v62  ;;  %v3596_v61 = vor.u32 %v3595_v10, %v3591_v42 }
 0x1e2   :  { %v10988_v39 = vpop.f32.mrf.mxu1  ;;  %v2960_v5 = vadd.f32 %v2831_v32, %v2399_v53  ;;  %v1936_v53 = vsel %vm10019_vm7, %v1934_v41, %v1935_v40  ;;  %v2054_v32 = vunpack.c.l.b16 %v1933_v45  ;;  %v3587_v40 = vrot.slane %v3586_v52, 4 }
 0x1e3   :  { %v3597_v23 = vrot.slane %v3596_v61, 4  ;;  %v3601_v41 = vrot.slane %v3599_v49, 5  ;;  %v3613_v52 = vshll.u32 %v8560_v51, 16 }
 0x1e4   :  { %v2273_v46 = vpop.f32.mrf.mxu2  ;;  %v10995_v62 = vadd.f32 %v4123_v37, %v2960_v5  ;;  %v9224_v37 = vld [vmem:[%s13615_s0 + $0x138] sm:$0xff]  ;;  %v3592_v10 = vsel %vm9489_vm3, %v3587_v40, %v3591_v42 }
 0x1e5   :  { %v2400_v11 = vadd.f32 %v2273_v46, %v1587_v9  ;;  %v2055_v9 = vunpack.c.l.b16 %v1936_v53  ;;  %v1939_v46 = vrot.slane %v9344_v34, 5  ;;  %v3602_v53 = vsel %vm9489_vm3, %v3597_v23, %v3601_v41  ;;  %v9345_v42 = vld [vmem:[%s13615_s0 + $0x11c] sm:$0x1] }
 0x1e6   :  { %8483 = vmatmul.msk.bf16.gmra.mxu3 %vm993_vm4, %v9251_v12  ;;  %v1942_v49 = vrot.slane %v9345_v42, 5  ;;  %v3907_v40 = vunpack.c.l.b16 %v3592_v10  ;;  %v3606_v23 = vrot.slane %v3604_v15, 4  ;;  %v9225_v15 = vld [vmem:[%s13615_s0 + $0x144] sm:$0xff] }
 0x1e7   :  { %v2098_v2 = vpack.c.b16 %v2055_v9, %v2054_v32  ;;  %v9252_v32 = vld [vmem:[%s13615_s0 + $0x114] sm:$0xff] }
 0x1e8   :  { %v4126_v20 = vpop.f32.mrf.mxu0 }
 0x1e9   :  { %v2834_v13 = vpop.f32.mrf.mxu3 }
 0x1ea   :  { %v11008_v18 = vpop.f32.mrf.mxu1  ;;  %v2961_v5 = vadd.f32 %v2834_v13, %v2400_v11  ;;  %v1712_v11 = vld [vmem:[%s13615_s0 + $0x114] sm:$0xe] }
 0x1eb   :  { %8611 = vmatmul.msk.bf16.gmra.mxu0 %vm993_vm4, %v3950_v8  ;;  %v3607_v8 = vshll.u32 %v8559_v7, 16  ;;  %v8229_v9 = vrot.slane %v1712_v11, 9 }
 0x1ec   :  { %v2275_v12 = vpop.f32.mrf.mxu2  ;;  %v11017_v17 = vadd.f32 %v4126_v20, %v2961_v5  ;;  %v3617_v20 = vshrl.u32 %v8560_v51, 16  ;;  %v1941_v5 = vrot.slane %v1939_v46, 4 }
 0x1ed   :  { %8200 = vmatmul.msk.bf16.gmra.mxu1 %vm993_vm4, %v9224_v37  ;;  %v2401_v63 = vadd.f32 %v2275_v12, %v1589_v14  ;;  %v1592_v14 = vadd.f32 %v10819_v31, %v10128_v43  ;;  %v3908_v12 = vunpack.c.l.b16 %v3602_v53  ;;  %v3609_v7 = vrot.slane %v3607_v8, 5 }
 0x1ee   :  { %v3619_v51 = vrot.slane %v3617_v20, 4  ;;  %v1940_v11 = vsel %vm10019_vm7, %v8229_v9, %v1939_v46  ;;  %v1943_v43 = vsel %vm10019_vm7, %v1941_v5, %v1942_v49  ;;  %v1594_v46 = vadd.f32 %v10843_v56, %v10159_v28  ;;  %v8563_v28 = vld [vmem:[%s13615_s0 + $0x130] sm:$0xf]  ;;  %v9346_v56 = vld [vmem:[%s13615_s0 + $0x124] sm:$0xf] }
 0x1ef   :  { %v3951_v31 = vpack.c.b16 %v3908_v12, %v3907_v40  ;;  %v8562_v40 = vld [vmem:[%s13615_s0 + $0x12c] sm:$0xf] }
 0x1f0   :  { %v4128_v45 = vpop.f32.mrf.mxu0 }
 0x1f1   :  { %v2836_v37 = vpop.f32.mrf.mxu3  ;;  %8260 = vmatmul.msk.bf16.gmra.mxu2 %vm993_vm4, %v2098_v2  ;;  %v3615_v2 = vrot.slane %v3613_v52, 5 }
 0x1f2   :  { %v11033_v61 = vpop.f32.mrf.mxu1  ;;  %v2962_v13 = vadd.f32 %v2836_v37, %v2401_v63  ;;  %v8561_v63 = vld [vmem:[%s13615_s0 + $0x128] sm:$0x1]  ;;  %v2056_v37 = vunpack.c.l.b16 %v1940_v11 }
 0x1f3   :  { %v3620_v53 = vor.u32 %v3619_v51, %v3615_v2  ;;  %v3623_v8 = vshll.u32 %v8561_v63, 16  ;;  %v1713_v51 = vld [vmem:[%s13615_s0 + $0x120] sm:$0xe]  ;;  %v3631_v63 = vshll.u32 %v8562_v40, 16 }
 0x1f4   :  { %v2278_v41 = vpop.f32.mrf.mxu2  ;;  %v11043_v34 = vadd.f32 %v4128_v45, %v2962_v13  ;;  %v3610_v45 = vor.u32 %v3609_v7, %v3606_v23  ;;  %v2057_v13 = vunpack.c.l.b16 %v1943_v43  ;;  %v1946_v7 = vrot.slane %v9346_v56, 5 }
 0x1f5   :  { %v2402_v42 = vadd.f32 %v2278_v41, %v1592_v14  ;;  %v3621_v5 = vrot.slane %v3620_v53, 4  ;;  %v3625_v14 = vrot.slane %v3623_v8, 5 }
 0x1f6   :  { %8484 = vmatmul.msk.bf16.gmra.mxu3 %vm993_vm4, %v9252_v32  ;;  %v3611_v9 = vrot.slane %v3610_v45, 4  ;;  %v2099_v41 = vpack.c.b16 %v2057_v13, %v2056_v37  ;;  %v9347_v45 = vld [vmem:[%s13615_s0 + $0x128] sm:$0x1]  ;;  %v1597_v37 = vadd.f32 %v10865_v24, %v10188_v29  ;;  %v8564_v29 = vld [vmem:[%s13615_s0 + $0x134] sm:$0x1] }
 0x1f7   :  { %v1949_v53 = vrot.slane %v9347_v45, 5 }
 0x1f8   :  { %v4131_v10 = vpop.f32.mrf.mxu0  ;;  %v3616_v43 = vsel %vm9489_vm3, %v3611_v9, %v3615_v2  ;;  %v9253_v2 = vld [vmem:[%s13615_s0 + $0x120] sm:$0xff] }
 0x1f9   :  { %v2839_v52 = vpop.f32.mrf.mxu3 }
 0x1fa   :  { %v11056_v20 = vpop.f32.mrf.mxu1  ;;  %v2963_v32 = vadd.f32 %v2839_v52, %v2402_v42  ;;  %v3628_v42 = vshrl.u32 %v8562_v40, 16 }
 0x1fb   :  { %8612 = vmatmul.msk.bf16.gmra.mxu0 %vm993_vm4, %v3951_v31  ;;  %v3626_v31 = vsel %vm9489_vm3, %v3621_v5, %v3625_v14  ;;  %v3633_v14 = vrot.slane %v3631_v63, 5 }
 0x1fc   :  { %v2280_v49 = vpop.f32.mrf.mxu2  ;;  %v11065_v12 = vadd.f32 %v4131_v10, %v2963_v32  ;;  %v3637_v10 = vshll.u32 %v8563_v28, 16  ;;  %v8230_v32 = vrot.slane %v1713_v51, 9  ;;  %v3910_v9 = vunpack.c.l.b16 %v3626_v31 }
 0x1fd   :  { %8201 = vmatmul.msk.bf16.gmra.mxu1 %vm993_vm4, %v9225_v15  ;;  %v2403_v23 = vadd.f32 %v2280_v49, %v1594_v46  ;;  %v3641_v15 = vshrl.u32 %v8563_v28, 16  ;;  %v1948_v46 = vrot.slane %v1946_v7, 4  ;;  %v3909_v49 = vunpack.c.l.b16 %v3616_v43 }
 0x1fe   :  { %v3630_v5 = vrot.slane %v3628_v42, 4  ;;  %v3639_v28 = vrot.slane %v3637_v10, 5  ;;  %v1947_v24 = vsel %vm10019_vm7, %v8230_v32, %v1946_v7  ;;  %v3647_v31 = vshll.u32 %v8564_v29, 16 }
 0x1ff   :  { %v3643_v56 = vrot.slane %v3641_v15, 4  ;;  %v3952_v51 = vpack.c.b16 %v3910_v9, %v3909_v49  ;;  %v1599_v7 = vadd.f32 %v10892_v50, %v10218_v27  ;;  %v8565_v49 = vld [vmem:[%s13615_s0 + $0x138] sm:$0xf]  ;;  %v8566_v27 = vld [vmem:[%s13615_s0 + $0x13c] sm:$0xf] }
 0x200   :  { %v4133_v11 = vpop.f32.mrf.mxu0  ;;  %v3634_v42 = vor.u32 %v3633_v14, %v3630_v5  ;;  %v9348_v50 = vld [vmem:[%s13615_s0 + $0x130] sm:$0xf]  ;;  %v3652_v29 = vshrl.u32 %v8565_v49, 16 }
 0x201   :  { %v2841_v8 = vpop.f32.mrf.mxu3  ;;  %8261 = vmatmul.msk.bf16.gmra.mxu2 %vm993_vm4, %v2099_v41  ;;  %v3644_v43 = vor.u32 %v3643_v56, %v3639_v28 }
 0x202   :  { %v11084_v52 = vpop.f32.mrf.mxu1  ;;  %v2964_v13 = vadd.f32 %v2841_v8, %v2403_v23  ;;  %v1950_v23 = vsel %vm10019_vm7, %v1948_v46, %v1949_v53  ;;  %v2058_v8 = vunpack.c.l.b16 %v1947_v24  ;;  %v3635_v53 = vrot.slane %v3634_v42, 4 }
 0x203   :  { %v3645_v32 = vrot.slane %v3644_v43, 4  ;;  %v3649_v46 = vrot.slane %v3647_v31, 5  ;;  %v3661_v42 = vshll.u32 %v8566_v27, 16 }
 0x204   :  { %v2283_v40 = vpop.f32.mrf.mxu2  ;;  %v11091_v41 = vadd.f32 %v4133_v11, %v2964_v13  ;;  %v9226_v11 = vld [vmem:[%s13615_s0 + $0x150] sm:$0xff]  ;;  %v3640_v56 = vsel %vm9489_vm3, %v3635_v53, %v3639_v28 }
 0x205   :  { %v2404_v45 = vadd.f32 %v2283_v40, %v1597_v37  ;;  %v2059_v37 = vunpack.c.l.b16 %v1950_v23  ;;  %v1953_v40 = vrot.slane %v9348_v50, 5  ;;  %v3650_v23 = vsel %vm9489_vm3, %v3645_v32, %v3649_v46  ;;  %v9349_v28 = vld [vmem:[%s13615_s0 + $0x134] sm:$0x1] }
 0x206   :  { %13661 = vst [vmem:[#allocation39_spill] sm:$0xff] %v11091_v41  ;;  %8485 = vmatmul.msk.bf16.gmra.mxu3 %vm993_vm4, %v9253_v2  ;;  %v1956_v31 = vrot.slane %v9349_v28, 5  ;;  %v3911_v53 = vunpack.c.l.b16 %v3640_v56  ;;  %v3654_v32 = vrot.slane %v3652_v29, 4  ;;  %v9227_v29 = vld [vmem:[%s13615_s0 + $0x15c] sm:$0xff] }
 0x207   :  { %v2100_v14 = vpack.c.b16 %v2059_v37, %v2058_v8  ;;  %v9254_v8 = vld [vmem:[%s13615_s0 + $0x12c] sm:$0xff] }
 0x208   :  { %v4136_v63 = vpop.f32.mrf.mxu0 }
 0x209   :  { %v2844_v10 = vpop.f32.mrf.mxu3 }
 0x20a   :  { %v11104_v15 = vpop.f32.mrf.mxu1  ;;  %v2965_v13 = vadd.f32 %v2844_v10, %v2404_v45  ;;  %v1714_v45 = vld [vmem:[%s13615_s0 + $0x12c] sm:$0xe] }
 0x20b   :  { %8613 = vmatmul.msk.bf16.gmra.mxu0 %vm993_vm4, %v3952_v51  ;;  %v3655_v51 = vshll.u32 %v8565_v49, 16  ;;  %v8231_v37 = vrot.slane %v1714_v45, 9 }
 0x20c   :  { %v2285_v2 = vpop.f32.mrf.mxu2  ;;  %v11113_v9 = vadd.f32 %v4136_v63, %v2965_v13  ;;  %v3665_v63 = vshrl.u32 %v8566_v27, 16  ;;  %v1955_v13 = vrot.slane %v1953_v40, 4 }
 0x20d   :  { %8202 = vmatmul.msk.bf16.gmra.mxu1 %vm993_vm4, %v9226_v11  ;;  %v2405_v5 = vadd.f32 %v2285_v2, %v1599_v7  ;;  %v1602_v7 = vadd.f32 %v10912_v48, %v9944_v1  ;;  %v3912_v2 = vunpack.c.l.b16 %v3650_v23  ;;  %v3657_v49 = vrot.slane %v3655_v51, 5 }
 0x20e   :  { %13662 = vst [vmem:[#allocation40_spill] sm:$0xff] %v11113_v9  ;;  %v3667_v27 = vrot.slane %v3665_v63, 4  ;;  %v1954_v45 = vsel %vm10019_vm7, %v8231_v37, %v1953_v40  ;;  %v1957_v1 = vsel %vm10019_vm7, %v1955_v13, %v1956_v31  ;;  %v1604_v40 = vadd.f32 %v10937_v36, %v9994_v55  ;;  %v8569_v55 = vld [vmem:[%s13615_s0 + $0x148] sm:$0xf]  ;;  %v9350_v36 = vld [vmem:[%s13615_s0 + $0x13c] sm:$0xf] }
 0x20f   :  { %v3953_v48 = vpack.c.b16 %v3912_v2, %v3911_v53  ;;  %v8568_v53 = vld [vmem:[%s13615_s0 + $0x144] sm:$0xf] }
 0x210   :  { %v4138_v24 = vpop.f32.mrf.mxu0 }
 0x211   :  { %v2846_v11 = vpop.f32.mrf.mxu3  ;;  %8262 = vmatmul.msk.bf16.gmra.mxu2 %vm993_vm4, %v2100_v14  ;;  %v3663_v14 = vrot.slane %v3661_v42, 5 }
 0x212   :  { %v11129_v43 = vpop.f32.mrf.mxu1  ;;  %v2966_v10 = vadd.f32 %v2846_v11, %v2405_v5  ;;  %v8567_v5 = vld [vmem:[%s13615_s0 + $0x140] sm:$0x1]  ;;  %v2060_v11 = vunpack.c.l.b16 %v1954_v45 }
 0x213   :  { %v3668_v23 = vor.u32 %v3667_v27, %v3663_v14  ;;  %v3671_v51 = vshll.u32 %v8567_v5, 16  ;;  %v1715_v27 = vld [vmem:[%s13615_s0 + $0x138] sm:$0xe]  ;;  %v3679_v5 = vshll.u32 %v8568_v53, 16 }
 0x214   :  { %v2288_v46 = vpop.f32.mrf.mxu2  ;;  %v11139_v50 = vadd.f32 %v4138_v24, %v2966_v10  ;;  %v3658_v24 = vor.u32 %v3657_v49, %v3654_v32  ;;  %v2061_v10 = vunpack.c.l.b16 %v1957_v1  ;;  %v1960_v49 = vrot.slane %v9350_v36, 5 }
 0x215   :  { %v2406_v28 = vadd.f32 %v2288_v46, %v1602_v7  ;;  %v3669_v13 = vrot.slane %v3668_v23, 4  ;;  %v3673_v7 = vrot.slane %v3671_v51, 5 }
 0x216   :  { %13663 = vst [vmem:[#allocation41_spill] sm:$0xff] %v11139_v50  ;;  %8486 = vmatmul.msk.bf16.gmra.mxu3 %vm993_vm4, %v9254_v8  ;;  %v3659_v37 = vrot.slane %v3658_v24, 4  ;;  %v2101_v46 = vpack.c.b16 %v2061_v10, %v2060_v11  ;;  %v9351_v24 = vld [vmem:[%s13615_s0 + $0x140] sm:$0x1]  ;;  %v1607_v11 = vadd.f32 %v10960_v57, %v10041_v47  ;;  %v8570_v47 = vld [vmem:[%s13615_s0 + $0x14c] sm:$0x1] }
 0x217   :  { %v1963_v23 = vrot.slane %v9351_v24, 5 }
 0x218   :  { %v4141_v56 = vpop.f32.mrf.mxu0  ;;  %v3664_v1 = vsel %vm9489_vm3, %v3659_v37, %v3663_v14  ;;  %v9255_v14 = vld [vmem:[%s13615_s0 + $0x138] sm:$0xff] }
 0x219   :  { %v2849_v42 = vpop.f32.mrf.mxu3 }
 0x21a   :  { %v11152_v63 = vpop.f32.mrf.mxu1  ;;  %v2967_v8 = vadd.f32 %v2849_v42, %v2406_v28  ;;  %v3676_v28 = vshrl.u32 %v8568_v53, 16 }
 0x21b   :  { %8614 = vmatmul.msk.bf16.gmra.mxu0 %vm993_vm4, %v3953_v48  ;;  %v3674_v48 = vsel %vm9489_vm3, %v3669_v13, %v3673_v7  ;;  %v3681_v7 = vrot.slane %v3679_v5, 5 }
 0x21c   :  { %v2290_v31 = vpop.f32.mrf.mxu2  ;;  %v11161_v2 = vadd.f32 %v4141_v56, %v2967_v8  ;;  %v3685_v56 = vshll.u32 %v8569_v55, 16  ;;  %v8232_v8 = vrot.slane %v1715_v27, 9  ;;  %v3914_v37 = vunpack.c.l.b16 %v3674_v48 }
 0x21d   :  { %8203 = vmatmul.msk.bf16.gmra.mxu1 %vm993_vm4, %v9227_v29  ;;  %v2407_v32 = vadd.f32 %v2290_v31, %v1604_v40  ;;  %v3689_v29 = vshrl.u32 %v8569_v55, 16  ;;  %v1962_v40 = vrot.slane %v1960_v49, 4  ;;  %v3913_v31 = vunpack.c.l.b16 %v3664_v1 }
 0x21e   :  { %13664 = vst [vmem:[#allocation42_spill] sm:$0xff] %v11161_v2  ;;  %v3678_v13 = vrot.slane %v3676_v28, 4  ;;  %v3687_v55 = vrot.slane %v3685_v56, 5  ;;  %v1961_v57 = vsel %vm10019_vm7, %v8232_v8, %v1960_v49  ;;  %v3695_v48 = vshll.u32 %v8570_v47, 16 }
 0x21f   :  { %v3691_v36 = vrot.slane %v3689_v29, 4  ;;  %v3954_v27 = vpack.c.b16 %v3914_v37, %v3913_v31  ;;  %v1609_v49 = vadd.f32 %v10988_v39, %v10072_v19  ;;  %v8571_v31 = vld [vmem:[%s13615_s0 + $0x150] sm:$0xf]  ;;  %v8572_v19 = vld [vmem:[%s13615_s0 + $0x154] sm:$0xf] }
 0x220   :  { %v4143_v45 = vpop.f32.mrf.mxu0  ;;  %v3682_v28 = vor.u32 %v3681_v7, %v3678_v13  ;;  %v9352_v39 = vld [vmem:[%s13615_s0 + $0x148] sm:$0xf]  ;;  %v3700_v47 = vshrl.u32 %v8571_v31, 16 }
 0x221   :  { %v2851_v51 = vpop.f32.mrf.mxu3  ;;  %8263 = vmatmul.msk.bf16.gmra.mxu2 %vm993_vm4, %v2101_v46  ;;  %v3692_v1 = vor.u32 %v3691_v36, %v3687_v55 }
 0x222   :  { %v11180_v42 = vpop.f32.mrf.mxu1  ;;  %v2968_v10 = vadd.f32 %v2851_v51, %v2407_v32  ;;  %v1964_v32 = vsel %vm10019_vm7, %v1962_v40, %v1963_v23  ;;  %v2062_v51 = vunpack.c.l.b16 %v1961_v57  ;;  %v3683_v23 = vrot.slane %v3682_v28, 4 }
 0x223   :  { %v3693_v8 = vrot.slane %v3692_v1, 4  ;;  %v3697_v40 = vrot.slane %v3695_v48, 5  ;;  %v3709_v28 = vshll.u32 %v8572_v19, 16 }
 0x224   :  { %v2293_v53 = vpop.f32.mrf.mxu2  ;;  %v11187_v46 = vadd.f32 %v4143_v45, %v2968_v10  ;;  %v9228_v45 = vld [vmem:[%s13615_s0 + $0x168] sm:$0xff]  ;;  %v3688_v36 = vsel %vm9489_vm3, %v3683_v23, %v3687_v55 }
 0x225   :  { %v2408_v24 = vadd.f32 %v2293_v53, %v1607_v11  ;;  %v2063_v11 = vunpack.c.l.b16 %v1964_v32  ;;  %v1967_v53 = vrot.slane %v9352_v39, 5  ;;  %v3698_v32 = vsel %vm9489_vm3, %v3693_v8, %v3697_v40  ;;  %v9353_v55 = vld [vmem:[%s13615_s0 + $0x14c] sm:$0x1] }
 0x226   :  { %13665 = vst [vmem:[#allocation43_spill] sm:$0xff] %v11187_v46  ;;  %8487 = vmatmul.msk.bf16.gmra.mxu3 %vm993_vm4, %v9255_v14  ;;  %v1970_v48 = vrot.slane %v9353_v55, 5  ;;  %v3915_v23 = vunpack.c.l.b16 %v3688_v36  ;;  %v3702_v8 = vrot.slane %v3700_v47, 4  ;;  %v9229_v47 = vld [vmem:[%s13615_s0 + $0x174] sm:$0xff] }
 0x227   :  { %v2102_v7 = vpack.c.b16 %v2063_v11, %v2062_v51  ;;  %v9256_v51 = vld [vmem:[%s13615_s0 + $0x144] sm:$0xff] }
 0x228   :  { %v4146_v5 = vpop.f32.mrf.mxu0 }
 0x229   :  { %v2854_v56 = vpop.f32.mrf.mxu3 }
 0x22a   :  { %v11200_v29 = vpop.f32.mrf.mxu1  ;;  %v2969_v10 = vadd.f32 %v2854_v56, %v2408_v24  ;;  %v1716_v24 = vld [vmem:[%s13615_s0 + $0x144] sm:$0xe] }
 0x22b   :  { %8615 = vmatmul.msk.bf16.gmra.mxu0 %vm993_vm4, %v3954_v27  ;;  %v3703_v27 = vshll.u32 %v8571_v31, 16  ;;  %v8233_v11 = vrot.slane %v1716_v24, 9 }
 0x22c   :  { %v2295_v14 = vpop.f32.mrf.mxu2  ;;  %v11209_v37 = vadd.f32 %v4146_v5, %v2969_v10  ;;  %v3713_v5 = vshrl.u32 %v8572_v19, 16  ;;  %v1969_v10 = vrot.slane %v1967_v53, 4 }
 0x22d   :  { %8204 = vmatmul.msk.bf16.gmra.mxu1 %vm993_vm4, %v9228_v45  ;;  %v2409_v13 = vadd.f32 %v2295_v14, %v1609_v49  ;;  %v1612_v49 = vadd.f32 %v11008_v18, %v10099_v59  ;;  %v3916_v14 = vunpack.c.l.b16 %v3698_v32  ;;  %v3705_v31 = vrot.slane %v3703_v27, 5 }
 0x22e   :  { %13666 = vst [vmem:[#allocation44_spill] sm:$0xff] %v11209_v37  ;;  %v3715_v19 = vrot.slane %v3713_v5, 4  ;;  %v1968_v24 = vsel %vm10019_vm7, %v8233_v11, %v1967_v53  ;;  %v1971_v59 = vsel %vm10019_vm7, %v1969_v10, %v1970_v48  ;;  %v8574_v53 = vld [vmem:[%s13615_s0 + $0x15c] sm:$0xf]  ;;  %v13668_v48 = vld [vmem:[#allocation7_spill] sm:$0xff] }
 0x22f   :  { %v3955_v18 = vpack.c.b16 %v3916_v14, %v3915_v23  ;;  %v1614_v11 = vadd.f32 %v11033_v61, %v13668_v48  ;;  %v9354_v61 = vld [vmem:[%s13615_s0 + $0x154] sm:$0xf] }
 0x230   :  { %v4148_v57 = vpop.f32.mrf.mxu0 }
 0x231   :  { %v2856_v45 = vpop.f32.mrf.mxu3  ;;  %8264 = vmatmul.msk.bf16.gmra.mxu2 %vm993_vm4, %v2102_v7  ;;  %v3711_v7 = vrot.slane %v3709_v28, 5 }
 0x232   :  { %v11225_v1 = vpop.f32.mrf.mxu1  ;;  %v2970_v56 = vadd.f32 %v2856_v45, %v2409_v13  ;;  %v8573_v13 = vld [vmem:[%s13615_s0 + $0x158] sm:$0x1]  ;;  %v2064_v45 = vunpack.c.l.b16 %v1968_v24  ;;  %v3727_v24 = vshll.u32 %v8574_v53, 16 }
 0x233   :  { %v3716_v32 = vor.u32 %v3715_v19, %v3711_v7  ;;  %v3719_v27 = vshll.u32 %v8573_v13, 16  ;;  %v1974_v13 = vrot.slane %v9354_v61, 5 }
 0x234   :  { %v2298_v40 = vpop.f32.mrf.mxu2  ;;  %v11235_v39 = vadd.f32 %v4148_v57, %v2970_v56  ;;  %v3706_v57 = vor.u32 %v3705_v31, %v3702_v8  ;;  %v2065_v56 = vunpack.c.l.b16 %v1971_v59  ;;  %v8575_v8 = vld [vmem:[%s13615_s0 + $0x160] sm:$0xf]  ;;  %v1717_v59 = vld [vmem:[%s13615_s0 + $0x150] sm:$0xe] }
 0x235   :  { %v2410_v55 = vadd.f32 %v2298_v40, %v1612_v49  ;;  %v3717_v23 = vrot.slane %v3716_v32, 4  ;;  %v3721_v14 = vrot.slane %v3719_v27, 5  ;;  %v9355_v27 = vld [vmem:[%s13615_s0 + $0x158] sm:$0x1] }
 0x236   :  { %13667 = vst [vmem:[#allocation45_spill] sm:$0xff] %v11235_v39  ;;  %8488 = vmatmul.msk.bf16.gmra.mxu3 %vm993_vm4, %v9256_v51  ;;  %v3707_v49 = vrot.slane %v3706_v57, 4  ;;  %v2103_v19 = vpack.c.b16 %v2065_v56, %v2064_v45  ;;  %v13670_v45 = vld [vmem:[#allocation9_spill] sm:$0xff] }
 0x237   :  { %v3722_v32 = vsel %vm9489_vm3, %v3717_v23, %v3721_v14  ;;  %v1617_v56 = vadd.f32 %v11056_v20, %v13670_v45  ;;  %v3729_v23 = vrot.slane %v3727_v24, 5  ;;  %v8576_v20 = vld [vmem:[%s13615_s0 + $0x164] sm:$0x1] }
 0x238   :  { %v4151_v36 = vpop.f32.mrf.mxu0  ;;  %v9230_v45 = vld [vmem:[%s13615_s0 + $0x180] sm:$0xff] }
 0x239   :  { %v2859_v28 = vpop.f32.mrf.mxu3 }
 0x23a   :  { %v11248_v5 = vpop.f32.mrf.mxu1  ;;  %v2971_v51 = vadd.f32 %v2859_v28, %v2410_v55  ;;  %v3724_v55 = vshrl.u32 %v8574_v53, 16  ;;  %v1977_v28 = vrot.slane %v9355_v27, 5 }
 0x23b   :  { %8616 = vmatmul.msk.bf16.gmra.mxu0 %vm993_vm4, %v3955_v18  ;;  %v3733_v18 = vshll.u32 %v8575_v8, 16 }
 0x23c   :  { %v2300_v10 = vpop.f32.mrf.mxu2  ;;  %v11260_v40 = vadd.f32 %v4151_v36, %v2971_v51  ;;  %v3712_v36 = vsel %vm9489_vm3, %v3707_v49, %v3711_v7  ;;  %v3726_v48 = vrot.slane %v3724_v55, 4  ;;  %v9257_v7 = vld [vmem:[%s13615_s0 + $0x150] sm:$0xff]  ;;  %v1976_v49 = vrot.slane %v1974_v13, 4 }
 0x23d   :  { %8205 = vmatmul.msk.bf16.gmra.mxu1 %vm993_vm4, %v9229_v47  ;;  %v2411_v31 = vadd.f32 %v2300_v10, %v1614_v11  ;;  %v3737_v47 = vshrl.u32 %v8575_v8, 16  ;;  %v8234_v10 = vrot.slane %v1717_v59, 9  ;;  %v3917_v14 = vunpack.c.l.b16 %v3712_v36 }
 0x23e   :  { %13669 = vst [vmem:[#allocation7_spill] sm:$0xff] %v11260_v40  ;;  %v3918_v8 = vunpack.c.l.b16 %v3722_v32  ;;  %v3735_v61 = vrot.slane %v3733_v18, 5  ;;  %v1978_v24 = vsel %vm10019_vm7, %v1976_v49, %v1977_v28  ;;  %v3730_v59 = vor.u32 %v3729_v23, %v3726_v48  ;;  %v8577_v49 = vld [vmem:[%s13615_s0 + $0x168] sm:$0xf]  ;;  %v9356_v23 = vld [vmem:[%s13615_s0 + $0x10] sm:$0xf] }
 0x23f   :  { %v3739_v27 = vrot.slane %v3737_v47, 4  ;;  %v3743_v47 = vshll.u32 %v8576_v20, 16 }
 0x240   :  { %v4153_v57 = vpop.f32.mrf.mxu0  ;;  %v3956_v36 = vpack.c.b16 %v3918_v8, %v3917_v14  ;;  %v4425_v14 = vrot.slane %v9356_v23, 5 }
 0x241   :  { %v2861_v51 = vpop.f32.mrf.mxu3  ;;  %8265 = vmatmul.msk.bf16.gmra.mxu2 %vm993_vm4, %v2103_v19  ;;  %v3740_v18 = vor.u32 %v3739_v27, %v3735_v61  ;;  %v3745_v48 = vrot.slane %v3743_v47, 5 }
 0x242   :  { %v11278_v53 = vpop.f32.mrf.mxu1  ;;  %v2972_v11 = vadd.f32 %v2861_v51, %v2411_v31  ;;  %v1975_v31 = vsel %vm10019_vm7, %v8234_v10, %v1974_v13  ;;  %v13672_v13 = vld [vmem:[#allocation11_spill] sm:$0xff] }
 0x243   :  { %v1619_v10 = vadd.f32 %v11084_v52, %v13672_v13  ;;  %v3741_v28 = vrot.slane %v3740_v18, 4  ;;  %v8578_v52 = vld [vmem:[%s13615_s0 + $0x16c] sm:$0xf]  ;;  %v3748_v18 = vshrl.u32 %v8577_v49, 16 }
 0x244   :  { %v2303_v40 = vpop.f32.mrf.mxu2  ;;  %v11286_v19 = vadd.f32 %v4153_v57, %v2972_v11 }
 0x245   :  { %v2412_v55 = vadd.f32 %v2303_v40, %v1617_v56  ;;  %v2066_v40 = vunpack.c.l.b16 %v1975_v31  ;;  %v2067_v56 = vunpack.c.l.b16 %v1978_v24  ;;  %v9357_v31 = vld [vmem:[%s13615_s0 + $0x160] sm:$0xf]  ;;  %v3746_v47 = vsel %vm9489_vm3, %v3741_v28, %v3745_v48 }
 0x246   :  { %13671 = vst [vmem:[#allocation9_spill] sm:$0xff] %v11286_v19  ;;  %8489 = vmatmul.msk.bf16.gmra.mxu3 %vm993_vm4, %v9257_v7  ;;  %v3731_v7 = vrot.slane %v3730_v59, 4  ;;  %v1981_v24 = vrot.slane %v9357_v31, 5  ;;  %v3750_v19 = vrot.slane %v3748_v18, 4 }
 0x248   :  { %v4156_v32 = vpop.f32.mrf.mxu0  ;;  %v3736_v59 = vsel %vm9489_vm3, %v3731_v7, %v3735_v61  ;;  %v9359_v61 = vld [vmem:[%s13615_s0 + $0x164] sm:$0x1] }
 0x249   :  { %v2864_v57 = vpop.f32.mrf.mxu3  ;;  %v1984_v7 = vrot.slane %v9359_v61, 5  ;;  %v3919_v61 = vunpack.c.l.b16 %v3736_v59  ;;  %v8579_v59 = vld [vmem:[%s13615_s0 + $0x170] sm:$0x1] }
 0x24a   :  { %v11296_v51 = vpop.f32.mrf.mxu1  ;;  %v2973_v11 = vadd.f32 %v2864_v57, %v2412_v55  ;;  %v2104_v55 = vpack.c.b16 %v2067_v56, %v2066_v40  ;;  %v3761_v57 = vshrl.u32 %v8578_v52, 16  ;;  %v4427_v40 = vrot.slane %v4425_v14, 4  ;;  %v9358_v56 = vld [vmem:[%s13615_s0 + $0x14] sm:$0x1] }
 0x24b   :  { %8617 = vmatmul.msk.bf16.gmra.mxu0 %vm993_vm4, %v3956_v36  ;;  %v1718_v36 = vld [vmem:[%s13615_s0 + $0x15c] sm:$0xe] }
 0x24c   :  { %v2305_v8 = vpop.f32.mrf.mxu2  ;;  %v11311_v27 = vadd.f32 %v4156_v32, %v2973_v11  ;;  %v3751_v32 = vshll.u32 %v8577_v49, 16  ;;  %v4428_v11 = vrot.slane %v9358_v56, 5  ;;  %v8235_v48 = vrot.slane %v1718_v36, 9  ;;  %v9258_v56 = vld [vmem:[%s13615_s0 + $0x15c] sm:$0xff] }
 0x24d   :  { %8206 = vmatmul.msk.bf16.gmra.mxu1 %vm993_vm4, %v9230_v45  ;;  %v2413_v20 = vadd.f32 %v2305_v8, %v1619_v10  ;;  %v3757_v45 = vshll.u32 %v8578_v52, 16  ;;  %v13674_v10 = vld [vmem:[#allocation13_spill] sm:$0xff]  ;;  %v1983_v49 = vrot.slane %v1981_v24, 4  ;;  %v8624_v52 = vld [vmem:[%s13615_s0 + $0xc] sm:$0xe]  ;;  %v3763_v39 = vrot.slane %v3761_v57, 4 }
 0x24e   :  { %13673 = vst [vmem:[#allocation11_spill] sm:$0xff] %v11311_v27  ;;  %v1622_v23 = vadd.f32 %v11104_v15, %v13674_v10  ;;  %v3920_v27 = vunpack.c.l.b16 %v3746_v47  ;;  %v3753_v15 = vrot.slane %v3751_v32, 5  ;;  %v4429_v36 = vsel %vm10019_vm7, %v4427_v40, %v4428_v11 }
 0x24f   :  { %v3759_v10 = vrot.slane %v3757_v45, 5  ;;  %v4648_v32 = vunpack.c.l.b16 %v4429_v36 }
 0x250   :  { %v4158_v13 = vpop.f32.mrf.mxu0  ;;  %v3957_v45 = vpack.c.b16 %v3920_v27, %v3919_v61  ;;  %v3754_v57 = vor.u32 %v3753_v15, %v3750_v19  ;;  %v8580_v27 = vld [vmem:[%s13615_s0 + $0x174] sm:$0xf]  ;;  %v13676_v19 = vld [vmem:[#allocation15_spill] sm:$0xff] }
 0x251   :  { %v2866_v8 = vpop.f32.mrf.mxu3  ;;  %8266 = vmatmul.msk.bf16.gmra.mxu2 %vm993_vm4, %v2104_v55  ;;  %v8656_v55 = vrot.slane %v8624_v52, 9  ;;  %v1624_v52 = vadd.f32 %v11129_v43, %v13676_v19 }
 0x252   :  { %v11332_v28 = vpop.f32.mrf.mxu1  ;;  %v2974_v31 = vadd.f32 %v2866_v8, %v2413_v20  ;;  %v1982_v20 = vsel %vm10019_vm7, %v8235_v48, %v1981_v24  ;;  %v1985_v8 = vsel %vm10019_vm7, %v1983_v49, %v1984_v7  ;;  %v9231_v24 = vld [vmem:[%s13615_s0 + $0x18c] sm:$0xff]  ;;  %v3767_v7 = vshll.u32 %v8579_v59, 16 }
 0x253   :  { %v4426_v18 = vsel %vm10019_vm7, %v8656_v55, %v4425_v14  ;;  %v2068_v11 = vunpack.c.l.b16 %v1982_v20  ;;  %v3772_v20 = vshrl.u32 %v8580_v27, 16 }
 0x254   :  { %v2308_v37 = vpop.f32.mrf.mxu2  ;;  %v11342_v46 = vadd.f32 %v4158_v13, %v2974_v31  ;;  %v4647_v47 = vunpack.c.l.b16 %v4426_v18  ;;  %v2069_v13 = vunpack.c.l.b16 %v1985_v8  ;;  %v3755_v31 = vrot.slane %v3754_v57, 4  ;;  %v9360_v18 = vld [vmem:[%s13615_s0 + $0x16c] sm:$0xf] }
 0x255   :  { %v2414_v2 = vadd.f32 %v2308_v37, %v1622_v23  ;;  %v3764_v37 = vor.u32 %v3763_v39, %v3759_v10  ;;  %v8581_v39 = vld [vmem:[%s13615_s0 + $0x178] sm:$0xf]  ;;  %v3775_v8 = vshll.u32 %v8580_v27, 16  ;;  %v1988_v43 = vrot.slane %v9360_v18, 5 }
 0x256   :  { %13675 = vst [vmem:[#allocation13_spill] sm:$0xff] %v11342_v46  ;;  %8490 = vmatmul.msk.bf16.gmra.mxu3 %vm993_vm4, %v9258_v56  ;;  %v11357_v23 = vpack.c.b16 %v4648_v32, %v4647_v47  ;;  %v2105_v61 = vpack.c.b16 %v2069_v13, %v2068_v11  ;;  %v3781_v59 = vshll.u32 %v8581_v39, 16  ;;  %v3785_v47 = vshrl.u32 %v8581_v39, 16  ;;  %v1719_v32 = vld [vmem:[%s13615_s0 + $0x168] sm:$0xe] }
 0x257   :  { %v3765_v15 = vrot.slane %v3764_v37, 4  ;;  %v3760_v57 = vsel %vm9489_vm3, %v3755_v31, %v3759_v10  ;;  %v9259_v10 = vld [vmem:[%s13615_s0 + $0x168] sm:$0xff]  ;;  %v8236_v39 = vrot.slane %v1719_v32, 9  ;;  %v1990_v19 = vrot.slane %v1988_v43, 4  ;;  %v13678_v31 = vld [vmem:[#allocation17_spill] sm:$0xff] }
 0x258   :  { %v4161_v40 = vpop.f32.mrf.mxu0 }
 0x259   :  { %v2869_v48 = vpop.f32.mrf.mxu3 }
 0x25a   :  { %v11359_v49 = vpop.f32.mrf.mxu1  ;;  %v2975_v14 = vadd.f32 %v2869_v48, %v2414_v2  ;;  %v3769_v2 = vrot.slane %v3767_v7, 5  ;;  %v3774_v7 = vrot.slane %v3772_v20, 4  ;;  %v3777_v48 = vrot.slane %v3775_v8, 5 }
 0x25b   :  { %8618 = vmatmul.msk.bf16.gmra.mxu0 %vm993_vm4, %v3957_v45 }
 0x25c   :  { %v2310_v56 = vpop.f32.mrf.mxu2  ;;  %v11371_v55 = vadd.f32 %v4161_v40, %v2975_v14  ;;  %v3770_v37 = vsel %vm9489_vm3, %v3765_v15, %v3769_v2  ;;  %v9361_v40 = vld [vmem:[%s13615_s0 + $0x170] sm:$0x1]  ;;  %v11389_v14 = vrot.slane %v3781_v59, 5  ;;  %v3921_v15 = vunpack.c.l.b16 %v3760_v57 }
 0x25d   :  { %8207 = vmatmul.msk.bf16.gmra.mxu1 %vm993_vm4, %v9231_v24  ;;  %v2415_v36 = vadd.f32 %v2310_v56, %v1624_v52  ;;  %v1991_v24 = vrot.slane %v9361_v40, 5  ;;  %v3787_v52 = vrot.slane %v3785_v47, 4  ;;  %v1627_v56 = vadd.f32 %v11152_v63, %v13678_v31 }
 0x25e   :  { %13677 = vst [vmem:[#allocation15_spill] sm:$0xff] %v11371_v55  ;;  %v3922_v2 = vunpack.c.l.b16 %v3770_v37  ;;  %v3778_v59 = vor.u32 %v3777_v48, %v3774_v7  ;;  %v9362_v48 = vld [vmem:[%s13615_s0 + $0x1c] sm:$0xf] }
 0x25f   :  { %v1992_v18 = vsel %vm10019_vm7, %v1990_v19, %v1991_v24  ;;  %v3788_v47 = vor.u32 %v3787_v52, %v11389_v14 }
 0x260   :  { %v4163_v45 = vpop.f32.mrf.mxu0  ;;  %v3958_v32 = vpack.c.b16 %v3922_v2, %v3921_v15  ;;  %v2071_v7 = vunpack.c.l.b16 %v1992_v18  ;;  %v9363_v15 = vld [vmem:[%s13615_s0 + $0x20] sm:$0x1] }
 0x261   :  { %v2871_v11 = vpop.f32.mrf.mxu3  ;;  %8267 = vmatmul.msk.bf16.gmra.mxu2 %vm993_vm4, %v2105_v61  ;;  %v8582_v61 = vld [vmem:[%s13615_s0 + $0x17c] sm:$0x1]  ;;  %v3789_v24 = vrot.slane %v3788_v47, 4  ;;  %v4435_v2 = vrot.slane %v9363_v15, 5 }
 0x262   :  { %v11387_v13 = vpop.f32.mrf.mxu1  ;;  %v2976_v27 = vadd.f32 %v2871_v11, %v2415_v36  ;;  %v1989_v36 = vsel %vm10019_vm7, %v8236_v39, %v1988_v43  ;;  %v3791_v63 = vshll.u32 %v8582_v61, 16  ;;  %v4432_v43 = vrot.slane %v9362_v48, 5 }
 0x263   :  { %v2070_v31 = vunpack.c.l.b16 %v1989_v36  ;;  %v3779_v39 = vrot.slane %v3778_v59, 4  ;;  %v8584_v59 = vld [vmem:[%s13615_s0 + $0x184] sm:$0xf] }
 0x264   :  { %v2313_v20 = vpop.f32.mrf.mxu2  ;;  %v11405_v57 = vadd.f32 %v4163_v45, %v2976_v27  ;;  %v3793_v19 = vrot.slane %v3791_v63, 5  ;;  %v8625_v45 = vld [vmem:[%s13615_s0 + $0x18] sm:$0xe]  ;;  %v13680_v27 = vld [vmem:[#allocation19_spill] sm:$0xff] }
 0x265   :  { %v2416_v8 = vadd.f32 %v2313_v20, %v1627_v56  ;;  %v1629_v52 = vadd.f32 %v11180_v42, %v13680_v27  ;;  %v8583_v56 = vld [vmem:[%s13615_s0 + $0x180] sm:$0xf]  ;;  %v1720_v20 = vld [vmem:[%s13615_s0 + $0x174] sm:$0xe]  ;;  %v9364_v42 = vld [vmem:[%s13615_s0 + $0x178] sm:$0xf]  ;;  %v2106_v47 = vpack.c.b16 %v2071_v7, %v2070_v31 }
 0x266   :  { %8491 = vmatmul.msk.bf16.gmra.mxu3 %vm993_vm4, %v9259_v10  ;;  %13679 = vst [vmem:[#allocation17_spill] sm:$0xff] %v11405_v57  ;;  %v8657_v63 = vrot.slane %v8625_v45, 9  ;;  %v8237_v48 = vrot.slane %v1720_v20, 9  ;;  %v3796_v27 = vshrl.u32 %v8583_v56, 16  ;;  %v3799_v15 = vshll.u32 %v8583_v56, 16  ;;  %v9260_v20 = vld [vmem:[%s13615_s0 + $0x174] sm:$0xff] }
 0x267   :  { %v3809_v7 = vshrl.u32 %v8584_v59, 16 }
 0x268   :  { %v4166_v37 = vpop.f32.mrf.mxu0  ;;  %v3801_v57 = vrot.slane %v3799_v15, 5 }
 0x269   :  { %v2874_v40 = vpop.f32.mrf.mxu3 }
 0x26a   :  { %v11407_v11 = vpop.f32.mrf.mxu1  ;;  %v2977_v10 = vadd.f32 %v2874_v40, %v2416_v8  ;;  %v1995_v8 = vrot.slane %v9364_v42, 5  ;;  %v3794_v40 = vsel %vm9489_vm3, %v3789_v24, %v3793_v19  ;;  %v3805_v42 = vshll.u32 %v8584_v59, 16  ;;  %v13682_v24 = vld [vmem:[#allocation21_spill] sm:$0xff] }
 0x26b   :  { %8619 = vmatmul.msk.bf16.gmra.mxu0 %vm993_vm4, %v3958_v32  ;;  %v4434_v32 = vrot.slane %v4432_v43, 4  ;;  %v1632_v19 = vadd.f32 %v11200_v29, %v13682_v24 }
 0x26c   :  { %v2315_v61 = vpop.f32.mrf.mxu2  ;;  %v11435_v36 = vadd.f32 %v4166_v37, %v2977_v10  ;;  %v9365_v37 = vld [vmem:[%s13615_s0 + $0x17c] sm:$0x1]  ;;  %v1997_v31 = vrot.slane %v1995_v8, 4  ;;  %v11459_v55 = vrot.slane %v3805_v42, 5 }
 0x26d   :  { %8688 = vmatmul.msk.bf16.vlgmr.msra.gmra.mxu1 %vm993_vm4, %v11357_v23  ;;  %v2417_v18 = vadd.f32 %v2315_v61, %v1629_v52  ;;  %v3784_v23 = vsel %vm9489_vm3, %v3779_v39, %v11389_v14  ;;  %v1998_v10 = vrot.slane %v9365_v37, 5  ;;  %v4433_v14 = vsel %vm10019_vm7, %v8657_v63, %v4432_v43 }
 0x26e   :  { %13681 = vst [vmem:[#allocation19_spill] sm:$0xff] %v11435_v36  ;;  %v4436_v39 = vsel %vm10019_vm7, %v4434_v32, %v4435_v2  ;;  %v3923_v59 = vunpack.c.l.b16 %v3784_v23  ;;  %v3924_v37 = vunpack.c.l.b16 %v3794_v40  ;;  %v3798_v36 = vrot.slane %v3796_v27, 4  ;;  %v8585_v23 = vld [vmem:[%s13615_s0 + $0x188] sm:$0x1] }
 0x26f   :  { %v1999_v2 = vsel %vm10019_vm7, %v1997_v31, %v1998_v10  ;;  %v4649_v63 = vunpack.c.l.b16 %v4433_v14  ;;  %v4650_v29 = vunpack.c.l.b16 %v4436_v39  ;;  %v3815_v31 = vshll.u32 %v8585_v23, 16  ;;  %v9366_v39 = vld [vmem:[%s13615_s0 + $0x28] sm:$0xf] }
 0x270   :  { %v4168_v52 = vpop.f32.mrf.mxu0  ;;  %v3959_v40 = vpack.c.b16 %v3924_v37, %v3923_v59  ;;  %v3802_v27 = vor.u32 %v3801_v57, %v3798_v36  ;;  %v4439_v24 = vrot.slane %v9366_v39, 5  ;;  %v8626_v36 = vld [vmem:[%s13615_s0 + $0x24] sm:$0xe] }
 0x271   :  { %v2876_v45 = vpop.f32.mrf.mxu3  ;;  %8268 = vmatmul.msk.bf16.gmra.mxu2 %vm993_vm4, %v2106_v47  ;;  %v1996_v47 = vsel %vm10019_vm7, %v8237_v48, %v1995_v8  ;;  %v2073_v48 = vunpack.c.l.b16 %v1999_v2 }
 0x272   :  { %v11446_v61 = vpop.f32.mrf.mxu1  ;;  %v2978_v56 = vadd.f32 %v2876_v45, %v2417_v18  ;;  %v3811_v18 = vrot.slane %v3809_v7, 4  ;;  %v2072_v8 = vunpack.c.l.b16 %v1996_v47  ;;  %v4712_v45 = vpack.c.b16 %v4650_v29, %v4649_v63 }
 0x273   :  { %v3803_v47 = vrot.slane %v3802_v27, 4  ;;  %v3817_v29 = vrot.slane %v3815_v31, 5  ;;  %v1721_v27 = vld [vmem:[%s13615_s0 + $0x180] sm:$0xe] }
 0x274   :  { %v2318_v43 = vpop.f32.mrf.mxu2  ;;  %v11467_v15 = vadd.f32 %v4168_v52, %v2978_v56  ;;  %v3812_v10 = vor.u32 %v3811_v18, %v11459_v55  ;;  %v9367_v52 = vld [vmem:[%s13615_s0 + $0x2c] sm:$0x1]  ;;  %v2107_v37 = vpack.c.b16 %v2073_v48, %v2072_v8  ;;  %v8658_v8 = vrot.slane %v8626_v36, 9 }
 0x275   :  { %v2418_v32 = vadd.f32 %v2318_v43, %v1632_v19  ;;  %v8586_v19 = vld [vmem:[%s13615_s0 + $0x18c] sm:$0xf]  ;;  %v4442_v56 = vrot.slane %v9367_v52, 5  ;;  %v8587_v43 = vld [vmem:[%s13615_s0 + $0x190] sm:$0xf]  ;;  %v4441_v48 = vrot.slane %v4439_v24, 4 }
 0x276   :  { %8492 = vmatmul.msk.bf16.gmra.mxu3 %vm993_vm4, %v9260_v20  ;;  %13683 = vst [vmem:[#allocation21_spill] sm:$0xff] %v11467_v15  ;;  %v13684_v20 = vld [vmem:[#allocation23_spill] sm:$0xff]  ;;  %v3813_v63 = vrot.slane %v3812_v10, 4  ;;  %v3820_v18 = vshrl.u32 %v8586_v19, 16  ;;  %v3829_v39 = vshll.u32 %v8587_v43, 16 }
 0x277   :  { %v1634_v59 = vadd.f32 %v11225_v1, %v13684_v20  ;;  %v9368_v1 = vld [vmem:[%s13615_s0 + $0x184] sm:$0xf] }
 0x278   :  { %v4171_v42 = vpop.f32.mrf.mxu0  ;;  %v3818_v36 = vsel %vm9489_vm3, %v3813_v63, %v3817_v29  ;;  %v3822_v52 = vrot.slane %v3820_v18, 4  ;;  %v3831_v63 = vrot.slane %v3829_v39, 5  ;;  %v13686_v18 = vld [vmem:[#allocation25_spill] sm:$0xff] }
 0x279   :  { %v2879_v14 = vpop.f32.mrf.mxu3 }
 0x27a   :  { %v11470_v7 = vpop.f32.mrf.mxu1  ;;  %v2979_v57 = vadd.f32 %v2879_v14, %v2418_v32  ;;  %v3823_v14 = vshll.u32 %v8586_v19, 16 }
 0x27b   :  { %8620 = vmatmul.msk.bf16.gmra.mxu0 %vm993_vm4, %v3959_v40  ;;  %v2002_v40 = vrot.slane %v9368_v1, 5  ;;  %v4443_v1 = vsel %vm10019_vm7, %v4441_v48, %v4442_v56 }
 0x27c   :  { %v2320_v2 = vpop.f32.mrf.mxu2  ;;  %v11491_v32 = vadd.f32 %v4171_v42, %v2979_v57  ;;  %v9369_v42 = vld [vmem:[%s13615_s0 + $0x188] sm:$0x1]  ;;  %v3808_v57 = vsel %vm9489_vm3, %v3803_v47, %v11459_v55  ;;  %v9261_v55 = vld [vmem:[%s13615_s0 + $0x180] sm:$0xff]  ;;  %v3825_v47 = vrot.slane %v3823_v14, 5  ;;  %v4652_v56 = vunpack.c.l.b16 %v4443_v1 }
 0x27d   :  { %8689 = vmatmul.msk.bf16.gmra.mxu1 %vm993_vm4, %v4712_v45  ;;  %v2419_v23 = vadd.f32 %v2320_v2, %v1634_v59  ;;  %v3833_v45 = vshrl.u32 %v8587_v43, 16  ;;  %v2005_v10 = vrot.slane %v9369_v42, 5  ;;  %v8238_v59 = vrot.slane %v1721_v27, 9 }
 0x27e   :  { %13685 = vst [vmem:[#allocation23_spill] sm:$0xff] %v11491_v32  ;;  %v2004_v43 = vrot.slane %v2002_v40, 4  ;;  %v4440_v2 = vsel %vm10019_vm7, %v8658_v8, %v4439_v24  ;;  %v3925_v32 = vunpack.c.l.b16 %v3808_v57  ;;  %v3926_v27 = vunpack.c.l.b16 %v3818_v36  ;;  %v8588_v24 = vld [vmem:[%s13615_s0 + $0x194] sm:$0x1] }
 0x27f   :  { %v3835_v29 = vrot.slane %v3833_v45, 4  ;;  %v4651_v15 = vunpack.c.l.b16 %v4440_v2  ;;  %v2003_v48 = vsel %vm10019_vm7, %v8238_v59, %v2002_v40  ;;  %v3826_v39 = vor.u32 %v3825_v47, %v3822_v52  ;;  %v8627_v40 = vld [vmem:[%s13615_s0 + $0x30] sm:$0xe] }
 0x280   :  { %v4173_v31 = vpop.f32.mrf.mxu0  ;;  %v2006_v14 = vsel %vm10019_vm7, %v2004_v43, %v2005_v10  ;;  %v3839_v45 = vshll.u32 %v8588_v24, 16  ;;  %v3960_v57 = vpack.c.b16 %v3926_v27, %v3925_v32  ;;  %v9370_v10 = vld [vmem:[%s13615_s0 + $0x34] sm:$0xf] }
 0x281   :  { %v2881_v20 = vpop.f32.mrf.mxu3  ;;  %8269 = vmatmul.msk.bf16.gmra.mxu2 %vm993_vm4, %v2107_v37  ;;  %v1637_v37 = vadd.f32 %v11248_v5, %v13686_v18  ;;  %v3836_v5 = vor.u32 %v3835_v29, %v3831_v63  ;;  %v2074_v18 = vunpack.c.l.b16 %v2003_v48  ;;  %v2075_v46 = vunpack.c.l.b16 %v2006_v14  ;;  %v8589_v29 = vld [vmem:[%s13615_s0 + $0x198] sm:$0xf]  ;;  %v9372_v27 = vld [vmem:[%s13615_s0 + $0x194] sm:$0x1]  ;;  %v8590_v48 = vld [vmem:[%s13615_s0 + $0x19c] sm:$0xf] }
 0x282   :  { %v11508_v19 = vpop.f32.mrf.mxu1  ;;  %v2980_v42 = vadd.f32 %v2881_v20, %v2419_v23  ;;  %v4713_v2 = vpack.c.b16 %v4652_v56, %v4651_v15  ;;  %v4446_v52 = vrot.slane %v9370_v10, 5  ;;  %v3827_v32 = vrot.slane %v3826_v39, 4  ;;  %v9371_v15 = vld [vmem:[%s13615_s0 + $0x190] sm:$0xf] }
 0x283   :  { %v3841_v43 = vrot.slane %v3839_v45, 5  ;;  %v2009_v47 = vrot.slane %v9371_v15, 5  ;;  %v2012_v24 = vrot.slane %v9372_v27, 5  ;;  %v2108_v56 = vpack.c.b16 %v2075_v46, %v2074_v18  ;;  %v13690_v27 = vld [vmem:[#allocation29_spill] sm:$0xff] }
 0x284   :  { %v2323_v8 = vpop.f32.mrf.mxu2  ;;  %v11527_v36 = vadd.f32 %v4173_v31, %v2980_v42  ;;  %v3837_v31 = vrot.slane %v3836_v5, 4  ;;  %v13688_v42 = vld [vmem:[#allocation27_spill] sm:$0xff]  ;;  %v4448_v39 = vrot.slane %v4446_v52, 4  ;;  %v9373_v5 = vld [vmem:[%s13615_s0 + $0x38] sm:$0x1]  ;;  %v3832_v46 = vsel %vm9489_vm3, %v3827_v32, %v3831_v63 }
 0x285   :  { %v2420_v23 = vadd.f32 %v2323_v8, %v1637_v37  ;;  %v4449_v45 = vrot.slane %v9373_v5, 5  ;;  %v2011_v10 = vrot.slane %v2009_v47, 4 }
 0x286   :  { %8493 = vmatmul.msk.bf16.gmra.mxu3 %vm993_vm4, %v9261_v55  ;;  %13687 = vst [vmem:[#allocation25_spill] sm:$0xff] %v11527_v36  ;;  %v1639_v55 = vadd.f32 %v11278_v53, %v13688_v42  ;;  %v1722_v53 = vld [vmem:[%s13615_s0 + $0x18c] sm:$0xe]  ;;  %v3842_v18 = vsel %vm9489_vm3, %v3837_v31, %v3841_v43  ;;  %v3853_v42 = vshll.u32 %v8590_v48, 16 }
 0x287   :  { %v4450_v32 = vsel %vm10019_vm7, %v4448_v39, %v4449_v45  ;;  %v9262_v43 = vld [vmem:[%s13615_s0 + $0x18c] sm:$0xff] }
 0x288   :  { %v4176_v20 = vpop.f32.mrf.mxu0  ;;  %v3855_v5 = vrot.slane %v3853_v42, 5 }
 0x289   :  { %v2884_v1 = vpop.f32.mrf.mxu3 }
 0x28a   :  { %v11529_v37 = vpop.f32.mrf.mxu1  ;;  %v2981_v59 = vadd.f32 %v2884_v1, %v2420_v23  ;;  %v8659_v23 = vrot.slane %v8627_v40, 9  ;;  %v3847_v1 = vshll.u32 %v8589_v29, 16  ;;  %v8239_v40 = vrot.slane %v1722_v53, 9 }
 0x28b   :  { %8621 = vmatmul.msk.bf16.gmra.mxu0 %vm993_vm4, %v3960_v57 }
 0x28c   :  { %v2325_v8 = vpop.f32.mrf.mxu2  ;;  %v11559_v57 = vadd.f32 %v4176_v20, %v2981_v59  ;;  %v3927_v20 = vunpack.c.l.b16 %v3832_v46  ;;  %v4447_v63 = vsel %vm10019_vm7, %v8659_v23, %v4446_v52 }
 0x28d   :  { %8690 = vmatmul.msk.bf16.gmra.mxu1 %vm993_vm4, %v4713_v2  ;;  %v2421_v14 = vadd.f32 %v2325_v8, %v1639_v55  ;;  %v3844_v2 = vshrl.u32 %v8589_v29, 16  ;;  %v3857_v55 = vshrl.u32 %v8590_v48, 16  ;;  %v1642_v8 = vadd.f32 %v11296_v51, %v13690_v27 }
 0x28e   :  { %13689 = vst [vmem:[#allocation27_spill] sm:$0xff] %v11559_v57  ;;  %v3928_v29 = vunpack.c.l.b16 %v3842_v18  ;;  %v3849_v51 = vrot.slane %v3847_v1, 5  ;;  %v2013_v48 = vsel %vm10019_vm7, %v2011_v10, %v2012_v24  ;;  %v4653_v23 = vunpack.c.l.b16 %v4447_v63 }
 0x28f   :  { %v3846_v53 = vrot.slane %v3844_v2, 4  ;;  %v3859_v46 = vrot.slane %v3857_v55, 4  ;;  %v4654_v27 = vunpack.c.l.b16 %v4450_v32  ;;  %v2077_v18 = vunpack.c.l.b16 %v2013_v48 }
 0x290   :  { %v4178_v15 = vpop.f32.mrf.mxu0  ;;  %v3961_v24 = vpack.c.b16 %v3928_v29, %v3927_v20  ;;  %v8628_v20 = vld [vmem:[%s13615_s0 + $0x3c] sm:$0xe] }
 0x291   :  { %v2886_v36 = vpop.f32.mrf.mxu3  ;;  %8270 = vmatmul.msk.bf16.gmra.mxu2 %vm993_vm4, %v2108_v56  ;;  %v2010_v56 = vsel %vm10019_vm7, %v8239_v40, %v2009_v47  ;;  %v11590_v47 = vld [vmem:[%s13615_s0 + $0x1c] sm:$0xf]  ;;  %v3850_v2 = vor.u32 %v3849_v51, %v3846_v53  ;;  %v3860_v1 = vor.u32 %v3859_v46, %v3855_v5  ;;  %v4714_v63 = vpack.c.b16 %v4654_v27, %v4653_v23 }
 0x292   :  { %v11568_v59 = vpop.f32.mrf.mxu1  ;;  %v2982_v31 = vadd.f32 %v2886_v36, %v2421_v14  ;;  %v8591_v36 = vld [vmem:[%s13615_s0 + $0x1a0] sm:$0x1]  ;;  %v8944_v14 = vld [vmem:[%s13615_s0 + $0x18] sm:$0xf]  ;;  %v2076_v45 = vunpack.c.l.b16 %v2010_v56 }
 0x293   :  { %v3863_v40 = vshll.u32 %v8591_v36, 16  ;;  %v5733_v10 = vshrl.u32 %v8944_v14, 16  ;;  %v5736_v32 = vshll.u32 %v8944_v14, 16  ;;  %v3851_v51 = vrot.slane %v3850_v2, 4 }
 0x294   :  { %v2328_v52 = vpop.f32.mrf.mxu2  ;;  %v11593_v42 = vadd.f32 %v4178_v15, %v2982_v31  ;;  %v13692_v31 = vld [vmem:[#allocation31_spill] sm:$0xff]  ;;  %v2109_v56 = vpack.c.b16 %v2077_v18, %v2076_v45  ;;  %v3861_v48 = vrot.slane %v3860_v1, 4  ;;  %v8660_v36 = vrot.slane %v8628_v20, 9  ;;  %v13693_v20 = vld [vmem:[#allocation2_spill] sm:$0xff] }
 0x295   :  { %v2422_v39 = vadd.f32 %v2328_v52, %v1642_v8  ;;  %v5742_v8 = vshll.u32 %v11590_v47, 16  ;;  %v5746_v52 = vshrl.u32 %v11590_v47, 16  ;;  %v1644_v29 = vadd.f32 %v11332_v28, %v13692_v31  ;;  %v9375_v28 = vld [vmem:[%s13615_s0 + $0x44] sm:$0x1] }
 0x296   :  { %8494 = vmatmul.msk.bf16.gmra.mxu3 %vm993_vm4, %v9262_v43  ;;  %13691 = vst [vmem:[#allocation29_spill] sm:$0xff] %v11593_v42  ;;  %v9374_v43 = vld [vmem:[%s13615_s0 + $0x40] sm:$0xf]  ;;  %v3865_v46 = vrot.slane %v3863_v40, 5  ;;  %v5735_v23 = vrot.slane %v5733_v10, 4  ;;  %v5738_v14 = vrot.slane %v5736_v32, 5  ;;  %v3856_v18 = vsel %vm9489_vm3, %v3851_v51, %v3855_v5 }
 0x297   :  { %v4453_v15 = vrot.slane %v9374_v43, 5  ;;  %v5744_v42 = vrot.slane %v5742_v8, 5  ;;  %v5748_v9 = vrot.slane %v5746_v52, 4  ;;  %v9263_v5 = vld [vmem:[%s13615_s0 + $0x198] sm:$0xff]  ;;  %v1647_v31 = vadd.f32 %v11359_v49, %v13693_v20 }
 0x298   :  { %v4181_v55 = vpop.f32.mrf.mxu0  ;;  %v3866_v2 = vsel %vm9489_vm3, %v3861_v48, %v3865_v46  ;;  %v5739_v1 = vor.u32 %v5738_v14, %v5735_v23  ;;  %v11647_v14 = vld [vmem:[%s13615_s0 + $0x28] sm:$0xf] }
 0x299   :  { %v2889_v57 = vpop.f32.mrf.mxu3  ;;  %v4455_v43 = vrot.slane %v4453_v15, 4  ;;  %v5749_v32 = vor.u32 %v5748_v9, %v5744_v42  ;;  %v8947_v9 = vld [vmem:[%s13615_s0 + $0x24] sm:$0xf]  ;;  %v5770_v20 = vshrl.u32 %v11647_v14, 16 }
 0x29a   :  { %v11597_v50 = vpop.f32.mrf.mxu1  ;;  %v2983_v53 = vadd.f32 %v2889_v57, %v2422_v39  ;;  %v4456_v57 = vrot.slane %v9375_v28, 5  ;;  %v5740_v46 = vrot.slane %v5739_v1, 4 }
 0x29b   :  { %8622 = vmatmul.msk.bf16.gmra.mxu0 %vm993_vm4, %v3961_v24  ;;  %v11617_v24 = vld [vmem:[%s13615_s0 + $0x20] sm:$0x1]  ;;  %v5750_v23 = vrot.slane %v5749_v32, 4  ;;  %v5757_v32 = vshrl.u32 %v8947_v9, 16 }
 0x29c   :  { %v2330_v27 = vpop.f32.mrf.mxu2  ;;  %v11612_v39 = vadd.f32 %v4181_v55, %v2983_v53  ;;  %v4454_v55 = vsel %vm10019_vm7, %v8660_v36, %v4453_v15  ;;  %v5752_v8 = vshll.u32 %v11617_v24, 16  ;;  %v3930_v53 = vunpack.c.l.b16 %v3866_v2 }
 0x29d   :  { %8691 = vmatmul.msk.bf16.gmra.mxu1 %vm993_vm4, %v4714_v63  ;;  %v2423_v41 = vadd.f32 %v2330_v27, %v1644_v29  ;;  %v4457_v63 = vsel %vm10019_vm7, %v4455_v43, %v4456_v57  ;;  %v3929_v29 = vunpack.c.l.b16 %v3856_v18  ;;  %v7062_v36 = vrot.slane %v11590_v47, 5  ;;  %v8629_v47 = vld [vmem:[%s13615_s0 + $0x48] sm:$0xe] }
 0x29e   :  { %v4656_v48 = vunpack.c.l.b16 %v4457_v63  ;;  %v5754_v27 = vrot.slane %v5752_v8, 5 }
 0x29f   :  { %v3962_v49 = vpack.c.b16 %v3930_v53, %v3929_v29  ;;  %v7064_v29 = vrot.slane %v7062_v36, 4  ;;  %v7065_v53 = vrot.slane %v11617_v24, 5 }
 0x2a0   :  { %v4183_v45 = vpop.f32.mrf.mxu0 }
 0x2a1   :  { %v2891_v40 = vpop.f32.mrf.mxu3  ;;  %8271 = vmatmul.msk.bf16.gmra.mxu2 %vm993_vm4, %v2109_v56  ;;  %v4655_v56 = vunpack.c.l.b16 %v4454_v55  ;;  %v5755_v55 = vsel %vm9489_vm3, %v5750_v23, %v5754_v27  ;;  %v9264_v27 = vld [vmem:[%s13615_s0 + $0x18] sm:$0xff] }
 0x2a2   :  { %v11624_v10 = vpop.f32.mrf.mxu1  ;;  %v2984_v52 = vadd.f32 %v2891_v40, %v2423_v41  ;;  %v9072_v41 = vld [vmem:[%s13615_s0 + $0x18] sm:$0xe]  ;;  %v5745_v40 = vsel %vm9489_vm3, %v5740_v46, %v5744_v42  ;;  %v13695_v42 = vld [vmem:[#allocation3_spill] sm:$0xff]  ;;  %v8661_v46 = vrot.slane %v8629_v47, 9 }
 0x2a3   :  { %v4715_v57 = vpack.c.b16 %v4656_v48, %v4655_v56  ;;  %v9104_v18 = vrot.slane %v9072_v41, 9  ;;  %v6500_v56 = vunpack.c.l.b16 %v5745_v40  ;;  %v6501_v48 = vunpack.c.l.b16 %v5755_v55  ;;  %v9377_v41 = vld [vmem:[%s13615_s0 + $0x50] sm:$0x1]  ;;  %v11687_v55 = vld [vmem:[%s13615_s0 + $0x2c] sm:$0x1] }
 0x2a4   :  { %v2333_v51 = vpop.f32.mrf.mxu2  ;;  %v11649_v43 = vadd.f32 %v4183_v45, %v2984_v52  ;;  %v9376_v45 = vld [vmem:[%s13615_s0 + $0x4c] sm:$0xf]  ;;  %v5760_v52 = vshll.u32 %v8947_v9, 16  ;;  %v4463_v24 = vrot.slane %v9377_v41, 5  ;;  %v5772_v40 = vrot.slane %v5770_v20, 4 }
 0x2a5   :  { %v2424_v15 = vadd.f32 %v2333_v51, %v1647_v31  ;;  %v4460_v63 = vrot.slane %v9376_v45, 5  ;;  %v1649_v31 = vadd.f32 %v11387_v13, %v13695_v42  ;;  %v6564_v45 = vpack.c.b16 %v6501_v48, %v6500_v56 }
 0x2a6   :  { %8495 = vmatmul.msk.bf16.gmra.mxu3 %vm993_vm4, %v9263_v5  ;;  %13694 = vst [vmem:[#allocation31_spill] sm:$0xff] %v11649_v43  ;;  %v5766_v5 = vshll.u32 %v11647_v14, 16 }
 0x2a7   :  { %v4462_v13 = vrot.slane %v4460_v63, 4 }
 0x2a8   :  { %v4186_v28 = vpop.f32.mrf.mxu0 }
 0x2a9   :  { %v2894_v2 = vpop.f32.mrf.mxu3 }
 0x2aa   :  { %v11651_v1 = vpop.f32.mrf.mxu1  ;;  %v2985_v8 = vadd.f32 %v2894_v2, %v2424_v15  ;;  %v7063_v15 = vsel %vm10019_vm7, %v9104_v18, %v7062_v36  ;;  %v11680_v2 = vrot.slane %v5766_v5, 5  ;;  %v7066_v36 = vsel %vm10019_vm7, %v7064_v29, %v7065_v53  ;;  %v13697_v29 = vld [vmem:[#allocation4_spill] sm:$0xff] }
 0x2ab   :  { %8623 = vmatmul.msk.bf16.gmra.mxu0 %vm993_vm4, %v3962_v49  ;;  %v5759_v49 = vrot.slane %v5757_v32, 4  ;;  %v4461_v32 = vsel %vm10019_vm7, %v8661_v46, %v4460_v63  ;;  %v7285_v20 = vunpack.c.l.b16 %v7066_v36  ;;  %v1652_v53 = vadd.f32 %v11407_v11, %v13697_v29  ;;  %v8950_v63 = vld [vmem:[%s13615_s0 + $0x30] sm:$0xf] }
 0x2ac   :  { %v2335_v51 = vpop.f32.mrf.mxu2  ;;  %v11678_v9 = vadd.f32 %v4186_v28, %v2985_v8  ;;  %v7284_v28 = vunpack.c.l.b16 %v7063_v15  ;;  %v4657_v48 = vunpack.c.l.b16 %v4461_v32  ;;  %v5784_v32 = vshll.u32 %v8950_v63, 16 }
 0x2ad   :  { %8692 = vmatmul.msk.bf16.gmra.mxu1 %vm993_vm4, %v4715_v57  ;;  %v2425_v23 = vadd.f32 %v2335_v51, %v1649_v31  ;;  %v5762_v57 = vrot.slane %v5760_v52, 5  ;;  %v4464_v52 = vsel %vm10019_vm7, %v4462_v13, %v4463_v24  ;;  %v5773_v31 = vor.u32 %v5772_v40, %v11680_v2  ;;  %v9073_v24 = vld [vmem:[%s13615_s0 + $0x24] sm:$0xe] }
 0x2ae   :  { %13696 = vst [vmem:[#allocation2_spill] sm:$0xff] %v11678_v9  ;;  %v5776_v51 = vshll.u32 %v11687_v55, 16  ;;  %v4658_v15 = vunpack.c.l.b16 %v4464_v52 }
 0x2af   :  { %v5763_v42 = vor.u32 %v5762_v57, %v5759_v49  ;;  %v5774_v11 = vrot.slane %v5773_v31, 4  ;;  %v7069_v49 = vrot.slane %v11647_v14, 5  ;;  %v5781_v57 = vshrl.u32 %v8950_v63, 16  ;;  %v9378_v14 = vld [vmem:[%s13615_s0 + $0x58] sm:$0xf] }
 0x2b0   :  { %v4188_v18 = vpop.f32.mrf.mxu0  ;;  %v5778_v41 = vrot.slane %v5776_v51, 5  ;;  %v7072_v51 = vrot.slane %v11687_v55, 5  ;;  %v9265_v55 = vld [vmem:[%s13615_s0 + $0x24] sm:$0xff] }
 0x2b1   :  { %v2896_v47 = vpop.f32.mrf.mxu3  ;;  %8912 = vmatmul.msk.bf16.vlgmr.msra.gmra.mxu2 %vm993_vm4, %v9264_v27  ;;  %v7348_v27 = vpack.c.b16 %v7285_v20, %v7284_v28  ;;  %v5764_v13 = vrot.slane %v5763_v42, 4  ;;  %v8630_v42 = vld [vmem:[%s13615_s0 + $0x54] sm:$0xe]  ;;  %v5783_v63 = vrot.slane %v5781_v57, 4 }
 0x2b2   :  { %v11690_v8 = vpop.f32.mrf.mxu1  ;;  %v2986_v5 = vadd.f32 %v2896_v47, %v2425_v23  ;;  %v11706_v23 = vld [vmem:[%s13615_s0 + $0x34] sm:$0xf]  ;;  %v4716_v47 = vpack.c.b16 %v4658_v15, %v4657_v48  ;;  %v5779_v48 = vsel %vm9489_vm3, %v5774_v11, %v5778_v41  ;;  %v7071_v15 = vrot.slane %v7069_v49, 4 }
 0x2b3   :  { %v5790_v52 = vshll.u32 %v11706_v23, 16  ;;  %v6503_v57 = vunpack.c.l.b16 %v5779_v48 }
 0x2b4   :  { %v2338_v56 = vpop.f32.mrf.mxu2  ;;  %v11713_v40 = vadd.f32 %v4188_v18, %v2986_v5  ;;  %v4467_v18 = vrot.slane %v9378_v14, 5  ;;  %v13699_v5 = vld [vmem:[#allocation5_spill] sm:$0xff]  ;;  %v8662_v14 = vrot.slane %v8630_v42, 9 }
 0x2b5   :  { %v2426_v46 = vadd.f32 %v2338_v56, %v1652_v53  ;;  %v1654_v31 = vadd.f32 %v11446_v61, %v13699_v5  ;;  %v9105_v53 = vrot.slane %v9073_v24, 9  ;;  %v5769_v56 = vsel %vm9489_vm3, %v5764_v13, %v11680_v2  ;;  %v9379_v2 = vld [vmem:[%s13615_s0 + $0x5c] sm:$0x1] }
 0x2b6   :  { %9040 = vmatmul.msk.bf16.vlgmr.msra.gmra.mxu3 %vm993_vm4, %v6564_v45  ;;  %13698 = vst [vmem:[#allocation3_spill] sm:$0xff] %v11713_v40  ;;  %v5794_v45 = vshrl.u32 %v11706_v23, 16  ;;  %v5786_v61 = vrot.slane %v5784_v32, 5  ;;  %v4470_v13 = vrot.slane %v9379_v2, 5  ;;  %v6502_v41 = vunpack.c.l.b16 %v5769_v56 }
 0x2b7   :  { %v7070_v32 = vsel %vm10019_vm7, %v9105_v53, %v7069_v49  ;;  %v4468_v5 = vsel %vm10019_vm7, %v8662_v14, %v4467_v18  ;;  %v13701_v53 = vld [vmem:[#allocation6_spill] sm:$0xff]  ;;  %v9074_v14 = vld [vmem:[%s13615_s0 + $0x30] sm:$0xe] }
 0x2b8   :  { %v4191_v36 = vpop.f32.mrf.mxu0  ;;  %v5796_v24 = vrot.slane %v5794_v45, 4  ;;  %v5787_v45 = vor.u32 %v5786_v61, %v5783_v63  ;;  %v6565_v49 = vpack.c.b16 %v6503_v57, %v6502_v41 }
 0x2b9   :  { %v2899_v28 = vpop.f32.mrf.mxu3 }
 0x2ba   :  { %v11717_v20 = vpop.f32.mrf.mxu1  ;;  %v2987_v29 = vadd.f32 %v2899_v28, %v2426_v46  ;;  %v5792_v46 = vrot.slane %v5790_v52, 5  ;;  %v7073_v52 = vsel %vm10019_vm7, %v7071_v15, %v7072_v51  ;;  %v1657_v51 = vadd.f32 %v11470_v7, %v13701_v53 }
 0x2bb   :  { %9136 = vmatmul.msk.bf16.vlgmr.msra.gmra.mxu0 %vm993_vm4, %v7348_v27  ;;  %v4469_v27 = vrot.slane %v4467_v18, 4  ;;  %v7286_v15 = vunpack.c.l.b16 %v7070_v32  ;;  %v7287_v63 = vunpack.c.l.b16 %v7073_v52  ;;  %v5788_v9 = vrot.slane %v5787_v45, 4 }
 0x2bc   :  { %v2340_v40 = vpop.f32.mrf.mxu2  ;;  %v11741_v11 = vadd.f32 %v4191_v36, %v2987_v29  ;;  %v5797_v29 = vor.u32 %v5796_v24, %v5792_v46  ;;  %v8953_v24 = vld [vmem:[%s13615_s0 + $0x3c] sm:$0xf]  ;;  %v9106_v32 = vrot.slane %v9074_v14, 9  ;;  %v9381_v14 = vld [vmem:[%s13615_s0 + $0x68] sm:$0x1] }
 0x2bd   :  { %8693 = vmatmul.msk.bf16.gmra.mxu1 %vm993_vm4, %v4716_v47  ;;  %v2427_v28 = vadd.f32 %v2340_v40, %v1654_v31  ;;  %v11746_v47 = vld [vmem:[%s13615_s0 + $0x38] sm:$0x1]  ;;  %v4471_v31 = vsel %vm10019_vm7, %v4469_v27, %v4470_v13  ;;  %v7349_v7 = vpack.c.b16 %v7287_v63, %v7286_v15  ;;  %v11773_v27 = vld [vmem:[%s13615_s0 + $0x40] sm:$0xf] }
 0x2be   :  { %13700 = vst [vmem:[#allocation4_spill] sm:$0xff] %v11741_v11  ;;  %v5800_v56 = vshll.u32 %v11746_v47, 16  ;;  %v4660_v2 = vunpack.c.l.b16 %v4471_v31  ;;  %v5798_v43 = vrot.slane %v5797_v29, 4  ;;  %v5805_v29 = vshrl.u32 %v8953_v24, 16 }
 0x2bf   :  { %v5818_v53 = vshrl.u32 %v11773_v27, 16 }
 0x2c0   :  { %v4193_v40 = vpop.f32.mrf.mxu0  ;;  %v5802_v18 = vrot.slane %v5800_v56, 5 }
 0x2c1   :  { %v2901_v42 = vpop.f32.mrf.mxu3  ;;  %8913 = vmatmul.msk.bf16.gmra.mxu2 %vm993_vm4, %v9265_v55  ;;  %v4659_v55 = vunpack.c.l.b16 %v4468_v5 }
 0x2c2   :  { %v11753_v36 = vpop.f32.mrf.mxu1  ;;  %v2988_v48 = vadd.f32 %v2901_v42, %v2427_v28  ;;  %v7076_v28 = vrot.slane %v11706_v23, 5  ;;  %v5793_v42 = vsel %vm9489_vm3, %v5788_v9, %v5792_v46  ;;  %v5803_v5 = vsel %vm9489_vm3, %v5798_v43, %v5802_v18  ;;  %v8631_v23 = vld [vmem:[%s13615_s0 + $0x60] sm:$0xe]  ;;  %v13702_v9 = vld [vmem:[#allocation8_spill] sm:$0xff] }
 0x2c3   :  { %v4717_v57 = vpack.c.b16 %v4660_v2, %v4659_v55  ;;  %v1659_v46 = vadd.f32 %v11508_v19, %v13702_v9  ;;  %v6504_v63 = vunpack.c.l.b16 %v5793_v42  ;;  %v8663_v55 = vrot.slane %v8631_v23, 9  ;;  %v9266_v18 = vld [vmem:[%s13615_s0 + $0x30] sm:$0xff] }
 0x2c4   :  { %v2343_v61 = vpop.f32.mrf.mxu2  ;;  %v11775_v13 = vadd.f32 %v4193_v40, %v2988_v48  ;;  %v9380_v40 = vld [vmem:[%s13615_s0 + $0x64] sm:$0xf]  ;;  %v5808_v48 = vshll.u32 %v8953_v24, 16  ;;  %v7078_v43 = vrot.slane %v7076_v28, 4  ;;  %v5820_v42 = vrot.slane %v5818_v53, 4 }
 0x2c5   :  { %v2428_v11 = vadd.f32 %v2343_v61, %v1657_v51  ;;  %v4474_v31 = vrot.slane %v9380_v40, 5  ;;  %v7079_v51 = vrot.slane %v11746_v47, 5  ;;  %v6505_v61 = vunpack.c.l.b16 %v5803_v5  ;;  %v11813_v5 = vld [vmem:[%s13615_s0 + $0x44] sm:$0x1] }
 0x2c6   :  { %9041 = vmatmul.msk.bf16.gmra.mxu3 %vm993_vm4, %v6565_v49  ;;  %v5814_v49 = vshll.u32 %v11773_v27, 16  ;;  %v4477_v47 = vrot.slane %v9381_v14, 5 }
 0x2c7   :  { %v4476_v19 = vrot.slane %v4474_v31, 4  ;;  %v6566_v40 = vpack.c.b16 %v6505_v61, %v6504_v63 }
 0x2c8   :  { %v4196_v41 = vpop.f32.mrf.mxu0 }
 0x2c9   :  { %v2904_v52 = vpop.f32.mrf.mxu3 }
 0x2ca   :  { %v11777_v45 = vpop.f32.mrf.mxu1  ;;  %v2989_v56 = vadd.f32 %v2904_v52, %v2428_v11  ;;  %v7077_v11 = vsel %vm10019_vm7, %v9106_v32, %v7076_v28  ;;  %v11806_v52 = vrot.slane %v5814_v49, 5  ;;  %v7080_v28 = vsel %vm10019_vm7, %v7078_v43, %v7079_v51  ;;  %v13703_v43 = vld [vmem:[#allocation10_spill] sm:$0xff] }
 0x2cb   :  { %9137 = vmatmul.msk.bf16.gmra.mxu0 %vm993_vm4, %v7349_v7  ;;  %v5807_v7 = vrot.slane %v5805_v29, 4  ;;  %v4475_v29 = vsel %vm10019_vm7, %v8663_v55, %v4474_v31  ;;  %v7289_v53 = vunpack.c.l.b16 %v7080_v28  ;;  %v1662_v51 = vadd.f32 %v11529_v37, %v13703_v43  ;;  %v8956_v31 = vld [vmem:[%s13615_s0 + $0x48] sm:$0xf] }
 0x2cc   :  { %v2345_v15 = vpop.f32.mrf.mxu2  ;;  %v11804_v24 = vadd.f32 %v4196_v41, %v2989_v56  ;;  %v7288_v41 = vunpack.c.l.b16 %v7077_v11  ;;  %v4661_v61 = vunpack.c.l.b16 %v4475_v29  ;;  %v5832_v29 = vshll.u32 %v8956_v31, 16 }
 0x2cd   :  { %8694 = vmatmul.msk.bf16.gmra.mxu1 %vm993_vm4, %v4717_v57  ;;  %v2429_v2 = vadd.f32 %v2345_v15, %v1659_v46  ;;  %v5810_v57 = vrot.slane %v5808_v48, 5  ;;  %v4478_v48 = vsel %vm10019_vm7, %v4476_v19, %v4477_v47  ;;  %v5821_v46 = vor.u32 %v5820_v42, %v11806_v52  ;;  %v9075_v47 = vld [vmem:[%s13615_s0 + $0x3c] sm:$0xe] }
 0x2ce   :  { %v5824_v15 = vshll.u32 %v11813_v5, 16  ;;  %v4662_v11 = vunpack.c.l.b16 %v4478_v48 }
 0x2cf   :  { %v5811_v9 = vor.u32 %v5810_v57, %v5807_v7  ;;  %v5822_v37 = vrot.slane %v5821_v46, 4  ;;  %v7083_v7 = vrot.slane %v11773_v27, 5  ;;  %v5829_v57 = vshrl.u32 %v8956_v31, 16  ;;  %v9382_v27 = vld [vmem:[%s13615_s0 + $0x70] sm:$0xf] }
 0x2d0   :  { %v4198_v32 = vpop.f32.mrf.mxu0  ;;  %v5826_v14 = vrot.slane %v5824_v15, 5  ;;  %v7086_v15 = vrot.slane %v11813_v5, 5  ;;  %v9267_v5 = vld [vmem:[%s13615_s0 + $0x3c] sm:$0xff] }
 0x2d1   :  { %v2906_v23 = vpop.f32.mrf.mxu3  ;;  %8914 = vmatmul.msk.bf16.gmra.mxu2 %vm993_vm4, %v9266_v18  ;;  %v7350_v18 = vpack.c.b16 %v7289_v53, %v7288_v41  ;;  %v5812_v19 = vrot.slane %v5811_v9, 4  ;;  %v8632_v9 = vld [vmem:[%s13615_s0 + $0x6c] sm:$0xe]  ;;  %v5831_v31 = vrot.slane %v5829_v57, 4 }
 0x2d2   :  { %v11816_v56 = vpop.f32.mrf.mxu1  ;;  %v2990_v49 = vadd.f32 %v2906_v23, %v2429_v2  ;;  %v11832_v2 = vld [vmem:[%s13615_s0 + $0x4c] sm:$0xf]  ;;  %v4718_v23 = vpack.c.b16 %v4662_v11, %v4661_v61  ;;  %v5827_v61 = vsel %vm9489_vm3, %v5822_v37, %v5826_v14  ;;  %v7085_v11 = vrot.slane %v7083_v7, 4 }
 0x2d3   :  { %v5838_v48 = vshll.u32 %v11832_v2, 16  ;;  %v6507_v57 = vunpack.c.l.b16 %v5827_v61 }
 0x2d4   :  { %v2348_v63 = vpop.f32.mrf.mxu2  ;;  %v11839_v42 = vadd.f32 %v4198_v32, %v2990_v49  ;;  %v4481_v32 = vrot.slane %v9382_v27, 5  ;;  %v13705_v49 = vld [vmem:[#allocation12_spill] sm:$0xff]  ;;  %v8664_v27 = vrot.slane %v8632_v9, 9 }
 0x2d5   :  { %v2430_v55 = vadd.f32 %v2348_v63, %v1662_v51  ;;  %v1664_v46 = vadd.f32 %v11568_v59, %v13705_v49  ;;  %v9107_v51 = vrot.slane %v9075_v47, 9  ;;  %v5817_v63 = vsel %vm9489_vm3, %v5812_v19, %v11806_v52  ;;  %v9383_v52 = vld [vmem:[%s13615_s0 + $0x74] sm:$0x1] }
 0x2d6   :  { %9042 = vmatmul.msk.bf16.gmra.mxu3 %vm993_vm4, %v6566_v40  ;;  %13704 = vst [vmem:[#allocation5_spill] sm:$0xff] %v11839_v42  ;;  %v5842_v40 = vshrl.u32 %v11832_v2, 16  ;;  %v5834_v59 = vrot.slane %v5832_v29, 5  ;;  %v4484_v19 = vrot.slane %v9383_v52, 5  ;;  %v6506_v14 = vunpack.c.l.b16 %v5817_v63 }
 0x2d8   :  { %v4201_v28 = vpop.f32.mrf.mxu0  ;;  %v5844_v47 = vrot.slane %v5842_v40, 4  ;;  %v5835_v40 = vor.u32 %v5834_v59, %v5831_v31  ;;  %v6567_v52 = vpack.c.b16 %v6507_v57, %v6506_v14  ;;  %v11896_v57 = vld [vmem:[%s13615_s0 + $0x58] sm:$0xf] }
 0x2d9   :  { %v2909_v41 = vpop.f32.mrf.mxu3 }
 0x2da   :  { %v11843_v53 = vpop.f32.mrf.mxu1  ;;  %v2991_v43 = vadd.f32 %v2909_v41, %v2430_v55  ;;  %v5840_v55 = vrot.slane %v5838_v48, 5  ;;  %v7087_v48 = vsel %vm10019_vm7, %v7085_v11, %v7086_v15 }
 0x2db   :  { %9138 = vmatmul.msk.bf16.gmra.mxu0 %vm993_vm4, %v7350_v18  ;;  %v4483_v18 = vrot.slane %v4481_v32, 4  ;;  %v7291_v11 = vunpack.c.l.b16 %v7087_v48 }
 0x2dc   :  { %v2350_v42 = vpop.f32.mrf.mxu2  ;;  %v11867_v37 = vadd.f32 %v4201_v28, %v2991_v43  ;;  %v4482_v28 = vsel %vm10019_vm7, %v8664_v27, %v4481_v32  ;;  %v5845_v43 = vor.u32 %v5844_v47, %v5840_v55  ;;  %v9076_v32 = vld [vmem:[%s13615_s0 + $0x48] sm:$0xe]  ;;  %v7090_v27 = vrot.slane %v11832_v2, 5 }
 0x2dd   :  { %8695 = vmatmul.msk.bf16.gmra.mxu1 %vm993_vm4, %v4718_v23  ;;  %v2431_v41 = vadd.f32 %v2350_v42, %v1664_v46  ;;  %v8958_v23 = vld [vmem:[%s13615_s0 + $0x50] sm:$0x1]  ;;  %v7084_v42 = vsel %vm10019_vm7, %v9107_v51, %v7083_v7  ;;  %v4485_v46 = vsel %vm10019_vm7, %v4483_v18, %v4484_v19  ;;  %v13707_v7 = vld [vmem:[#allocation14_spill] sm:$0xff]  ;;  %v4663_v59 = vunpack.c.l.b16 %v4482_v28 }
 0x2de   :  { %13706 = vst [vmem:[#allocation6_spill] sm:$0xff] %v11867_v37  ;;  %v5848_v63 = vshll.u32 %v8958_v23, 16  ;;  %v1667_v51 = vadd.f32 %v11597_v50, %v13707_v7  ;;  %v7290_v15 = vunpack.c.l.b16 %v7084_v42  ;;  %v5836_v37 = vrot.slane %v5835_v40, 4  ;;  %v8959_v50 = vld [vmem:[%s13615_s0 + $0x54] sm:$0xf] }
 0x2df   :  { %v5846_v47 = vrot.slane %v5845_v43, 4  ;;  %v9108_v14 = vrot.slane %v9076_v32, 9  ;;  %v7093_v28 = vrot.slane %v8958_v23, 5  ;;  %v5853_v7 = vshrl.u32 %v8959_v50, 16 }
 0x2e0   :  { %v4203_v29 = vpop.f32.mrf.mxu0  ;;  %v5850_v19 = vrot.slane %v5848_v63, 5  ;;  %v5841_v40 = vsel %vm9489_vm3, %v5836_v37, %v5840_v55  ;;  %v5862_v37 = vshll.u32 %v11896_v57, 16  ;;  %v5866_v23 = vshrl.u32 %v11896_v57, 16 }
 0x2e1   :  { %v2911_v9 = vpop.f32.mrf.mxu3  ;;  %8915 = vmatmul.msk.bf16.gmra.mxu2 %vm993_vm4, %v9267_v5  ;;  %v4664_v5 = vunpack.c.l.b16 %v4485_v46 }
 0x2e2   :  { %v11877_v49 = vpop.f32.mrf.mxu1  ;;  %v2992_v61 = vadd.f32 %v2911_v9, %v2431_v41  ;;  %v7351_v41 = vpack.c.b16 %v7291_v11, %v7290_v15  ;;  %v7092_v9 = vrot.slane %v7090_v27, 4  ;;  %v5851_v63 = vsel %vm9489_vm3, %v5846_v47, %v5850_v19  ;;  %v13708_v11 = vld [vmem:[#allocation16_spill] sm:$0xff] }
 0x2e3   :  { %v4719_v2 = vpack.c.b16 %v4664_v5, %v4663_v59  ;;  %v6508_v59 = vunpack.c.l.b16 %v5841_v40  ;;  %v6509_v32 = vunpack.c.l.b16 %v5851_v63  ;;  %v11936_v63 = vld [vmem:[%s13615_s0 + $0x5c] sm:$0x1] }
 0x2e4   :  { %v2353_v31 = vpop.f32.mrf.mxu2  ;;  %v11898_v42 = vadd.f32 %v4203_v29, %v2992_v61  ;;  %v9384_v29 = vld [vmem:[%s13615_s0 + $0x7c] sm:$0xf] }
 0x2e5   :  { %v2432_v18 = vadd.f32 %v2353_v31, %v1667_v51  ;;  %v4488_v61 = vrot.slane %v9384_v29, 5  ;;  %v5856_v51 = vshll.u32 %v8959_v50, 16  ;;  %v1669_v31 = vadd.f32 %v11624_v10, %v13708_v11  ;;  %v9268_v50 = vld [vmem:[%s13615_s0 + $0x48] sm:$0xff] }
 0x2e6   :  { %9043 = vmatmul.msk.bf16.gmra.mxu3 %vm993_vm4, %v6567_v52  ;;  %v8633_v52 = vld [vmem:[%s13615_s0 + $0x78] sm:$0xe]  ;;  %v6568_v29 = vpack.c.b16 %v6509_v32, %v6508_v59  ;;  %v5872_v59 = vshll.u32 %v11936_v63, 16 }
 0x2e7   :  { %v8665_v47 = vrot.slane %v8633_v52, 9  ;;  %v4490_v10 = vrot.slane %v4488_v61, 4 }
 0x2e8   :  { %v4206_v48 = vpop.f32.mrf.mxu0 }
 0x2e9   :  { %v2914_v46 = vpop.f32.mrf.mxu3 }
 0x2ea   :  { %v4855_v43 = vpop.f32.mrf.mxu1  ;;  %v2993_v15 = vadd.f32 %v2914_v46, %v2432_v18  ;;  %v7091_v18 = vsel %vm10019_vm7, %v9108_v14, %v7090_v27  ;;  %v5855_v46 = vrot.slane %v5853_v7, 4  ;;  %v11931_v27 = vrot.slane %v5862_v37, 5 }
 0x2eb   :  { %v11911_v55 = vadd.f32 %v4855_v43, %v10495_v60  ;;  %9139 = vmatmul.msk.bf16.gmra.mxu0 %vm993_vm4, %v7351_v41  ;;  %v7094_v60 = vsel %vm10019_vm7, %v7092_v9, %v7093_v28  ;;  %v9385_v41 = vld [vmem:[%s13615_s0 + $0x80] sm:$0x1]  ;;  %v5858_v43 = vrot.slane %v5856_v51, 5  ;;  %v5868_v14 = vrot.slane %v5866_v23, 4 }
 0x2ec   :  { %v2355_v5 = vpop.f32.mrf.mxu2  ;;  %v4491_v40 = vrot.slane %v9385_v41, 5  ;;  %v7292_v28 = vunpack.c.l.b16 %v7091_v18  ;;  %v7293_v11 = vunpack.c.l.b16 %v7094_v60  ;;  %v5874_v41 = vrot.slane %v5872_v59, 5 }
 0x2ed   :  { %8696 = vmatmul.msk.bf16.gmra.mxu1 %vm993_vm4, %v4719_v2  ;;  %v2433_v19 = vadd.f32 %v2355_v5, %v1669_v31  ;;  %v11929_v2 = vadd.f32 %v4206_v48, %v2993_v15  ;;  %v4489_v48 = vsel %vm10019_vm7, %v8665_v47, %v4488_v61  ;;  %v5859_v37 = vor.u32 %v5858_v43, %v5855_v46  ;;  %v13709_v5 = vld [vmem:[#allocation18_spill] sm:$0xff] }
 0x2ee   :  { %v4492_v7 = vsel %vm10019_vm7, %v4490_v10, %v4491_v40  ;;  %v5869_v23 = vor.u32 %v5868_v14, %v11931_v27  ;;  %v1672_v18 = vadd.f32 %v11651_v1, %v13709_v5  ;;  %v4665_v60 = vunpack.c.l.b16 %v4489_v48  ;;  %v8962_v61 = vld [vmem:[%s13615_s0 + $0x60] sm:$0xf]  ;;  %v9077_v40 = vld [vmem:[%s13615_s0 + $0x54] sm:$0xe]  ;;  %v8634_v5 = vld [vmem:[%s13615_s0 + $0x84] sm:$0xe] }
 0x2ef   :  { %v5860_v10 = vrot.slane %v5859_v37, 4  ;;  %v7097_v46 = vrot.slane %v11896_v57, 5  ;;  %v5877_v43 = vshrl.u32 %v8962_v61, 16  ;;  %v5880_v48 = vshll.u32 %v8962_v61, 16  ;;  %v9386_v57 = vld [vmem:[%s13615_s0 + $0x88] sm:$0xf] }
 0x2f0   :  { %v4208_v9 = vpop.f32.mrf.mxu0  ;;  %v5870_v1 = vrot.slane %v5869_v23, 4  ;;  %v9109_v59 = vrot.slane %v9077_v40, 9 }
 0x2f1   :  { %v2916_v52 = vpop.f32.mrf.mxu3  ;;  %8916 = vmatmul.msk.bf16.gmra.mxu2 %vm993_vm4, %v9268_v50  ;;  %v4666_v50 = vunpack.c.l.b16 %v4492_v7  ;;  %v5879_v61 = vrot.slane %v5877_v43, 4 }
 0x2f2   :  { %v4857_v31 = vpop.f32.mrf.mxu1  ;;  %v2994_v51 = vadd.f32 %v2916_v52, %v2433_v19  ;;  %v7352_v19 = vpack.c.b16 %v7293_v11, %v7292_v28  ;;  %v13711_v28 = vld [vmem:[#allocation20_spill] sm:$0xff] }
 0x2f3   :  { %v11944_v15 = vadd.f32 %v4857_v31, %v10522_v4  ;;  %v11956_v4 = vld [vmem:[%s13615_s0 + $0x64] sm:$0xf]  ;;  %v4720_v31 = vpack.c.b16 %v4666_v50, %v4665_v60  ;;  %v1674_v11 = vadd.f32 %v11690_v8, %v13711_v28  ;;  %v5865_v8 = vsel %vm9489_vm3, %v5860_v10, %v11931_v27  ;;  %v9387_v27 = vld [vmem:[%s13615_s0 + $0x8c] sm:$0x1] }
 0x2f4   :  { %v2358_v32 = vpop.f32.mrf.mxu2  ;;  %v11963_v14 = vadd.f32 %v4208_v9, %v2994_v51  ;;  %v5886_v7 = vshll.u32 %v11956_v4, 16  ;;  %v4495_v9 = vrot.slane %v9386_v57, 5  ;;  %v5875_v60 = vsel %vm9489_vm3, %v5870_v1, %v5874_v41 }
 0x2f5   :  { %v2434_v47 = vadd.f32 %v2358_v32, %v1672_v18  ;;  %v7100_v32 = vrot.slane %v11936_v63, 5  ;;  %v7099_v50 = vrot.slane %v7097_v46, 4  ;;  %v9269_v63 = vld [vmem:[%s13615_s0 + $0x54] sm:$0xff]  ;;  %v4498_v10 = vrot.slane %v9387_v27, 5 }
 0x2f6   :  { %9044 = vmatmul.msk.bf16.gmra.mxu3 %vm993_vm4, %v6568_v29  ;;  %13710 = vst [vmem:[#allocation8_spill] sm:$0xff] %v11963_v14  ;;  %v5890_v29 = vshrl.u32 %v11956_v4, 16  ;;  %v6510_v41 = vunpack.c.l.b16 %v5865_v8  ;;  %v6511_v43 = vunpack.c.l.b16 %v5875_v60 }
 0x2f8   :  { %v4211_v52 = vpop.f32.mrf.mxu0  ;;  %v5892_v40 = vrot.slane %v5890_v29, 4  ;;  %v7101_v29 = vsel %vm10019_vm7, %v7099_v50, %v7100_v32  ;;  %v6569_v27 = vpack.c.b16 %v6511_v43, %v6510_v41  ;;  %v12022_v41 = vld [vmem:[%s13615_s0 + $0x70] sm:$0xf] }
 0x2f9   :  { %v2919_v37 = vpop.f32.mrf.mxu3 }
 0x2fa   :  { %v4860_v23 = vpop.f32.mrf.mxu1  ;;  %v2995_v51 = vadd.f32 %v2919_v37, %v2434_v47  ;;  %v8666_v47 = vrot.slane %v8634_v5, 9  ;;  %v5888_v37 = vrot.slane %v5886_v7, 5  ;;  %v7098_v7 = vsel %vm10019_vm7, %v9109_v59, %v7097_v46  ;;  %v13713_v59 = vld [vmem:[#allocation22_spill] sm:$0xff] }
 0x2fb   :  { %v11976_v18 = vadd.f32 %v4860_v23, %v10545_v58  ;;  %9140 = vmatmul.msk.bf16.gmra.mxu0 %vm993_vm4, %v7352_v19  ;;  %v5882_v58 = vrot.slane %v5880_v48, 5  ;;  %v4497_v19 = vrot.slane %v4495_v9, 4  ;;  %v1677_v32 = vadd.f32 %v11717_v20, %v13713_v59  ;;  %v13714_v59 = vld [vmem:[#allocation24_spill] sm:$0xff] }
 0x2fc   :  { %v2360_v28 = vpop.f32.mrf.mxu2  ;;  %v11992_v1 = vadd.f32 %v4211_v52, %v2995_v51  ;;  %v4496_v52 = vsel %vm10019_vm7, %v8666_v47, %v4495_v9  ;;  %v5893_v8 = vor.u32 %v5892_v40, %v5888_v37  ;;  %v7294_v50 = vunpack.c.l.b16 %v7098_v7  ;;  %v9078_v9 = vld [vmem:[%s13615_s0 + $0x60] sm:$0xe] }
 0x2fd   :  { %8697 = vmatmul.msk.bf16.gmra.mxu1 %vm993_vm4, %v4720_v31  ;;  %v2435_v23 = vadd.f32 %v2360_v28, %v1674_v11  ;;  %v8964_v31 = vld [vmem:[%s13615_s0 + $0x68] sm:$0x1]  ;;  %v5883_v11 = vor.u32 %v5882_v58, %v5879_v61  ;;  %v4499_v51 = vsel %vm10019_vm7, %v4497_v19, %v4498_v10  ;;  %v7295_v61 = vunpack.c.l.b16 %v7101_v29 }
 0x2fe   :  { %13712 = vst [vmem:[#allocation10_spill] sm:$0xff] %v11992_v1  ;;  %v5896_v60 = vshll.u32 %v8964_v31, 16  ;;  %v4668_v1 = vunpack.c.l.b16 %v4499_v51  ;;  %v7104_v47 = vrot.slane %v11956_v4, 5  ;;  %v9110_v10 = vrot.slane %v9078_v9, 9 }
 0x2ff   :  { %v5884_v14 = vrot.slane %v5883_v11, 4  ;;  %v7353_v20 = vpack.c.b16 %v7295_v61, %v7294_v50 }
 0x300   :  { %v4213_v48 = vpop.f32.mrf.mxu0  ;;  %v5898_v19 = vrot.slane %v5896_v60, 5  ;;  %v7106_v11 = vrot.slane %v7104_v47, 4 }
 0x301   :  { %v2921_v5 = vpop.f32.mrf.mxu3  ;;  %8917 = vmatmul.msk.bf16.gmra.mxu2 %vm993_vm4, %v9269_v63  ;;  %v4667_v63 = vunpack.c.l.b16 %v4496_v52  ;;  %v5889_v29 = vsel %vm9489_vm3, %v5884_v14, %v5888_v37  ;;  %v5910_v37 = vshll.u32 %v12022_v41, 16 }
 0x302   :  { %v4862_v57 = vpop.f32.mrf.mxu1  ;;  %v2996_v28 = vadd.f32 %v2921_v5, %v2435_v23  ;;  %v5894_v23 = vrot.slane %v5893_v8, 4  ;;  %v7107_v5 = vrot.slane %v8964_v31, 5  ;;  %v8635_v8 = vld [vmem:[%s13615_s0 + $0x90] sm:$0xe]  ;;  %v5914_v31 = vshrl.u32 %v12022_v41, 16 }
 0x303   :  { %v12007_v46 = vadd.f32 %v4862_v57, %v10572_v30  ;;  %v8965_v30 = vld [vmem:[%s13615_s0 + $0x6c] sm:$0xf]  ;;  %v4721_v4 = vpack.c.b16 %v4668_v1, %v4667_v63  ;;  %v6512_v50 = vunpack.c.l.b16 %v5889_v29  ;;  %v7105_v63 = vsel %vm10019_vm7, %v9110_v10, %v7104_v47 }
 0x304   :  { %v2363_v58 = vpop.f32.mrf.mxu2  ;;  %v12024_v43 = vadd.f32 %v4213_v48, %v2996_v28  ;;  %v5899_v51 = vsel %vm9489_vm3, %v5894_v23, %v5898_v19  ;;  %v9388_v48 = vld [vmem:[%s13615_s0 + $0x94] sm:$0xf]  ;;  %v5901_v1 = vshrl.u32 %v8965_v30, 16  ;;  %v5904_v28 = vshll.u32 %v8965_v30, 16  ;;  %v9270_v23 = vld [vmem:[%s13615_s0 + $0x60] sm:$0xff] }
 0x305   :  { %v2436_v40 = vadd.f32 %v2363_v58, %v1677_v32  ;;  %v4502_v60 = vrot.slane %v9388_v48, 5  ;;  %v1679_v32 = vadd.f32 %v11753_v36, %v13714_v59  ;;  %v6513_v58 = vunpack.c.l.b16 %v5899_v51  ;;  %v9389_v19 = vld [vmem:[%s13615_s0 + $0x98] sm:$0x1]  ;;  %v13715_v59 = vld [vmem:[#allocation26_spill] sm:$0xff] }
 0x306   :  { %9045 = vmatmul.msk.bf16.gmra.mxu3 %vm993_vm4, %v6569_v27  ;;  %v8667_v9 = vrot.slane %v8635_v8, 9  ;;  %v4505_v30 = vrot.slane %v9389_v19, 5  ;;  %v5906_v29 = vrot.slane %v5904_v28, 5  ;;  %v12057_v47 = vrot.slane %v5910_v37, 5 }
 0x307   :  { %v4504_v36 = vrot.slane %v4502_v60, 4  ;;  %v5916_v10 = vrot.slane %v5914_v31, 4  ;;  %v6570_v51 = vpack.c.b16 %v6513_v58, %v6512_v50  ;;  %v7111_v19 = vrot.slane %v12022_v41, 5  ;;  %v9390_v41 = vld [vmem:[%s13615_s0 + $0xa0] sm:$0xf] }
 0x308   :  { %v4216_v7 = vpop.f32.mrf.mxu0 }
 0x309   :  { %v2924_v57 = vpop.f32.mrf.mxu3  ;;  %v5917_v31 = vor.u32 %v5916_v10, %v12057_v47 }
 0x30a   :  { %v4865_v52 = vpop.f32.mrf.mxu1  ;;  %v2997_v27 = vadd.f32 %v2924_v57, %v2436_v40  ;;  %v12062_v57 = vld [vmem:[%s13615_s0 + $0x74] sm:$0x1] }
 0x30b   :  { %v12037_v14 = vadd.f32 %v4865_v52, %v10593_v3  ;;  %9141 = vmatmul.msk.bf16.gmra.mxu0 %vm993_vm4, %v7353_v20  ;;  %v7108_v3 = vsel %vm10019_vm7, %v7106_v11, %v7107_v5  ;;  %v7296_v5 = vunpack.c.l.b16 %v7105_v63  ;;  %v5920_v50 = vshll.u32 %v12062_v57, 16 }
 0x30c   :  { %v2365_v61 = vpop.f32.mrf.mxu2  ;;  %v12055_v20 = vadd.f32 %v4216_v7, %v2997_v27  ;;  %v7297_v8 = vunpack.c.l.b16 %v7108_v3  ;;  %v4503_v7 = vsel %vm10019_vm7, %v8667_v9, %v4502_v60  ;;  %v8968_v60 = vld [vmem:[%s13615_s0 + $0x78] sm:$0xf] }
 0x30d   :  { %8698 = vmatmul.msk.bf16.gmra.mxu1 %vm993_vm4, %v4721_v4  ;;  %v2437_v40 = vadd.f32 %v2365_v61, %v1679_v32  ;;  %v5903_v4 = vrot.slane %v5901_v1, 4  ;;  %v4506_v1 = vsel %vm10019_vm7, %v4504_v36, %v4505_v30  ;;  %v1682_v32 = vadd.f32 %v11777_v45, %v13715_v59  ;;  %v9079_v36 = vld [vmem:[%s13615_s0 + $0x6c] sm:$0xe] }
 0x30e   :  { %v4669_v58 = vunpack.c.l.b16 %v4503_v7  ;;  %v4670_v63 = vunpack.c.l.b16 %v4506_v1  ;;  %v7354_v9 = vpack.c.b16 %v7297_v8, %v7296_v5  ;;  %v5918_v45 = vrot.slane %v5917_v31, 4  ;;  %v13716_v5 = vld [vmem:[#allocation28_spill] sm:$0xff] }
 0x30f   :  { %v5907_v37 = vor.u32 %v5906_v29, %v5903_v4  ;;  %v5925_v30 = vshrl.u32 %v8968_v60, 16  ;;  %v1684_v8 = vadd.f32 %v11816_v56, %v13716_v5  ;;  %v9111_v59 = vrot.slane %v9079_v36, 9 }
 0x310   :  { %v4218_v11 = vpop.f32.mrf.mxu0  ;;  %v4722_v10 = vpack.c.b16 %v4670_v63, %v4669_v58 }
 0x311   :  { %v2926_v52 = vpop.f32.mrf.mxu3  ;;  %8918 = vmatmul.msk.bf16.gmra.mxu2 %vm993_vm4, %v9270_v23  ;;  %v5922_v23 = vrot.slane %v5920_v50, 5  ;;  %v5927_v58 = vrot.slane %v5925_v30, 4 }
 0x312   :  { %v4867_v48 = vpop.f32.mrf.mxu1  ;;  %v2998_v28 = vadd.f32 %v2926_v52, %v2437_v40  ;;  %v5908_v40 = vrot.slane %v5907_v37, 4  ;;  %v5928_v52 = vshll.u32 %v8968_v60, 16  ;;  %v8636_v37 = vld [vmem:[%s13615_s0 + $0x9c] sm:$0xe] }
 0x313   :  { %v12070_v27 = vadd.f32 %v4867_v48, %v10619_v35  ;;  %v12082_v35 = vld [vmem:[%s13615_s0 + $0x7c] sm:$0xf]  ;;  %v5923_v50 = vsel %vm9489_vm3, %v5918_v45, %v5922_v23  ;;  %v8668_v60 = vrot.slane %v8636_v37, 9 }
 0x314   :  { %v2368_v61 = vpop.f32.mrf.mxu2  ;;  %v12089_v4 = vadd.f32 %v4218_v11, %v2998_v28  ;;  %v5934_v48 = vshll.u32 %v12082_v35, 16  ;;  %v4509_v11 = vrot.slane %v9390_v41, 5  ;;  %v5913_v56 = vsel %vm9489_vm3, %v5908_v40, %v12057_v47  ;;  %v9391_v47 = vld [vmem:[%s13615_s0 + $0xa4] sm:$0x1] }
 0x315   :  { %v2438_v3 = vadd.f32 %v2368_v61, %v1682_v32  ;;  %v7114_v32 = vrot.slane %v12062_v57, 5  ;;  %v7113_v61 = vrot.slane %v7111_v19, 4  ;;  %v9271_v57 = vld [vmem:[%s13615_s0 + $0x6c] sm:$0xff]  ;;  %v4512_v40 = vrot.slane %v9391_v47, 5 }
 0x316   :  { %9046 = vmatmul.msk.bf16.gmra.mxu3 %vm993_vm4, %v6570_v51  ;;  %v5938_v51 = vshrl.u32 %v12082_v35, 16  ;;  %v6514_v23 = vunpack.c.l.b16 %v5913_v56  ;;  %v6515_v30 = vunpack.c.l.b16 %v5923_v50  ;;  %v7118_v47 = vrot.slane %v12082_v35, 5 }
 0x318   :  { %v4221_v29 = vpop.f32.mrf.mxu0  ;;  %v5940_v36 = vrot.slane %v5938_v51, 4  ;;  %v7115_v51 = vsel %vm10019_vm7, %v7113_v61, %v7114_v32  ;;  %v6571_v50 = vpack.c.b16 %v6515_v30, %v6514_v23  ;;  %v12151_v23 = vld [vmem:[%s13615_s0 + $0x88] sm:$0xf] }
 0x319   :  { %v2929_v7 = vpop.f32.mrf.mxu3 }
 0x31a   :  { %v4870_v1 = vpop.f32.mrf.mxu1  ;;  %v2999_v28 = vadd.f32 %v2929_v7, %v2438_v3  ;;  %v5936_v3 = vrot.slane %v5934_v48, 5  ;;  %v7112_v48 = vsel %vm10019_vm7, %v9111_v59, %v7111_v19  ;;  %v13717_v59 = vld [vmem:[#allocation30_spill] sm:$0xff] }
 0x31b   :  { %v12102_v31 = vadd.f32 %v4870_v1, %v10641_v0  ;;  %9142 = vmatmul.msk.bf16.gmra.mxu0 %vm993_vm4, %v7354_v9  ;;  %v5930_v0 = vrot.slane %v5928_v52, 5  ;;  %v4511_v9 = vrot.slane %v4509_v11, 4  ;;  %v4510_v1 = vsel %vm10019_vm7, %v8668_v60, %v4509_v11  ;;  %v9080_v60 = vld [vmem:[%s13615_s0 + $0x78] sm:$0xe] }
 0x31c   :  { %v2370_v63 = vpop.f32.mrf.mxu2  ;;  %v12118_v45 = vadd.f32 %v4221_v29, %v2999_v28  ;;  %v5941_v41 = vor.u32 %v5940_v36, %v5936_v3  ;;  %v1687_v32 = vadd.f32 %v11843_v53, %v13717_v59  ;;  %v7298_v61 = vunpack.c.l.b16 %v7112_v48 }
 0x31d   :  { %8699 = vmatmul.msk.bf16.gmra.mxu1 %vm993_vm4, %v4722_v10  ;;  %v2439_v5 = vadd.f32 %v2370_v63, %v1684_v8  ;;  %v12123_v10 = vld [vmem:[%s13615_s0 + $0x80] sm:$0x1]  ;;  %v5931_v8 = vor.u32 %v5930_v0, %v5927_v58  ;;  %v4513_v37 = vsel %vm10019_vm7, %v4511_v9, %v4512_v40  ;;  %v7299_v58 = vunpack.c.l.b16 %v7115_v51 }
 0x31e   :  { %v5944_v28 = vshll.u32 %v12123_v10, 16  ;;  %v4671_v0 = vunpack.c.l.b16 %v4510_v1  ;;  %v5942_v9 = vrot.slane %v5941_v41, 4  ;;  %v9112_v40 = vrot.slane %v9080_v60, 9 }
 0x31f   :  { %v5932_v11 = vrot.slane %v5931_v8, 4  ;;  %v7355_v53 = vpack.c.b16 %v7299_v58, %v7298_v61  ;;  %v7120_v41 = vrot.slane %v7118_v47, 4  ;;  %v5962_v61 = vshrl.u32 %v12151_v23, 16  ;;  %v13718_v58 = vld [vmem:[#allocation32_spill] sm:$0xff] }
 0x320   :  { %v4223_v52 = vpop.f32.mrf.mxu0 }
 0x321   :  { %v2931_v7 = vpop.f32.mrf.mxu3  ;;  %8919 = vmatmul.msk.bf16.gmra.mxu2 %vm993_vm4, %v9271_v57  ;;  %v4672_v57 = vunpack.c.l.b16 %v4513_v37  ;;  %v5937_v35 = vsel %vm9489_vm3, %v5932_v11, %v5936_v3 }
 0x322   :  { %v4872_v29 = vpop.f32.mrf.mxu1  ;;  %v3000_v56 = vadd.f32 %v2931_v7, %v2439_v5  ;;  %v5946_v5 = vrot.slane %v5944_v28, 5  ;;  %v7121_v28 = vrot.slane %v12123_v10, 5  ;;  %v1689_v10 = vadd.f32 %v11877_v49, %v13718_v58  ;;  %v9393_v49 = vld [vmem:[%s13615_s0 + $0xb0] sm:$0x1] }
 0x323   :  { %v12136_v19 = vadd.f32 %v4872_v29, %v10667_v38  ;;  %v8971_v38 = vld [vmem:[%s13615_s0 + $0x84] sm:$0xf]  ;;  %v4723_v51 = vpack.c.b16 %v4672_v57, %v4671_v0  ;;  %v7119_v0 = vsel %vm10019_vm7, %v9112_v40, %v7118_v47 }
 0x324   :  { %v2373_v63 = vpop.f32.mrf.mxu2  ;;  %v12153_v30 = vadd.f32 %v4223_v52, %v3000_v56  ;;  %v5949_v8 = vshrl.u32 %v8971_v38, 16  ;;  %v5952_v7 = vshll.u32 %v8971_v38, 16  ;;  %v5947_v37 = vsel %vm9489_vm3, %v5942_v9, %v5946_v5  ;;  %v8637_v52 = vld [vmem:[%s13615_s0 + $0xa8] sm:$0xe]  ;;  %v9392_v56 = vld [vmem:[%s13615_s0 + $0xac] sm:$0xf] }
 0x325   :  { %v2440_v36 = vadd.f32 %v2373_v63, %v1687_v32  ;;  %v5958_v32 = vshll.u32 %v12151_v23, 16  ;;  %v6516_v63 = vunpack.c.l.b16 %v5937_v35  ;;  %v6517_v11 = vunpack.c.l.b16 %v5947_v37  ;;  %v9272_v5 = vld [vmem:[%s13615_s0 + $0x78] sm:$0xff] }
 0x326   :  { %9047 = vmatmul.msk.bf16.gmra.mxu3 %vm993_vm4, %v6571_v50  ;;  %v4516_v50 = vrot.slane %v9392_v56, 5  ;;  %v8669_v60 = vrot.slane %v8637_v52, 9  ;;  %v7122_v47 = vsel %vm10019_vm7, %v7120_v41, %v7121_v28 }
 0x327   :  { %v12187_v40 = vrot.slane %v5958_v32, 5  ;;  %v7301_v52 = vunpack.c.l.b16 %v7122_v47 }
 0x328   :  { %v4226_v48 = vpop.f32.mrf.mxu0  ;;  %v4518_v38 = vrot.slane %v4516_v50, 4  ;;  %v4517_v56 = vsel %vm10019_vm7, %v8669_v60, %v4516_v50 }
 0x329   :  { %v2934_v29 = vpop.f32.mrf.mxu3 }
 0x32a   :  { %v4875_v1 = vpop.f32.mrf.mxu1  ;;  %v3001_v3 = vadd.f32 %v2934_v29, %v2440_v36  ;;  %v5954_v36 = vrot.slane %v5952_v7, 5  ;;  %v6572_v29 = vpack.c.b16 %v6517_v11, %v6516_v63  ;;  %v4673_v63 = vunpack.c.l.b16 %v4517_v56 }
 0x32b   :  { %v12167_v59 = vadd.f32 %v4875_v1, %v10688_v16  ;;  %9143 = vmatmul.msk.bf16.gmra.mxu0 %vm993_vm4, %v7355_v53  ;;  %v5951_v16 = vrot.slane %v5949_v8, 4  ;;  %v4519_v53 = vrot.slane %v9393_v49, 5  ;;  %v12192_v8 = vld [vmem:[%s13615_s0 + $0x8c] sm:$0x1]  ;;  %v7300_v1 = vunpack.c.l.b16 %v7119_v0 }
 0x32c   :  { %v2375_v57 = vpop.f32.mrf.mxu2  ;;  %v12183_v35 = vadd.f32 %v4226_v48, %v3001_v3  ;;  %v5968_v58 = vshll.u32 %v12192_v8, 16 }
 0x32d   :  { %8700 = vmatmul.msk.bf16.gmra.mxu1 %vm993_vm4, %v4723_v51  ;;  %v2441_v9 = vadd.f32 %v2375_v57, %v1689_v10  ;;  %v5964_v51 = vrot.slane %v5962_v61, 4  ;;  %v4520_v41 = vsel %vm10019_vm7, %v4518_v38, %v4519_v53  ;;  %v5955_v28 = vor.u32 %v5954_v36, %v5951_v16  ;;  %v8974_v57 = vld [vmem:[%s13615_s0 + $0x90] sm:$0xf]  ;;  %v9081_v36 = vld [vmem:[%s13615_s0 + $0x84] sm:$0xe] }
 0x32e   :  { %v4674_v0 = vunpack.c.l.b16 %v4520_v41  ;;  %v7356_v60 = vpack.c.b16 %v7301_v52, %v7300_v1  ;;  %v5973_v38 = vshrl.u32 %v8974_v57, 16  ;;  %v5976_v49 = vshll.u32 %v8974_v57, 16 }
 0x32f   :  { %v5965_v61 = vor.u32 %v5964_v51, %v12187_v40  ;;  %v5956_v11 = vrot.slane %v5955_v28, 4  ;;  %v9394_v51 = vld [vmem:[%s13615_s0 + $0xb8] sm:$0xf]  ;;  %v9113_v52 = vrot.slane %v9081_v36, 9 }
 0x330   :  { %v4228_v7 = vpop.f32.mrf.mxu0  ;;  %v4724_v47 = vpack.c.b16 %v4674_v0, %v4673_v63  ;;  %v5975_v63 = vrot.slane %v5973_v38, 4  ;;  %v5978_v0 = vrot.slane %v5976_v49, 5 }
 0x331   :  { %v2936_v37 = vpop.f32.mrf.mxu3  ;;  %8920 = vmatmul.msk.bf16.gmra.mxu2 %vm993_vm4, %v9272_v5  ;;  %v5966_v16 = vrot.slane %v5965_v61, 4  ;;  %v7125_v5 = vrot.slane %v12151_v23, 5  ;;  %v5961_v28 = vsel %vm9489_vm3, %v5956_v11, %v12187_v40  ;;  %v9303_v61 = vld [vmem:[%s13617_s3 + $0x38] sm:$0xff] }
 0x332   :  { %v4877_v48 = vpop.f32.mrf.mxu1  ;;  %v3002_v3 = vadd.f32 %v2936_v37, %v2441_v9  ;;  %v12215_v9 = vld [vmem:[%s13615_s0 + $0x94] sm:$0xf]  ;;  %7998 = vmatpush.bf16.msrb.mxu1 %v9303_v61  ;;  %v6518_v38 = vunpack.c.l.b16 %v5961_v28 }
 0x333   :  { %v12200_v32 = vadd.f32 %v4877_v48, %v10713_v54  ;;  %v5970_v54 = vrot.slane %v5968_v58, 5  ;;  %v8638_v48 = vld [vmem:[%s13615_s0 + $0xb4] sm:$0xe]  ;;  %v5982_v23 = vshll.u32 %v12215_v9, 16  ;;  %v5986_v56 = vshrl.u32 %v12215_v9, 16 }
 0x334   :  { %v5412_v10 = vpop.f32.mrf.mxu2 }
 0x335   :  { %v5572_v50 = vadd.f32 %v5412_v10, %v11911_v55  ;;  %v12218_v55 = vadd.f32 %v4228_v7, %v3002_v3  ;;  %v7128_v3 = vrot.slane %v12192_v8, 5  ;;  %v5971_v58 = vsel %vm9489_vm3, %v5966_v16, %v5970_v54  ;;  %v9395_v8 = vld [vmem:[%s13615_s0 + $0xbc] sm:$0x1] }
 0x336   :  { %9048 = vmatmul.msk.bf16.gmra.mxu3 %vm993_vm4, %v6572_v29  ;;  %v4523_v29 = vrot.slane %v9394_v51, 5  ;;  %v7127_v10 = vrot.slane %v7125_v5, 4  ;;  %v4526_v11 = vrot.slane %v9395_v8, 5  ;;  %v5984_v16 = vrot.slane %v5982_v23, 5 }
 0x337   :  { %13719 = vst [vmem:[#allocation12_spill] sm:$0xff] %v12218_v55  ;;  %v5988_v54 = vrot.slane %v5986_v56, 4  ;;  %v6519_v49 = vunpack.c.l.b16 %v5971_v58  ;;  %v5979_v51 = vor.u32 %v5978_v0, %v5975_v63 }
 0x338   :  { %v7488_v53 = vpop.f32.mrf.mxu0  ;;  %v4525_v40 = vrot.slane %v4523_v29, 4 }
 0x339   :  { %v6708_v1 = vpop.f32.mrf.mxu3  ;;  %v6573_v61 = vpack.c.b16 %v6519_v49, %v6518_v38  ;;  %v7132_v38 = vrot.slane %v12215_v9, 5  ;;  %v8977_v49 = vld [vmem:[%s13615_s0 + $0x9c] sm:$0xf] }
 0x33a   :  { %v4880_v37 = vpop.f32.mrf.mxu1  ;;  %v6868_v7 = vadd.f32 %v6708_v1, %v5572_v50  ;;  %v8670_v50 = vrot.slane %v8638_v48, 9  ;;  %v12261_v1 = vld [vmem:[%s13616_s2] ss:$0 sm:$0xff] }
 0x33b   :  { %v12229_v41 = vadd.f32 %v4880_v37, %v10734_v6  ;;  %9144 = vmatmul.msk.bf16.gmra.mxu0 %vm993_vm4, %v7356_v60  ;;  %v9273_v60 = vld [vmem:[%s13615_s0 + $0x84] sm:$0xff] }
 0x33c   :  { %v7648_v6 = vadd.f32 %v7488_v53, %v6868_v7  ;;  %v5414_v57 = vpop.f32.mrf.mxu2  ;;  %v7126_v53 = vsel %vm10019_vm7, %v9113_v52, %v7125_v5  ;;  %v4524_v48 = vsel %vm10019_vm7, %v8670_v50, %v4523_v29  ;;  %v4527_v5 = vsel %vm10019_vm7, %v4525_v40, %v4526_v11  ;;  %v9082_v11 = vld [vmem:[%s13615_s0 + $0x90] sm:$0xe] }
 0x33d   :  { %8701 = vmatmul.msk.bf16.gmra.mxu1 %vm993_vm4, %v4724_v47  ;;  %v5573_v36 = vadd.f32 %v5414_v57, %v11944_v15  ;;  %v12254_v47 = vld [vmem:[%s13615_s0 + $0x98] sm:$0x1]  ;;  %v7129_v15 = vsel %vm10019_vm7, %v7127_v10, %v7128_v3  ;;  %v7302_v23 = vunpack.c.l.b16 %v7126_v53  ;;  %v5989_v7 = vor.u32 %v5988_v54, %v5984_v16 }
 0x33e   :  { %v5992_v28 = vshll.u32 %v12254_v47, 16  ;;  %v7303_v58 = vunpack.c.l.b16 %v7129_v15  ;;  %v13720_v10 = vld [vmem:[#allocation33_spill] sm:$0xff]  ;;  %v4675_v0 = vunpack.c.l.b16 %v4524_v48  ;;  %v4676_v57 = vunpack.c.l.b16 %v4527_v5  ;;  %v12286_v15 = vld [vmem:[%s13615_s0 + $0xa0] sm:$0xf] }
 0x33f   :  { %v5980_v29 = vrot.slane %v5979_v51, 4  ;;  %v7716_v50 = vadd.f32 %v12261_v1, %v7648_v6  ;;  %v5990_v54 = vrot.slane %v5989_v7, 4  ;;  %v7135_v9 = vrot.slane %v12254_v47, 5 }
 0x340   :  { %v7490_v37 = vpop.f32.mrf.mxu0  ;;  %v7357_v6 = vpack.c.b16 %v7303_v58, %v7302_v23  ;;  %v4725_v51 = vpack.c.b16 %v4676_v57, %v4675_v0  ;;  %v6000_v7 = vshll.u32 %v8977_v49, 16  ;;  %v9396_v58 = vld [vmem:[%s13615_s0 + $0xc4] sm:$0xf] }
 0x341   :  { %v6710_v52 = vpop.f32.mrf.mxu3  ;;  %8921 = vmatmul.msk.bf16.gmra.mxu2 %vm993_vm4, %v9273_v60  ;;  %v7780_v48 = vmax.f32 %v7716_v50, 0.0  ;;  %v13721_v57 = vld [vmem:[#allocation34_spill] sm:$0xff] }
 0x342   :  { %v4882_v56 = vpop.f32.mrf.mxu1  ;;  %v6869_v3 = vadd.f32 %v6710_v52, %v5573_v36  ;;  %v5994_v36 = vrot.slane %v5992_v28, 5  ;;  %v8639_v50 = vld [vmem:[%s13615_s0 + $0xc0] sm:$0xe] }
 0x343   :  { %v12270_v63 = vadd.f32 %v4882_v56, %v13720_v10  ;;  %v5997_v56 = vshrl.u32 %v8977_v49, 16  ;;  %v4530_v10 = vrot.slane %v9396_v58, 5  ;;  %v12323_v58 = vld [vmem:[%s13615_s0 + $0xa4] sm:$0x1] }
 0x344   :  { %v7649_v40 = vadd.f32 %v7490_v37, %v6869_v3  ;;  %v5417_v8 = vpop.f32.mrf.mxu2  ;;  %v9114_v37 = vrot.slane %v9082_v11, 9  ;;  %v5995_v23 = vsel %vm9489_vm3, %v5990_v54, %v5994_v36 }
 0x345   :  { %v5574_v60 = vadd.f32 %v5417_v8, %v11976_v18  ;;  %v5985_v18 = vsel %vm9489_vm3, %v5980_v29, %v5984_v16  ;;  %v6006_v16 = vshll.u32 %v12286_v15, 16  ;;  %v5999_v49 = vrot.slane %v5997_v56, 4 }
 0x346   :  { %v7717_v53 = vadd.f32 %v12261_v1, %v7649_v40  ;;  %9049 = vmatmul.msk.bf16.gmra.mxu3 %vm993_vm4, %v6573_v61  ;;  %v7134_v61 = vrot.slane %v7132_v38, 4  ;;  %v6010_v40 = vshrl.u32 %v12286_v15, 16  ;;  %v6520_v8 = vunpack.c.l.b16 %v5985_v18 }
 0x347   :  { %v7133_v11 = vsel %vm10019_vm7, %v9114_v37, %v7132_v38  ;;  %v12318_v37 = vrot.slane %v6006_v16, 5 }
 0x348   :  { %v7781_v5 = vmax.f32 %v7717_v53, 0.0  ;;  %v7493_v52 = vpop.f32.mrf.mxu0  ;;  %v6002_v53 = vrot.slane %v6000_v7, 5 }
 0x349   :  { %v6713_v28 = vpop.f32.mrf.mxu3 }
 0x34a   :  { %v4885_v3 = vpop.f32.mrf.mxu1  ;;  %v7844_v0 = vadd.f32 %v7781_v5, %v7780_v48  ;;  %v6870_v47 = vadd.f32 %v6713_v28, %v5574_v60  ;;  %v6521_v60 = vunpack.c.l.b16 %v5995_v23  ;;  %v9274_v5 = vld [vmem:[%s13615_s0 + $0x90] sm:$0xff]  ;;  %v8671_v28 = vrot.slane %v8639_v50, 9 }
 0x34b   :  { %v12298_v29 = vadd.f32 %v4885_v3, %v13721_v57  ;;  %9145 = vmatmul.msk.bf16.gmra.mxu0 %vm993_vm4, %v7357_v6  ;;  %v4532_v3 = vrot.slane %v4530_v10, 4  ;;  %v9397_v6 = vld [vmem:[%s13615_s0 + $0xc8] sm:$0x1]  ;;  %v7304_v23 = vunpack.c.l.b16 %v7133_v11  ;;  %v6003_v16 = vor.u32 %v6002_v53, %v5999_v49 }
 0x34c   :  { %v7650_v54 = vadd.f32 %v7493_v52, %v6870_v47  ;;  %v5419_v36 = vpop.f32.mrf.mxu2  ;;  %v4533_v38 = vrot.slane %v9397_v6, 5  ;;  %v6012_v52 = vrot.slane %v6010_v40, 4  ;;  %v6574_v7 = vpack.c.b16 %v6521_v60, %v6520_v8  ;;  %v13722_v11 = vld [vmem:[#allocation35_spill] sm:$0xff] }
 0x34d   :  { %8702 = vmatmul.msk.bf16.gmra.mxu1 %vm993_vm4, %v4725_v51  ;;  %v5575_v48 = vadd.f32 %v5419_v36, %v12007_v46  ;;  %v7136_v51 = vsel %vm10019_vm7, %v7134_v61, %v7135_v9  ;;  %v4531_v9 = vsel %vm10019_vm7, %v8671_v28, %v4530_v10  ;;  %v6016_v60 = vshll.u32 %v12323_v58, 16  ;;  %v8980_v10 = vld [vmem:[%s13615_s0 + $0xa8] sm:$0xf] }
 0x34e   :  { %v7718_v18 = vadd.f32 %v12261_v1, %v7650_v54  ;;  %v7305_v57 = vunpack.c.l.b16 %v7136_v51  ;;  %v4534_v61 = vsel %vm10019_vm7, %v4532_v3, %v4533_v38  ;;  %v6013_v36 = vor.u32 %v6012_v52, %v12318_v37  ;;  %v9083_v38 = vld [vmem:[%s13615_s0 + $0x9c] sm:$0xe] }
 0x34f   :  { %v4678_v51 = vunpack.c.l.b16 %v4534_v61  ;;  %v6018_v52 = vrot.slane %v6016_v60, 5 }
 0x350   :  { %v7782_v46 = vmax.f32 %v7718_v18, 0.0  ;;  %v7495_v56 = vpop.f32.mrf.mxu0  ;;  %v4677_v18 = vunpack.c.l.b16 %v4531_v9  ;;  %v7358_v53 = vpack.c.b16 %v7305_v57, %v7304_v23  ;;  %v6014_v3 = vrot.slane %v6013_v36, 4 }
 0x351   :  { %v6715_v47 = vpop.f32.mrf.mxu3  ;;  %8922 = vmatmul.msk.bf16.gmra.mxu2 %vm993_vm4, %v9274_v5  ;;  %v9115_v57 = vrot.slane %v9083_v38, 9 }
 0x352   :  { %v4887_v50 = vpop.f32.mrf.mxu1  ;;  %v7845_v40 = vadd.f32 %v7844_v0, %v7782_v46  ;;  %v6871_v8 = vadd.f32 %v6715_v47, %v5575_v48  ;;  %v12342_v0 = vld [vmem:[%s13615_s0 + $0xac] sm:$0xf]  ;;  %v6004_v48 = vrot.slane %v6003_v16, 4  ;;  %v7139_v46 = vrot.slane %v12286_v15, 5  ;;  %v9398_v16 = vld [vmem:[%s13615_s0 + $0xe8] sm:$0xf] }
 0x353   :  { %v12331_v54 = vadd.f32 %v4887_v50, %v13722_v11  ;;  %v4726_v9 = vpack.c.b16 %v4678_v51, %v4677_v18  ;;  %v6030_v61 = vshll.u32 %v12342_v0, 16  ;;  %v4537_v11 = vrot.slane %v9398_v16, 5  ;;  %v13723_v15 = vld [vmem:[#allocation36_spill] sm:$0xff]  ;;  %v8640_v18 = vld [vmem:[%s13615_s0 + $0xe4] sm:$0xe] }
 0x354   :  { %v7651_v6 = vadd.f32 %v7495_v56, %v6871_v8  ;;  %v5422_v5 = vpop.f32.mrf.mxu2  ;;  %v6024_v56 = vshll.u32 %v8980_v10, 16  ;;  %v6034_v8 = vshrl.u32 %v12342_v0, 16  ;;  %v6019_v51 = vsel %vm9489_vm3, %v6014_v3, %v6018_v52  ;;  %v9399_v52 = vld [vmem:[%s13615_s0 + $0xec] sm:$0x1] }
 0x355   :  { %v5576_v28 = vadd.f32 %v5422_v5, %v12037_v14  ;;  %v6021_v14 = vshrl.u32 %v8980_v10, 16  ;;  %v6009_v5 = vsel %vm9489_vm3, %v6004_v48, %v12318_v37  ;;  %v7141_v10 = vrot.slane %v7139_v46, 4 }
 0x356   :  { %v7719_v49 = vadd.f32 %v12261_v1, %v7651_v6  ;;  %9050 = vmatmul.msk.bf16.gmra.mxu3 %vm993_vm4, %v6574_v7  ;;  %v6036_v37 = vrot.slane %v6034_v8, 4  ;;  %v4539_v3 = vrot.slane %v4537_v11, 4  ;;  %v7140_v16 = vsel %vm10019_vm7, %v9115_v57, %v7139_v46  ;;  %v13724_v57 = vld [vmem:[#allocation37_spill] sm:$0xff] }
 0x358   :  { %v7783_v47 = vmax.f32 %v7719_v49, 0.0  ;;  %v7498_v50 = vpop.f32.mrf.mxu0  ;;  %v6023_v49 = vrot.slane %v6021_v14, 4  ;;  %v4540_v14 = vrot.slane %v9399_v52, 5 }
 0x359   :  { %v6718_v7 = vpop.f32.mrf.mxu3 }
 0x35a   :  { %v4890_v23 = vpop.f32.mrf.mxu1  ;;  %v7846_v36 = vadd.f32 %v7845_v40, %v7783_v47  ;;  %v6872_v60 = vadd.f32 %v6718_v7, %v5576_v28  ;;  %v6026_v40 = vrot.slane %v6024_v56, 5  ;;  %v7142_v47 = vrot.slane %v12323_v58, 5 }
 0x35b   :  { %v12356_v6 = vadd.f32 %v4890_v23, %v13723_v15  ;;  %9146 = vmatmul.msk.bf16.gmra.mxu0 %vm993_vm4, %v7358_v53  ;;  %v12369_v7 = vrot.slane %v6030_v61, 5  ;;  %v9275_v53 = vld [vmem:[%s13615_s0 + $0x9c] sm:$0xff]  ;;  %v8672_v23 = vrot.slane %v8640_v18, 9  ;;  %v6523_v58 = vunpack.c.l.b16 %v6019_v51 }
 0x35c   :  { %v7652_v28 = vadd.f32 %v7498_v50, %v6872_v60  ;;  %v5424_v38 = vpop.f32.mrf.mxu2  ;;  %v6522_v50 = vunpack.c.l.b16 %v6009_v5  ;;  %v7143_v60 = vsel %vm10019_vm7, %v7141_v10, %v7142_v47  ;;  %v8983_v10 = vld [vmem:[%s13615_s0 + $0xb4] sm:$0xf]  ;;  %v7306_v47 = vunpack.c.l.b16 %v7140_v16 }
 0x35d   :  { %8703 = vmatmul.msk.bf16.gmra.mxu1 %vm993_vm4, %v4726_v9  ;;  %v5577_v48 = vadd.f32 %v5424_v38, %v12070_v27  ;;  %v12382_v9 = vld [vmem:[%s13615_s0 + $0xb0] sm:$0x1]  ;;  %v6027_v27 = vor.u32 %v6026_v40, %v6023_v49  ;;  %v6037_v15 = vor.u32 %v6036_v37, %v12369_v7  ;;  %v4538_v51 = vsel %vm10019_vm7, %v8672_v23, %v4537_v11 }
 0x35e   :  { %v7720_v56 = vadd.f32 %v12261_v1, %v7652_v28  ;;  %v4541_v49 = vsel %vm10019_vm7, %v4539_v3, %v4540_v14  ;;  %v6040_v40 = vshll.u32 %v12382_v9, 16  ;;  %v6575_v46 = vpack.c.b16 %v6523_v58, %v6522_v50 }
 0x35f   :  { %v7307_v37 = vunpack.c.l.b16 %v7143_v60  ;;  %v4679_v23 = vunpack.c.l.b16 %v4538_v51  ;;  %v4680_v55 = vunpack.c.l.b16 %v4541_v49  ;;  %v6038_v3 = vrot.slane %v6037_v15, 4 }
 0x360   :  { %v7784_v61 = vmax.f32 %v7720_v56, 0.0  ;;  %v7500_v8 = vpop.f32.mrf.mxu0  ;;  %v6042_v50 = vrot.slane %v6040_v40, 5  ;;  %v7146_v58 = vrot.slane %v12342_v0, 5  ;;  %v9400_v0 = vld [vmem:[%s13615_s0 + $0xf4] sm:$0xf] }
 0x361   :  { %v6720_v18 = vpop.f32.mrf.mxu3  ;;  %8923 = vmatmul.msk.bf16.gmra.mxu2 %vm993_vm4, %v9275_v53  ;;  %v6028_v53 = vrot.slane %v6027_v27, 4  ;;  %v6045_v27 = vshrl.u32 %v8983_v10, 16  ;;  %v7359_v16 = vpack.c.b16 %v7307_v37, %v7306_v47  ;;  %v4727_v49 = vpack.c.b16 %v4680_v55, %v4679_v23  ;;  %v8641_v55 = vld [vmem:[%s13615_s0 + $0xf0] sm:$0xe] }
 0x362   :  { %v4892_v5 = vpop.f32.mrf.mxu1  ;;  %v7847_v28 = vadd.f32 %v7846_v36, %v7784_v61  ;;  %v6873_v38 = vadd.f32 %v6720_v18, %v5577_v48  ;;  %v9084_v36 = vld [vmem:[%s13615_s0 + $0xa8] sm:$0xe]  ;;  %v12407_v48 = vld [vmem:[%s13615_s0 + $0xb8] sm:$0xf]  ;;  %v4544_v40 = vrot.slane %v9400_v0, 5  ;;  %v7149_v47 = vrot.slane %v12382_v9, 5 }
 0x363   :  { %v12396_v52 = vadd.f32 %v4892_v5, %v13724_v57  ;;  %v9116_v60 = vrot.slane %v9084_v36, 9  ;;  %v6054_v15 = vshll.u32 %v12407_v48, 16  ;;  %v6058_v18 = vshrl.u32 %v12407_v48, 16 }
 0x364   :  { %v7653_v56 = vadd.f32 %v7500_v8, %v6873_v38  ;;  %v5427_v11 = vpop.f32.mrf.mxu2  ;;  %v6048_v8 = vshll.u32 %v8983_v10, 16  ;;  %v6043_v57 = vsel %vm9489_vm3, %v6038_v3, %v6042_v50  ;;  %v7148_v10 = vrot.slane %v7146_v58, 4 }
 0x365   :  { %v5578_v14 = vadd.f32 %v5427_v11, %v12102_v31  ;;  %v6033_v31 = vsel %vm9489_vm3, %v6028_v53, %v12369_v7  ;;  %v6047_v37 = vrot.slane %v6045_v27, 4  ;;  %v13725_v53 = vld [vmem:[#allocation38_spill] sm:$0xff]  ;;  %v12431_v36 = vrot.slane %v6054_v15, 5  ;;  %v12440_v27 = vld [vmem:[%s13615_s0 + $0xbc] sm:$0x1] }
 0x366   :  { %v7721_v61 = vadd.f32 %v12261_v1, %v7653_v56  ;;  %9051 = vmatmul.msk.bf16.gmra.mxu3 %vm993_vm4, %v6575_v46  ;;  %v6050_v23 = vrot.slane %v6048_v8, 5  ;;  %v8673_v9 = vrot.slane %v8641_v55, 9  ;;  %v4546_v0 = vrot.slane %v4544_v40, 4 }
 0x367   :  { %v6524_v15 = vunpack.c.l.b16 %v6033_v31  ;;  %v6064_v55 = vshll.u32 %v12440_v27, 16 }
 0x368   :  { %v7785_v5 = vmax.f32 %v7721_v61, 0.0  ;;  %v7503_v51 = vpop.f32.mrf.mxu0  ;;  %v6060_v61 = vrot.slane %v6058_v18, 4  ;;  %v6525_v18 = vunpack.c.l.b16 %v6043_v57 }
 0x369   :  { %v6723_v38 = vpop.f32.mrf.mxu3 }
 0x36a   :  { %v4895_v46 = vpop.f32.mrf.mxu1  ;;  %v7848_v56 = vadd.f32 %v7847_v28, %v7785_v5  ;;  %v6874_v7 = vadd.f32 %v6723_v38, %v5578_v14  ;;  %v9401_v28 = vld [vmem:[%s13615_s0 + $0xf8] sm:$0x1]  ;;  %v6051_v38 = vor.u32 %v6050_v23, %v6047_v37 }
 0x36b   :  { %v12428_v11 = vadd.f32 %v4895_v46, %v13725_v53  ;;  %9147 = vmatmul.msk.bf16.gmra.mxu0 %vm993_vm4, %v7359_v16  ;;  %v4547_v14 = vrot.slane %v9401_v28, 5  ;;  %v9276_v16 = vld [vmem:[%s13615_s0 + $0xa8] sm:$0xff]  ;;  %v6061_v46 = vor.u32 %v6060_v61, %v12431_v36  ;;  %v4545_v53 = vsel %vm10019_vm7, %v8673_v9, %v4544_v40  ;;  %v8986_v40 = vld [vmem:[%s13615_s0 + $0xc0] sm:$0xf] }
 0x36c   :  { %v7654_v3 = vadd.f32 %v7503_v51, %v6874_v7  ;;  %v5429_v50 = vpop.f32.mrf.mxu2  ;;  %v7147_v51 = vsel %vm10019_vm7, %v9116_v60, %v7146_v58  ;;  %v6576_v58 = vpack.c.b16 %v6525_v18, %v6524_v15  ;;  %v6052_v61 = vrot.slane %v6051_v38, 4 }
 0x36d   :  { %8704 = vmatmul.msk.bf16.gmra.mxu1 %vm993_vm4, %v4727_v49  ;;  %v5579_v8 = vadd.f32 %v5429_v50, %v12136_v19  ;;  %v7150_v49 = vsel %vm10019_vm7, %v7148_v10, %v7149_v47  ;;  %v4548_v31 = vsel %vm10019_vm7, %v4546_v0, %v4547_v14  ;;  %v7308_v60 = vunpack.c.l.b16 %v7147_v51  ;;  %v9085_v14 = vld [vmem:[%s13615_s0 + $0xb4] sm:$0xe] }
 0x36e   :  { %v7722_v5 = vadd.f32 %v12261_v1, %v7654_v3  ;;  %v7309_v3 = vunpack.c.l.b16 %v7150_v49  ;;  %v4681_v50 = vunpack.c.l.b16 %v4545_v53  ;;  %v4682_v9 = vunpack.c.l.b16 %v4548_v31 }
 0x36f   :  { %v6062_v0 = vrot.slane %v6061_v46, 4  ;;  %v6066_v28 = vrot.slane %v6064_v55, 5  ;;  %v6069_v18 = vshrl.u32 %v8986_v40, 16  ;;  %v9117_v49 = vrot.slane %v9085_v14, 9 }
 0x370   :  { %v7786_v19 = vmax.f32 %v7722_v5, 0.0  ;;  %v7505_v7 = vpop.f32.mrf.mxu0  ;;  %v7360_v51 = vpack.c.b16 %v7309_v3, %v7308_v60  ;;  %v6072_v38 = vshll.u32 %v8986_v40, 16  ;;  %v4728_v46 = vpack.c.b16 %v4682_v9, %v4681_v50  ;;  %v9402_v3 = vld [vmem:[%s13615_s0 + $0x100] sm:$0xf]  ;;  %v8642_v50 = vld [vmem:[%s13615_s0 + $0xfc] sm:$0xe] }
 0x371   :  { %v6725_v57 = vpop.f32.mrf.mxu3  ;;  %8924 = vmatmul.msk.bf16.gmra.mxu2 %vm993_vm4, %v9276_v16  ;;  %v7156_v55 = vrot.slane %v12440_v27, 5  ;;  %v9302_v27 = vld [vmem:[%s13617_s3 + $0x30] sm:$0xff] }
 0x372   :  { %v4897_v10 = vpop.f32.mrf.mxu1  ;;  %v7849_v47 = vadd.f32 %v7848_v56, %v7786_v19  ;;  %v6875_v37 = vadd.f32 %v6725_v57, %v5579_v8  ;;  %v7153_v56 = vrot.slane %v12407_v48, 5  ;;  %v12472_v8 = vld [vmem:[%s13615_s0 + $0xc4] sm:$0xf]  ;;  %v6057_v48 = vsel %vm9489_vm3, %v6052_v61, %v12431_v36  ;;  %7999 = vmatpush.bf16.msrb.mxu1 %v9302_v27 }
 0x373   :  { %v12459_v23 = vadd.f32 %v4897_v10, %v10899_v33  ;;  %v6078_v31 = vshll.u32 %v12472_v8, 16  ;;  %v6082_v57 = vshrl.u32 %v12472_v8, 16  ;;  %v4551_v10 = vrot.slane %v9402_v3, 5 }
 0x374   :  { %v7655_v16 = vadd.f32 %v7505_v7, %v6875_v37  ;;  %v5432_v15 = vpop.f32.mrf.mxu2  ;;  %v7155_v53 = vrot.slane %v7153_v56, 4  ;;  %v6071_v36 = vrot.slane %v6069_v18, 4  ;;  %v6074_v9 = vrot.slane %v6072_v38, 5 }
 0x375   :  { %v5580_v33 = vadd.f32 %v5432_v15, %v12167_v59  ;;  %v6067_v59 = vsel %vm9489_vm3, %v6062_v0, %v6066_v28  ;;  %v6526_v0 = vunpack.c.l.b16 %v6057_v48  ;;  %v6080_v15 = vrot.slane %v6078_v31, 5  ;;  %v12513_v48 = vld [vmem:[%s13615_s0 + $0xc8] sm:$0x1] }
 0x376   :  { %v7723_v5 = vadd.f32 %v12261_v1, %v7655_v16  ;;  %9052 = vmatmul.msk.bf16.gmra.mxu3 %vm993_vm4, %v6576_v58  ;;  %v6527_v28 = vunpack.c.l.b16 %v6067_v59  ;;  %v4553_v38 = vrot.slane %v4551_v10, 4 }
 0x378   :  { %v7787_v19 = vmax.f32 %v7723_v5, 0.0  ;;  %v7508_v7 = vpop.f32.mrf.mxu0  ;;  %v9277_v5 = vld [vmem:[%s13615_s0 + $0xb4] sm:$0xff] }
 0x379   :  { %v6728_v58 = vpop.f32.mrf.mxu3 }
 0x37a   :  { %v4900_v60 = vpop.f32.mrf.mxu1  ;;  %v7850_v37 = vadd.f32 %v7849_v47, %v7787_v19  ;;  %v6876_v61 = vadd.f32 %v6728_v58, %v5580_v33  ;;  %v7154_v47 = vsel %vm10019_vm7, %v9117_v49, %v7153_v56  ;;  %v6084_v33 = vrot.slane %v6082_v57, 4  ;;  %v9403_v56 = vld [vmem:[%s13615_s0 + $0x104] sm:$0x1] }
 0x37b   :  { %v12488_v40 = vadd.f32 %v4900_v60, %v10921_v22  ;;  %9148 = vmatmul.msk.bf16.gmra.mxu0 %vm993_vm4, %v7360_v51  ;;  %v7157_v22 = vsel %vm10019_vm7, %v7155_v53, %v7156_v55  ;;  %v8674_v51 = vrot.slane %v8642_v50, 9  ;;  %v4554_v49 = vrot.slane %v9403_v56, 5 }
 0x37c   :  { %v7656_v14 = vadd.f32 %v7508_v7, %v6876_v61  ;;  %v5434_v16 = vpop.f32.mrf.mxu2  ;;  %v6577_v19 = vpack.c.b16 %v6527_v28, %v6526_v0  ;;  %v7310_v7 = vunpack.c.l.b16 %v7154_v47  ;;  %v7311_v53 = vunpack.c.l.b16 %v7157_v22 }
 0x37d   :  { %8705 = vmatmul.msk.bf16.gmra.mxu1 %vm993_vm4, %v4728_v46  ;;  %v5581_v18 = vadd.f32 %v5434_v16, %v12200_v32  ;;  %v6075_v32 = vor.u32 %v6074_v9, %v6071_v36  ;;  %v4552_v58 = vsel %vm10019_vm7, %v8674_v51, %v4551_v10  ;;  %v4555_v60 = vsel %vm10019_vm7, %v4553_v38, %v4554_v49  ;;  %v8989_v10 = vld [vmem:[%s13615_s0 + $0xcc] sm:$0xf]  ;;  %v12530_v16 = vld [vmem:[%s13615_s0 + $0xd0] sm:$0xf]  ;;  %v9086_v51 = vld [vmem:[%s13615_s0 + $0xc0] sm:$0xe] }
 0x37e   :  { %v7724_v46 = vadd.f32 %v12261_v1, %v7656_v14  ;;  %v6085_v3 = vor.u32 %v6084_v33, %v6080_v15  ;;  %v6088_v61 = vshll.u32 %v12513_v48, 16  ;;  %v4683_v47 = vunpack.c.l.b16 %v4552_v58 }
 0x37f   :  { %v6076_v9 = vrot.slane %v6075_v32, 4  ;;  %v4684_v14 = vunpack.c.l.b16 %v4555_v60  ;;  %v6093_v38 = vshrl.u32 %v8989_v10, 16  ;;  %v6096_v56 = vshll.u32 %v8989_v10, 16 }
 0x380   :  { %v7788_v59 = vmax.f32 %v7724_v46, 0.0  ;;  %v7510_v55 = vpop.f32.mrf.mxu0  ;;  %v6086_v22 = vrot.slane %v6085_v3, 4  ;;  %v6090_v33 = vrot.slane %v6088_v61, 5  ;;  %v6102_v49 = vshll.u32 %v12530_v16, 16 }
 0x381   :  { %v6730_v31 = vpop.f32.mrf.mxu3  ;;  %8925 = vmatmul.msk.bf16.gmra.mxu2 %vm993_vm4, %v9277_v5  ;;  %v6081_v5 = vsel %vm9489_vm3, %v6076_v9, %v6080_v15  ;;  %v6098_v9 = vrot.slane %v6096_v56, 5 }
 0x382   :  { %v4902_v57 = vpop.f32.mrf.mxu1  ;;  %v7851_v27 = vadd.f32 %v7850_v37, %v7788_v59  ;;  %v6877_v36 = vadd.f32 %v6730_v31, %v5581_v18  ;;  %v7361_v18 = vpack.c.b16 %v7311_v53, %v7310_v7  ;;  %v4729_v59 = vpack.c.b16 %v4684_v14, %v4683_v47  ;;  %v9404_v31 = vld [vmem:[%s13615_s0 + $0x10c] sm:$0xf] }
 0x383   :  { %v12522_v50 = vadd.f32 %v4902_v57, %v10947_v44  ;;  %v6091_v15 = vsel %vm9489_vm3, %v6086_v22, %v6090_v33  ;;  %v9118_v53 = vrot.slane %v9086_v51, 9  ;;  %v4558_v57 = vrot.slane %v9404_v31, 5  ;;  %v9278_v33 = vld [vmem:[%s13615_s0 + $0xc0] sm:$0xff] }
 0x384   :  { %v7657_v0 = vadd.f32 %v7510_v55, %v6877_v36  ;;  %v5437_v28 = vpop.f32.mrf.mxu2  ;;  %v7160_v55 = vrot.slane %v12472_v8, 5  ;;  %v6528_v61 = vunpack.c.l.b16 %v6081_v5  ;;  %v8643_v8 = vld [vmem:[%s13615_s0 + $0x108] sm:$0xe]  ;;  %v6095_v36 = vrot.slane %v6093_v38, 4  ;;  %v9405_v5 = vld [vmem:[%s13615_s0 + $0x110] sm:$0x1] }
 0x385   :  { %v5582_v37 = vadd.f32 %v5437_v28, %v12229_v41  ;;  %v6106_v41 = vshrl.u32 %v12530_v16, 16  ;;  %v4561_v51 = vrot.slane %v9405_v5, 5 }
 0x386   :  { %v7725_v44 = vadd.f32 %v12261_v1, %v7657_v0  ;;  %9053 = vmatmul.msk.bf16.gmra.mxu3 %vm993_vm4, %v6577_v19  ;;  %v12555_v0 = vrot.slane %v6102_v49, 5  ;;  %v7162_v10 = vrot.slane %v7160_v55, 4  ;;  %v7161_v38 = vsel %vm10019_vm7, %v9118_v53, %v7160_v55 }
 0x387   :  { %v6108_v28 = vrot.slane %v6106_v41, 4  ;;  %v6099_v56 = vor.u32 %v6098_v9, %v6095_v36 }
 0x388   :  { %v7789_v46 = vmax.f32 %v7725_v44, 0.0  ;;  %v7513_v32 = vpop.f32.mrf.mxu0  ;;  %v8675_v44 = vrot.slane %v8643_v8, 9 }
 0x389   :  { %v6733_v19 = vpop.f32.mrf.mxu3  ;;  %v6109_v49 = vor.u32 %v6108_v28, %v12555_v0  ;;  %v6100_v9 = vrot.slane %v6099_v56, 4 }
 0x38a   :  { %v4905_v7 = vpop.f32.mrf.mxu1  ;;  %v7852_v58 = vadd.f32 %v7851_v27, %v7789_v46  ;;  %v6878_v60 = vadd.f32 %v6733_v19, %v5582_v37  ;;  %v6529_v27 = vunpack.c.l.b16 %v6091_v15  ;;  %v12562_v37 = vld [vmem:[%s13615_s0 + $0xd4] sm:$0x1]  ;;  %v4559_v15 = vsel %vm10019_vm7, %v8675_v44, %v4558_v57 }
 0x38b   :  { %v12549_v3 = vadd.f32 %v4905_v7, %v10969_v21  ;;  %9149 = vmatmul.msk.bf16.gmra.mxu0 %vm993_vm4, %v7361_v18  ;;  %v7163_v21 = vrot.slane %v12513_v48, 5  ;;  %v4560_v18 = vrot.slane %v4558_v57, 4  ;;  %v6110_v28 = vrot.slane %v6109_v49, 4  ;;  %v9087_v57 = vld [vmem:[%s13615_s0 + $0xcc] sm:$0xe] }
 0x38c   :  { %v7658_v47 = vadd.f32 %v7513_v32, %v6878_v60  ;;  %v5439_v14 = vpop.f32.mrf.mxu2  ;;  %v6578_v19 = vpack.c.b16 %v6529_v27, %v6528_v61  ;;  %v7312_v60 = vunpack.c.l.b16 %v7161_v38  ;;  %v4685_v61 = vunpack.c.l.b16 %v4559_v15 }
 0x38d   :  { %8706 = vmatmul.msk.bf16.gmra.mxu1 %vm993_vm4, %v4729_v59  ;;  %v5583_v22 = vadd.f32 %v5439_v14, %v12270_v63  ;;  %v6112_v63 = vshll.u32 %v12562_v37, 16  ;;  %v7164_v32 = vsel %vm10019_vm7, %v7162_v10, %v7163_v21  ;;  %v4562_v55 = vsel %vm10019_vm7, %v4560_v18, %v4561_v51 }
 0x38e   :  { %v7726_v48 = vadd.f32 %v12261_v1, %v7658_v47  ;;  %v7313_v36 = vunpack.c.l.b16 %v7164_v32  ;;  %v4686_v27 = vunpack.c.l.b16 %v4562_v55  ;;  %v9119_v18 = vrot.slane %v9087_v57, 9  ;;  %v9406_v32 = vld [vmem:[%s13615_s0 + $0x118] sm:$0xf]  ;;  %v8644_v55 = vld [vmem:[%s13615_s0 + $0x114] sm:$0xe] }
 0x38f   :  { %v6114_v47 = vrot.slane %v6112_v63, 5 }
 0x390   :  { %v7790_v41 = vmax.f32 %v7726_v48, 0.0  ;;  %v7515_v46 = vpop.f32.mrf.mxu0  ;;  %v7362_v44 = vpack.c.b16 %v7313_v36, %v7312_v60  ;;  %v4730_v48 = vpack.c.b16 %v4686_v27, %v4685_v61  ;;  %v9407_v27 = vld [vmem:[%s13615_s0 + $0x11c] sm:$0x1] }
 0x391   :  { %v6735_v59 = vpop.f32.mrf.mxu3  ;;  %8926 = vmatmul.msk.bf16.gmra.mxu2 %vm993_vm4, %v9278_v33  ;;  %v12599_v33 = vld [vmem:[%s13615_s0 + $0xf4] sm:$0xf]  ;;  %v4568_v57 = vrot.slane %v9407_v27, 5 }
 0x392   :  { %v4907_v7 = vpop.f32.mrf.mxu1  ;;  %v7853_v53 = vadd.f32 %v7852_v58, %v7790_v41  ;;  %v6879_v31 = vadd.f32 %v6735_v59, %v5583_v22  ;;  %v7167_v58 = vrot.slane %v12530_v16, 5  ;;  %v6115_v16 = vsel %vm9489_vm3, %v6110_v28, %v6114_v47 }
 0x393   :  { %v12584_v8 = vadd.f32 %v4907_v7, %v10995_v62  ;;  %v8992_v62 = vld [vmem:[%s13615_s0 + $0xf0] sm:$0xf]  ;;  %v4565_v59 = vrot.slane %v9406_v32, 5  ;;  %v6531_v60 = vunpack.c.l.b16 %v6115_v16 }
 0x394   :  { %v7659_v14 = vadd.f32 %v7515_v46, %v6879_v31  ;;  %v5442_v10 = vpop.f32.mrf.mxu2  ;;  %v6117_v38 = vshrl.u32 %v8992_v62, 16  ;;  %v6120_v56 = vshll.u32 %v8992_v62, 16  ;;  %v7169_v41 = vrot.slane %v7167_v58, 4 }
 0x395   :  { %v5584_v21 = vadd.f32 %v5442_v10, %v12298_v29  ;;  %v6105_v29 = vsel %vm9489_vm3, %v6100_v9, %v12555_v0  ;;  %v7170_v46 = vrot.slane %v12562_v37, 5  ;;  %v6126_v0 = vshll.u32 %v12599_v33, 16 }
 0x396   :  { %v7727_v22 = vadd.f32 %v12261_v1, %v7659_v14  ;;  %9054 = vmatmul.msk.bf16.gmra.mxu3 %vm993_vm4, %v6578_v19  ;;  %v6130_v31 = vshrl.u32 %v12599_v33, 16  ;;  %v6530_v37 = vunpack.c.l.b16 %v6105_v29  ;;  %v6119_v28 = vrot.slane %v6117_v38, 4  ;;  %v9279_v14 = vld [vmem:[%s13615_s0 + $0xcc] sm:$0xff] }
 0x397   :  { %v8676_v10 = vrot.slane %v8644_v55, 9  ;;  %v4567_v61 = vrot.slane %v4565_v59, 4  ;;  %v12632_v62 = vrot.slane %v6126_v0, 5 }
 0x398   :  { %v7791_v5 = vmax.f32 %v7727_v22, 0.0  ;;  %v7518_v51 = vpop.f32.mrf.mxu0  ;;  %v6132_v22 = vrot.slane %v6130_v31, 4  ;;  %v6579_v29 = vpack.c.b16 %v6531_v60, %v6530_v37 }
 0x399   :  { %v6738_v49 = vpop.f32.mrf.mxu3  ;;  %v4566_v38 = vsel %vm10019_vm7, %v8676_v10, %v4565_v59  ;;  %v8995_v59 = vld [vmem:[%s13615_s0 + $0xfc] sm:$0xf] }
 0x39a   :  { %v4910_v63 = vpop.f32.mrf.mxu1  ;;  %v7854_v19 = vadd.f32 %v7853_v53, %v7791_v5  ;;  %v6880_v7 = vadd.f32 %v6738_v49, %v5584_v21  ;;  %v7168_v53 = vsel %vm10019_vm7, %v9119_v18, %v7167_v58  ;;  %v7171_v58 = vsel %vm10019_vm7, %v7169_v41, %v7170_v46  ;;  %v12637_v18 = vld [vmem:[%s13615_s0 + $0xf8] sm:$0x1] }
 0x39b   :  { %v12612_v15 = vadd.f32 %v4910_v63, %v11017_v17  ;;  %9150 = vmatmul.msk.bf16.gmra.mxu0 %vm993_vm4, %v7362_v44  ;;  %v6122_v17 = vrot.slane %v6120_v56, 5  ;;  %v7314_v16 = vunpack.c.l.b16 %v7168_v53  ;;  %v4569_v56 = vsel %vm10019_vm7, %v4567_v61, %v4568_v57 }
 0x39c   :  { %v7660_v36 = vadd.f32 %v7518_v51, %v6880_v7  ;;  %v5444_v9 = vpop.f32.mrf.mxu2  ;;  %v7315_v51 = vunpack.c.l.b16 %v7171_v58  ;;  %v6133_v32 = vor.u32 %v6132_v22, %v12632_v62  ;;  %v6136_v0 = vshll.u32 %v12637_v18, 16 }
 0x39d   :  { %8707 = vmatmul.msk.bf16.gmra.mxu1 %vm993_vm4, %v4730_v48  ;;  %v5585_v47 = vadd.f32 %v5444_v9, %v12331_v54  ;;  %v6123_v49 = vor.u32 %v6122_v17, %v6119_v28  ;;  %v4687_v31 = vunpack.c.l.b16 %v4566_v38  ;;  %v4688_v37 = vunpack.c.l.b16 %v4569_v56  ;;  %v9088_v28 = vld [vmem:[%s13615_s0 + $0xf0] sm:$0xe] }
 0x39e   :  { %v7728_v21 = vadd.f32 %v12261_v1, %v7660_v36  ;;  %v7363_v36 = vpack.c.b16 %v7315_v51, %v7314_v16  ;;  %v6134_v53 = vrot.slane %v6133_v32, 4  ;;  %v6138_v17 = vrot.slane %v6136_v0, 5 }
 0x39f   :  { %v6124_v9 = vrot.slane %v6123_v49, 4  ;;  %v4731_v27 = vpack.c.b16 %v4688_v37, %v4687_v31  ;;  %v7177_v56 = vrot.slane %v12637_v18, 5  ;;  %v9409_v18 = vld [vmem:[%s13615_s0 + $0x128] sm:$0x1] }
 0x3a0   :  { %v7792_v54 = vmax.f32 %v7728_v21, 0.0  ;;  %v7520_v44 = vpop.f32.mrf.mxu0  ;;  %v6139_v38 = vsel %vm9489_vm3, %v6134_v53, %v6138_v17 }
 0x3a1   :  { %v6740_v5 = vpop.f32.mrf.mxu3  ;;  %8927 = vmatmul.msk.bf16.gmra.mxu2 %vm993_vm4, %v9279_v14  ;;  %v6144_v14 = vshll.u32 %v8995_v59, 16  ;;  %v6129_v51 = vsel %vm9489_vm3, %v6124_v9, %v12632_v62  ;;  %v12696_v9 = vld [vmem:[%s13615_s0 + $0x104] sm:$0x1] }
 0x3a2   :  { %v4912_v48 = vpop.f32.mrf.mxu1  ;;  %v7855_v63 = vadd.f32 %v7854_v19, %v7792_v54  ;;  %v6881_v41 = vadd.f32 %v6740_v5, %v5585_v47  ;;  %v12656_v19 = vld [vmem:[%s13615_s0 + $0x100] sm:$0xf]  ;;  %v7174_v47 = vrot.slane %v12599_v33, 5  ;;  %v9120_v54 = vrot.slane %v9088_v28, 9 }
 0x3a3   :  { %v12645_v46 = vadd.f32 %v4912_v48, %v11043_v34  ;;  %v6150_v57 = vshll.u32 %v12656_v19, 16  ;;  %v6154_v21 = vshrl.u32 %v12656_v19, 16  ;;  %v8645_v48 = vld [vmem:[%s13615_s0 + $0x120] sm:$0xe] }
 0x3a4   :  { %v7661_v7 = vadd.f32 %v7520_v44, %v6881_v41  ;;  %v5447_v55 = vpop.f32.mrf.mxu2  ;;  %v9408_v44 = vld [vmem:[%s13615_s0 + $0x124] sm:$0xf]  ;;  %v7176_v32 = vrot.slane %v7174_v47, 4  ;;  %v8677_v31 = vrot.slane %v8645_v48, 9  ;;  %v7175_v17 = vsel %vm10019_vm7, %v9120_v54, %v7174_v47 }
 0x3a5   :  { %v5586_v60 = vadd.f32 %v5447_v55, %v12356_v6  ;;  %v6141_v6 = vshrl.u32 %v8995_v59, 16  ;;  %v12683_v0 = vrot.slane %v6150_v57, 5  ;;  %v6156_v62 = vrot.slane %v6154_v21, 4  ;;  %v9280_v55 = vld [vmem:[%s13615_s0 + $0xf0] sm:$0xff] }
 0x3a6   :  { %v7729_v34 = vadd.f32 %v12261_v1, %v7661_v7  ;;  %9055 = vmatmul.msk.bf16.gmra.mxu3 %vm993_vm4, %v6579_v29  ;;  %v4572_v29 = vrot.slane %v9408_v44, 5  ;;  %v4575_v59 = vrot.slane %v9409_v18, 5  ;;  %v6160_v57 = vshll.u32 %v12696_v9, 16  ;;  %v8998_v44 = vld [vmem:[%s13615_s0 + $0x108] sm:$0xf] }
 0x3a7   :  { %v6143_v49 = vrot.slane %v6141_v6, 4  ;;  %v7178_v6 = vsel %vm10019_vm7, %v7176_v32, %v7177_v56 }
 0x3a8   :  { %v7793_v10 = vmax.f32 %v7729_v34, 0.0  ;;  %v7523_v61 = vpop.f32.mrf.mxu0  ;;  %v4574_v37 = vrot.slane %v4572_v29, 4  ;;  %v6532_v34 = vunpack.c.l.b16 %v6129_v51  ;;  %v7317_v51 = vunpack.c.l.b16 %v7178_v6 }
 0x3a9   :  { %v6743_v58 = vpop.f32.mrf.mxu3  ;;  %v6162_v32 = vrot.slane %v6160_v57, 5 }
 0x3aa   :  { %v4915_v22 = vpop.f32.mrf.mxu1  ;;  %v7856_v16 = vadd.f32 %v7855_v63, %v7793_v10  ;;  %v6882_v5 = vadd.f32 %v6743_v58, %v5586_v60  ;;  %v6146_v63 = vrot.slane %v6144_v14, 5  ;;  %v6157_v14 = vor.u32 %v6156_v62, %v12683_v0 }
 0x3ab   :  { %v12670_v33 = vadd.f32 %v4915_v22, %v11065_v12  ;;  %9151 = vmatmul.msk.bf16.gmra.mxu0 %vm993_vm4, %v7363_v36  ;;  %v6533_v36 = vunpack.c.l.b16 %v6139_v38  ;;  %v13726_v22 = vld [vmem:[#allocation39_spill] sm:$0xff]  ;;  %v7181_v62 = vrot.slane %v12656_v19, 5 }
 0x3ac   :  { %v7662_v41 = vadd.f32 %v7523_v61, %v6882_v5  ;;  %v5449_v12 = vpop.f32.mrf.mxu2  ;;  %v4573_v61 = vsel %vm10019_vm7, %v8677_v31, %v4572_v29  ;;  %v7316_v5 = vunpack.c.l.b16 %v7175_v17 }
 0x3ad   :  { %8708 = vmatmul.msk.bf16.gmra.mxu1 %vm993_vm4, %v4731_v27  ;;  %v5587_v7 = vadd.f32 %v5449_v12, %v12396_v52  ;;  %v6147_v52 = vor.u32 %v6146_v63, %v6143_v49  ;;  %v4576_v27 = vsel %vm10019_vm7, %v4574_v37, %v4575_v59  ;;  %v6580_v47 = vpack.c.b16 %v6533_v36, %v6532_v34 }
 0x3ae   :  { %v7730_v60 = vadd.f32 %v12261_v1, %v7662_v41  ;;  %v4689_v56 = vunpack.c.l.b16 %v4573_v61  ;;  %v4690_v49 = vunpack.c.l.b16 %v4576_v27  ;;  %v6158_v63 = vrot.slane %v6157_v14, 4  ;;  %v12721_v41 = vld [vmem:[%s13615_s0 + $0x10c] sm:$0xf] }
 0x3af   :  { %v6148_v48 = vrot.slane %v6147_v52, 4  ;;  %v6168_v37 = vshll.u32 %v8998_v44, 16  ;;  %v7364_v18 = vpack.c.b16 %v7317_v51, %v7316_v5  ;;  %v8646_v61 = vld [vmem:[%s13615_s0 + $0x12c] sm:$0xe] }
 0x3b0   :  { %v7794_v53 = vmax.f32 %v7730_v60, 0.0  ;;  %v7525_v28 = vpop.f32.mrf.mxu0  ;;  %v6174_v60 = vshll.u32 %v12721_v41, 16  ;;  %v4732_v19 = vpack.c.b16 %v4690_v49, %v4689_v56  ;;  %v6163_v14 = vsel %vm9489_vm3, %v6158_v63, %v6162_v32  ;;  %v12762_v49 = vld [vmem:[%s13615_s0 + $0x110] sm:$0x1] }
 0x3b1   :  { %v6745_v10 = vpop.f32.mrf.mxu3  ;;  %8928 = vmatmul.msk.bf16.gmra.mxu2 %vm993_vm4, %v9280_v55  ;;  %v12728_v55 = vld [vmem:[%s13616_s2] ss:$0 sm:$0xff]  ;;  %v6153_v52 = vsel %vm9489_vm3, %v6148_v48, %v12683_v0  ;;  %v6535_v32 = vunpack.c.l.b16 %v6163_v14 }
 0x3b2   :  { %v4917_v1 = vpop.f32.mrf.mxu1  ;;  %v7857_v21 = vadd.f32 %v7856_v16, %v7794_v53  ;;  %v6883_v58 = vadd.f32 %v6745_v10, %v5587_v7  ;;  %v9089_v16 = vld [vmem:[%s13615_s0 + $0xfc] sm:$0xe]  ;;  %v6165_v7 = vshrl.u32 %v8998_v44, 16  ;;  %v9411_v53 = vld [vmem:[%s13615_s0 + $0x130] sm:$0xf]  ;;  %v7183_v10 = vrot.slane %v7181_v62, 4 }
 0x3b3   :  { %v12710_v54 = vadd.f32 %v4917_v1, %v13726_v22  ;;  %v9121_v59 = vrot.slane %v9089_v16, 9  ;;  %v7184_v1 = vrot.slane %v12696_v9, 5  ;;  %v9301_v22 = vld [vmem:[%s13617_s3 + $0x28] sm:$0xff]  ;;  %v6170_v44 = vrot.slane %v6168_v37, 5  ;;  %v9281_v16 = vld [vmem:[%s13615_s0 + $0xfc] sm:$0xff] }
 0x3b4   :  { %v7663_v38 = vadd.f32 %v7525_v28, %v6883_v58  ;;  %v5452_v29 = vpop.f32.mrf.mxu2  ;;  %v4579_v28 = vrot.slane %v9411_v53, 5  ;;  %v6167_v27 = vrot.slane %v6165_v7, 4  ;;  %v13727_v58 = vld [vmem:[#allocation40_spill] sm:$0xff]  ;;  %v12753_v5 = vrot.slane %v6174_v60, 5  ;;  %8000 = vmatpush.bf16.msrb.mxu1 %v9301_v22 }
 0x3b5   :  { %v5588_v12 = vadd.f32 %v5452_v29, %v12428_v11  ;;  %v6178_v11 = vshrl.u32 %v12721_v41, 16  ;;  %v9412_v29 = vld [vmem:[%s13615_s0 + $0x134] sm:$0x1]  ;;  %v7185_v37 = vsel %vm10019_vm7, %v7183_v10, %v7184_v1  ;;  %v13728_v10 = vld [vmem:[#allocation41_spill] sm:$0xff] }
 0x3b6   :  { %v7731_v31 = vadd.f32 %v12728_v55, %v7663_v38  ;;  %9056 = vmatmul.msk.bf16.gmra.mxu3 %vm993_vm4, %v6580_v47  ;;  %v8678_v38 = vrot.slane %v8646_v61, 9  ;;  %v4582_v56 = vrot.slane %v9412_v29, 5  ;;  %v7319_v53 = vunpack.c.l.b16 %v7185_v37 }
 0x3b7   :  { %v6180_v9 = vrot.slane %v6178_v11, 4 }
 0x3b8   :  { %v7795_v34 = vmax.f32 %v7731_v31, 0.0  ;;  %v7528_v36 = vpop.f32.mrf.mxu0  ;;  %v7182_v31 = vsel %vm10019_vm7, %v9121_v59, %v7181_v62 }
 0x3b9   :  { %v6748_v17 = vpop.f32.mrf.mxu3  ;;  %v6181_v60 = vor.u32 %v6180_v9, %v12753_v5  ;;  %v7318_v59 = vunpack.c.l.b16 %v7182_v31 }
 0x3ba   :  { %v4920_v6 = vpop.f32.mrf.mxu1  ;;  %v7858_v57 = vadd.f32 %v7857_v21, %v7795_v34  ;;  %v6884_v0 = vadd.f32 %v6748_v17, %v5588_v12  ;;  %v4581_v21 = vrot.slane %v4579_v28, 4  ;;  %v6534_v12 = vunpack.c.l.b16 %v6153_v52 }
 0x3bb   :  { %v12747_v47 = vadd.f32 %v4920_v6, %v13727_v58  ;;  %9152 = vmatmul.msk.bf16.gmra.mxu0 %vm993_vm4, %v7364_v18  ;;  %v6171_v18 = vor.u32 %v6170_v44, %v6167_v27  ;;  %v6182_v58 = vrot.slane %v6181_v60, 4  ;;  %v9090_v44 = vld [vmem:[%s13615_s0 + $0x108] sm:$0xe] }
 0x3bc   :  { %v7664_v51 = vadd.f32 %v7528_v36, %v6884_v0  ;;  %v5454_v48 = vpop.f32.mrf.mxu2  ;;  %v4580_v36 = vsel %vm10019_vm7, %v8678_v38, %v4579_v28  ;;  %v6581_v62 = vpack.c.b16 %v6535_v32, %v6534_v12  ;;  %v9001_v28 = vld [vmem:[%s13615_s0 + $0x114] sm:$0xf]  ;;  %v12794_v38 = vld [vmem:[%s13615_s0 + $0x118] sm:$0xf]  ;;  %v7191_v32 = vrot.slane %v12762_v49, 5 }
 0x3bd   :  { %8709 = vmatmul.msk.bf16.gmra.mxu1 %vm993_vm4, %v4732_v19  ;;  %v5589_v63 = vadd.f32 %v5454_v48, %v12459_v23  ;;  %v6184_v23 = vshll.u32 %v12762_v49, 16  ;;  %v4583_v19 = vsel %vm10019_vm7, %v4581_v21, %v4582_v56  ;;  %v6172_v61 = vrot.slane %v6171_v18, 4  ;;  %v8647_v49 = vld [vmem:[%s13615_s0 + $0x138] sm:$0xe] }
 0x3be   :  { %v7732_v7 = vadd.f32 %v12728_v55, %v7664_v51  ;;  %v4691_v27 = vunpack.c.l.b16 %v4580_v36  ;;  %v4692_v0 = vunpack.c.l.b16 %v4583_v19  ;;  %v6189_v21 = vshrl.u32 %v9001_v28, 16 }
 0x3bf   :  { %v6186_v22 = vrot.slane %v6184_v23, 5  ;;  %v7365_v56 = vpack.c.b16 %v7319_v53, %v7318_v59  ;;  %v6198_v18 = vshll.u32 %v12794_v38, 16  ;;  %v6202_v60 = vshrl.u32 %v12794_v38, 16 }
 0x3c0   :  { %v7796_v11 = vmax.f32 %v7732_v7, 0.0  ;;  %v7530_v34 = vpop.f32.mrf.mxu0  ;;  %v4733_v12 = vpack.c.b16 %v4692_v0, %v4691_v27 }
 0x3c1   :  { %v6750_v52 = vpop.f32.mrf.mxu3  ;;  %8929 = vmatmul.msk.bf16.gmra.mxu2 %vm993_vm4, %v9281_v16  ;;  %v6192_v16 = vshll.u32 %v9001_v28, 16  ;;  %v6200_v27 = vrot.slane %v6198_v18, 5  ;;  %v6204_v0 = vrot.slane %v6202_v60, 4 }
 0x3c2   :  { %v4922_v17 = vpop.f32.mrf.mxu1  ;;  %v7859_v6 = vadd.f32 %v7858_v57, %v7796_v11  ;;  %v6885_v14 = vadd.f32 %v6750_v52, %v5589_v63  ;;  %v7188_v57 = vrot.slane %v12721_v41, 5  ;;  %v9122_v63 = vrot.slane %v9090_v44, 9 }
 0x3c3   :  { %v12781_v1 = vadd.f32 %v4922_v17, %v13728_v10  ;;  %v6177_v41 = vsel %vm9489_vm3, %v6172_v61, %v12753_v5  ;;  %v6191_v5 = vrot.slane %v6189_v21, 4  ;;  %v6194_v53 = vrot.slane %v6192_v16, 5  ;;  %v12832_v21 = vld [vmem:[%s13615_s0 + $0x11c] sm:$0x1] }
 0x3c4   :  { %v7665_v9 = vadd.f32 %v7530_v34, %v6885_v14  ;;  %v5457_v51 = vpop.f32.mrf.mxu2  ;;  %v7190_v37 = vrot.slane %v7188_v57, 4  ;;  %v9413_v34 = vld [vmem:[%s13615_s0 + $0x13c] sm:$0xf]  ;;  %v6536_v17 = vunpack.c.l.b16 %v6177_v41  ;;  %v7189_v10 = vsel %vm10019_vm7, %v9122_v63, %v7188_v57 }
 0x3c5   :  { %v5590_v48 = vadd.f32 %v5457_v51, %v12488_v40  ;;  %v6187_v40 = vsel %vm9489_vm3, %v6182_v58, %v6186_v22  ;;  %v4586_v36 = vrot.slane %v9413_v34, 5  ;;  %v9282_v22 = vld [vmem:[%s13615_s0 + $0x108] sm:$0xff]  ;;  %v8679_v44 = vrot.slane %v8647_v49, 9  ;;  %v9414_v51 = vld [vmem:[%s13615_s0 + $0x140] sm:$0x1] }
 0x3c6   :  { %v7733_v29 = vadd.f32 %v12728_v55, %v7665_v9  ;;  %9057 = vmatmul.msk.bf16.gmra.mxu3 %vm993_vm4, %v6581_v62  ;;  %v13729_v62 = vld [vmem:[#allocation42_spill] sm:$0xff]  ;;  %v6537_v14 = vunpack.c.l.b16 %v6187_v40  ;;  %v4589_v57 = vrot.slane %v9414_v51, 5  ;;  %v7320_v16 = vunpack.c.l.b16 %v7189_v10 }
 0x3c7   :  { %v4588_v9 = vrot.slane %v4586_v36, 4 }
 0x3c8   :  { %v7797_v7 = vmax.f32 %v7733_v29, 0.0  ;;  %v7533_v31 = vpop.f32.mrf.mxu0  ;;  %v6195_v29 = vor.u32 %v6194_v53, %v6191_v5  ;;  %v6582_v63 = vpack.c.b16 %v6537_v14, %v6536_v17  ;;  %v12849_v53 = vld [vmem:[%s13615_s0 + $0x124] sm:$0xf] }
 0x3c9   :  { %v6753_v23 = vpop.f32.mrf.mxu3 }
 0x3ca   :  { %v4925_v11 = vpop.f32.mrf.mxu1  ;;  %v7860_v19 = vadd.f32 %v7859_v6, %v7797_v7  ;;  %v6886_v52 = vadd.f32 %v6753_v23, %v5590_v48  ;;  %v7192_v6 = vsel %vm10019_vm7, %v7190_v37, %v7191_v32  ;;  %v4587_v32 = vsel %vm10019_vm7, %v8679_v44, %v4586_v36  ;;  %v13730_v23 = vld [vmem:[#allocation43_spill] sm:$0xff]  ;;  %v9004_v36 = vld [vmem:[%s13615_s0 + $0x120] sm:$0xf] }
 0x3cb   :  { %v12810_v59 = vadd.f32 %v4925_v11, %v13729_v62  ;;  %9153 = vmatmul.msk.bf16.gmra.mxu0 %vm993_vm4, %v7365_v56  ;;  %v4590_v7 = vsel %vm10019_vm7, %v4588_v9, %v4589_v57  ;;  %v6208_v37 = vshll.u32 %v12832_v21, 16  ;;  %v6196_v34 = vrot.slane %v6195_v29, 4 }
 0x3cc   :  { %v7666_v61 = vadd.f32 %v7533_v31, %v6886_v52  ;;  %v5459_v28 = vpop.f32.mrf.mxu2  ;;  %v6205_v31 = vor.u32 %v6204_v0, %v6200_v27  ;;  %v4693_v62 = vunpack.c.l.b16 %v4587_v32  ;;  %v4694_v49 = vunpack.c.l.b16 %v4590_v7 }
 0x3cd   :  { %8710 = vmatmul.msk.bf16.gmra.mxu1 %vm993_vm4, %v4733_v12  ;;  %v5591_v58 = vadd.f32 %v5459_v28, %v12522_v50  ;;  %v7321_v12 = vunpack.c.l.b16 %v7192_v6  ;;  %v6210_v14 = vrot.slane %v6208_v37, 5  ;;  %v6201_v28 = vsel %vm9489_vm3, %v6196_v34, %v6200_v27  ;;  %v9091_v6 = vld [vmem:[%s13615_s0 + $0x114] sm:$0xe] }
 0x3ce   :  { %v7734_v48 = vadd.f32 %v12728_v55, %v7666_v61  ;;  %v6206_v17 = vrot.slane %v6205_v31, 4  ;;  %v6213_v0 = vshrl.u32 %v9004_v36, 16  ;;  %v4734_v51 = vpack.c.b16 %v4694_v49, %v4693_v62  ;;  %v12881_v62 = vld [vmem:[%s13615_s0 + $0x128] sm:$0x1] }
 0x3cf   :  { %v7366_v61 = vpack.c.b16 %v7321_v12, %v7320_v16  ;;  %v7195_v57 = vrot.slane %v12794_v38, 5  ;;  %v6538_v32 = vunpack.c.l.b16 %v6201_v28  ;;  %v8648_v38 = vld [vmem:[%s13615_s0 + $0x144] sm:$0xe] }
 0x3d0   :  { %v7798_v50 = vmax.f32 %v7734_v48, 0.0  ;;  %v7535_v56 = vpop.f32.mrf.mxu0  ;;  %v6211_v27 = vsel %vm9489_vm3, %v6206_v17, %v6210_v14  ;;  %v6215_v7 = vrot.slane %v6213_v0, 4  ;;  %v9416_v14 = vld [vmem:[%s13615_s0 + $0x14c] sm:$0x1] }
 0x3d1   :  { %v6755_v41 = vpop.f32.mrf.mxu3  ;;  %8930 = vmatmul.msk.bf16.gmra.mxu2 %vm993_vm4, %v9282_v22  ;;  %v6222_v22 = vshll.u32 %v12849_v53, 16 }
 0x3d2   :  { %v4927_v40 = vpop.f32.mrf.mxu1  ;;  %v7861_v18 = vadd.f32 %v7860_v19, %v7798_v50  ;;  %v6887_v60 = vadd.f32 %v6755_v41, %v5591_v58  ;;  %v6216_v58 = vshll.u32 %v9004_v36, 16  ;;  %v9123_v50 = vrot.slane %v9091_v6, 9  ;;  %v13731_v41 = vld [vmem:[#allocation44_spill] sm:$0xff] }
 0x3d3   :  { %v12841_v11 = vadd.f32 %v4927_v40, %v13730_v23  ;;  %v12874_v37 = vrot.slane %v6222_v22, 5  ;;  %v9283_v36 = vld [vmem:[%s13615_s0 + $0x114] sm:$0xff] }
 0x3d4   :  { %v7667_v5 = vadd.f32 %v7535_v56, %v6887_v60  ;;  %v5462_v52 = vpop.f32.mrf.mxu2  ;;  %v9415_v56 = vld [vmem:[%s13615_s0 + $0x148] sm:$0xf]  ;;  %v6218_v31 = vrot.slane %v6216_v58, 5 }
 0x3d5   :  { %v5592_v19 = vadd.f32 %v5462_v52, %v12549_v3  ;;  %v6226_v3 = vshrl.u32 %v12849_v53, 16  ;;  %v7198_v52 = vrot.slane %v12832_v21, 5 }
 0x3d6   :  { %v7735_v10 = vadd.f32 %v12728_v55, %v7667_v5  ;;  %9058 = vmatmul.msk.bf16.gmra.mxu3 %vm993_vm4, %v6582_v63  ;;  %v4593_v63 = vrot.slane %v9415_v56, 5  ;;  %v7197_v5 = vrot.slane %v7195_v57, 4  ;;  %v6219_v28 = vor.u32 %v6218_v31, %v6215_v7 }
 0x3d7   :  { %v6228_v60 = vrot.slane %v6226_v3, 4 }
 0x3d8   :  { %v7799_v44 = vmax.f32 %v7735_v10, 0.0  ;;  %v7538_v9 = vpop.f32.mrf.mxu0  ;;  %v4595_v17 = vrot.slane %v4593_v63, 4  ;;  %v4596_v10 = vrot.slane %v9416_v14, 5  ;;  %v7199_v22 = vsel %vm10019_vm7, %v7197_v5, %v7198_v52  ;;  %v12918_v52 = vld [vmem:[%s13615_s0 + $0x130] sm:$0xf] }
 0x3d9   :  { %v6758_v48 = vpop.f32.mrf.mxu3  ;;  %v6229_v6 = vor.u32 %v6228_v60, %v12874_v37 }
 0x3da   :  { %v4930_v29 = vpop.f32.mrf.mxu1  ;;  %v7862_v16 = vadd.f32 %v7861_v18, %v7799_v44  ;;  %v6888_v12 = vadd.f32 %v6758_v48, %v5592_v19  ;;  %v6539_v18 = vunpack.c.l.b16 %v6211_v27  ;;  %v8680_v19 = vrot.slane %v8648_v38, 9 }
 0x3db   :  { %v12868_v40 = vadd.f32 %v4930_v29, %v13731_v41  ;;  %9154 = vmatmul.msk.bf16.gmra.mxu0 %vm993_vm4, %v7366_v61  ;;  %v7196_v61 = vsel %vm10019_vm7, %v9123_v50, %v7195_v57  ;;  %v4597_v57 = vsel %vm10019_vm7, %v4595_v17, %v4596_v10  ;;  %v13732_v50 = vld [vmem:[#allocation45_spill] sm:$0xff]  ;;  %v6220_v41 = vrot.slane %v6219_v28, 4 }
 0x3dc   :  { %v7668_v23 = vadd.f32 %v7538_v9, %v6888_v12  ;;  %v5464_v34 = vpop.f32.mrf.mxu2  ;;  %v6583_v44 = vpack.c.b16 %v6539_v18, %v6538_v32  ;;  %v7322_v27 = vunpack.c.l.b16 %v7196_v61  ;;  %v7323_v12 = vunpack.c.l.b16 %v7199_v22  ;;  %v9007_v18 = vld [vmem:[%s13615_s0 + $0x12c] sm:$0xf] }
 0x3dd   :  { %8711 = vmatmul.msk.bf16.gmra.mxu1 %vm993_vm4, %v4734_v51  ;;  %v5593_v49 = vadd.f32 %v5464_v34, %v12584_v8  ;;  %v6232_v8 = vshll.u32 %v12881_v62, 16  ;;  %v4594_v51 = vsel %vm10019_vm7, %v8680_v19, %v4593_v63  ;;  %v6230_v38 = vrot.slane %v6229_v6, 4  ;;  %v9092_v63 = vld [vmem:[%s13615_s0 + $0x120] sm:$0xe] }
 0x3de   :  { %v7736_v21 = vadd.f32 %v12728_v55, %v7668_v23  ;;  %v4695_v32 = vunpack.c.l.b16 %v4594_v51  ;;  %v4696_v23 = vunpack.c.l.b16 %v4597_v57  ;;  %v6237_v10 = vshrl.u32 %v9007_v18, 16  ;;  %v8649_v51 = vld [vmem:[%s13615_s0 + $0x150] sm:$0xe] }
 0x3df   :  { %v6234_v7 = vrot.slane %v6232_v8, 5  ;;  %v7205_v8 = vrot.slane %v12881_v62, 5  ;;  %v6250_v57 = vshrl.u32 %v12918_v52, 16 }
 0x3e0   :  { %v7800_v0 = vmax.f32 %v7736_v21, 0.0  ;;  %v7540_v58 = vpop.f32.mrf.mxu0  ;;  %v4735_v14 = vpack.c.b16 %v4696_v23, %v4695_v32  ;;  %v6240_v21 = vshll.u32 %v9007_v18, 16  ;;  %v9418_v32 = vld [vmem:[%s13615_s0 + $0x158] sm:$0x1] }
 0x3e1   :  { %v6760_v3 = vpop.f32.mrf.mxu3  ;;  %8931 = vmatmul.msk.bf16.gmra.mxu2 %vm993_vm4, %v9283_v36  ;;  %v9124_v36 = vrot.slane %v9092_v63, 9  ;;  %v4603_v23 = vrot.slane %v9418_v32, 5  ;;  %v6252_v18 = vrot.slane %v6250_v57, 4 }
 0x3e2   :  { %v4932_v9 = vpop.f32.mrf.mxu1  ;;  %v7863_v48 = vadd.f32 %v7862_v16, %v7800_v0  ;;  %v6889_v29 = vadd.f32 %v6760_v3, %v5593_v49  ;;  %v7202_v16 = vrot.slane %v12849_v53, 5  ;;  %v7367_v49 = vpack.c.b16 %v7323_v12, %v7322_v27  ;;  %v9417_v0 = vld [vmem:[%s13615_s0 + $0x154] sm:$0xf] }
 0x3e3   :  { %v12903_v56 = vadd.f32 %v4932_v9, %v13732_v50  ;;  %v6235_v53 = vsel %vm9489_vm3, %v6230_v38, %v6234_v7  ;;  %v6239_v12 = vrot.slane %v6237_v10, 4  ;;  %v9284_v7 = vld [vmem:[%s13615_s0 + $0x120] sm:$0xff] }
 0x3e4   :  { %v7669_v31 = vadd.f32 %v7540_v58, %v6889_v29  ;;  %v5467_v60 = vpop.f32.mrf.mxu2  ;;  %v7204_v6 = vrot.slane %v7202_v16, 4  ;;  %v4600_v58 = vrot.slane %v9417_v0, 5  ;;  %v6541_v29 = vunpack.c.l.b16 %v6235_v53  ;;  %v12956_v53 = vld [vmem:[%s13615_s0 + $0x134] sm:$0x1] }
 0x3e5   :  { %v5594_v34 = vadd.f32 %v5467_v60, %v12612_v15  ;;  %v6225_v15 = vsel %vm9489_vm3, %v6220_v41, %v12874_v37  ;;  %v6246_v37 = vshll.u32 %v12918_v52, 16  ;;  %v6242_v41 = vrot.slane %v6240_v21, 5 }
 0x3e6   :  { %v7737_v5 = vadd.f32 %v12728_v55, %v7669_v31  ;;  %9059 = vmatmul.msk.bf16.gmra.mxu3 %vm993_vm4, %v6583_v44  ;;  %v13733_v44 = vld [vmem:[#allocation7_spill] sm:$0xff]  ;;  %v6540_v62 = vunpack.c.l.b16 %v6225_v15  ;;  %v8681_v31 = vrot.slane %v8649_v51, 9  ;;  %v4602_v60 = vrot.slane %v4600_v58, 4 }
 0x3e7   :  { %v6243_v21 = vor.u32 %v6242_v41, %v6239_v12  ;;  %v9093_v12 = vld [vmem:[%s13615_s0 + $0x12c] sm:$0xe] }
 0x3e8   :  { %v7801_v19 = vmax.f32 %v7737_v5, 0.0  ;;  %v7543_v17 = vpop.f32.mrf.mxu0  ;;  %v4604_v10 = vsel %vm10019_vm7, %v4602_v60, %v4603_v23 }
 0x3e9   :  { %v6763_v61 = vpop.f32.mrf.mxu3  ;;  %v4698_v57 = vunpack.c.l.b16 %v4604_v10  ;;  %v8650_v10 = vld [vmem:[%s13615_s0 + $0x15c] sm:$0xe] }
 0x3ea   :  { %v4935_v28 = vpop.f32.mrf.mxu1  ;;  %v7864_v22 = vadd.f32 %v7863_v48, %v7801_v19  ;;  %v6890_v3 = vadd.f32 %v6763_v61, %v5594_v34  ;;  %v7203_v48 = vsel %vm10019_vm7, %v9124_v36, %v7202_v16  ;;  %v7206_v34 = vsel %vm10019_vm7, %v7204_v6, %v7205_v8  ;;  %v13734_v6 = vld [vmem:[#allocation9_spill] sm:$0xff] }
 0x3eb   :  { %v12931_v9 = vadd.f32 %v4935_v28, %v13733_v44  ;;  %9155 = vmatmul.msk.bf16.gmra.mxu0 %vm993_vm4, %v7367_v49  ;;  %v12951_v16 = vrot.slane %v6246_v37, 5  ;;  %v6584_v49 = vpack.c.b16 %v6541_v29, %v6540_v62  ;;  %v7324_v15 = vunpack.c.l.b16 %v7203_v48 }
 0x3ec   :  { %v7670_v27 = vadd.f32 %v7543_v17, %v6890_v3  ;;  %v5469_v50 = vpop.f32.mrf.mxu2  ;;  %v7325_v19 = vunpack.c.l.b16 %v7206_v34  ;;  %v6256_v37 = vshll.u32 %v12956_v53, 16 }
 0x3ed   :  { %8712 = vmatmul.msk.bf16.gmra.mxu1 %vm993_vm4, %v4735_v14  ;;  %v5595_v38 = vadd.f32 %v5469_v50, %v12645_v46  ;;  %v4601_v14 = vsel %vm10019_vm7, %v8681_v31, %v4600_v58  ;;  %v6253_v0 = vor.u32 %v6252_v18, %v12951_v16  ;;  %v9010_v58 = vld [vmem:[%s13615_s0 + $0x138] sm:$0xf]  ;;  %v6244_v50 = vrot.slane %v6243_v21, 4 }
 0x3ee   :  { %v7738_v63 = vadd.f32 %v12728_v55, %v7670_v27  ;;  %v4697_v51 = vunpack.c.l.b16 %v4601_v14  ;;  %v7368_v27 = vpack.c.b16 %v7325_v19, %v7324_v15  ;;  %v6258_v41 = vrot.slane %v6256_v37, 5  ;;  %v9300_v14 = vld [vmem:[%s13617_s3 + $0x20] sm:$0xff] }
 0x3ef   :  { %v6254_v48 = vrot.slane %v6253_v0, 4  ;;  %8001 = vmatpush.bf16.msrb.mxu1 %v9300_v14 }
 0x3f0   :  { %v7802_v46 = vmax.f32 %v7738_v63, 0.0  ;;  %v7545_v5 = vpop.f32.mrf.mxu0  ;;  %v4736_v32 = vpack.c.b16 %v4698_v57, %v4697_v51  ;;  %v9285_v57 = vld [vmem:[%s13615_s0 + $0x12c] sm:$0xff] }
 0x3f1   :  { %v6765_v36 = vpop.f32.mrf.mxu3  ;;  %8932 = vmatmul.msk.bf16.gmra.mxu2 %vm993_vm4, %v9284_v7  ;;  %v6264_v7 = vshll.u32 %v9010_v58, 16  ;;  %v6259_v21 = vsel %vm9489_vm3, %v6254_v48, %v6258_v41 }
 0x3f2   :  { %v4937_v17 = vpop.f32.mrf.mxu1  ;;  %v7865_v61 = vadd.f32 %v7864_v22, %v7802_v46  ;;  %v6891_v28 = vadd.f32 %v6765_v36, %v5595_v38  ;;  %v12975_v22 = vld [vmem:[%s13615_s0 + $0x13c] sm:$0xf]  ;;  %v7209_v38 = vrot.slane %v12918_v52, 5  ;;  %v9125_v46 = vrot.slane %v9093_v12, 9  ;;  %v13735_v52 = vld [vmem:[#allocation11_spill] sm:$0xff] }
 0x3f3   :  { %v12964_v8 = vadd.f32 %v4937_v17, %v13734_v6  ;;  %v6270_v23 = vshll.u32 %v12975_v22, 16  ;;  %v6274_v63 = vshrl.u32 %v12975_v22, 16  ;;  %v6249_v17 = vsel %vm9489_vm3, %v6244_v50, %v12951_v16 }
 0x3f4   :  { %v7671_v3 = vadd.f32 %v7545_v5, %v6891_v28  ;;  %v5472_v44 = vpop.f32.mrf.mxu2  ;;  %v9419_v5 = vld [vmem:[%s13615_s0 + $0x160] sm:$0xf]  ;;  %v6266_v6 = vrot.slane %v6264_v7, 5  ;;  %v7211_v16 = vrot.slane %v7209_v38, 4  ;;  %v6542_v50 = vunpack.c.l.b16 %v6249_v17  ;;  %v9013_v17 = vld [vmem:[%s13615_s0 + $0x144] sm:$0xf] }
 0x3f5   :  { %v5596_v62 = vadd.f32 %v5472_v44, %v12670_v33  ;;  %v6261_v33 = vshrl.u32 %v9010_v58, 16  ;;  %v6276_v44 = vrot.slane %v6274_v63, 4  ;;  %v8682_v58 = vrot.slane %v8650_v10, 9 }
 0x3f6   :  { %v7739_v29 = vadd.f32 %v12728_v55, %v7671_v3  ;;  %9060 = vmatmul.msk.bf16.gmra.mxu3 %vm993_vm4, %v6584_v49  ;;  %v4607_v49 = vrot.slane %v9419_v5, 5  ;;  %v13005_v3 = vrot.slane %v6270_v23, 5  ;;  %v6543_v48 = vunpack.c.l.b16 %v6259_v21 }
 0x3f7   :  { %v6263_v28 = vrot.slane %v6261_v33, 4  ;;  %v7210_v7 = vsel %vm10019_vm7, %v9125_v46, %v7209_v38  ;;  %v13736_v46 = vld [vmem:[#allocation13_spill] sm:$0xff] }
 0x3f8   :  { %v7803_v31 = vmax.f32 %v7739_v29, 0.0  ;;  %v7548_v60 = vpop.f32.mrf.mxu0  ;;  %v4608_v63 = vsel %vm10019_vm7, %v8682_v58, %v4607_v49  ;;  %v6585_v38 = vpack.c.b16 %v6543_v48, %v6542_v50  ;;  %v7326_v14 = vunpack.c.l.b16 %v7210_v7 }
 0x3f9   :  { %v6768_v34 = vpop.f32.mrf.mxu3  ;;  %v6267_v12 = vor.u32 %v6266_v6, %v6263_v28  ;;  %v4699_v28 = vunpack.c.l.b16 %v4608_v63  ;;  %v8651_v63 = vld [vmem:[%s13615_s0 + $0x168] sm:$0xe] }
 0x3fa   :  { %v4940_v18 = vpop.f32.mrf.mxu1  ;;  %v7866_v15 = vadd.f32 %v7865_v61, %v7803_v31  ;;  %v6892_v36 = vadd.f32 %v6768_v34, %v5596_v62  ;;  %v7212_v61 = vrot.slane %v12956_v53, 5  ;;  %v4609_v62 = vrot.slane %v4607_v49, 4  ;;  %v9420_v53 = vld [vmem:[%s13615_s0 + $0x164] sm:$0x1] }
 0x3fb   :  { %v12989_v19 = vadd.f32 %v4940_v18, %v13735_v52  ;;  %9156 = vmatmul.msk.bf16.gmra.mxu0 %vm993_vm4, %v7368_v27  ;;  %v4610_v29 = vrot.slane %v9420_v53, 5  ;;  %v6268_v21 = vrot.slane %v6267_v12, 4 }
 0x3fc   :  { %v7672_v0 = vadd.f32 %v7548_v60, %v6892_v36  ;;  %v5474_v37 = vpop.f32.mrf.mxu2  ;;  %v7213_v31 = vsel %vm10019_vm7, %v7211_v16, %v7212_v61  ;;  %v6277_v60 = vor.u32 %v6276_v44, %v13005_v3 }
 0x3fd   :  { %8713 = vmatmul.msk.bf16.gmra.mxu1 %vm993_vm4, %v4736_v32  ;;  %v5597_v51 = vadd.f32 %v5474_v37, %v12710_v54  ;;  %v13018_v54 = vld [vmem:[%s13615_s0 + $0x140] sm:$0x1]  ;;  %v4611_v34 = vsel %vm10019_vm7, %v4609_v62, %v4610_v29  ;;  %v7327_v10 = vunpack.c.l.b16 %v7213_v31  ;;  %v13043_v37 = vld [vmem:[%s13615_s0 + $0x148] sm:$0xf]  ;;  %v6288_v62 = vshll.u32 %v9013_v17, 16 }
 0x3fe   :  { %v7740_v27 = vadd.f32 %v12728_v55, %v7672_v0  ;;  %v6280_v18 = vshll.u32 %v13018_v54, 16  ;;  %v4700_v6 = vunpack.c.l.b16 %v4611_v34  ;;  %v6278_v0 = vrot.slane %v6277_v60, 4 }
 0x3ff   :  { %v7369_v53 = vpack.c.b16 %v7327_v10, %v7326_v14  ;;  %v6298_v50 = vshrl.u32 %v13043_v37, 16 }
 0x400   :  { %v7804_v41 = vmax.f32 %v7740_v27, 0.0  ;;  %v7550_v33 = vpop.f32.mrf.mxu0  ;;  %v6282_v44 = vrot.slane %v6280_v18, 5  ;;  %v6294_v27 = vshll.u32 %v13043_v37, 16 }
 0x401   :  { %v6770_v32 = vpop.f32.mrf.mxu3  ;;  %8933 = vmatmul.msk.bf16.gmra.mxu2 %vm993_vm4, %v9285_v57  ;;  %v6285_v57 = vshrl.u32 %v9013_v17, 16  ;;  %v6300_v14 = vrot.slane %v6298_v50, 4 }
 0x402   :  { %v4942_v23 = vpop.f32.mrf.mxu1  ;;  %v7867_v5 = vadd.f32 %v7866_v15, %v7804_v41  ;;  %v6893_v36 = vadd.f32 %v6770_v32, %v5597_v51  ;;  %v9094_v15 = vld [vmem:[%s13615_s0 + $0x138] sm:$0xe]  ;;  %v7216_v51 = vrot.slane %v12975_v22, 5  ;;  %v4737_v41 = vpack.c.b16 %v4700_v6, %v4699_v28  ;;  %v9421_v22 = vld [vmem:[%s13615_s0 + $0x16c] sm:$0xf] }
 0x403   :  { %v13032_v52 = vadd.f32 %v4942_v23, %v13736_v46  ;;  %v9126_v29 = vrot.slane %v9094_v15, 9  ;;  %v6283_v60 = vsel %vm9489_vm3, %v6278_v0, %v6282_v44  ;;  %v7219_v23 = vrot.slane %v13018_v54, 5  ;;  %v13076_v28 = vld [vmem:[%s13615_s0 + $0x14c] sm:$0x1]  ;;  %v9286_v0 = vld [vmem:[%s13615_s0 + $0x138] sm:$0xff] }
 0x404   :  { %v7673_v61 = vadd.f32 %v7550_v33, %v6893_v36  ;;  %v5477_v49 = vpop.f32.mrf.mxu2  ;;  %v4614_v33 = vrot.slane %v9421_v22, 5  ;;  %v7218_v32 = vrot.slane %v7216_v51, 4  ;;  %v6287_v34 = vrot.slane %v6285_v57, 4  ;;  %v13737_v36 = vld [vmem:[#allocation15_spill] sm:$0xff] }
 0x405   :  { %v5598_v16 = vadd.f32 %v5477_v49, %v12747_v47  ;;  %v6273_v47 = vsel %vm9489_vm3, %v6268_v21, %v13005_v3  ;;  %v6290_v46 = vrot.slane %v6288_v62, 5  ;;  %v13067_v17 = vrot.slane %v6294_v27, 5 }
 0x406   :  { %v7741_v58 = vadd.f32 %v12728_v55, %v7673_v61  ;;  %9061 = vmatmul.msk.bf16.gmra.mxu3 %vm993_vm4, %v6585_v38  ;;  %v8683_v54 = vrot.slane %v8651_v63, 9  ;;  %v4616_v61 = vrot.slane %v4614_v33, 4  ;;  %v6544_v15 = vunpack.c.l.b16 %v6273_v47 }
 0x407   :  { %v7217_v57 = vsel %vm10019_vm7, %v9126_v29, %v7216_v51  ;;  %v6291_v62 = vor.u32 %v6290_v46, %v6287_v34  ;;  %v6304_v27 = vshll.u32 %v13076_v28, 16 }
 0x408   :  { %v7805_v48 = vmax.f32 %v7741_v58, 0.0  ;;  %v7553_v12 = vpop.f32.mrf.mxu0  ;;  %v7220_v58 = vsel %vm10019_vm7, %v7218_v32, %v7219_v23  ;;  %v7328_v29 = vunpack.c.l.b16 %v7217_v57 }
 0x409   :  { %v6773_v7 = vpop.f32.mrf.mxu3  ;;  %v7329_v47 = vunpack.c.l.b16 %v7220_v58  ;;  %v6292_v23 = vrot.slane %v6291_v62, 4 }
 0x40a   :  { %v4945_v31 = vpop.f32.mrf.mxu1  ;;  %v7868_v18 = vadd.f32 %v7867_v5, %v7805_v48  ;;  %v6894_v3 = vadd.f32 %v6773_v7, %v5598_v16  ;;  %v9422_v5 = vld [vmem:[%s13615_s0 + $0x170] sm:$0x1]  ;;  %v6545_v16 = vunpack.c.l.b16 %v6283_v60  ;;  %v4615_v48 = vsel %vm10019_vm7, %v8683_v54, %v4614_v33  ;;  %v13738_v60 = vld [vmem:[#allocation17_spill] sm:$0xff] }
 0x40b   :  { %v13064_v38 = vadd.f32 %v4945_v31, %v13737_v36  ;;  %9157 = vmatmul.msk.bf16.gmra.mxu0 %vm993_vm4, %v7369_v53  ;;  %v4617_v49 = vrot.slane %v9422_v5, 5  ;;  %v6301_v53 = vor.u32 %v6300_v14, %v13067_v17  ;;  %v4701_v63 = vunpack.c.l.b16 %v4615_v48  ;;  %v9095_v36 = vld [vmem:[%s13615_s0 + $0x144] sm:$0xe] }
 0x40c   :  { %v7674_v10 = vadd.f32 %v7553_v12, %v6894_v3  ;;  %v5479_v21 = vpop.f32.mrf.mxu2  ;;  %v6586_v51 = vpack.c.b16 %v6545_v16, %v6544_v15  ;;  %v6306_v33 = vrot.slane %v6304_v27, 5  ;;  %v9127_v5 = vrot.slane %v9095_v36, 9  ;;  %v9423_v27 = vld [vmem:[%s13615_s0 + $0x178] sm:$0xf] }
 0x40d   :  { %8714 = vmatmul.msk.bf16.gmra.mxu1 %vm993_vm4, %v4737_v41  ;;  %v5599_v6 = vadd.f32 %v5479_v21, %v12781_v1  ;;  %v4618_v12 = vsel %vm10019_vm7, %v4616_v61, %v4617_v49  ;;  %v6302_v3 = vrot.slane %v6301_v53, 4  ;;  %v7370_v61 = vpack.c.b16 %v7329_v47, %v7328_v29  ;;  %v13110_v49 = vld [vmem:[%s13615_s0 + $0x154] sm:$0xf] }
 0x40e   :  { %v7742_v44 = vadd.f32 %v12728_v55, %v7674_v10  ;;  %v4702_v34 = vunpack.c.l.b16 %v4618_v12  ;;  %v7223_v10 = vrot.slane %v13043_v37, 5  ;;  %v13739_v12 = vld [vmem:[#allocation19_spill] sm:$0xff] }
 0x40f   :  { %v6307_v37 = vsel %vm9489_vm3, %v6302_v3, %v6306_v33  ;;  %v9287_v3 = vld [vmem:[%s13615_s0 + $0x144] sm:$0xff] }
 0x410   :  { %v7806_v1 = vmax.f32 %v7742_v44, 0.0  ;;  %v7555_v50 = vpop.f32.mrf.mxu0  ;;  %v7225_v44 = vrot.slane %v7223_v10, 4  ;;  %v6547_v47 = vunpack.c.l.b16 %v6307_v37 }
 0x411   :  { %v6775_v41 = vpop.f32.mrf.mxu3  ;;  %8934 = vmatmul.msk.bf16.gmra.mxu2 %vm993_vm4, %v9286_v0  ;;  %v7226_v0 = vrot.slane %v13076_v28, 5  ;;  %v8652_v28 = vld [vmem:[%s13615_s0 + $0x174] sm:$0xe] }
 0x412   :  { %v4947_v22 = vpop.f32.mrf.mxu1  ;;  %v7869_v7 = vadd.f32 %v7868_v18, %v7806_v1  ;;  %v6895_v31 = vadd.f32 %v6775_v41, %v5599_v6  ;;  %v9016_v18 = vld [vmem:[%s13615_s0 + $0x150] sm:$0xf]  ;;  %v4738_v6 = vpack.c.b16 %v4702_v34, %v4701_v63  ;;  %v4621_v1 = vrot.slane %v9423_v27, 5 }
 0x413   :  { %v13095_v32 = vadd.f32 %v4947_v22, %v13738_v60  ;;  %v6309_v57 = vshrl.u32 %v9016_v18, 16  ;;  %v6312_v58 = vshll.u32 %v9016_v18, 16  ;;  %v7224_v22 = vsel %vm10019_vm7, %v9127_v5, %v7223_v10 }
 0x414   :  { %v7675_v46 = vadd.f32 %v7555_v50, %v6895_v31  ;;  %v5482_v14 = vpop.f32.mrf.mxu2  ;;  %v6318_v50 = vshll.u32 %v13110_v49, 16  ;;  %v8684_v33 = vrot.slane %v8652_v28, 9  ;;  %v4623_v36 = vrot.slane %v4621_v1, 4 }
 0x415   :  { %v5600_v21 = vadd.f32 %v5482_v14, %v12810_v59  ;;  %v6297_v59 = vsel %vm9489_vm3, %v6292_v23, %v13067_v17  ;;  %v6311_v23 = vrot.slane %v6309_v57, 4  ;;  %v6314_v63 = vrot.slane %v6312_v58, 5 }
 0x416   :  { %v7743_v54 = vadd.f32 %v12728_v55, %v7675_v46  ;;  %9062 = vmatmul.msk.bf16.gmra.mxu3 %vm993_vm4, %v6586_v51  ;;  %v6322_v51 = vshrl.u32 %v13110_v49, 16  ;;  %v6546_v29 = vunpack.c.l.b16 %v6297_v59  ;;  %v9424_v46 = vld [vmem:[%s13615_s0 + $0x17c] sm:$0x1]  ;;  %v13148_v18 = vrot.slane %v6318_v50, 5 }
 0x417   :  { %v4624_v14 = vrot.slane %v9424_v46, 5 }
 0x418   :  { %v7807_v15 = vmax.f32 %v7743_v54, 0.0  ;;  %v7558_v16 = vpop.f32.mrf.mxu0  ;;  %v6587_v5 = vpack.c.b16 %v6547_v47, %v6546_v29  ;;  %v13166_v29 = vld [vmem:[%s13615_s0 + $0x160] sm:$0xf] }
 0x419   :  { %v6778_v62 = vpop.f32.mrf.mxu3 }
 0x41a   :  { %v4950_v53 = vpop.f32.mrf.mxu1  ;;  %v7870_v17 = vadd.f32 %v7869_v7, %v7807_v15  ;;  %v6896_v48 = vadd.f32 %v6778_v62, %v5600_v21  ;;  %v7227_v7 = vsel %vm10019_vm7, %v7225_v44, %v7226_v0  ;;  %v13146_v21 = vld [vmem:[%s13615_s0 + $0x158] sm:$0x1]  ;;  %v4622_v15 = vsel %vm10019_vm7, %v8684_v33, %v4621_v1  ;;  %v9019_v1 = vld [vmem:[%s13615_s0 + $0x15c] sm:$0xf] }
 0x41b   :  { %v13123_v41 = vadd.f32 %v4950_v53, %v13739_v12  ;;  %9158 = vmatmul.msk.bf16.gmra.mxu0 %vm993_vm4, %v7370_v61  ;;  %v7331_v59 = vunpack.c.l.b16 %v7227_v7  ;;  %v6315_v44 = vor.u32 %v6314_v63, %v6311_v23  ;;  %v6328_v57 = vshll.u32 %v13146_v21, 16  ;;  %v13740_v53 = vld [vmem:[#allocation21_spill] sm:$0xff]  ;;  %v9096_v23 = vld [vmem:[%s13615_s0 + $0x150] sm:$0xe] }
 0x41c   :  { %v7676_v31 = vadd.f32 %v7558_v16, %v6896_v48  ;;  %v5484_v60 = vpop.f32.mrf.mxu2  ;;  %v4625_v16 = vsel %vm10019_vm7, %v4623_v36, %v4624_v14  ;;  %v4703_v28 = vunpack.c.l.b16 %v4622_v15  ;;  %v6333_v63 = vshrl.u32 %v9019_v1, 16  ;;  %v8653_v15 = vld [vmem:[%s13615_s0 + $0x180] sm:$0xe] }
 0x41d   :  { %8715 = vmatmul.msk.bf16.gmra.mxu1 %vm993_vm4, %v4738_v6  ;;  %v5601_v34 = vadd.f32 %v5484_v60, %v12841_v11  ;;  %v6324_v11 = vrot.slane %v6322_v51, 4  ;;  %v7330_v6 = vunpack.c.l.b16 %v7224_v22  ;;  %v4704_v51 = vunpack.c.l.b16 %v4625_v16 }
 0x41e   :  { %v7744_v10 = vadd.f32 %v12728_v55, %v7676_v31  ;;  %v6316_v47 = vrot.slane %v6315_v44, 4  ;;  %v6330_v7 = vrot.slane %v6328_v57, 5  ;;  %v6346_v33 = vshrl.u32 %v13166_v29, 16 }
 0x41f   :  { %v6325_v50 = vor.u32 %v6324_v11, %v13148_v18  ;;  %v7371_v31 = vpack.c.b16 %v7331_v59, %v7330_v6  ;;  %v4739_v46 = vpack.c.b16 %v4704_v51, %v4703_v28  ;;  %v9288_v28 = vld [vmem:[%s13615_s0 + $0x150] sm:$0xff]  ;;  %v8685_v51 = vrot.slane %v8653_v15, 9 }
 0x420   :  { %v7808_v54 = vmax.f32 %v7744_v10, 0.0  ;;  %v7560_v61 = vpop.f32.mrf.mxu0  ;;  %v6321_v11 = vsel %vm9489_vm3, %v6316_v47, %v13148_v18  ;;  %v6335_v18 = vrot.slane %v6333_v63, 4  ;;  %v6348_v57 = vrot.slane %v6346_v33, 4 }
 0x421   :  { %v6780_v37 = vpop.f32.mrf.mxu3  ;;  %8935 = vmatmul.msk.bf16.gmra.mxu2 %vm993_vm4, %v9287_v3  ;;  %v6326_v60 = vrot.slane %v6325_v50, 4  ;;  %v6342_v3 = vshll.u32 %v13166_v29, 16  ;;  %v7233_v50 = vrot.slane %v13146_v21, 5  ;;  %v13211_v21 = vld [vmem:[%s13616_s2] ss:$0 sm:$0xff] }
 0x422   :  { %v4952_v0 = vpop.f32.mrf.mxu1  ;;  %v7871_v58 = vadd.f32 %v7870_v17, %v7808_v54  ;;  %v6897_v62 = vadd.f32 %v6780_v37, %v5601_v34  ;;  %v6336_v34 = vshll.u32 %v9019_v1, 16  ;;  %v9128_v54 = vrot.slane %v9096_v23, 9  ;;  %v13741_v37 = vld [vmem:[#allocation23_spill] sm:$0xff] }
 0x423   :  { %v13157_v27 = vadd.f32 %v4952_v0, %v13740_v53  ;;  %v13192_v44 = vrot.slane %v6342_v3, 5 }
 0x424   :  { %v7677_v48 = vadd.f32 %v7560_v61, %v6897_v62  ;;  %v5487_v12 = vpop.f32.mrf.mxu2  ;;  %v9425_v61 = vld [vmem:[%s13615_s0 + $0x184] sm:$0xf]  ;;  %v6338_v16 = vrot.slane %v6336_v34, 5 }
 0x425   :  { %v5602_v17 = vadd.f32 %v5487_v12, %v12868_v40  ;;  %v6349_v23 = vor.u32 %v6348_v57, %v13192_v44 }
 0x426   :  { %v7745_v22 = vadd.f32 %v12728_v55, %v7677_v48  ;;  %9063 = vmatmul.msk.bf16.gmra.mxu3 %vm993_vm4, %v6587_v5  ;;  %v7230_v55 = vrot.slane %v13110_v49, 5  ;;  %v4628_v5 = vrot.slane %v9425_v61, 5  ;;  %v6331_v49 = vsel %vm9489_vm3, %v6326_v60, %v6330_v7  ;;  %v13199_v48 = vld [vmem:[%s13615_s0 + $0x164] sm:$0x1] }
 0x427   :  { %v6339_v7 = vor.u32 %v6338_v16, %v6335_v18  ;;  %v6352_v63 = vshll.u32 %v13199_v48, 16 }
 0x428   :  { %v7809_v36 = vmax.f32 %v7745_v22, 0.0  ;;  %v7563_v40 = vpop.f32.mrf.mxu0  ;;  %v7232_v53 = vrot.slane %v7230_v55, 4  ;;  %v4630_v1 = vrot.slane %v4628_v5, 4  ;;  %v7231_v60 = vsel %vm10019_vm7, %v9128_v54, %v7230_v55 }
 0x429   :  { %v6783_v14 = vpop.f32.mrf.mxu3  ;;  %v7332_v54 = vunpack.c.l.b16 %v7231_v60 }
 0x42a   :  { %v4955_v10 = vpop.f32.mrf.mxu1  ;;  %v7872_v6 = vadd.f32 %v7871_v58, %v7809_v36  ;;  %v6898_v59 = vadd.f32 %v6783_v14, %v5602_v17  ;;  %v9426_v17 = vld [vmem:[%s13615_s0 + $0x188] sm:$0x1]  ;;  %v7234_v33 = vsel %vm10019_vm7, %v7232_v53, %v7233_v50  ;;  %v13240_v50 = vld [vmem:[%s13615_s0 + $0x16c] sm:$0xf] }
 0x42b   :  { %v13184_v0 = vadd.f32 %v4955_v10, %v13741_v37  ;;  %9159 = vmatmul.msk.bf16.gmra.mxu0 %vm993_vm4, %v7371_v31  ;;  %v4631_v47 = vrot.slane %v9426_v17, 5  ;;  %v6548_v31 = vunpack.c.l.b16 %v6321_v11  ;;  %v7333_v61 = vunpack.c.l.b16 %v7234_v33  ;;  %v9022_v53 = vld [vmem:[%s13615_s0 + $0x168] sm:$0xf] }
 0x42c   :  { %v7678_v62 = vadd.f32 %v7563_v40, %v6898_v59  ;;  %v5489_v58 = vpop.f32.mrf.mxu2  ;;  %v6340_v59 = vrot.slane %v6339_v7, 4  ;;  %v6350_v37 = vrot.slane %v6349_v23, 4  ;;  %v6357_v23 = vshrl.u32 %v9022_v53, 16 }
 0x42d   :  { %8716 = vmatmul.msk.bf16.gmra.mxu1 %vm993_vm4, %v4739_v46  ;;  %v5603_v12 = vadd.f32 %v5489_v58, %v12903_v56  ;;  %v6549_v56 = vunpack.c.l.b16 %v6331_v49  ;;  %v4629_v46 = vsel %vm10019_vm7, %v8685_v51, %v4628_v5  ;;  %v4632_v55 = vsel %vm10019_vm7, %v4630_v1, %v4631_v47 }
 0x42e   :  { %v7746_v22 = vadd.f32 %v13211_v21, %v7678_v62  ;;  %v6354_v49 = vrot.slane %v6352_v63, 5  ;;  %v4705_v16 = vunpack.c.l.b16 %v4629_v46  ;;  %v4706_v57 = vunpack.c.l.b16 %v4632_v55  ;;  %v9097_v62 = vld [vmem:[%s13615_s0 + $0x15c] sm:$0xe] }
 0x42f   :  { %v6588_v11 = vpack.c.b16 %v6549_v56, %v6548_v31  ;;  %v7237_v58 = vrot.slane %v13166_v29, 5  ;;  %v7240_v47 = vrot.slane %v13199_v48, 5  ;;  %v6360_v63 = vshll.u32 %v9022_v53, 16  ;;  %v13742_v48 = vld [vmem:[#allocation27_spill] sm:$0xff]  ;;  %v9299_v46 = vld [vmem:[%s13617_s3 + $0x18] sm:$0xff] }
 0x430   :  { %v7810_v34 = vmax.f32 %v7746_v22, 0.0  ;;  %v7565_v3 = vpop.f32.mrf.mxu0  ;;  %v6355_v29 = vsel %vm9489_vm3, %v6350_v37, %v6354_v49  ;;  %v4740_v17 = vpack.c.b16 %v4706_v57, %v4705_v16  ;;  %v9428_v22 = vld [vmem:[%s13615_s0 + $0x190] sm:$0xf]  ;;  %v6370_v55 = vshrl.u32 %v13240_v50, 16  ;;  %8002 = vmatpush.bf16.msrb.mxu1 %v9299_v46 }
 0x431   :  { %v6785_v36 = vpop.f32.mrf.mxu3  ;;  %8936 = vmatmul.msk.bf16.gmra.mxu2 %vm993_vm4, %v9288_v28  ;;  %v9129_v28 = vrot.slane %v9097_v62, 9  ;;  %v4635_v31 = vrot.slane %v9428_v22, 5  ;;  %v7239_v7 = vrot.slane %v7237_v58, 4  ;;  %v6359_v16 = vrot.slane %v6357_v23, 4 }
 0x432   :  { %v13221_v40 = vpop.f32.mrf.mxu1  ;;  %v7873_v14 = vadd.f32 %v7872_v6, %v7810_v34  ;;  %v6899_v10 = vadd.f32 %v6785_v36, %v5603_v12  ;;  %v7372_v12 = vpack.c.b16 %v7333_v61, %v7332_v54  ;;  %v6366_v34 = vshll.u32 %v13240_v50, 16 }
 0x433   :  { %v6362_v57 = vrot.slane %v6360_v63, 5  ;;  %v7238_v62 = vsel %vm10019_vm7, %v9129_v28, %v7237_v58  ;;  %v6372_v53 = vrot.slane %v6370_v55, 4 }
 0x434   :  { %v7679_v15 = vadd.f32 %v7565_v3, %v6899_v10  ;;  %v5492_v18 = vpop.f32.mrf.mxu2  ;;  %v7334_v28 = vunpack.c.l.b16 %v7238_v62 }
 0x435   :  { %v5604_v5 = vadd.f32 %v5492_v18, %v12931_v9  ;;  %v6345_v9 = vsel %vm9489_vm3, %v6340_v59, %v13192_v44  ;;  %v8654_v44 = vld [vmem:[%s13615_s0 + $0x18c] sm:$0xe]  ;;  %v9429_v59 = vld [vmem:[%s13615_s0 + $0x194] sm:$0x1]  ;;  %v6551_v18 = vunpack.c.l.b16 %v6355_v29 }
 0x436   :  { %v7747_v6 = vadd.f32 %v13211_v21, %v7679_v15  ;;  %9064 = vmatmul.msk.bf16.gmra.mxu3 %vm993_vm4, %v6588_v11  ;;  %v6550_v10 = vunpack.c.l.b16 %v6345_v9  ;;  %v8686_v61 = vrot.slane %v8654_v44, 9  ;;  %v4638_v37 = vrot.slane %v9429_v59, 5  ;;  %v9289_v15 = vld [vmem:[%s13615_s0 + $0x15c] sm:$0xff]  ;;  %v9098_v59 = vld [vmem:[%s13615_s0 + $0x168] sm:$0xe] }
 0x438   :  { %v7811_v51 = vmax.f32 %v7747_v6, 0.0  ;;  %v7568_v1 = vpop.f32.mrf.mxu0  ;;  %v13277_v6 = vrot.slane %v6366_v34, 5  ;;  %v4636_v9 = vsel %vm10019_vm7, %v8686_v61, %v4635_v31  ;;  %v6589_v58 = vpack.c.b16 %v6551_v18, %v6550_v10  ;;  %v13302_v10 = vld [vmem:[%s13615_s0 + $0x178] sm:$0xf] }
 0x439   :  { %v6788_v56 = vpop.f32.mrf.mxu3  ;;  %v6390_v62 = vshll.u32 %v13302_v10, 16 }
 0x43a   :  { %v4960_v60 = vpop.f32.mrf.mxu1  ;;  %v13255_v3 = vadd.f32 %v7873_v14, %v7811_v51  ;;  %v6900_v33 = vadd.f32 %v6788_v56, %v5604_v5  ;;  %v4637_v14 = vrot.slane %v4635_v31, 4  ;;  %v7241_v5 = vsel %vm10019_vm7, %v7239_v7, %v7240_v47  ;;  %v13743_v56 = vld [vmem:[#allocation29_spill] sm:$0xff] }
 0x43b   :  { %v13258_v36 = vadd.f32 %v4960_v60, %v13742_v48  ;;  %9160 = vmatmul.msk.bf16.gmra.mxu0 %vm993_vm4, %v7372_v12  ;;  %v6363_v47 = vor.u32 %v6362_v57, %v6359_v16  ;;  %v6373_v7 = vor.u32 %v6372_v53, %v13277_v6  ;;  %v4707_v31 = vunpack.c.l.b16 %v4636_v9  ;;  %v9025_v48 = vld [vmem:[%s13615_s0 + $0x174] sm:$0xf] }
 0x43c   :  { %v7680_v11 = vadd.f32 %v7568_v1, %v6900_v33  ;;  %v5494_v54 = vpop.f32.mrf.mxu2  ;;  %v4639_v29 = vsel %vm10019_vm7, %v4637_v14, %v4638_v37  ;;  %v7335_v1 = vunpack.c.l.b16 %v7241_v5  ;;  %v6394_v5 = vshrl.u32 %v13302_v10, 16 }
 0x43d   :  { %8717 = vmatmul.msk.bf16.gmra.mxu1 %vm993_vm4, %v4740_v17  ;;  %v5605_v49 = vadd.f32 %v5494_v54, %v12964_v8  ;;  %v13282_v8 = vld [vmem:[%s13615_s0 + $0x170] sm:$0x1]  ;;  %v4708_v23 = vunpack.c.l.b16 %v4639_v29  ;;  %v6364_v61 = vrot.slane %v6363_v47, 4  ;;  %v9130_v9 = vrot.slane %v9098_v59, 9  ;;  %v9430_v29 = vld [vmem:[%s13615_s0 + $0x19c] sm:$0xf] }
 0x43e   :  { %v6376_v44 = vshll.u32 %v13282_v8, 16  ;;  %v7748_v63 = vadd.f32 %v13211_v21, %v7680_v11  ;;  %v7373_v46 = vpack.c.b16 %v7335_v1, %v7334_v28  ;;  %v6374_v11 = vrot.slane %v6373_v7, 4 }
 0x43f   :  { %v4741_v37 = vpack.c.b16 %v4708_v23, %v4707_v31  ;;  %v6369_v1 = vsel %vm9489_vm3, %v6364_v61, %v13277_v6  ;;  %v13329_v23 = vrot.slane %v6390_v62, 5  ;;  %v6396_v6 = vrot.slane %v6394_v5, 4 }
 0x440   :  { %v7570_v12 = vpop.f32.mrf.mxu0  ;;  %v6378_v14 = vrot.slane %v6376_v44, 5  ;;  %v7812_v18 = vmax.f32 %v7748_v63, 0.0  ;;  %v6552_v61 = vunpack.c.l.b16 %v6369_v1 }
 0x441   :  { %v6790_v51 = vpop.f32.mrf.mxu3  ;;  %8937 = vmatmul.msk.bf16.gmra.mxu2 %vm993_vm4, %v9289_v15  ;;  %v6384_v15 = vshll.u32 %v9025_v48, 16  ;;  %v6397_v5 = vor.u32 %v6396_v6, %v13329_v23 }
 0x442   :  { %v4962_v17 = vpop.f32.mrf.mxu1  ;;  %v6901_v22 = vadd.f32 %v6790_v51, %v5605_v49  ;;  %v7244_v49 = vrot.slane %v13240_v50, 5  ;;  %v4642_v51 = vrot.slane %v9430_v29, 5  ;;  %v6379_v47 = vsel %vm9489_vm3, %v6374_v11, %v6378_v14 }
 0x443   :  { %v13290_v60 = vadd.f32 %v4962_v17, %v13743_v56  ;;  %v8655_v17 = vld [vmem:[%s13615_s0 + $0x198] sm:$0xe]  ;;  %v7247_v56 = vrot.slane %v13282_v8, 5  ;;  %v6386_v31 = vrot.slane %v6384_v15, 5  ;;  %v9431_v8 = vld [vmem:[%s13615_s0 + $0x1a0] sm:$0x1] }
 0x444   :  { %v7681_v34 = vadd.f32 %v7570_v12, %v6901_v22  ;;  %v5497_v33 = vpop.f32.mrf.mxu2  ;;  %v7246_v22 = vrot.slane %v7244_v49, 4  ;;  %v7245_v59 = vsel %vm10019_vm7, %v9130_v9, %v7244_v49  ;;  %v13744_v9 = vld [vmem:[#allocation31_spill] sm:$0xff] }
 0x445   :  { %v5606_v55 = vadd.f32 %v5497_v33, %v12989_v19  ;;  %v6381_v19 = vshrl.u32 %v9025_v48, 16  ;;  %v8687_v33 = vrot.slane %v8655_v17, 9  ;;  %v4644_v48 = vrot.slane %v4642_v51, 4 }
 0x446   :  { %v7749_v54 = vadd.f32 %v13211_v21, %v7681_v34  ;;  %9065 = vmatmul.msk.bf16.gmra.mxu3 %vm993_vm4, %v6589_v58  ;;  %v9290_v34 = vld [vmem:[%s13615_s0 + $0x168] sm:$0xff] }
 0x447   :  { %v6383_v7 = vrot.slane %v6381_v19, 4 }
 0x448   :  { %v7813_v16 = vmax.f32 %v7749_v54, 0.0  ;;  %v7573_v57 = vpop.f32.mrf.mxu0 }
 0x449   :  { %v6793_v53 = vpop.f32.mrf.mxu3  ;;  %v6387_v62 = vor.u32 %v6386_v31, %v6383_v7  ;;  %v9099_v31 = vld [vmem:[%s13615_s0 + $0x174] sm:$0xe] }
 0x44a   :  { %v4965_v12 = vpop.f32.mrf.mxu1  ;;  %v7881_v58 = vadd.f32 %v7813_v16, %v7812_v18  ;;  %v6902_v28 = vadd.f32 %v6793_v53, %v5606_v55  ;;  %v13341_v55 = vld [vmem:[%s13615_s0 + $0x17c] sm:$0x1]  ;;  %v4643_v16 = vsel %vm10019_vm7, %v8687_v33, %v4642_v51 }
 0x44b   :  { %v13316_v50 = vadd.f32 %v4965_v12, %v11612_v39  ;;  %9161 = vmatmul.msk.bf16.gmra.mxu0 %vm993_vm4, %v7373_v46  ;;  %v4645_v46 = vrot.slane %v9431_v8, 5  ;;  %v6400_v19 = vshll.u32 %v13341_v55, 16  ;;  %v13371_v8 = vld [vmem:[%s13615_s0 + $0x184] sm:$0xf] }
 0x44c   :  { %v7682_v44 = vadd.f32 %v7573_v57, %v6902_v28  ;;  %v5499_v39 = vpop.f32.mrf.mxu2  ;;  %v7336_v28 = vunpack.c.l.b16 %v7245_v59 }
 0x44d   :  { %8718 = vmatmul.msk.bf16.gmra.mxu1 %vm993_vm4, %v4741_v37  ;;  %v5607_v63 = vadd.f32 %v5499_v39, %v13032_v52  ;;  %v6553_v52 = vunpack.c.l.b16 %v6379_v47  ;;  %v7248_v37 = vsel %vm10019_vm7, %v7246_v22, %v7247_v56  ;;  %v4646_v57 = vsel %vm10019_vm7, %v4644_v48, %v4645_v46 }
 0x44e   :  { %v7750_v54 = vadd.f32 %v13211_v21, %v7682_v44  ;;  %v7337_v1 = vunpack.c.l.b16 %v7248_v37  ;;  %v4709_v22 = vunpack.c.l.b16 %v4643_v16  ;;  %v4710_v56 = vunpack.c.l.b16 %v4646_v57 }
 0x44f   :  { %v6590_v12 = vpack.c.b16 %v6553_v52, %v6552_v61  ;;  %v6388_v44 = vrot.slane %v6387_v62, 4  ;;  %v6398_v39 = vrot.slane %v6397_v5, 4  ;;  %v7251_v48 = vrot.slane %v13302_v10, 5 }
 0x450   :  { %v7814_v11 = vmax.f32 %v7750_v54, 0.0  ;;  %v7575_v14 = vpop.f32.mrf.mxu0  ;;  %v4742_v33 = vpack.c.b16 %v4710_v56, %v4709_v22  ;;  %v9131_v37 = vrot.slane %v9099_v31, 9  ;;  %v6418_v16 = vshrl.u32 %v13371_v8, 16 }
 0x451   :  { %v6795_v15 = vpop.f32.mrf.mxu3  ;;  %8938 = vmatmul.msk.bf16.gmra.mxu2 %vm993_vm4, %v9290_v34  ;;  %v6402_v34 = vrot.slane %v6400_v19, 5  ;;  %v6393_v61 = vsel %vm9489_vm3, %v6388_v44, %v13329_v23  ;;  %v7253_v23 = vrot.slane %v7251_v48, 4  ;;  %v7254_v5 = vrot.slane %v13341_v55, 5  ;;  %v9030_v55 = vld [vmem:[%s13615_s0 + $0x188] sm:$0x1] }
 0x452   :  { %v4967_v18 = vpop.f32.mrf.mxu1  ;;  %v7882_v53 = vadd.f32 %v7881_v58, %v7814_v11  ;;  %v6903_v49 = vadd.f32 %v6795_v15, %v5607_v63  ;;  %v7374_v58 = vpack.c.b16 %v7337_v1, %v7336_v28  ;;  %v7252_v1 = vsel %vm10019_vm7, %v9131_v37, %v7251_v48 }
 0x453   :  { %v13356_v29 = vadd.f32 %v4967_v18, %v13744_v9  ;;  %v6403_v52 = vsel %vm9489_vm3, %v6398_v39, %v6402_v34  ;;  %v6414_v18 = vshll.u32 %v13371_v8, 16  ;;  %v6420_v56 = vrot.slane %v6418_v16, 4 }
 0x454   :  { %v7683_v17 = vadd.f32 %v7575_v14, %v6903_v49  ;;  %v5502_v47 = vpop.f32.mrf.mxu2  ;;  %v13745_v14 = vld [vmem:[#allocation2_spill] sm:$0xff]  ;;  %v9291_v49 = vld [vmem:[%s13615_s0 + $0x174] sm:$0xff]  ;;  %v6555_v9 = vunpack.c.l.b16 %v6403_v52 }
 0x455   :  { %v5608_v51 = vadd.f32 %v5502_v47, %v13064_v38  ;;  %v9028_v38 = vld [vmem:[%s13615_s0 + $0x180] sm:$0xf]  ;;  %v6416_v22 = vrot.slane %v6414_v18, 5 }
 0x456   :  { %v7751_v7 = vadd.f32 %v13211_v21, %v7683_v17  ;;  %9066 = vmatmul.msk.bf16.gmra.mxu3 %vm993_vm4, %v6590_v12  ;;  %v6405_v19 = vshrl.u32 %v9028_v38, 16  ;;  %v6408_v15 = vshll.u32 %v9028_v38, 16  ;;  %v6554_v12 = vunpack.c.l.b16 %v6393_v61 }
 0x458   :  { %v7815_v6 = vmax.f32 %v7751_v7, 0.0  ;;  %v7578_v63 = vpop.f32.mrf.mxu0  ;;  %v6407_v17 = vrot.slane %v6405_v19, 4  ;;  %v6410_v47 = vrot.slane %v6408_v15, 5  ;;  %v6591_v34 = vpack.c.b16 %v6555_v9, %v6554_v12 }
 0x459   :  { %v6798_v46 = vpop.f32.mrf.mxu3 }
 0x45a   :  { %v4970_v54 = vpop.f32.mrf.mxu1  ;;  %v7883_v11 = vadd.f32 %v7882_v53, %v7815_v6  ;;  %v6904_v10 = vadd.f32 %v6798_v46, %v5608_v51  ;;  %v7338_v6 = vunpack.c.l.b16 %v7252_v1  ;;  %v6411_v38 = vor.u32 %v6410_v47, %v6407_v17  ;;  %v13747_v47 = vld [vmem:[#allocation4_spill] sm:$0xff] }
 0x45b   :  { %v13379_v59 = vadd.f32 %v4970_v54, %v13745_v14  ;;  %9162 = vmatmul.msk.bf16.gmra.mxu0 %vm993_vm4, %v7374_v58  ;;  %v6421_v46 = vor.u32 %v6420_v56, %v6416_v22  ;;  %v6424_v54 = vshll.u32 %v9030_v55, 16  ;;  %v9031_v14 = vld [vmem:[%s13615_s0 + $0x18c] sm:$0xf] }
 0x45c   :  { %v7684_v57 = vadd.f32 %v7578_v63, %v6904_v10  ;;  %v5504_v62 = vpop.f32.mrf.mxu2  ;;  %v13746_v63 = vld [vmem:[#allocation3_spill] sm:$0xff]  ;;  %v6412_v15 = vrot.slane %v6411_v38, 4 }
 0x45d   :  { %8719 = vmatmul.msk.bf16.gmra.mxu1 %vm993_vm4, %v4742_v33  ;;  %v5609_v53 = vadd.f32 %v5504_v62, %v13095_v32  ;;  %v7255_v32 = vsel %vm10019_vm7, %v7253_v23, %v7254_v5  ;;  %v6422_v18 = vrot.slane %v6421_v46, 4  ;;  %v6426_v16 = vrot.slane %v6424_v54, 5 }
 0x45e   :  { %v7752_v28 = vadd.f32 %v13211_v21, %v7684_v57  ;;  %v7339_v48 = vunpack.c.l.b16 %v7255_v32  ;;  %v7258_v23 = vrot.slane %v13371_v8, 5  ;;  %v6429_v5 = vshrl.u32 %v9031_v14, 16 }
 0x45f   :  { %v6427_v8 = vsel %vm9489_vm3, %v6422_v18, %v6426_v16  ;;  %v7261_v32 = vrot.slane %v9030_v55, 5  ;;  %v13435_v55 = vld [vmem:[%s13615_s0 + $0x194] sm:$0x1] }
 0x460   :  { %v7816_v51 = vmax.f32 %v7752_v28, 0.0  ;;  %v7580_v44 = vpop.f32.mrf.mxu0  ;;  %v7375_v19 = vpack.c.b16 %v7339_v48, %v7338_v6  ;;  %v6557_v54 = vunpack.c.l.b16 %v6427_v8  ;;  %v6448_v18 = vshll.u32 %v13435_v55, 16 }
 0x461   :  { %v6800_v39 = vpop.f32.mrf.mxu3  ;;  %8939 = vmatmul.msk.bf16.gmra.mxu2 %vm993_vm4, %v9291_v49 }
 0x462   :  { %v4972_v7 = vpop.f32.mrf.mxu1  ;;  %v7884_v58 = vadd.f32 %v7883_v11, %v7816_v51  ;;  %v6905_v31 = vadd.f32 %v6800_v39, %v5609_v53  ;;  %v13411_v11 = vld [vmem:[%s13615_s0 + $0x190] sm:$0xf]  ;;  %v6432_v53 = vshll.u32 %v9031_v14, 16  ;;  %v6417_v51 = vsel %vm9489_vm3, %v6412_v15, %v6416_v22 }
 0x463   :  { %v13400_v33 = vadd.f32 %v4972_v7, %v13746_v63  ;;  %v6438_v9 = vshll.u32 %v13411_v11, 16  ;;  %v6442_v28 = vshrl.u32 %v13411_v11, 16  ;;  %v7260_v7 = vrot.slane %v7258_v23, 4  ;;  %v9292_v63 = vld [vmem:[%s13615_s0 + $0x180] sm:$0xff] }
 0x464   :  { %v7685_v61 = vadd.f32 %v7580_v44, %v6905_v31  ;;  %v5507_v52 = vpop.f32.mrf.mxu2  ;;  %v6431_v31 = vrot.slane %v6429_v5, 4  ;;  %v6434_v6 = vrot.slane %v6432_v53, 5  ;;  %v6556_v46 = vunpack.c.l.b16 %v6417_v51 }
 0x465   :  { %v5610_v10 = vadd.f32 %v5507_v52, %v13123_v41  ;;  %v9100_v41 = vld [vmem:[%s13615_s0 + $0x180] sm:$0xe]  ;;  %v6440_v48 = vrot.slane %v6438_v9, 5  ;;  %v6444_v38 = vrot.slane %v6442_v28, 4 }
 0x466   :  { %v7753_v37 = vadd.f32 %v13211_v21, %v7685_v61  ;;  %9067 = vmatmul.msk.bf16.gmra.mxu3 %vm993_vm4, %v6591_v34  ;;  %v9132_v44 = vrot.slane %v9100_v41, 9  ;;  %v6435_v14 = vor.u32 %v6434_v6, %v6431_v31 }
 0x467   :  { %v6445_v15 = vor.u32 %v6444_v38, %v6440_v48 }
 0x468   :  { %v7817_v57 = vmax.f32 %v7753_v37, 0.0  ;;  %v7583_v62 = vpop.f32.mrf.mxu0 }
 0x469   :  { %v6803_v49 = vpop.f32.mrf.mxu3  ;;  %v6446_v28 = vrot.slane %v6445_v15, 4  ;;  %v9293_v15 = vld [vmem:[%s13615_s0 + $0x18c] sm:$0xff] }
 0x46a   :  { %v4975_v12 = vpop.f32.mrf.mxu1  ;;  %v7885_v1 = vadd.f32 %v7884_v58, %v7817_v57  ;;  %v6906_v17 = vadd.f32 %v6803_v49, %v5610_v10  ;;  %v7262_v10 = vsel %vm10019_vm7, %v7260_v7, %v7261_v32  ;;  %v9101_v32 = vld [vmem:[%s13615_s0 + $0x18c] sm:$0xe] }
 0x46b   :  { %v13420_v56 = vadd.f32 %v4975_v12, %v13747_v47  ;;  %9163 = vmatmul.msk.bf16.gmra.mxu0 %vm993_vm4, %v7375_v19  ;;  %v7341_v53 = vunpack.c.l.b16 %v7262_v10  ;;  %v6436_v12 = vrot.slane %v6435_v14, 4 }
 0x46c   :  { %v7686_v39 = vadd.f32 %v7583_v62, %v6906_v17  ;;  %v5509_v34 = vpop.f32.mrf.mxu2  ;;  %v6592_v62 = vpack.c.b16 %v6557_v54, %v6556_v46  ;;  %v6450_v17 = vrot.slane %v6448_v18, 5  ;;  %v13748_v54 = vld [vmem:[#allocation25_spill] sm:$0xff] }
 0x46d   :  { %v5611_v58 = vadd.f32 %v5509_v34, %v13157_v27  ;;  %v7259_v27 = vsel %vm10019_vm7, %v9132_v44, %v7258_v23 }
 0x46e   :  { %v7754_v22 = vadd.f32 %v13211_v21, %v7686_v39  ;;  %v7340_v5 = vunpack.c.l.b16 %v7259_v27  ;;  %v7265_v39 = vrot.slane %v13411_v11, 5  ;;  %v6451_v31 = vsel %vm9489_vm3, %v6446_v28, %v6450_v17 }
 0x46f   :  { %v6559_v18 = vunpack.c.l.b16 %v6451_v31 }
 0x470   :  { %v7818_v61 = vmax.f32 %v7754_v22, 0.0  ;;  %v7585_v52 = vpop.f32.mrf.mxu0  ;;  %v7376_v51 = vpack.c.b16 %v7341_v53, %v7340_v5 }
 0x471   :  { %v6805_v37 = vpop.f32.mrf.mxu3  ;;  %8940 = vmatmul.msk.bf16.gmra.mxu2 %vm993_vm4, %v9292_v63 }
 0x472   :  { %v4977_v19 = vpop.f32.mrf.mxu1  ;;  %v7886_v16 = vadd.f32 %v7885_v1, %v7818_v61  ;;  %v6907_v57 = vadd.f32 %v6805_v37, %v5611_v58  ;;  %v9034_v1 = vld [vmem:[%s13615_s0 + $0x198] sm:$0xf]  ;;  %v5056_v61 = vadd.f32 %v13221_v40, %v13748_v54  ;;  %v7267_v37 = vrot.slane %v7265_v39, 4 }
 0x473   :  { %v13444_v41 = vadd.f32 %v4977_v19, %v11775_v13  ;;  %v13455_v13 = vld [vmem:[%s13615_s0 + $0x19c] sm:$0xf]  ;;  %v6453_v6 = vshrl.u32 %v9034_v1, 16  ;;  %v6456_v58 = vshll.u32 %v9034_v1, 16  ;;  %v7268_v19 = vrot.slane %v13435_v55, 5 }
 0x474   :  { %v7687_v23 = vadd.f32 %v7585_v52, %v6907_v57  ;;  %v5512_v49 = vpop.f32.mrf.mxu2  ;;  %v6462_v63 = vshll.u32 %v13455_v13, 16  ;;  %v6466_v11 = vshrl.u32 %v13455_v13, 16  ;;  %v9133_v52 = vrot.slane %v9101_v32, 9 }
 0x475   :  { %v5612_v9 = vadd.f32 %v5512_v49, %v13184_v0  ;;  %v6441_v0 = vsel %vm9489_vm3, %v6436_v12, %v6440_v48  ;;  %v9298_v48 = vld [vmem:[%s13617_s3 + $0x10] sm:$0xff]  ;;  %v6458_v57 = vrot.slane %v6456_v58, 5  ;;  %v7269_v12 = vsel %vm10019_vm7, %v7267_v37, %v7268_v19 }
 0x476   :  { %v7755_v47 = vadd.f32 %v13211_v21, %v7687_v23  ;;  %9068 = vmatmul.msk.bf16.gmra.mxu3 %vm993_vm4, %v6592_v62  ;;  %v6558_v14 = vunpack.c.l.b16 %v6441_v0  ;;  %8003 = vmatpush.bf16.msrb.mxu1 %v9298_v48  ;;  %v13484_v62 = vld [vmem:[%s13615_s0 + $0x1a0] sm:$0x1]  ;;  %v6464_v5 = vrot.slane %v6462_v63, 5  ;;  %v6468_v53 = vrot.slane %v6466_v11, 4 }
 0x477   :  { %v7266_v49 = vsel %vm10019_vm7, %v9133_v52, %v7265_v39  ;;  %v6472_v1 = vshll.u32 %v13484_v62, 16  ;;  %v7272_v52 = vrot.slane %v13455_v13, 5 }
 0x478   :  { %v7819_v8 = vmax.f32 %v7755_v47, 0.0  ;;  %v7588_v44 = vpop.f32.mrf.mxu0  ;;  %v6593_v28 = vpack.c.b16 %v6559_v18, %v6558_v14  ;;  %v6469_v32 = vor.u32 %v6468_v53, %v6464_v5  ;;  %v13750_v18 = vld [vmem:[#allocation6_spill] sm:$0xff] }
 0x479   :  { %v6808_v34 = vpop.f32.mrf.mxu3  ;;  %v6474_v48 = vrot.slane %v6472_v1, 5 }
 0x47a   :  { %v4980_v7 = vpop.f32.mrf.mxu1  ;;  %v7887_v38 = vadd.f32 %v7886_v16, %v7819_v8  ;;  %v6908_v22 = vadd.f32 %v6808_v34, %v5612_v9  ;;  %v6455_v16 = vrot.slane %v6453_v6, 4  ;;  %v7342_v34 = vunpack.c.l.b16 %v7266_v49 }
 0x47b   :  { %v13467_v46 = vadd.f32 %v4980_v7, %v11804_v24  ;;  %9164 = vmatmul.msk.bf16.gmra.mxu0 %vm993_vm4, %v7376_v51  ;;  %v7343_v7 = vunpack.c.l.b16 %v7269_v12  ;;  %v7275_v12 = vrot.slane %v13484_v62, 5  ;;  %v9039_v62 = vld [vmem:[%s13615_s0 + $0x1ac] sm:$0x1] }
 0x47c   :  { %v7688_v27 = vadd.f32 %v7588_v44, %v6908_v22  ;;  %v5514_v10 = vpop.f32.mrf.mxu2  ;;  %v6459_v47 = vor.u32 %v6458_v57, %v6455_v16  ;;  %v13749_v44 = vld [vmem:[#allocation5_spill] sm:$0xff]  ;;  %v6470_v22 = vrot.slane %v6469_v32, 4 }
 0x47d   :  { %v5613_v24 = vadd.f32 %v5514_v10, %v5056_v61  ;;  %v7377_v11 = vpack.c.b16 %v7343_v7, %v7342_v34 }
 0x47e   :  { %v7756_v40 = vadd.f32 %v13211_v21, %v7688_v27  ;;  %v6460_v58 = vrot.slane %v6459_v47, 4  ;;  %v13508_v27 = vld [vmem:[%s13615_s0 + $0x1a8] sm:$0xf]  ;;  %v6475_v13 = vsel %vm9489_vm3, %v6470_v22, %v6474_v48 }
 0x47f   :  { %v6486_v53 = vshll.u32 %v13508_v27, 16  ;;  %v6561_v1 = vunpack.c.l.b16 %v6475_v13  ;;  %v7279_v13 = vrot.slane %v13508_v27, 5 }
 0x480   :  { %v7820_v23 = vmax.f32 %v7756_v40, 0.0  ;;  %v7590_v55 = vpop.f32.mrf.mxu0  ;;  %v6465_v37 = vsel %vm9489_vm3, %v6460_v58, %v6464_v5  ;;  %v7274_v5 = vrot.slane %v7272_v52, 4 }
 0x481   :  { %v6810_v9 = vpop.f32.mrf.mxu3  ;;  %8941 = vmatmul.msk.bf16.gmra.mxu2 %vm993_vm4, %v9293_v15  ;;  %v6560_v47 = vunpack.c.l.b16 %v6465_v37  ;;  %v6488_v32 = vrot.slane %v6486_v53, 5 }
 0x482   :  { %v4982_v17 = vpop.f32.mrf.mxu1  ;;  %v7888_v51 = vadd.f32 %v7887_v38, %v7820_v23  ;;  %v6909_v8 = vadd.f32 %v6810_v9, %v5613_v24  ;;  %v9102_v38 = vld [vmem:[%s13615_s0 + $0x198] sm:$0xe]  ;;  %v6490_v23 = vshrl.u32 %v13508_v27, 16  ;;  %v7282_v27 = vrot.slane %v9039_v62, 5 }
 0x483   :  { %v13493_v0 = vadd.f32 %v4982_v17, %v13749_v44  ;;  %v9134_v19 = vrot.slane %v9102_v38, 9 }
 0x484   :  { %v7689_v39 = vadd.f32 %v7590_v55, %v6909_v8  ;;  %v5517_v31 = vpop.f32.mrf.mxu2  ;;  %v6492_v34 = vrot.slane %v6490_v23, 4 }
 0x485   :  { %v5614_v6 = vadd.f32 %v5517_v31, %v13258_v36  ;;  %v9037_v36 = vld [vmem:[%s13615_s0 + $0x1a4] sm:$0xf] }
 0x486   :  { %v7757_v63 = vadd.f32 %v13211_v21, %v7689_v39  ;;  %9069 = vmatmul.msk.bf16.gmra.mxu3 %vm993_vm4, %v6593_v28  ;;  %v6477_v57 = vshrl.u32 %v9037_v36, 16  ;;  %v6480_v40 = vshll.u32 %v9037_v36, 16  ;;  %v9294_v28 = vld [vmem:[%s13615_s0 + $0x198] sm:$0xff] }
 0x488   :  { %v7821_v54 = vmax.f32 %v7757_v63, 0.0  ;;  %v7593_v61 = vpop.f32.mrf.mxu0  ;;  %v6479_v8 = vrot.slane %v6477_v57, 4  ;;  %v6482_v44 = vrot.slane %v6480_v40, 5  ;;  %v6594_v63 = vpack.c.b16 %v6561_v1, %v6560_v47  ;;  %v9103_v40 = vld [vmem:[%s13615_s0 + $0x1a4] sm:$0xe] }
 0x489   :  { %v6813_v10 = vpop.f32.mrf.mxu3 }
 0x48a   :  { %v4985_v14 = vpop.f32.mrf.mxu1  ;;  %v7889_v24 = vadd.f32 %v7888_v51, %v7821_v54  ;;  %v6910_v15 = vadd.f32 %v6813_v10, %v5614_v6  ;;  %v7273_v51 = vsel %vm10019_vm7, %v9134_v19, %v7272_v52  ;;  %v6483_v38 = vor.u32 %v6482_v44, %v6479_v8 }
 0x48b   :  { %v13513_v16 = vadd.f32 %v4985_v14, %v13750_v18  ;;  %9165 = vmatmul.msk.bf16.gmra.mxu0 %vm993_vm4, %v7377_v11  ;;  %v7344_v22 = vunpack.c.l.b16 %v7273_v51  ;;  %v6493_v11 = vor.u32 %v6492_v34, %v6488_v32  ;;  %v6496_v54 = vshll.u32 %v9039_v62, 16 }
 0x48c   :  { %v7690_v55 = vadd.f32 %v7593_v61, %v6910_v15  ;;  %v5519_v49 = vpop.f32.mrf.mxu2  ;;  %v6484_v37 = vrot.slane %v6483_v38, 4 }
 0x48d   :  { %v5615_v9 = vadd.f32 %v5519_v49, %v13290_v60  ;;  %v7276_v60 = vsel %vm10019_vm7, %v7274_v5, %v7275_v12  ;;  %v6494_v19 = vrot.slane %v6493_v11, 4  ;;  %v6498_v15 = vrot.slane %v6496_v54, 5 }
 0x48e   :  { %v7758_v17 = vadd.f32 %v13211_v21, %v7690_v55  ;;  %v7345_v48 = vunpack.c.l.b16 %v7276_v60  ;;  %v9135_v12 = vrot.slane %v9103_v40, 9 }
 0x48f   :  { %v6499_v55 = vsel %vm9489_vm3, %v6494_v19, %v6498_v15 }
 0x490   :  { %v7822_v7 = vmax.f32 %v7758_v17, 0.0  ;;  %v7595_v39 = vpop.f32.mrf.mxu0  ;;  %v7378_v14 = vpack.c.b16 %v7345_v48, %v7344_v22  ;;  %v9295_v17 = vld [vmem:[%s13615_s0 + $0x1a4] sm:$0xff]  ;;  %v6563_v51 = vunpack.c.l.b16 %v6499_v55  ;;  %v7280_v25 = vsel %vm10019_vm7, %v9135_v12, %v7279_v13 }
 0x491   :  { %v6815_v31 = vpop.f32.mrf.mxu3  ;;  %8942 = vmatmul.msk.bf16.gmra.mxu2 %vm993_vm4, %v9294_v28  ;;  %v7346_v60 = vunpack.c.l.b16 %v7280_v25 }
 0x492   :  { %v7890_v6 = vadd.f32 %v7889_v24, %v7822_v7  ;;  %v6911_v58 = vadd.f32 %v6815_v31, %v5615_v9  ;;  %v7281_v9 = vrot.slane %v7279_v13, 4 }
 0x494   :  { %v7691_v61 = vadd.f32 %v7595_v39, %v6911_v58  ;;  %v5522_v52 = vpop.f32.mrf.mxu2 }
 0x495   :  { %v5616_v36 = vadd.f32 %v5522_v52, %v13316_v50  ;;  %v6489_v50 = vsel %vm9489_vm3, %v6484_v37, %v6488_v32  ;;  %v7283_v32 = vsel %vm10019_vm7, %v7281_v9, %v7282_v27 }
 0x496   :  { %v7759_v10 = vadd.f32 %v13211_v21, %v7691_v61  ;;  %9070 = vmatmul.msk.bf16.gmra.mxu3 %vm993_vm4, %v6594_v63  ;;  %v6562_v1 = vunpack.c.l.b16 %v6489_v50  ;;  %v7347_v62 = vunpack.c.l.b16 %v7283_v32 }
 0x498   :  { %v7823_v24 = vmax.f32 %v7759_v10, 0.0  ;;  %v7598_v18 = vpop.f32.mrf.mxu0  ;;  %v6595_v39 = vpack.c.b16 %v6563_v51, %v6562_v1  ;;  %v7379_v22 = vpack.c.b16 %v7347_v62, %v7346_v60  ;;  %v4987_v1 = vpop.f32.mrf.mxu1 }
 0x499   :  { %v6818_v57 = vpop.f32.mrf.mxu3 }
 0x49a   :  { %v7891_v53 = vadd.f32 %v7890_v6, %v7823_v24  ;;  %v6912_v23 = vadd.f32 %v6818_v57, %v5616_v36 }
 0x49b   :  { %9166 = vmatmul.msk.bf16.gmra.mxu0 %vm993_vm4, %v7378_v14 }
 0x49c   :  { %v7692_v49 = vadd.f32 %v7598_v18, %v6912_v23  ;;  %v5524_v5 = vpop.f32.mrf.mxu2 }
 0x49d   :  { %v5617_v28 = vadd.f32 %v5524_v5, %v13356_v29 }
 0x49e   :  { %v7760_v47 = vadd.f32 %v13211_v21, %v7692_v49 }
 0x4a0   :  { %v7824_v8 = vmax.f32 %v7760_v47, 0.0  ;;  %v7600_v44 = vpop.f32.mrf.mxu0 }
 0x4a1   :  { %v6820_v34 = vpop.f32.mrf.mxu3  ;;  %8943 = vmatmul.msk.bf16.gmra.mxu2 %vm993_vm4, %v9295_v17 }
 0x4a2   :  { %v7892_v29 = vadd.f32 %v7891_v53, %v7824_v8  ;;  %v6913_v7 = vadd.f32 %v6820_v34, %v5617_v28 }
 0x4a4   :  { %v7693_v31 = vadd.f32 %v7600_v44, %v6913_v7  ;;  %v5527_v6 = vpop.f32.mrf.mxu2 }
 0x4a5   :  { %v5618_v58 = vadd.f32 %v5527_v6, %v13379_v59 }
 0x4a6   :  { %v7761_v63 = vadd.f32 %v13211_v21, %v7693_v31  ;;  %9071 = vmatmul.msk.bf16.gmra.mxu3 %vm993_vm4, %v6595_v39  ;;  %v4990_v31 = vpop.f32.mrf.mxu1 }
 0x4a8   :  { %v7825_v48 = vmax.f32 %v7761_v63, 0.0  ;;  %v7603_v26 = vpop.f32.mrf.mxu0 }
 0x4a9   :  { %v6823_v38 = vpop.f32.mrf.mxu3 }
 0x4aa   :  { %v7893_v11 = vadd.f32 %v7892_v29, %v7825_v48  ;;  %v6914_v54 = vadd.f32 %v6823_v38, %v5618_v58 }
 0x4ab   :  { %9167 = vmatmul.msk.bf16.gmra.mxu0 %vm993_vm4, %v7379_v22 }
 0x4ac   :  { %v7694_v61 = vadd.f32 %v7603_v26, %v6914_v54  ;;  %v5529_v52 = vpop.f32.mrf.mxu2 }
 0x4ad   :  { %v5619_v36 = vadd.f32 %v5529_v52, %v13400_v33  ;;  %v9297_v33 = vld [vmem:[%s13617_s3 + $0x8] sm:$0xff] }
 0x4ae   :  { %v7762_v10 = vadd.f32 %v13211_v21, %v7694_v61  ;;  %8004 = vmatpush.bf16.msrb.mxu1 %v9297_v33  ;;  %v4992_v61 = vpop.f32.mrf.mxu1 }
 0x4b0   :  { %v7826_v14 = vmax.f32 %v7762_v10, 0.0  ;;  %v7605_v59 = vpop.f32.mrf.mxu0 }
 0x4b1   :  { %v6825_v37 = vpop.f32.mrf.mxu3 }
 0x4b2   :  { %v7894_v19 = vadd.f32 %v7893_v11, %v7826_v14  ;;  %v6915_v15 = vadd.f32 %v6825_v37, %v5619_v36 }
 0x4b4   :  { %v7695_v24 = vadd.f32 %v7605_v59, %v6915_v15  ;;  %v5532_v18 = vpop.f32.mrf.mxu2  ;;  %v5068_v59 = vadd.f32 %v4987_v1, %v11898_v42  ;;  %v13579_v15 = vld [vmem:[%s13616_s2] ss:$0 sm:$0xff] }
 0x4b5   :  { %v5620_v13 = vadd.f32 %v5532_v18, %v13420_v56 }
 0x4b6   :  { %v7763_v57 = vadd.f32 %v13211_v21, %v7695_v24 }
 0x4b8   :  { %v7827_v40 = vmax.f32 %v7763_v57, 0.0  ;;  %v7608_v53 = vpop.f32.mrf.mxu0  ;;  %v4995_v57 = vpop.f32.mrf.mxu1 }
 0x4b9   :  { %v6828_v23 = vpop.f32.mrf.mxu3 }
 0x4ba   :  { %v7895_v50 = vadd.f32 %v7894_v19, %v7827_v40  ;;  %v6916_v55 = vadd.f32 %v6828_v23, %v5620_v13  ;;  %v5069_v23 = vadd.f32 %v4990_v31, %v11929_v2 }
 0x4bc   :  { %v7696_v49 = vadd.f32 %v7608_v53, %v6916_v55  ;;  %v5534_v5 = vpop.f32.mrf.mxu2 }
 0x4bd   :  { %v5621_v12 = vadd.f32 %v5534_v5, %v13444_v41 }
 0x4be   :  { %v7764_v9 = vadd.f32 %v13211_v21, %v7696_v49 }
 0x4c0   :  { %v7828_v27 = vmax.f32 %v7764_v9, 0.0  ;;  %v7610_v56 = vpop.f32.mrf.mxu0 }
 0x4c1   :  { %v6830_v28 = vpop.f32.mrf.mxu3 }
 0x4c2   :  { %v7896_v17 = vadd.f32 %v7895_v50, %v7828_v27  ;;  %v6917_v47 = vadd.f32 %v6830_v28, %v5621_v12 }
 0x4c4   :  { %v7697_v51 = vadd.f32 %v7610_v56, %v6917_v47  ;;  %v5537_v8 = vpop.f32.mrf.mxu2  ;;  %v13751_v56 = vld [vmem:[#allocation8_spill] sm:$0xff] }
 0x4c5   :  { %v5622_v44 = vadd.f32 %v5537_v8, %v13467_v46  ;;  %v5070_v28 = vadd.f32 %v4992_v61, %v13751_v56 }
 0x4c6   :  { %v7765_v25 = vadd.f32 %v13211_v21, %v7697_v51 }
 0x4c8   :  { %v7829_v32 = vmax.f32 %v7765_v25, 0.0  ;;  %v7613_v34 = vpop.f32.mrf.mxu0 }
 0x4c9   :  { %v6833_v29 = vpop.f32.mrf.mxu3 }
 0x4ca   :  { %v7897_v7 = vadd.f32 %v7896_v17, %v7829_v32  ;;  %v6918_v39 = vadd.f32 %v6833_v29, %v5622_v44  ;;  %v4997_v17 = vpop.f32.mrf.mxu1  ;;  %v13752_v29 = vld [vmem:[#allocation10_spill] sm:$0xff] }
 0x4cc   :  { %v7698_v41 = vadd.f32 %v7613_v34, %v6918_v39  ;;  %v5539_v60 = vpop.f32.mrf.mxu2 }
 0x4cd   :  { %v5623_v62 = vadd.f32 %v5539_v60, %v13493_v0 }
 0x4ce   :  { %v7766_v6 = vadd.f32 %v13211_v21, %v7698_v41 }
 0x4d0   :  { %v7830_v58 = vmax.f32 %v7766_v6, 0.0  ;;  %v7615_v63 = vpop.f32.mrf.mxu0 }
 0x4d1   :  { %v6835_v22 = vpop.f32.mrf.mxu3 }
 0x4d2   :  { %v7898_v48 = vadd.f32 %v7897_v7, %v7830_v58  ;;  %v6919_v26 = vadd.f32 %v6835_v22, %v5623_v62  ;;  %v5071_v7 = vadd.f32 %v4995_v57, %v13752_v29  ;;  %v5000_v60 = vpop.f32.mrf.mxu1 }
 0x4d4   :  { %v7699_v46 = vadd.f32 %v7615_v63, %v6919_v26  ;;  %v5542_v38 = vpop.f32.mrf.mxu2  ;;  %v9296_v26 = vld [vmem:[%s13617_s3] sm:$0xff] }
 0x4d5   :  { %v5624_v11 = vadd.f32 %v5542_v38, %v13513_v16  ;;  %8005 = vmatpush.bf16.msrb.mxu1 %v9296_v26 }
 0x4d6   :  { %v7767_v54 = vadd.f32 %v13211_v21, %v7699_v46  ;;  %v5072_v46 = vadd.f32 %v4997_v17, %v12024_v43 }
 0x4d8   :  { %v7831_v52 = vmax.f32 %v7767_v54, 0.0  ;;  %v7618_v36 = vpop.f32.mrf.mxu0 }
 0x4d9   :  { %v6838_v10 = vpop.f32.mrf.mxu3 }
 0x4da   :  { %v7899_v14 = vadd.f32 %v7898_v48, %v7831_v52  ;;  %v6920_v0 = vadd.f32 %v6838_v10, %v5624_v11  ;;  %v5002_v52 = vpop.f32.mrf.mxu1 }
 0x4dc   :  { %v7700_v37 = vadd.f32 %v7618_v36, %v6920_v0  ;;  %v5544_v19 = vpop.f32.mrf.mxu2 }
 0x4dd   :  { %v5625_v16 = vadd.f32 %v5544_v19, %v5068_v59 }
 0x4de   :  { %v7768_v24 = vadd.f32 %v13579_v15, %v7700_v37  ;;  %v5073_v37 = vadd.f32 %v5000_v60, %v12055_v20 }
 0x4e0   :  { %v7832_v18 = vmax.f32 %v7768_v24, 0.0  ;;  %v7620_v21 = vpop.f32.mrf.mxu0 }
 0x4e1   :  { %v6840_v13 = vpop.f32.mrf.mxu3 }
 0x4e2   :  { %v7900_v40 = vadd.f32 %v7899_v14, %v7832_v18  ;;  %v6921_v53 = vadd.f32 %v6840_v13, %v5625_v16  ;;  %v5005_v57 = vpop.f32.mrf.mxu1 }
 0x4e4   :  { %v7701_v50 = vadd.f32 %v7620_v21, %v6921_v53  ;;  %v5547_v42 = vpop.f32.mrf.mxu2 }
 0x4e5   :  { %v5626_v33 = vadd.f32 %v5547_v42, %v5069_v23  ;;  %v5074_v23 = vadd.f32 %v5002_v52, %v12089_v4  ;;  %v13753_v52 = vld [vmem:[#allocation12_spill] sm:$0xff] }
 0x4e6   :  { %v7769_v55 = vadd.f32 %v13579_v15, %v7701_v50 }
 0x4e8   :  { %v7833_v49 = vmax.f32 %v7769_v55, 0.0  ;;  %v7623_v5 = vpop.f32.mrf.mxu0 }
 0x4e9   :  { %v6843_v12 = vpop.f32.mrf.mxu3 }
 0x4ea   :  { %v7901_v9 = vadd.f32 %v7900_v40, %v7833_v49  ;;  %v6922_v27 = vadd.f32 %v6843_v12, %v5626_v33  ;;  %v5007_v56 = vpop.f32.mrf.mxu1 }
 0x4ec   :  { %v7702_v47 = vadd.f32 %v7623_v5, %v6922_v27  ;;  %v5549_v1 = vpop.f32.mrf.mxu2  ;;  %v5075_v27 = vadd.f32 %v5005_v57, %v12118_v45 }
 0x4ed   :  { %v5627_v8 = vadd.f32 %v5549_v1, %v5070_v28 }
 0x4ee   :  { %v7770_v51 = vadd.f32 %v13579_v15, %v7702_v47 }
 0x4f0   :  { %v7834_v44 = vmax.f32 %v7770_v51, 0.0  ;;  %v7625_v2 = vpop.f32.mrf.mxu0 }
 0x4f1   :  { %v6845_v25 = vpop.f32.mrf.mxu3 }
 0x4f2   :  { %v7902_v32 = vadd.f32 %v7901_v9, %v7834_v44  ;;  %v6923_v34 = vadd.f32 %v6845_v25, %v5627_v8  ;;  %v5076_v25 = vadd.f32 %v5007_v56, %v12153_v30  ;;  %v5010_v29 = vpop.f32.mrf.mxu1 }
 0x4f4   :  { %v7703_v39 = vadd.f32 %v7625_v2, %v6923_v34  ;;  %v5552_v41 = vpop.f32.mrf.mxu2 }
 0x4f5   :  { %v5628_v31 = vadd.f32 %v5552_v41, %v5071_v7 }
 0x4f6   :  { %v7771_v62 = vadd.f32 %v13579_v15, %v7703_v39 }
 0x4f8   :  { %v7835_v6 = vmax.f32 %v7771_v62, 0.0  ;;  %v7628_v58 = vpop.f32.mrf.mxu0 }
 0x4f9   :  { %v6848_v63 = vpop.f32.mrf.mxu3 }
 0x4fa   :  { %v7903_v22 = vadd.f32 %v7902_v32, %v7835_v6  ;;  %v6924_v48 = vadd.f32 %v6848_v63, %v5628_v31  ;;  %v5077_v6 = vadd.f32 %v5010_v29, %v12183_v35  ;;  %v5012_v26 = vpop.f32.mrf.mxu1 }
 0x4fc   :  { %v7704_v38 = vadd.f32 %v7628_v58, %v6924_v48  ;;  %v5554_v11 = vpop.f32.mrf.mxu2 }
 0x4fd   :  { %v5629_v61 = vadd.f32 %v5554_v11, %v5072_v46 }
 0x4fe   :  { %v7772_v54 = vadd.f32 %v13579_v15, %v7704_v38 }
 0x500   :  { %v7836_v36 = vmax.f32 %v7772_v54, 0.0  ;;  %v7630_v10 = vpop.f32.mrf.mxu0 }
 0x501   :  { %v6850_v14 = vpop.f32.mrf.mxu3 }
 0x502   :  { %v7904_v0 = vadd.f32 %v7903_v22, %v7836_v36  ;;  %v6925_v59 = vadd.f32 %v6850_v14, %v5629_v61  ;;  %v7875_v61 = vrot.slane %v13255_v3, 4  ;;  %v5078_v36 = vadd.f32 %v5012_v26, %v13753_v52 }
 0x504   :  { %v7705_v19 = vadd.f32 %v7630_v10, %v6925_v59  ;;  %v5557_v24 = vpop.f32.mrf.mxu2  ;;  %v7876_v59 = vadd.f32 %v7875_v61, %v13255_v3 }
 0x505   :  { %v5630_v18 = vadd.f32 %v5557_v24, %v5073_v37 }
 0x506   :  { %v7773_v16 = vadd.f32 %v13579_v15, %v7705_v19 }
 0x508   :  { %v7837_v43 = vmax.f32 %v7773_v16, 0.0  ;;  %v7633_v21 = vpop.f32.mrf.mxu0 }
 0x509   :  { %v6853_v13 = vpop.f32.mrf.mxu3 }
 0x50a   :  { %v7905_v40 = vadd.f32 %v7904_v0, %v7837_v43  ;;  %v6926_v53 = vadd.f32 %v6853_v13, %v5630_v18  ;;  %v7877_v43 = vrot.slane %v7876_v59, 2 }
 0x50c   :  { %v7706_v50 = vadd.f32 %v7633_v21, %v6926_v53  ;;  %v5559_v42 = vpop.f32.mrf.mxu2  ;;  %v7878_v57 = vadd.f32 %v7877_v43, %v7876_v59 }
 0x50d   :  { %v5631_v33 = vadd.f32 %v5559_v42, %v5074_v23 }
 0x50e   :  { %v7774_v55 = vadd.f32 %v13579_v15, %v7706_v50  ;;  %v7879_v23 = vrot.slane %v7878_v57, 1 }
 0x510   :  { %v7838_v49 = vmax.f32 %v7774_v55, 0.0  ;;  %v7635_v20 = vpop.f32.mrf.mxu0  ;;  %v7880_v55 = vadd.f32 %v7879_v23, %v7878_v57 }
 0x511   :  { %v6855_v5 = vpop.f32.mrf.mxu3 }
 0x512   :  { %v7906_v12 = vadd.f32 %v7905_v40, %v7838_v49  ;;  %v6927_v9 = vadd.f32 %v6855_v5, %v5631_v33 }
 0x514   :  { %v7707_v28 = vadd.f32 %v7635_v20, %v6927_v9  ;;  %v5562_v17 = vpop.f32.mrf.mxu2  ;;  %v7918_v20 = vmul.f32 0.00390625, %v7880_v55 }
 0x515   :  { %v5632_v1 = vadd.f32 %v5562_v17, %v5075_v27 }
 0x516   :  { %v7775_v47 = vadd.f32 %v13579_v15, %v7707_v28 }
 0x518   :  { %v7839_v51 = vmax.f32 %v7775_v47, 0.0  ;;  %v7638_v4 = vpop.f32.mrf.mxu0  ;;  %v9308_v47 = vld [vmem:[%s13618_s4] ss:$0 sm:$0xff] }
 0x519   :  { %v6858_v8 = vpop.f32.mrf.mxu3 }
 0x51a   :  { %v7907_v44 = vadd.f32 %v7906_v12, %v7839_v51  ;;  %v6928_v2 = vadd.f32 %v6858_v8, %v5632_v1  ;;  %v7920_v12 = vpack.c.bf16 %v7918_v20, %v7918_v20 }
 0x51c   :  { %v7708_v32 = vadd.f32 %v7638_v4, %v6928_v2  ;;  %v5564_v34 = vpop.f32.mrf.mxu2  ;;  %v7944_v56 = vunpack.c.l.b16 %v7920_v12 }
 0x51d   :  { %v5633_v39 = vadd.f32 %v5564_v34, %v5076_v25 }
 0x51e   :  { %v7776_v7 = vadd.f32 %v13579_v15, %v7708_v32 }
 0x520   :  { %v7840_v45 = vmax.f32 %v7776_v7, 0.0  ;;  %v7640_v41 = vpop.f32.mrf.mxu0 }
 0x521   :  { %v6860_v60 = vpop.f32.mrf.mxu3 }
 0x522   :  { %v7908_v62 = vadd.f32 %v7907_v44, %v7840_v45  ;;  %v6929_v31 = vadd.f32 %v6860_v60, %v5633_v39 }
 0x524   :  { %v7709_v58 = vadd.f32 %v7640_v41, %v6929_v31  ;;  %v5567_v63 = vpop.f32.mrf.mxu2 }
 0x525   :  { %v5634_v48 = vadd.f32 %v5567_v63, %v5077_v6 }
 0x526   :  { %v7777_v22 = vadd.f32 %v13579_v15, %v7709_v58 }
 0x528   :  { %v7841_v30 = vmax.f32 %v7777_v22, 0.0  ;;  %v7643_v46 = vpop.f32.mrf.mxu0 }
 0x529   :  { %v6863_v38 = vpop.f32.mrf.mxu3 }
 0x52a   :  { %v7909_v11 = vadd.f32 %v7908_v62, %v7841_v30  ;;  %v6930_v54 = vadd.f32 %v6863_v38, %v5634_v48 }
 0x52c   :  { %v7710_v10 = vadd.f32 %v7643_v46, %v6930_v54  ;;  %v5569_v14 = vpop.f32.mrf.mxu2 }
 0x52d   :  { %v5635_v35 = vadd.f32 %v5569_v14, %v5078_v36 }
 0x52e   :  { %v7778_v0 = vadd.f32 %v13579_v15, %v7710_v10 }
 0x530   :  { %v7842_v37 = vmax.f32 %v7778_v0, 0.0  ;;  %v7645_v18 = vpop.f32.mrf.mxu0 }
 0x531   :  { %v6865_v19 = vpop.f32.mrf.mxu3 }
 0x532   :  { %v7910_v24 = vadd.f32 %v7909_v11, %v7842_v37  ;;  %v6931_v16 = vadd.f32 %v6865_v19, %v5635_v35 }
 0x534   :  { %v7711_v21 = vadd.f32 %v7645_v18, %v6931_v16 }
 0x536   :  { %v7779_v13 = vadd.f32 %v13579_v15, %v7711_v21 }
 0x538   :  { %v7843_v40 = vmax.f32 %v7779_v13, 0.0 }
 0x53a   :  { %v7911_v53 = vadd.f32 %v7910_v24, %v7843_v40 }
 0x53c   :  { %v7912_v50 = vrot.slane %v7911_v53, 4 }
 0x53e   :  { %v7913_v42 = vadd.f32 %v7912_v50, %v7911_v53 }
 0x540   :  { %v7914_v33 = vrot.slane %v7913_v42, 2 }
 0x542   :  { %v7915_v49 = vadd.f32 %v7914_v33, %v7913_v42 }
 0x544   :  { %v7916_v3 = vrot.slane %v7915_v49, 1 }
 0x546   :  { %v7917_v5 = vadd.f32 %v7916_v3, %v7915_v49 }
 0x548   :  { %v7919_v9 = vmul.f32 0.00390625, %v7917_v5 }
 0x54a   :  { %v7921_v27 = vpack.c.bf16 %v7919_v9, %v7919_v9 }
 0x54c   :  { %v7945_v28 = vunpack.c.l.b16 %v7921_v27 }
 0x54e   :  { %v7947_v17 = vsel %vm7946_vm8, %v7945_v28, %v7944_v56 }
 0x54f   :  { %v7948_v15 = vpack.c.b16 %v7947_v17, %v7947_v17 }
 0x551   :  { %8006 = vmatmul.bf16.vlgmr.msrb.gmra.mxu1 %v7948_v15 }
 0x5ce   :  { %v8007_v1 = vpop.f32.mrf.mxu1 }
 0x5cf   :  { %v8008_v51 = vadd.f32 %v9308_v47, %v8007_v1 }
 0x5d1   :  { %8011 = vst [vmem:[%s13619_s5] sm:$0x3] %v8008_v51 }
 0x5d6   :  { %v8009_v4 = vpop.f32.mrf.mxu1 }

</bundles_post_ra>
